<compile_context>
chip_gen: v7x
topology: tpu7x:2x2x1
jax: 0.10.0
libtpu: 0.0.40
codegen_flags: <defaults>
</compile_context>

<pallas_src>
import functools
import numpy as np
import jax
import jax.numpy as jnp
from jax.experimental import pallas as pl
from jax.experimental.pallas import tpu as pltpu

# ------------------------- model hyper-parameters (small) -------------------
NUM_STAGES = 4
NUM_LAYERS = 4
NUM_F_MAPS = 32
DIM = 16           # input feature dim
NUM_CLASSES = 8
BATCH = 2
T_LEN = 128        # sequence length (multiple of 128 -> lane-dense stores)


# ------------------------------ Pallas kernel --------------------------------
def mstcn_kernel(x_ref, m_ref,
                 w_in1_ref, b_in1_ref, wd1_ref, bd1_ref, w11_ref, b11_ref,
                 w_out1_ref, b_out1_ref,
                 w_inr_ref, b_inr_ref, wdr_ref, bdr_ref, w1r_ref, b1r_ref,
                 w_outr_ref, b_outr_ref,
                 out_ref, feat_ref, *, seq_len):
    """Fused MultiStageModel forward for one group of batch elements.

    Activations are (C, N) with N = nb * seq_len batch elements folded onto the
    lane axis.  All shifts use the per-batch-local time index so dilated taps
    never mix data across the fold boundary.
    """
    N = x_ref.shape[-1]           # nb * T lanes
    L = wd1_ref.shape[0]          # num_layers
    n_rest = w_inr_ref.shape[0]   # num refinement stages
    T = seq_len

    x = x_ref[...]                # (DIM, N) f32
    m = m_ref[...]                # (1,   N) f32  == mask[:, 0:1, :] folded

    # Hoisted per-batch-local time index + shift-validity masks (computed ONCE
    # per kernel invocation; JAX does not CSE broadcast_in_dim / compares).
    t_loc = jax.lax.broadcasted_iota(jnp.int32, (1, N), 1) % T
    valid = {}
    for l in range(L):
        d = 2 ** l
        if d < T:
            valid[-d] = t_loc >= d          # y[t] = a[t-d] valid when t >= d
            valid[d] = t_loc < (T - d)      # y[t] = a[t+d] valid when t < T-d

    def shift(a, s):
        """y[:, t] = a[:, t + s] with zero padding outside the local [0, T)."""
        if s == 0:
            return a
        if abs(s) >= T:                     # robustness if 2^(L-1) >= T
            return jnp.zeros_like(a)
        rolled = pltpu.roll(a, shift=(-s) % N, axis=1)
        return jnp.where(valid[s], rolled, 0.0)   # (1,N) mask broadcasts

    def bf(a):
        return a.astype(jnp.bfloat16)

    def run_stage(inp, w_in, b_in, get_layer, w_out, b_out):
        # conv_1x1 (dim -> num_f_maps); bf16 operands, f32 accumulation.
        out = jnp.dot(w_in, bf(inp), preferred_element_type=jnp.float32) + b_in
        for l in range(L):
            d = 2 ** l
            wd, bd, w1, b1 = get_layer(l)   # wd: (3, F, F) bf16 tap slabs
            # Dilated 3-tap conv as 3 accumulating K=F matmuls (no concat):
            # tap0 -> x[t-d], tap1 -> x[t], tap2 -> x[t+d]  (Conv1d tap order).
            h = (jnp.dot(wd[0], bf(shift(out, -d)),
                         preferred_element_type=jnp.float32)
                 + jnp.dot(wd[1], bf(out),
                           preferred_element_type=jnp.float32)
                 + jnp.dot(wd[2], bf(shift(out, d)),
                           preferred_element_type=jnp.float32)
                 + bd)
            h = jnp.maximum(h, 0.0)
            h = jnp.dot(w1, bf(h), preferred_element_type=jnp.float32) + b1
            # dropout: identity (eval mode)
            out = (out + h) * m                          # residual + mask
        logits = (jnp.dot(w_out, bf(out),
                          preferred_element_type=jnp.float32) + b_out) * m
        return logits, out

    # ---- stage 1 ----
    logits, feat = run_stage(
        x, w_in1_ref[...], b_in1_ref[...],
        lambda l: (wd1_ref[l], bd1_ref[l], w11_ref[l], b11_ref[l]),
        w_out1_ref[...], b_out1_ref[...])
    out_ref[0] = logits

    # ---- refinement stages (softmax over classes * mask, in-kernel) ----
    for s in range(n_rest):
        z = logits - jnp.max(logits, axis=0, keepdims=True)
        e = jnp.exp(z)
        # reciprocal on the EUP slot; fuse mask into the same (1, N) scale.
        scale = pl.reciprocal(jnp.sum(e, axis=0, keepdims=True),
                              approx=True) * m
        inp = e * scale
        logits, feat = run_stage(
            inp, w_inr_ref[s], b_inr_ref[s],
            lambda l, s=s: (wdr_ref[s * L + l], bdr_ref[s, l],
                            w1r_ref[s, l], b1r_ref[s, l]),
            w_outr_ref[s], b_outr_ref[s])
        out_ref[s + 1] = logits

    # Only the final stage's features are part of the module's return value.
    feat_ref[...] = feat


# --------------------------------- wrapper -----------------------------------
def _pick_groups(batch):
    """v7x has 2 TensorCores/chip -> one batch element per ('parallel') grid
    step; single-TC v5e/v6e -> fold the whole batch into the lane axis."""
    try:
        kind = jax.devices()[0].device_kind.lower()
    except Exception:
        kind = ""
    return batch if "v7" in kind else 1


@functools.partial(jax.jit, static_argnames=("groups",))
def multi_stage_forward(kern1, kern_rest, x, mask, *, groups=1):
    """Run the whole MultiStageModel in one pallas_call (grid over batch groups)."""
    B, in_dim, T = x.shape
    F_ = kern1["w_in"].shape[0]
    NC = kern1["w_out"].shape[0]
    L = kern1["wd"].shape[0]
    S = kern_rest["w_in"].shape[0] + 1
    G = groups
    nb = B // G
    assert G * nb == B
    N = nb * T

    mask1 = mask[:, 0:1, :]
    # Fold nb batch elements onto the lane axis: lane = b_local * T + t.
    xf = x.reshape(G, nb, in_dim, T).transpose(0, 2, 1, 3).reshape(G, in_dim, N)
    mf = mask1.reshape(G, nb, 1, T).transpose(0, 2, 1, 3).reshape(G, 1, N)

    # Flatten (stage, layer) of the refinement dilated-conv weights to keep the
    # weight refs at rank <= 4.
    wdr_flat = kern_rest["wd"].reshape((S - 1) * L, 3, F_, F_)

    def per_group(shape):
        inner = tuple(shape[1:])
        n = len(inner)
        return pl.BlockSpec((None,) + inner, lambda g, n=n: (g,) + (0,) * n)

    def whole(arr):
        nd = arr.ndim
        return pl.BlockSpec(tuple(arr.shape), lambda g, nd=nd: (0,) * nd)

    weights = (kern1["w_in"], kern1["b_in"], kern1["wd"], kern1["bd"],
               kern1["w1"], kern1["b1"], kern1["w_out"], kern1["b_out"],
               kern_rest["w_in"], kern_rest["b_in"], wdr_flat,
               kern_rest["bd"], kern_rest["w1"], kern_rest["b1"],
               kern_rest["w_out"], kern_rest["b_out"])

    out_shapes = (jax.ShapeDtypeStruct((G, S, NC, N), jnp.float32),
                  jax.ShapeDtypeStruct((G, F_, N), jnp.float32))

    outputs_g, feat_g = pl.pallas_call(
        functools.partial(mstcn_kernel, seq_len=T),
        out_shape=out_shapes,
        grid=(G,),
        in_specs=[per_group(xf.shape), per_group(mf.shape)]
                + [whole(w) for w in weights],
        out_specs=(pl.BlockSpec((None, S, NC, N), lambda g: (g, 0, 0, 0)),
                   pl.BlockSpec((None, F_, N), lambda g: (g, 0, 0))),
        compiler_params=pltpu.CompilerParams(dimension_semantics=("parallel",)),
    )(xf, mf, *weights)

    # Unfold lanes back to (stage, batch, classes, time) / (batch, F, time).
    outputs = (outputs_g.reshape(G, S, NC, nb, T)
               .transpose(1, 0, 3, 2, 4).reshape(S, B, NC, T))
    feat = (feat_g.reshape(G, F_, nb, T)
            .transpose(0, 2, 1, 3).reshape(B, F_, T))
    return outputs, feat


# ------------------------- deterministic parameter init ----------------------
def _init_conv1d(key, out_c, in_c, k):
    wkey, bkey = jax.random.split(key)
    bound = 1.0 / np.sqrt(in_c * k)
    w = jax.random.uniform(wkey, (out_c, in_c, k), jnp.float32, -bound, bound)
    b = jax.random.uniform(bkey, (out_c,), jnp.float32, -bound, bound)
    return w, b


def init_stage(key, num_layers, num_f_maps, dim, num_classes):
    keys = jax.random.split(key, 2 + 2 * num_layers)
    w_in, b_in = _init_conv1d(keys[0], num_f_maps, dim, 1)
    w_out, b_out = _init_conv1d(keys[1], num_classes, num_f_maps, 1)
    wd_list, bd_list, w1_list, b1_list = [], [], [], []
    for l in range(num_layers):
        wd, bd = _init_conv1d(keys[2 + 2 * l], num_f_maps, num_f_maps, 3)
        w1, b1 = _init_conv1d(keys[3 + 2 * l], num_f_maps, num_f_maps, 1)
        wd_list.append(wd); bd_list.append(bd)
        w1_list.append(w1); b1_list.append(b1)
    raw = {
        "w_in": w_in, "b_in": b_in,
        "wd": jnp.stack(wd_list), "bd": jnp.stack(bd_list),   # (L,F,F,3), (L,F)
        "w1": jnp.stack(w1_list), "b1": jnp.stack(b1_list),   # (L,F,F,1), (L,F)
        "w_out": w_out, "b_out": b_out,
    }
    # Kernel-layout params: 1x1 kernels squeezed, biases -> (C,1) f32,
    # dilated-conv taps split into three (F,F) slabs, matmul weights in bf16.
    kern = {
        "w_in": raw["w_in"][:, :, 0].astype(jnp.bfloat16),              # (F, dim)
        "b_in": raw["b_in"][:, None],                                   # (F, 1)
        "wd": jnp.transpose(raw["wd"], (0, 3, 1, 2)).astype(jnp.bfloat16),  # (L,3,F,F)
        "bd": raw["bd"][:, :, None],                                    # (L, F, 1)
        "w1": raw["w1"][:, :, :, 0].astype(jnp.bfloat16),               # (L, F, F)
        "b1": raw["b1"][:, :, None],                                    # (L, F, 1)
        "w_out": raw["w_out"][:, :, 0].astype(jnp.bfloat16),            # (NC, F)
        "b_out": raw["b_out"][:, None],                                 # (NC, 1)
    }
    return raw, kern


# ------------------------------ pure-JAX reference ---------------------------
def _conv1d_ref(x, w, b, dilation=1, padding=0):
    y = jax.lax.conv_general_dilated(
        x, w, window_strides=(1,), padding=[(padding, padding)],
        rhs_dilation=(dilation,), dimension_numbers=("NCH", "OIH", "NCH"))
    return y + b[None, :, None]


def _stage_ref(raw, x, mask1):
    out = _conv1d_ref(x, raw["w_in"], raw["b_in"])
    L = raw["wd"].shape[0]
    for l in range(L):
        d = 2 ** l
        h = jax.nn.relu(_conv1d_ref(out, raw["wd"][l], raw["bd"][l],
                                    dilation=d, padding=d))
        h = _conv1d_ref(h, raw["w1"][l], raw["b1"][l])
        out = (out + h) * mask1
    out1 = _conv1d_ref(out, raw["w_out"], raw["b_out"]) * mask1
    return out1, out


def _multi_stage_ref(all_raw, x, mask):
    mask1 = mask[:, 0:1, :]
    out, feat = _stage_ref(all_raw["stage1"], x, mask1)
    outs = [out]
    for raw in all_raw["stages"]:
        out, feat = _stage_ref(raw, jax.nn.softmax(out, axis=1) * mask1, mask1)
        outs.append(out)
    return jnp.stack(outs, axis=0), feat


# ----------------------------------- main ------------------------------------
if __name__ == "__main__":
    key = jax.random.PRNGKey(0)
    k_x, k_m, k_s1, k_rest = jax.random.split(key, 4)

    # inputs
    x = jax.random.normal(k_x, (BATCH, DIM, T_LEN), jnp.float32)
    # mask: valid prefix per batch element (PyTorch model uses mask[:, 0:1, :])
    lengths = jnp.array([T_LEN, T_LEN - 17], jnp.int32)
    t_idx = jnp.arange(T_LEN)[None, :]
    mask = (t_idx < lengths[:, None]).astype(jnp.float32)[:, None, :]
    mask = jnp.tile(mask, (1, NUM_CLASSES, 1))                  # (B, NC, T)

    # parameters
    raw1, kern1 = init_stage(k_s1, NUM_LAYERS, NUM_F_MAPS, DIM, NUM_CLASSES)
    raw_rest, kern_rest_list = [], []
    for sk in jax.random.split(k_rest, NUM_STAGES - 1):
        r, kparams = init_stage(sk, NUM_LAYERS, NUM_F_MAPS, NUM_CLASSES, NUM_CLASSES)
        raw_rest.append(r); kern_rest_list.append(kparams)
    # stack the refinement-stage params along a leading stage axis
    kern_rest = jax.tree_util.tree_map(lambda *xs: jnp.stack(xs, axis=0),
                                       *kern_rest_list)

    # choose grid layout for this chip: fold batch into lanes on single-TC
    # chips (v5e/v6e), keep one batch element per (parallel) core on v7x.
    groups = _pick_groups(BATCH)

    # Pallas forward (single fused kernel for all stages)
    outputs, feat = multi_stage_forward(kern1, kern_rest, x, mask, groups=groups)
    outputs = jax.block_until_ready(outputs)
    feat = jax.block_until_ready(feat)

    # reference check (f32 conv reference; tolerance loosened for bf16 matmuls
    # + approx reciprocal in the kernel — semantic bugs would be orders of
    # magnitude larger than this).
    ref_outputs, ref_feat = _multi_stage_ref(
        {"stage1": raw1, "stages": raw_rest}, x, mask)
    assert outputs.shape == (NUM_STAGES, BATCH, NUM_CLASSES, T_LEN)
    assert feat.shape == (BATCH, NUM_F_MAPS, T_LEN)
    np.testing.assert_allclose(np.asarray(outputs), np.asarray(ref_outputs),
                               rtol=3e-2, atol=3e-2)
    np.testing.assert_allclose(np.asarray(feat), np.asarray(ref_feat),
                               rtol=3e-2, atol=3e-2)

    print("KERNEL_OK")
</pallas_src>

<mosaic_0001>
module attributes {stable_mosaic.version = 11 : i64} {
  func.func @mstcn_kernel(%arg0: i32, %arg1: memref<1x16x256xf32, #tpu.memory_space<vmem>>, %arg2: memref<1x1x256xf32, #tpu.memory_space<vmem>>, %arg3: memref<32x16xbf16, #tpu.memory_space<vmem>>, %arg4: memref<32x1xf32, #tpu.memory_space<vmem>>, %arg5: memref<4x3x32x32xbf16, #tpu.memory_space<vmem>>, %arg6: memref<4x32x1xf32, #tpu.memory_space<vmem>>, %arg7: memref<4x32x32xbf16, #tpu.memory_space<vmem>>, %arg8: memref<4x32x1xf32, #tpu.memory_space<vmem>>, %arg9: memref<8x32xbf16, #tpu.memory_space<vmem>>, %arg10: memref<8x1xf32, #tpu.memory_space<vmem>>, %arg11: memref<3x32x8xbf16, #tpu.memory_space<vmem>>, %arg12: memref<3x32x1xf32, #tpu.memory_space<vmem>>, %arg13: memref<12x3x32x32xbf16, #tpu.memory_space<vmem>>, %arg14: memref<3x4x32x1xf32, #tpu.memory_space<vmem>>, %arg15: memref<3x4x32x32xbf16, #tpu.memory_space<vmem>>, %arg16: memref<3x4x32x1xf32, #tpu.memory_space<vmem>>, %arg17: memref<3x8x32xbf16, #tpu.memory_space<vmem>>, %arg18: memref<3x8x1xf32, #tpu.memory_space<vmem>>, %arg19: memref<1x4x8x256xf32, #tpu.memory_space<vmem>>, %arg20: memref<1x32x256xf32, #tpu.memory_space<vmem>>) attributes {dimension_semantics = [#tpu.dimension_semantics<parallel>], iteration_bounds = array<i64: 1>, scalar_prefetch = 0 : i64, scratch_operands = 0 : i64, tpu.core_type = #tpu.core_type<tc>, window_params = [{transform_indices = @transform_0, window_bounds = array<i64: 1, 16, 256>}, {transform_indices = @transform_1, window_bounds = array<i64: 1, 1, 256>}, {pipeline_mode = #tpu.pipeline_mode<synchronous>, transform_indices = @transform_2, window_bounds = array<i64: 32, 16>}, {pipeline_mode = #tpu.pipeline_mode<synchronous>, transform_indices = @transform_3, window_bounds = array<i64: 32, 1>}, {pipeline_mode = #tpu.pipeline_mode<synchronous>, transform_indices = @transform_4, window_bounds = array<i64: 4, 3, 32, 32>}, {pipeline_mode = #tpu.pipeline_mode<synchronous>, transform_indices = @transform_5, window_bounds = array<i64: 4, 32, 1>}, {pipeline_mode = #tpu.pipeline_mode<synchronous>, transform_indices = @transform_6, window_bounds = array<i64: 4, 32, 32>}, {pipeline_mode = #tpu.pipeline_mode<synchronous>, transform_indices = @transform_7, window_bounds = array<i64: 4, 32, 1>}, {pipeline_mode = #tpu.pipeline_mode<synchronous>, transform_indices = @transform_8, window_bounds = array<i64: 8, 32>}, {pipeline_mode = #tpu.pipeline_mode<synchronous>, transform_indices = @transform_9, window_bounds = array<i64: 8, 1>}, {pipeline_mode = #tpu.pipeline_mode<synchronous>, transform_indices = @transform_10, window_bounds = array<i64: 3, 32, 8>}, {pipeline_mode = #tpu.pipeline_mode<synchronous>, transform_indices = @transform_11, window_bounds = array<i64: 3, 32, 1>}, {pipeline_mode = #tpu.pipeline_mode<synchronous>, transform_indices = @transform_12, window_bounds = array<i64: 12, 3, 32, 32>}, {pipeline_mode = #tpu.pipeline_mode<synchronous>, transform_indices = @transform_13, window_bounds = array<i64: 3, 4, 32, 1>}, {pipeline_mode = #tpu.pipeline_mode<synchronous>, transform_indices = @transform_14, window_bounds = array<i64: 3, 4, 32, 32>}, {pipeline_mode = #tpu.pipeline_mode<synchronous>, transform_indices = @transform_15, window_bounds = array<i64: 3, 4, 32, 1>}, {pipeline_mode = #tpu.pipeline_mode<synchronous>, transform_indices = @transform_16, window_bounds = array<i64: 3, 8, 32>}, {pipeline_mode = #tpu.pipeline_mode<synchronous>, transform_indices = @transform_17, window_bounds = array<i64: 3, 8, 1>}, {transform_indices = @transform_18, window_bounds = array<i64: 1, 4, 8, 256>}, {transform_indices = @transform_19, window_bounds = array<i64: 1, 32, 256>}]} {
    %c0 = arith.constant 0 : index
    %c0_0 = arith.constant 0 : index
    %c0_1 = arith.constant 0 : index
    %0 = vector.load %arg1[%c0, %c0_0, %c0_1] : memref<1x16x256xf32, #tpu.memory_space<vmem>>, vector<1x16x256xf32>
    %1 = vector.shape_cast %0 : vector<1x16x256xf32> to vector<16x256xf32>
    %c0_2 = arith.constant 0 : index
    %c0_3 = arith.constant 0 : index
    %c0_4 = arith.constant 0 : index
    %2 = vector.load %arg2[%c0_2, %c0_3, %c0_4] : memref<1x1x256xf32, #tpu.memory_space<vmem>>, vector<1x1x256xf32>
    %3 = vector.shape_cast %2 : vector<1x1x256xf32> to vector<1x256xf32>
    %4 = tpu.iota {dimensions = array<i32: 1>} : vector<1x256xi32>
    %c128_i32 = arith.constant 128 : i32
    %c0_i32 = arith.constant 0 : i32
    %5 = arith.cmpi eq, %c128_i32, %c0_i32 : i32
    %c1_i32 = arith.constant 1 : i32
    %6 = arith.select %5, %c1_i32, %c128_i32 : i32
    %7 = vector.broadcast %6 : i32 to vector<1x256xi32>
    %8 = arith.remsi %4, %7 : vector<1x256xi32>
    %c0_i32_5 = arith.constant 0 : i32
    %9 = vector.broadcast %c0_i32_5 : i32 to vector<1x256xi32>
    %10 = arith.cmpi ne, %8, %9 : vector<1x256xi32>
    %c0_i32_6 = arith.constant 0 : i32
    %11 = vector.broadcast %c0_i32_6 : i32 to vector<1x256xi32>
    %12 = arith.cmpi slt, %8, %11 : vector<1x256xi32>
    %c0_i32_7 = arith.constant 0 : i32
    %13 = arith.cmpi slt, %6, %c0_i32_7 : i32
    %14 = vector.broadcast %13 : i1 to vector<1x256xi1>
    %15 = vector.broadcast %14 : vector<1x256xi1> to vector<1x256xi1>
    %16 = arith.xori %12, %15 : vector<1x256xi1>
    %17 = arith.andi %16, %10 : vector<1x256xi1>
    %18 = vector.broadcast %6 : i32 to vector<1x256xi32>
    %19 = arith.addi %8, %18 : vector<1x256xi32>
    %20 = arith.select %17, %19, %8 : vector<1x256xi1>, vector<1x256xi32>
    %c1_i32_8 = arith.constant 1 : i32
    %21 = vector.broadcast %c1_i32_8 : i32 to vector<1x256xi32>
    %22 = arith.cmpi sge, %20, %21 : vector<1x256xi32>
    %c127_i32 = arith.constant 127 : i32
    %23 = vector.broadcast %c127_i32 : i32 to vector<1x256xi32>
    %24 = arith.cmpi slt, %20, %23 : vector<1x256xi32>
    %c2_i32 = arith.constant 2 : i32
    %25 = vector.broadcast %c2_i32 : i32 to vector<1x256xi32>
    %26 = arith.cmpi sge, %20, %25 : vector<1x256xi32>
    %c126_i32 = arith.constant 126 : i32
    %27 = vector.broadcast %c126_i32 : i32 to vector<1x256xi32>
    %28 = arith.cmpi slt, %20, %27 : vector<1x256xi32>
    %c4_i32 = arith.constant 4 : i32
    %29 = vector.broadcast %c4_i32 : i32 to vector<1x256xi32>
    %30 = arith.cmpi sge, %20, %29 : vector<1x256xi32>
    %c124_i32 = arith.constant 124 : i32
    %31 = vector.broadcast %c124_i32 : i32 to vector<1x256xi32>
    %32 = arith.cmpi slt, %20, %31 : vector<1x256xi32>
    %c8_i32 = arith.constant 8 : i32
    %33 = vector.broadcast %c8_i32 : i32 to vector<1x256xi32>
    %34 = arith.cmpi sge, %20, %33 : vector<1x256xi32>
    %c120_i32 = arith.constant 120 : i32
    %35 = vector.broadcast %c120_i32 : i32 to vector<1x256xi32>
    %36 = arith.cmpi slt, %20, %35 : vector<1x256xi32>
    %c0_9 = arith.constant 0 : index
    %c0_10 = arith.constant 0 : index
    %37 = vector.load %arg3[%c0_9, %c0_10] : memref<32x16xbf16, #tpu.memory_space<vmem>>, vector<32x16xbf16>
    %c0_11 = arith.constant 0 : index
    %c0_12 = arith.constant 0 : index
    %38 = vector.load %arg4[%c0_11, %c0_12] : memref<32x1xf32, #tpu.memory_space<vmem>>, vector<32x1xf32>
    %c0_13 = arith.constant 0 : index
    %c0_14 = arith.constant 0 : index
    %39 = vector.load %arg9[%c0_13, %c0_14] : memref<8x32xbf16, #tpu.memory_space<vmem>>, vector<8x32xbf16>
    %c0_15 = arith.constant 0 : index
    %c0_16 = arith.constant 0 : index
    %40 = vector.load %arg10[%c0_15, %c0_16] : memref<8x1xf32, #tpu.memory_space<vmem>>, vector<8x1xf32>
    %41 = arith.truncf %1 : vector<16x256xf32> to vector<16x256xbf16>
    %cst = arith.constant dense<0.000000e+00> : vector<32x256xf32>
    %42 = tpu.matmul %37, %41, %cst {dimension_numbers = #tpu.dot_dimension_numbers<[1], [0], [0], [1], [0, 0, 1, 1], [], []>} : vector<32x16xbf16>, vector<16x256xbf16>, vector<32x256xf32> -> vector<32x256xf32>
    %43 = vector.broadcast %38 : vector<32x1xf32> to vector<32x256xf32>
    %44 = arith.addf %42, %43 : vector<32x256xf32>
    %c0_17 = arith.constant 0 : index
    %c0_18 = arith.constant 0 : index
    %c0_19 = arith.constant 0 : index
    %c0_20 = arith.constant 0 : index
    %45 = vector.load %arg5[%c0_17, %c0_18, %c0_19, %c0_20] : memref<4x3x32x32xbf16, #tpu.memory_space<vmem>>, vector<1x3x32x32xbf16>
    %46 = vector.shape_cast %45 : vector<1x3x32x32xbf16> to vector<3x32x32xbf16>
    %c0_21 = arith.constant 0 : index
    %c0_22 = arith.constant 0 : index
    %c0_23 = arith.constant 0 : index
    %47 = vector.load %arg6[%c0_21, %c0_22, %c0_23] : memref<4x32x1xf32, #tpu.memory_space<vmem>>, vector<1x32x1xf32>
    %48 = vector.shape_cast %47 : vector<1x32x1xf32> to vector<32x1xf32>
    %c0_24 = arith.constant 0 : index
    %c0_25 = arith.constant 0 : index
    %c0_26 = arith.constant 0 : index
    %49 = vector.load %arg7[%c0_24, %c0_25, %c0_26] : memref<4x32x32xbf16, #tpu.memory_space<vmem>>, vector<1x32x32xbf16>
    %50 = vector.shape_cast %49 : vector<1x32x32xbf16> to vector<32x32xbf16>
    %c0_27 = arith.constant 0 : index
    %c0_28 = arith.constant 0 : index
    %c0_29 = arith.constant 0 : index
    %51 = vector.load %arg8[%c0_27, %c0_28, %c0_29] : memref<4x32x1xf32, #tpu.memory_space<vmem>>, vector<1x32x1xf32>
    %52 = vector.shape_cast %51 : vector<1x32x1xf32> to vector<32x1xf32>
    %53 = vector.extract_strided_slice %46 {offsets = [0, 0, 0], sizes = [1, 32, 32], strides = [1, 1, 1]} : vector<3x32x32xbf16> to vector<1x32x32xbf16>
    %54 = vector.shape_cast %53 : vector<1x32x32xbf16> to vector<32x32xbf16>
    %c1_i32_30 = arith.constant 1 : i32
    %55 = tpu.dynamic_rotate %44 by %c1_i32_30 dim 1 : vector<32x256xf32>, i32 -> vector<32x256xf32>
    %cst_31 = arith.constant 0.000000e+00 : f32
    %56 = vector.shape_cast %22 : vector<1x256xi1> to vector<1x256xi1>
    %57 = vector.broadcast %56 : vector<1x256xi1> to vector<32x256xi1>
    %58 = vector.broadcast %cst_31 : f32 to vector<32x256xf32>
    %59 = arith.select %57, %55, %58 : vector<32x256xi1>, vector<32x256xf32>
    %60 = arith.truncf %59 : vector<32x256xf32> to vector<32x256xbf16>
    %cst_32 = arith.constant dense<0.000000e+00> : vector<32x256xf32>
    %61 = tpu.matmul %54, %60, %cst_32 {dimension_numbers = #tpu.dot_dimension_numbers<[1], [0], [0], [1], [0, 0, 1, 1], [], []>} : vector<32x32xbf16>, vector<32x256xbf16>, vector<32x256xf32> -> vector<32x256xf32>
    %62 = vector.extract_strided_slice %46 {offsets = [1, 0, 0], sizes = [1, 32, 32], strides = [1, 1, 1]} : vector<3x32x32xbf16> to vector<1x32x32xbf16>
    %63 = vector.shape_cast %62 : vector<1x32x32xbf16> to vector<32x32xbf16>
    %64 = arith.truncf %44 : vector<32x256xf32> to vector<32x256xbf16>
    %cst_33 = arith.constant dense<0.000000e+00> : vector<32x256xf32>
    %65 = tpu.matmul %63, %64, %cst_33 {dimension_numbers = #tpu.dot_dimension_numbers<[1], [0], [0], [1], [0, 0, 1, 1], [], []>} : vector<32x32xbf16>, vector<32x256xbf16>, vector<32x256xf32> -> vector<32x256xf32>
    %66 = arith.addf %61, %65 : vector<32x256xf32>
    %67 = vector.extract_strided_slice %46 {offsets = [2, 0, 0], sizes = [1, 32, 32], strides = [1, 1, 1]} : vector<3x32x32xbf16> to vector<1x32x32xbf16>
    %68 = vector.shape_cast %67 : vector<1x32x32xbf16> to vector<32x32xbf16>
    %c255_i32 = arith.constant 255 : i32
    %69 = tpu.dynamic_rotate %44 by %c255_i32 dim 1 : vector<32x256xf32>, i32 -> vector<32x256xf32>
    %cst_34 = arith.constant 0.000000e+00 : f32
    %70 = vector.shape_cast %24 : vector<1x256xi1> to vector<1x256xi1>
    %71 = vector.broadcast %70 : vector<1x256xi1> to vector<32x256xi1>
    %72 = vector.broadcast %cst_34 : f32 to vector<32x256xf32>
    %73 = arith.select %71, %69, %72 : vector<32x256xi1>, vector<32x256xf32>
    %74 = arith.truncf %73 : vector<32x256xf32> to vector<32x256xbf16>
    %cst_35 = arith.constant dense<0.000000e+00> : vector<32x256xf32>
    %75 = tpu.matmul %68, %74, %cst_35 {dimension_numbers = #tpu.dot_dimension_numbers<[1], [0], [0], [1], [0, 0, 1, 1], [], []>} : vector<32x32xbf16>, vector<32x256xbf16>, vector<32x256xf32> -> vector<32x256xf32>
    %76 = arith.addf %66, %75 : vector<32x256xf32>
    %77 = vector.broadcast %48 : vector<32x1xf32> to vector<32x256xf32>
    %78 = arith.addf %76, %77 : vector<32x256xf32>
    %cst_36 = arith.constant 0.000000e+00 : f32
    %79 = vector.broadcast %cst_36 : f32 to vector<32x256xf32>
    %80 = arith.maximumf %78, %79 : vector<32x256xf32>
    %81 = arith.truncf %80 : vector<32x256xf32> to vector<32x256xbf16>
    %cst_37 = arith.constant dense<0.000000e+00> : vector<32x256xf32>
    %82 = tpu.matmul %50, %81, %cst_37 {dimension_numbers = #tpu.dot_dimension_numbers<[1], [0], [0], [1], [0, 0, 1, 1], [], []>} : vector<32x32xbf16>, vector<32x256xbf16>, vector<32x256xf32> -> vector<32x256xf32>
    %83 = vector.broadcast %52 : vector<32x1xf32> to vector<32x256xf32>
    %84 = arith.addf %82, %83 : vector<32x256xf32>
    %85 = arith.addf %44, %84 : vector<32x256xf32>
    %86 = vector.broadcast %3 : vector<1x256xf32> to vector<32x256xf32>
    %87 = arith.mulf %85, %86 : vector<32x256xf32>
    %c1 = arith.constant 1 : index
    %c0_38 = arith.constant 0 : index
    %c0_39 = arith.constant 0 : index
    %c0_40 = arith.constant 0 : index
    %88 = vector.load %arg5[%c1, %c0_38, %c0_39, %c0_40] : memref<4x3x32x32xbf16, #tpu.memory_space<vmem>>, vector<1x3x32x32xbf16>
    %89 = vector.shape_cast %88 : vector<1x3x32x32xbf16> to vector<3x32x32xbf16>
    %c1_41 = arith.constant 1 : index
    %c0_42 = arith.constant 0 : index
    %c0_43 = arith.constant 0 : index
    %90 = vector.load %arg6[%c1_41, %c0_42, %c0_43] : memref<4x32x1xf32, #tpu.memory_space<vmem>>, vector<1x32x1xf32>
    %91 = vector.shape_cast %90 : vector<1x32x1xf32> to vector<32x1xf32>
    %c1_44 = arith.constant 1 : index
    %c0_45 = arith.constant 0 : index
    %c0_46 = arith.constant 0 : index
    %92 = vector.load %arg7[%c1_44, %c0_45, %c0_46] : memref<4x32x32xbf16, #tpu.memory_space<vmem>>, vector<1x32x32xbf16>
    %93 = vector.shape_cast %92 : vector<1x32x32xbf16> to vector<32x32xbf16>
    %c1_47 = arith.constant 1 : index
    %c0_48 = arith.constant 0 : index
    %c0_49 = arith.constant 0 : index
    %94 = vector.load %arg8[%c1_47, %c0_48, %c0_49] : memref<4x32x1xf32, #tpu.memory_space<vmem>>, vector<1x32x1xf32>
    %95 = vector.shape_cast %94 : vector<1x32x1xf32> to vector<32x1xf32>
    %96 = vector.extract_strided_slice %89 {offsets = [0, 0, 0], sizes = [1, 32, 32], strides = [1, 1, 1]} : vector<3x32x32xbf16> to vector<1x32x32xbf16>
    %97 = vector.shape_cast %96 : vector<1x32x32xbf16> to vector<32x32xbf16>
    %c2_i32_50 = arith.constant 2 : i32
    %98 = tpu.dynamic_rotate %87 by %c2_i32_50 dim 1 : vector<32x256xf32>, i32 -> vector<32x256xf32>
    %cst_51 = arith.constant 0.000000e+00 : f32
    %99 = vector.shape_cast %26 : vector<1x256xi1> to vector<1x256xi1>
    %100 = vector.broadcast %99 : vector<1x256xi1> to vector<32x256xi1>
    %101 = vector.broadcast %cst_51 : f32 to vector<32x256xf32>
    %102 = arith.select %100, %98, %101 : vector<32x256xi1>, vector<32x256xf32>
    %103 = arith.truncf %102 : vector<32x256xf32> to vector<32x256xbf16>
    %cst_52 = arith.constant dense<0.000000e+00> : vector<32x256xf32>
    %104 = tpu.matmul %97, %103, %cst_52 {dimension_numbers = #tpu.dot_dimension_numbers<[1], [0], [0], [1], [0, 0, 1, 1], [], []>} : vector<32x32xbf16>, vector<32x256xbf16>, vector<32x256xf32> -> vector<32x256xf32>
    %105 = vector.extract_strided_slice %89 {offsets = [1, 0, 0], sizes = [1, 32, 32], strides = [1, 1, 1]} : vector<3x32x32xbf16> to vector<1x32x32xbf16>
    %106 = vector.shape_cast %105 : vector<1x32x32xbf16> to vector<32x32xbf16>
    %107 = arith.truncf %87 : vector<32x256xf32> to vector<32x256xbf16>
    %cst_53 = arith.constant dense<0.000000e+00> : vector<32x256xf32>
    %108 = tpu.matmul %106, %107, %cst_53 {dimension_numbers = #tpu.dot_dimension_numbers<[1], [0], [0], [1], [0, 0, 1, 1], [], []>} : vector<32x32xbf16>, vector<32x256xbf16>, vector<32x256xf32> -> vector<32x256xf32>
    %109 = arith.addf %104, %108 : vector<32x256xf32>
    %110 = vector.extract_strided_slice %89 {offsets = [2, 0, 0], sizes = [1, 32, 32], strides = [1, 1, 1]} : vector<3x32x32xbf16> to vector<1x32x32xbf16>
    %111 = vector.shape_cast %110 : vector<1x32x32xbf16> to vector<32x32xbf16>
    %c254_i32 = arith.constant 254 : i32
    %112 = tpu.dynamic_rotate %87 by %c254_i32 dim 1 : vector<32x256xf32>, i32 -> vector<32x256xf32>
    %cst_54 = arith.constant 0.000000e+00 : f32
    %113 = vector.shape_cast %28 : vector<1x256xi1> to vector<1x256xi1>
    %114 = vector.broadcast %113 : vector<1x256xi1> to vector<32x256xi1>
    %115 = vector.broadcast %cst_54 : f32 to vector<32x256xf32>
    %116 = arith.select %114, %112, %115 : vector<32x256xi1>, vector<32x256xf32>
    %117 = arith.truncf %116 : vector<32x256xf32> to vector<32x256xbf16>
    %cst_55 = arith.constant dense<0.000000e+00> : vector<32x256xf32>
    %118 = tpu.matmul %111, %117, %cst_55 {dimension_numbers = #tpu.dot_dimension_numbers<[1], [0], [0], [1], [0, 0, 1, 1], [], []>} : vector<32x32xbf16>, vector<32x256xbf16>, vector<32x256xf32> -> vector<32x256xf32>
    %119 = arith.addf %109, %118 : vector<32x256xf32>
    %120 = vector.broadcast %91 : vector<32x1xf32> to vector<32x256xf32>
    %121 = arith.addf %119, %120 : vector<32x256xf32>
    %cst_56 = arith.constant 0.000000e+00 : f32
    %122 = vector.broadcast %cst_56 : f32 to vector<32x256xf32>
    %123 = arith.maximumf %121, %122 : vector<32x256xf32>
    %124 = arith.truncf %123 : vector<32x256xf32> to vector<32x256xbf16>
    %cst_57 = arith.constant dense<0.000000e+00> : vector<32x256xf32>
    %125 = tpu.matmul %93, %124, %cst_57 {dimension_numbers = #tpu.dot_dimension_numbers<[1], [0], [0], [1], [0, 0, 1, 1], [], []>} : vector<32x32xbf16>, vector<32x256xbf16>, vector<32x256xf32> -> vector<32x256xf32>
    %126 = vector.broadcast %95 : vector<32x1xf32> to vector<32x256xf32>
    %127 = arith.addf %125, %126 : vector<32x256xf32>
    %128 = arith.addf %87, %127 : vector<32x256xf32>
    %129 = vector.broadcast %3 : vector<1x256xf32> to vector<32x256xf32>
    %130 = arith.mulf %128, %129 : vector<32x256xf32>
    %c2 = arith.constant 2 : index
    %c0_58 = arith.constant 0 : index
    %c0_59 = arith.constant 0 : index
    %c0_60 = arith.constant 0 : index
    %131 = vector.load %arg5[%c2, %c0_58, %c0_59, %c0_60] : memref<4x3x32x32xbf16, #tpu.memory_space<vmem>>, vector<1x3x32x32xbf16>
    %132 = vector.shape_cast %131 : vector<1x3x32x32xbf16> to vector<3x32x32xbf16>
    %c2_61 = arith.constant 2 : index
    %c0_62 = arith.constant 0 : index
    %c0_63 = arith.constant 0 : index
    %133 = vector.load %arg6[%c2_61, %c0_62, %c0_63] : memref<4x32x1xf32, #tpu.memory_space<vmem>>, vector<1x32x1xf32>
    %134 = vector.shape_cast %133 : vector<1x32x1xf32> to vector<32x1xf32>
    %c2_64 = arith.constant 2 : index
    %c0_65 = arith.constant 0 : index
    %c0_66 = arith.constant 0 : index
    %135 = vector.load %arg7[%c2_64, %c0_65, %c0_66] : memref<4x32x32xbf16, #tpu.memory_space<vmem>>, vector<1x32x32xbf16>
    %136 = vector.shape_cast %135 : vector<1x32x32xbf16> to vector<32x32xbf16>
    %c2_67 = arith.constant 2 : index
    %c0_68 = arith.constant 0 : index
    %c0_69 = arith.constant 0 : index
    %137 = vector.load %arg8[%c2_67, %c0_68, %c0_69] : memref<4x32x1xf32, #tpu.memory_space<vmem>>, vector<1x32x1xf32>
    %138 = vector.shape_cast %137 : vector<1x32x1xf32> to vector<32x1xf32>
    %139 = vector.extract_strided_slice %132 {offsets = [0, 0, 0], sizes = [1, 32, 32], strides = [1, 1, 1]} : vector<3x32x32xbf16> to vector<1x32x32xbf16>
    %140 = vector.shape_cast %139 : vector<1x32x32xbf16> to vector<32x32xbf16>
    %c4_i32_70 = arith.constant 4 : i32
    %141 = tpu.dynamic_rotate %130 by %c4_i32_70 dim 1 : vector<32x256xf32>, i32 -> vector<32x256xf32>
    %cst_71 = arith.constant 0.000000e+00 : f32
    %142 = vector.shape_cast %30 : vector<1x256xi1> to vector<1x256xi1>
    %143 = vector.broadcast %142 : vector<1x256xi1> to vector<32x256xi1>
    %144 = vector.broadcast %cst_71 : f32 to vector<32x256xf32>
    %145 = arith.select %143, %141, %144 : vector<32x256xi1>, vector<32x256xf32>
    %146 = arith.truncf %145 : vector<32x256xf32> to vector<32x256xbf16>
    %cst_72 = arith.constant dense<0.000000e+00> : vector<32x256xf32>
    %147 = tpu.matmul %140, %146, %cst_72 {dimension_numbers = #tpu.dot_dimension_numbers<[1], [0], [0], [1], [0, 0, 1, 1], [], []>} : vector<32x32xbf16>, vector<32x256xbf16>, vector<32x256xf32> -> vector<32x256xf32>
    %148 = vector.extract_strided_slice %132 {offsets = [1, 0, 0], sizes = [1, 32, 32], strides = [1, 1, 1]} : vector<3x32x32xbf16> to vector<1x32x32xbf16>
    %149 = vector.shape_cast %148 : vector<1x32x32xbf16> to vector<32x32xbf16>
    %150 = arith.truncf %130 : vector<32x256xf32> to vector<32x256xbf16>
    %cst_73 = arith.constant dense<0.000000e+00> : vector<32x256xf32>
    %151 = tpu.matmul %149, %150, %cst_73 {dimension_numbers = #tpu.dot_dimension_numbers<[1], [0], [0], [1], [0, 0, 1, 1], [], []>} : vector<32x32xbf16>, vector<32x256xbf16>, vector<32x256xf32> -> vector<32x256xf32>
    %152 = arith.addf %147, %151 : vector<32x256xf32>
    %153 = vector.extract_strided_slice %132 {offsets = [2, 0, 0], sizes = [1, 32, 32], strides = [1, 1, 1]} : vector<3x32x32xbf16> to vector<1x32x32xbf16>
    %154 = vector.shape_cast %153 : vector<1x32x32xbf16> to vector<32x32xbf16>
    %c252_i32 = arith.constant 252 : i32
    %155 = tpu.dynamic_rotate %130 by %c252_i32 dim 1 : vector<32x256xf32>, i32 -> vector<32x256xf32>
    %cst_74 = arith.constant 0.000000e+00 : f32
    %156 = vector.shape_cast %32 : vector<1x256xi1> to vector<1x256xi1>
    %157 = vector.broadcast %156 : vector<1x256xi1> to vector<32x256xi1>
    %158 = vector.broadcast %cst_74 : f32 to vector<32x256xf32>
    %159 = arith.select %157, %155, %158 : vector<32x256xi1>, vector<32x256xf32>
    %160 = arith.truncf %159 : vector<32x256xf32> to vector<32x256xbf16>
    %cst_75 = arith.constant dense<0.000000e+00> : vector<32x256xf32>
    %161 = tpu.matmul %154, %160, %cst_75 {dimension_numbers = #tpu.dot_dimension_numbers<[1], [0], [0], [1], [0, 0, 1, 1], [], []>} : vector<32x32xbf16>, vector<32x256xbf16>, vector<32x256xf32> -> vector<32x256xf32>
    %162 = arith.addf %152, %161 : vector<32x256xf32>
    %163 = vector.broadcast %134 : vector<32x1xf32> to vector<32x256xf32>
    %164 = arith.addf %162, %163 : vector<32x256xf32>
    %cst_76 = arith.constant 0.000000e+00 : f32
    %165 = vector.broadcast %cst_76 : f32 to vector<32x256xf32>
    %166 = arith.maximumf %164, %165 : vector<32x256xf32>
    %167 = arith.truncf %166 : vector<32x256xf32> to vector<32x256xbf16>
    %cst_77 = arith.constant dense<0.000000e+00> : vector<32x256xf32>
    %168 = tpu.matmul %136, %167, %cst_77 {dimension_numbers = #tpu.dot_dimension_numbers<[1], [0], [0], [1], [0, 0, 1, 1], [], []>} : vector<32x32xbf16>, vector<32x256xbf16>, vector<32x256xf32> -> vector<32x256xf32>
    %169 = vector.broadcast %138 : vector<32x1xf32> to vector<32x256xf32>
    %170 = arith.addf %168, %169 : vector<32x256xf32>
    %171 = arith.addf %130, %170 : vector<32x256xf32>
    %172 = vector.broadcast %3 : vector<1x256xf32> to vector<32x256xf32>
    %173 = arith.mulf %171, %172 : vector<32x256xf32>
    %c3 = arith.constant 3 : index
    %c0_78 = arith.constant 0 : index
    %c0_79 = arith.constant 0 : index
    %c0_80 = arith.constant 0 : index
    %174 = vector.load %arg5[%c3, %c0_78, %c0_79, %c0_80] : memref<4x3x32x32xbf16, #tpu.memory_space<vmem>>, vector<1x3x32x32xbf16>
    %175 = vector.shape_cast %174 : vector<1x3x32x32xbf16> to vector<3x32x32xbf16>
    %c3_81 = arith.constant 3 : index
    %c0_82 = arith.constant 0 : index
    %c0_83 = arith.constant 0 : index
    %176 = vector.load %arg6[%c3_81, %c0_82, %c0_83] : memref<4x32x1xf32, #tpu.memory_space<vmem>>, vector<1x32x1xf32>
    %177 = vector.shape_cast %176 : vector<1x32x1xf32> to vector<32x1xf32>
    %c3_84 = arith.constant 3 : index
    %c0_85 = arith.constant 0 : index
    %c0_86 = arith.constant 0 : index
    %178 = vector.load %arg7[%c3_84, %c0_85, %c0_86] : memref<4x32x32xbf16, #tpu.memory_space<vmem>>, vector<1x32x32xbf16>
    %179 = vector.shape_cast %178 : vector<1x32x32xbf16> to vector<32x32xbf16>
    %c3_87 = arith.constant 3 : index
    %c0_88 = arith.constant 0 : index
    %c0_89 = arith.constant 0 : index
    %180 = vector.load %arg8[%c3_87, %c0_88, %c0_89] : memref<4x32x1xf32, #tpu.memory_space<vmem>>, vector<1x32x1xf32>
    %181 = vector.shape_cast %180 : vector<1x32x1xf32> to vector<32x1xf32>
    %182 = vector.extract_strided_slice %175 {offsets = [0, 0, 0], sizes = [1, 32, 32], strides = [1, 1, 1]} : vector<3x32x32xbf16> to vector<1x32x32xbf16>
    %183 = vector.shape_cast %182 : vector<1x32x32xbf16> to vector<32x32xbf16>
    %c8_i32_90 = arith.constant 8 : i32
    %184 = tpu.dynamic_rotate %173 by %c8_i32_90 dim 1 : vector<32x256xf32>, i32 -> vector<32x256xf32>
    %cst_91 = arith.constant 0.000000e+00 : f32
    %185 = vector.shape_cast %34 : vector<1x256xi1> to vector<1x256xi1>
    %186 = vector.broadcast %185 : vector<1x256xi1> to vector<32x256xi1>
    %187 = vector.broadcast %cst_91 : f32 to vector<32x256xf32>
    %188 = arith.select %186, %184, %187 : vector<32x256xi1>, vector<32x256xf32>
    %189 = arith.truncf %188 : vector<32x256xf32> to vector<32x256xbf16>
    %cst_92 = arith.constant dense<0.000000e+00> : vector<32x256xf32>
    %190 = tpu.matmul %183, %189, %cst_92 {dimension_numbers = #tpu.dot_dimension_numbers<[1], [0], [0], [1], [0, 0, 1, 1], [], []>} : vector<32x32xbf16>, vector<32x256xbf16>, vector<32x256xf32> -> vector<32x256xf32>
    %191 = vector.extract_strided_slice %175 {offsets = [1, 0, 0], sizes = [1, 32, 32], strides = [1, 1, 1]} : vector<3x32x32xbf16> to vector<1x32x32xbf16>
    %192 = vector.shape_cast %191 : vector<1x32x32xbf16> to vector<32x32xbf16>
    %193 = arith.truncf %173 : vector<32x256xf32> to vector<32x256xbf16>
    %cst_93 = arith.constant dense<0.000000e+00> : vector<32x256xf32>
    %194 = tpu.matmul %192, %193, %cst_93 {dimension_numbers = #tpu.dot_dimension_numbers<[1], [0], [0], [1], [0, 0, 1, 1], [], []>} : vector<32x32xbf16>, vector<32x256xbf16>, vector<32x256xf32> -> vector<32x256xf32>
    %195 = arith.addf %190, %194 : vector<32x256xf32>
    %196 = vector.extract_strided_slice %175 {offsets = [2, 0, 0], sizes = [1, 32, 32], strides = [1, 1, 1]} : vector<3x32x32xbf16> to vector<1x32x32xbf16>
    %197 = vector.shape_cast %196 : vector<1x32x32xbf16> to vector<32x32xbf16>
    %c248_i32 = arith.constant 248 : i32
    %198 = tpu.dynamic_rotate %173 by %c248_i32 dim 1 : vector<32x256xf32>, i32 -> vector<32x256xf32>
    %cst_94 = arith.constant 0.000000e+00 : f32
    %199 = vector.shape_cast %36 : vector<1x256xi1> to vector<1x256xi1>
    %200 = vector.broadcast %199 : vector<1x256xi1> to vector<32x256xi1>
    %201 = vector.broadcast %cst_94 : f32 to vector<32x256xf32>
    %202 = arith.select %200, %198, %201 : vector<32x256xi1>, vector<32x256xf32>
    %203 = arith.truncf %202 : vector<32x256xf32> to vector<32x256xbf16>
    %cst_95 = arith.constant dense<0.000000e+00> : vector<32x256xf32>
    %204 = tpu.matmul %197, %203, %cst_95 {dimension_numbers = #tpu.dot_dimension_numbers<[1], [0], [0], [1], [0, 0, 1, 1], [], []>} : vector<32x32xbf16>, vector<32x256xbf16>, vector<32x256xf32> -> vector<32x256xf32>
    %205 = arith.addf %195, %204 : vector<32x256xf32>
    %206 = vector.broadcast %177 : vector<32x1xf32> to vector<32x256xf32>
    %207 = arith.addf %205, %206 : vector<32x256xf32>
    %cst_96 = arith.constant 0.000000e+00 : f32
    %208 = vector.broadcast %cst_96 : f32 to vector<32x256xf32>
    %209 = arith.maximumf %207, %208 : vector<32x256xf32>
    %210 = arith.truncf %209 : vector<32x256xf32> to vector<32x256xbf16>
    %cst_97 = arith.constant dense<0.000000e+00> : vector<32x256xf32>
    %211 = tpu.matmul %179, %210, %cst_97 {dimension_numbers = #tpu.dot_dimension_numbers<[1], [0], [0], [1], [0, 0, 1, 1], [], []>} : vector<32x32xbf16>, vector<32x256xbf16>, vector<32x256xf32> -> vector<32x256xf32>
    %212 = vector.broadcast %181 : vector<32x1xf32> to vector<32x256xf32>
    %213 = arith.addf %211, %212 : vector<32x256xf32>
    %214 = arith.addf %173, %213 : vector<32x256xf32>
    %215 = vector.broadcast %3 : vector<1x256xf32> to vector<32x256xf32>
    %216 = arith.mulf %214, %215 : vector<32x256xf32>
    %217 = arith.truncf %216 : vector<32x256xf32> to vector<32x256xbf16>
    %cst_98 = arith.constant dense<0.000000e+00> : vector<8x256xf32>
    %218 = tpu.matmul %39, %217, %cst_98 {dimension_numbers = #tpu.dot_dimension_numbers<[1], [0], [0], [1], [0, 0, 1, 1], [], []>} : vector<8x32xbf16>, vector<32x256xbf16>, vector<8x256xf32> -> vector<8x256xf32>
    %219 = vector.broadcast %40 : vector<8x1xf32> to vector<8x256xf32>
    %220 = arith.addf %218, %219 : vector<8x256xf32>
    %221 = vector.broadcast %3 : vector<1x256xf32> to vector<8x256xf32>
    %222 = arith.mulf %220, %221 : vector<8x256xf32>
    %c0_99 = arith.constant 0 : index
    %c0_100 = arith.constant 0 : index
    %c0_101 = arith.constant 0 : index
    %c0_102 = arith.constant 0 : index
    %223 = vector.load %arg19[%c0_99, %c0_100, %c0_101, %c0_102] : memref<1x4x8x256xf32, #tpu.memory_space<vmem>>, vector<1x1x8x256xf32>
    %224 = vector.shape_cast %223 : vector<1x1x8x256xf32> to vector<8x256xf32>
    %225 = vector.shape_cast %222 : vector<8x256xf32> to vector<1x1x8x256xf32>
    tpu.vector_store %arg19[%c0_99, %c0_100, %c0_101, %c0_102], %225 {strides = array<i32>} : memref<1x4x8x256xf32, #tpu.memory_space<vmem>>, vector<1x1x8x256xf32>,
    %cst_103 = arith.constant dense<0xFF800000> : vector<256xf32>
    %226 = vector.multi_reduction <maximumf>, %222, %cst_103 [0] : vector<8x256xf32> to vector<256xf32>
    %227 = vector.shape_cast %226 : vector<256xf32> to vector<1x256xf32>
    %228 = vector.broadcast %227 : vector<1x256xf32> to vector<8x256xf32>
    %229 = arith.subf %222, %228 : vector<8x256xf32>
    %230 = math.exp %229 : vector<8x256xf32>
    %cst_104 = arith.constant dense<0.000000e+00> : vector<256xf32>
    %231 = vector.multi_reduction <add>, %230, %cst_104 [0] : vector<8x256xf32> to vector<256xf32>
    %232 = vector.shape_cast %231 : vector<256xf32> to vector<1x256xf32>
    %233 = tpu.reciprocal %232 {approx = true} : vector<1x256xf32> -> vector<1x256xf32>
    %234 = arith.mulf %233, %3 : vector<1x256xf32>
    %235 = vector.broadcast %234 : vector<1x256xf32> to vector<8x256xf32>
    %236 = arith.mulf %230, %235 : vector<8x256xf32>
    %c0_105 = arith.constant 0 : index
    %c0_106 = arith.constant 0 : index
    %c0_107 = arith.constant 0 : index
    %237 = vector.load %arg11[%c0_105, %c0_106, %c0_107] : memref<3x32x8xbf16, #tpu.memory_space<vmem>>, vector<1x32x8xbf16>
    %238 = vector.shape_cast %237 : vector<1x32x8xbf16> to vector<32x8xbf16>
    %c0_108 = arith.constant 0 : index
    %c0_109 = arith.constant 0 : index
    %c0_110 = arith.constant 0 : index
    %239 = vector.load %arg12[%c0_108, %c0_109, %c0_110] : memref<3x32x1xf32, #tpu.memory_space<vmem>>, vector<1x32x1xf32>
    %240 = vector.shape_cast %239 : vector<1x32x1xf32> to vector<32x1xf32>
    %c0_111 = arith.constant 0 : index
    %c0_112 = arith.constant 0 : index
    %c0_113 = arith.constant 0 : index
    %241 = vector.load %arg17[%c0_111, %c0_112, %c0_113] : memref<3x8x32xbf16, #tpu.memory_space<vmem>>, vector<1x8x32xbf16>
    %242 = vector.shape_cast %241 : vector<1x8x32xbf16> to vector<8x32xbf16>
    %c0_114 = arith.constant 0 : index
    %c0_115 = arith.constant 0 : index
    %c0_116 = arith.constant 0 : index
    %243 = vector.load %arg18[%c0_114, %c0_115, %c0_116] : memref<3x8x1xf32, #tpu.memory_space<vmem>>, vector<1x8x1xf32>
    %244 = vector.shape_cast %243 : vector<1x8x1xf32> to vector<8x1xf32>
    %245 = arith.truncf %236 : vector<8x256xf32> to vector<8x256xbf16>
    %cst_117 = arith.constant dense<0.000000e+00> : vector<32x256xf32>
    %246 = tpu.matmul %238, %245, %cst_117 {dimension_numbers = #tpu.dot_dimension_numbers<[1], [0], [0], [1], [0, 0, 1, 1], [], []>} : vector<32x8xbf16>, vector<8x256xbf16>, vector<32x256xf32> -> vector<32x256xf32>
    %247 = vector.broadcast %240 : vector<32x1xf32> to vector<32x256xf32>
    %248 = arith.addf %246, %247 : vector<32x256xf32>
    %c0_118 = arith.constant 0 : index
    %c0_119 = arith.constant 0 : index
    %c0_120 = arith.constant 0 : index
    %c0_121 = arith.constant 0 : index
    %249 = vector.load %arg13[%c0_118, %c0_119, %c0_120, %c0_121] : memref<12x3x32x32xbf16, #tpu.memory_space<vmem>>, vector<1x3x32x32xbf16>
    %250 = vector.shape_cast %249 : vector<1x3x32x32xbf16> to vector<3x32x32xbf16>
    %c0_122 = arith.constant 0 : index
    %c0_123 = arith.constant 0 : index
    %c0_124 = arith.constant 0 : index
    %c0_125 = arith.constant 0 : index
    %251 = vector.load %arg14[%c0_122, %c0_123, %c0_124, %c0_125] : memref<3x4x32x1xf32, #tpu.memory_space<vmem>>, vector<1x1x32x1xf32>
    %252 = vector.shape_cast %251 : vector<1x1x32x1xf32> to vector<32x1xf32>
    %c0_126 = arith.constant 0 : index
    %c0_127 = arith.constant 0 : index
    %c0_128 = arith.constant 0 : index
    %c0_129 = arith.constant 0 : index
    %253 = vector.load %arg15[%c0_126, %c0_127, %c0_128, %c0_129] : memref<3x4x32x32xbf16, #tpu.memory_space<vmem>>, vector<1x1x32x32xbf16>
    %254 = vector.shape_cast %253 : vector<1x1x32x32xbf16> to vector<32x32xbf16>
    %c0_130 = arith.constant 0 : index
    %c0_131 = arith.constant 0 : index
    %c0_132 = arith.constant 0 : index
    %c0_133 = arith.constant 0 : index
    %255 = vector.load %arg16[%c0_130, %c0_131, %c0_132, %c0_133] : memref<3x4x32x1xf32, #tpu.memory_space<vmem>>, vector<1x1x32x1xf32>
    %256 = vector.shape_cast %255 : vector<1x1x32x1xf32> to vector<32x1xf32>
    %257 = vector.extract_strided_slice %250 {offsets = [0, 0, 0], sizes = [1, 32, 32], strides = [1, 1, 1]} : vector<3x32x32xbf16> to vector<1x32x32xbf16>
    %258 = vector.shape_cast %257 : vector<1x32x32xbf16> to vector<32x32xbf16>
    %c1_i32_134 = arith.constant 1 : i32
    %259 = tpu.dynamic_rotate %248 by %c1_i32_134 dim 1 : vector<32x256xf32>, i32 -> vector<32x256xf32>
    %cst_135 = arith.constant 0.000000e+00 : f32
    %260 = vector.shape_cast %22 : vector<1x256xi1> to vector<1x256xi1>
    %261 = vector.broadcast %260 : vector<1x256xi1> to vector<32x256xi1>
    %262 = vector.broadcast %cst_135 : f32 to vector<32x256xf32>
    %263 = arith.select %261, %259, %262 : vector<32x256xi1>, vector<32x256xf32>
    %264 = arith.truncf %263 : vector<32x256xf32> to vector<32x256xbf16>
    %cst_136 = arith.constant dense<0.000000e+00> : vector<32x256xf32>
    %265 = tpu.matmul %258, %264, %cst_136 {dimension_numbers = #tpu.dot_dimension_numbers<[1], [0], [0], [1], [0, 0, 1, 1], [], []>} : vector<32x32xbf16>, vector<32x256xbf16>, vector<32x256xf32> -> vector<32x256xf32>
    %266 = vector.extract_strided_slice %250 {offsets = [1, 0, 0], sizes = [1, 32, 32], strides = [1, 1, 1]} : vector<3x32x32xbf16> to vector<1x32x32xbf16>
    %267 = vector.shape_cast %266 : vector<1x32x32xbf16> to vector<32x32xbf16>
    %268 = arith.truncf %248 : vector<32x256xf32> to vector<32x256xbf16>
    %cst_137 = arith.constant dense<0.000000e+00> : vector<32x256xf32>
    %269 = tpu.matmul %267, %268, %cst_137 {dimension_numbers = #tpu.dot_dimension_numbers<[1], [0], [0], [1], [0, 0, 1, 1], [], []>} : vector<32x32xbf16>, vector<32x256xbf16>, vector<32x256xf32> -> vector<32x256xf32>
    %270 = arith.addf %265, %269 : vector<32x256xf32>
    %271 = vector.extract_strided_slice %250 {offsets = [2, 0, 0], sizes = [1, 32, 32], strides = [1, 1, 1]} : vector<3x32x32xbf16> to vector<1x32x32xbf16>
    %272 = vector.shape_cast %271 : vector<1x32x32xbf16> to vector<32x32xbf16>
    %c255_i32_138 = arith.constant 255 : i32
    %273 = tpu.dynamic_rotate %248 by %c255_i32_138 dim 1 : vector<32x256xf32>, i32 -> vector<32x256xf32>
    %cst_139 = arith.constant 0.000000e+00 : f32
    %274 = vector.shape_cast %24 : vector<1x256xi1> to vector<1x256xi1>
    %275 = vector.broadcast %274 : vector<1x256xi1> to vector<32x256xi1>
    %276 = vector.broadcast %cst_139 : f32 to vector<32x256xf32>
    %277 = arith.select %275, %273, %276 : vector<32x256xi1>, vector<32x256xf32>
    %278 = arith.truncf %277 : vector<32x256xf32> to vector<32x256xbf16>
    %cst_140 = arith.constant dense<0.000000e+00> : vector<32x256xf32>
    %279 = tpu.matmul %272, %278, %cst_140 {dimension_numbers = #tpu.dot_dimension_numbers<[1], [0], [0], [1], [0, 0, 1, 1], [], []>} : vector<32x32xbf16>, vector<32x256xbf16>, vector<32x256xf32> -> vector<32x256xf32>
    %280 = arith.addf %270, %279 : vector<32x256xf32>
    %281 = vector.broadcast %252 : vector<32x1xf32> to vector<32x256xf32>
    %282 = arith.addf %280, %281 : vector<32x256xf32>
    %cst_141 = arith.constant 0.000000e+00 : f32
    %283 = vector.broadcast %cst_141 : f32 to vector<32x256xf32>
    %284 = arith.maximumf %282, %283 : vector<32x256xf32>
    %285 = arith.truncf %284 : vector<32x256xf32> to vector<32x256xbf16>
    %cst_142 = arith.constant dense<0.000000e+00> : vector<32x256xf32>
    %286 = tpu.matmul %254, %285, %cst_142 {dimension_numbers = #tpu.dot_dimension_numbers<[1], [0], [0], [1], [0, 0, 1, 1], [], []>} : vector<32x32xbf16>, vector<32x256xbf16>, vector<32x256xf32> -> vector<32x256xf32>
    %287 = vector.broadcast %256 : vector<32x1xf32> to vector<32x256xf32>
    %288 = arith.addf %286, %287 : vector<32x256xf32>
    %289 = arith.addf %248, %288 : vector<32x256xf32>
    %290 = vector.broadcast %3 : vector<1x256xf32> to vector<32x256xf32>
    %291 = arith.mulf %289, %290 : vector<32x256xf32>
    %c1_143 = arith.constant 1 : index
    %c0_144 = arith.constant 0 : index
    %c0_145 = arith.constant 0 : index
    %c0_146 = arith.constant 0 : index
    %292 = vector.load %arg13[%c1_143, %c0_144, %c0_145, %c0_146] : memref<12x3x32x32xbf16, #tpu.memory_space<vmem>>, vector<1x3x32x32xbf16>
    %293 = vector.shape_cast %292 : vector<1x3x32x32xbf16> to vector<3x32x32xbf16>
    %c0_147 = arith.constant 0 : index
    %c1_148 = arith.constant 1 : index
    %c0_149 = arith.constant 0 : index
    %c0_150 = arith.constant 0 : index
    %294 = vector.load %arg14[%c0_147, %c1_148, %c0_149, %c0_150] : memref<3x4x32x1xf32, #tpu.memory_space<vmem>>, vector<1x1x32x1xf32>
    %295 = vector.shape_cast %294 : vector<1x1x32x1xf32> to vector<32x1xf32>
    %c0_151 = arith.constant 0 : index
    %c1_152 = arith.constant 1 : index
    %c0_153 = arith.constant 0 : index
    %c0_154 = arith.constant 0 : index
    %296 = vector.load %arg15[%c0_151, %c1_152, %c0_153, %c0_154] : memref<3x4x32x32xbf16, #tpu.memory_space<vmem>>, vector<1x1x32x32xbf16>
    %297 = vector.shape_cast %296 : vector<1x1x32x32xbf16> to vector<32x32xbf16>
    %c0_155 = arith.constant 0 : index
    %c1_156 = arith.constant 1 : index
    %c0_157 = arith.constant 0 : index
    %c0_158 = arith.constant 0 : index
    %298 = vector.load %arg16[%c0_155, %c1_156, %c0_157, %c0_158] : memref<3x4x32x1xf32, #tpu.memory_space<vmem>>, vector<1x1x32x1xf32>
    %299 = vector.shape_cast %298 : vector<1x1x32x1xf32> to vector<32x1xf32>
    %300 = vector.extract_strided_slice %293 {offsets = [0, 0, 0], sizes = [1, 32, 32], strides = [1, 1, 1]} : vector<3x32x32xbf16> to vector<1x32x32xbf16>
    %301 = vector.shape_cast %300 : vector<1x32x32xbf16> to vector<32x32xbf16>
    %c2_i32_159 = arith.constant 2 : i32
    %302 = tpu.dynamic_rotate %291 by %c2_i32_159 dim 1 : vector<32x256xf32>, i32 -> vector<32x256xf32>
    %cst_160 = arith.constant 0.000000e+00 : f32
    %303 = vector.shape_cast %26 : vector<1x256xi1> to vector<1x256xi1>
    %304 = vector.broadcast %303 : vector<1x256xi1> to vector<32x256xi1>
    %305 = vector.broadcast %cst_160 : f32 to vector<32x256xf32>
    %306 = arith.select %304, %302, %305 : vector<32x256xi1>, vector<32x256xf32>
    %307 = arith.truncf %306 : vector<32x256xf32> to vector<32x256xbf16>
    %cst_161 = arith.constant dense<0.000000e+00> : vector<32x256xf32>
    %308 = tpu.matmul %301, %307, %cst_161 {dimension_numbers = #tpu.dot_dimension_numbers<[1], [0], [0], [1], [0, 0, 1, 1], [], []>} : vector<32x32xbf16>, vector<32x256xbf16>, vector<32x256xf32> -> vector<32x256xf32>
    %309 = vector.extract_strided_slice %293 {offsets = [1, 0, 0], sizes = [1, 32, 32], strides = [1, 1, 1]} : vector<3x32x32xbf16> to vector<1x32x32xbf16>
    %310 = vector.shape_cast %309 : vector<1x32x32xbf16> to vector<32x32xbf16>
    %311 = arith.truncf %291 : vector<32x256xf32> to vector<32x256xbf16>
    %cst_162 = arith.constant dense<0.000000e+00> : vector<32x256xf32>
    %312 = tpu.matmul %310, %311, %cst_162 {dimension_numbers = #tpu.dot_dimension_numbers<[1], [0], [0], [1], [0, 0, 1, 1], [], []>} : vector<32x32xbf16>, vector<32x256xbf16>, vector<32x256xf32> -> vector<32x256xf32>
    %313 = arith.addf %308, %312 : vector<32x256xf32>
    %314 = vector.extract_strided_slice %293 {offsets = [2, 0, 0], sizes = [1, 32, 32], strides = [1, 1, 1]} : vector<3x32x32xbf16> to vector<1x32x32xbf16>
    %315 = vector.shape_cast %314 : vector<1x32x32xbf16> to vector<32x32xbf16>
    %c254_i32_163 = arith.constant 254 : i32
    %316 = tpu.dynamic_rotate %291 by %c254_i32_163 dim 1 : vector<32x256xf32>, i32 -> vector<32x256xf32>
    %cst_164 = arith.constant 0.000000e+00 : f32
    %317 = vector.shape_cast %28 : vector<1x256xi1> to vector<1x256xi1>
    %318 = vector.broadcast %317 : vector<1x256xi1> to vector<32x256xi1>
    %319 = vector.broadcast %cst_164 : f32 to vector<32x256xf32>
    %320 = arith.select %318, %316, %319 : vector<32x256xi1>, vector<32x256xf32>
    %321 = arith.truncf %320 : vector<32x256xf32> to vector<32x256xbf16>
    %cst_165 = arith.constant dense<0.000000e+00> : vector<32x256xf32>
    %322 = tpu.matmul %315, %321, %cst_165 {dimension_numbers = #tpu.dot_dimension_numbers<[1], [0], [0], [1], [0, 0, 1, 1], [], []>} : vector<32x32xbf16>, vector<32x256xbf16>, vector<32x256xf32> -> vector<32x256xf32>
    %323 = arith.addf %313, %322 : vector<32x256xf32>
    %324 = vector.broadcast %295 : vector<32x1xf32> to vector<32x256xf32>
    %325 = arith.addf %323, %324 : vector<32x256xf32>
    %cst_166 = arith.constant 0.000000e+00 : f32
    %326 = vector.broadcast %cst_166 : f32 to vector<32x256xf32>
    %327 = arith.maximumf %325, %326 : vector<32x256xf32>
    %328 = arith.truncf %327 : vector<32x256xf32> to vector<32x256xbf16>
    %cst_167 = arith.constant dense<0.000000e+00> : vector<32x256xf32>
    %329 = tpu.matmul %297, %328, %cst_167 {dimension_numbers = #tpu.dot_dimension_numbers<[1], [0], [0], [1], [0, 0, 1, 1], [], []>} : vector<32x32xbf16>, vector<32x256xbf16>, vector<32x256xf32> -> vector<32x256xf32>
    %330 = vector.broadcast %299 : vector<32x1xf32> to vector<32x256xf32>
    %331 = arith.addf %329, %330 : vector<32x256xf32>
    %332 = arith.addf %291, %331 : vector<32x256xf32>
    %333 = vector.broadcast %3 : vector<1x256xf32> to vector<32x256xf32>
    %334 = arith.mulf %332, %333 : vector<32x256xf32>
    %c2_168 = arith.constant 2 : index
    %c0_169 = arith.constant 0 : index
    %c0_170 = arith.constant 0 : index
    %c0_171 = arith.constant 0 : index
    %335 = vector.load %arg13[%c2_168, %c0_169, %c0_170, %c0_171] : memref<12x3x32x32xbf16, #tpu.memory_space<vmem>>, vector<1x3x32x32xbf16>
    %336 = vector.shape_cast %335 : vector<1x3x32x32xbf16> to vector<3x32x32xbf16>
    %c0_172 = arith.constant 0 : index
    %c2_173 = arith.constant 2 : index
    %c0_174 = arith.constant 0 : index
    %c0_175 = arith.constant 0 : index
    %337 = vector.load %arg14[%c0_172, %c2_173, %c0_174, %c0_175] : memref<3x4x32x1xf32, #tpu.memory_space<vmem>>, vector<1x1x32x1xf32>
    %338 = vector.shape_cast %337 : vector<1x1x32x1xf32> to vector<32x1xf32>
    %c0_176 = arith.constant 0 : index
    %c2_177 = arith.constant 2 : index
    %c0_178 = arith.constant 0 : index
    %c0_179 = arith.constant 0 : index
    %339 = vector.load %arg15[%c0_176, %c2_177, %c0_178, %c0_179] : memref<3x4x32x32xbf16, #tpu.memory_space<vmem>>, vector<1x1x32x32xbf16>
    %340 = vector.shape_cast %339 : vector<1x1x32x32xbf16> to vector<32x32xbf16>
    %c0_180 = arith.constant 0 : index
    %c2_181 = arith.constant 2 : index
    %c0_182 = arith.constant 0 : index
    %c0_183 = arith.constant 0 : index
    %341 = vector.load %arg16[%c0_180, %c2_181, %c0_182, %c0_183] : memref<3x4x32x1xf32, #tpu.memory_space<vmem>>, vector<1x1x32x1xf32>
    %342 = vector.shape_cast %341 : vector<1x1x32x1xf32> to vector<32x1xf32>
    %343 = vector.extract_strided_slice %336 {offsets = [0, 0, 0], sizes = [1, 32, 32], strides = [1, 1, 1]} : vector<3x32x32xbf16> to vector<1x32x32xbf16>
    %344 = vector.shape_cast %343 : vector<1x32x32xbf16> to vector<32x32xbf16>
    %c4_i32_184 = arith.constant 4 : i32
    %345 = tpu.dynamic_rotate %334 by %c4_i32_184 dim 1 : vector<32x256xf32>, i32 -> vector<32x256xf32>
    %cst_185 = arith.constant 0.000000e+00 : f32
    %346 = vector.shape_cast %30 : vector<1x256xi1> to vector<1x256xi1>
    %347 = vector.broadcast %346 : vector<1x256xi1> to vector<32x256xi1>
    %348 = vector.broadcast %cst_185 : f32 to vector<32x256xf32>
    %349 = arith.select %347, %345, %348 : vector<32x256xi1>, vector<32x256xf32>
    %350 = arith.truncf %349 : vector<32x256xf32> to vector<32x256xbf16>
    %cst_186 = arith.constant dense<0.000000e+00> : vector<32x256xf32>
    %351 = tpu.matmul %344, %350, %cst_186 {dimension_numbers = #tpu.dot_dimension_numbers<[1], [0], [0], [1], [0, 0, 1, 1], [], []>} : vector<32x32xbf16>, vector<32x256xbf16>, vector<32x256xf32> -> vector<32x256xf32>
    %352 = vector.extract_strided_slice %336 {offsets = [1, 0, 0], sizes = [1, 32, 32], strides = [1, 1, 1]} : vector<3x32x32xbf16> to vector<1x32x32xbf16>
    %353 = vector.shape_cast %352 : vector<1x32x32xbf16> to vector<32x32xbf16>
    %354 = arith.truncf %334 : vector<32x256xf32> to vector<32x256xbf16>
    %cst_187 = arith.constant dense<0.000000e+00> : vector<32x256xf32>
    %355 = tpu.matmul %353, %354, %cst_187 {dimension_numbers = #tpu.dot_dimension_numbers<[1], [0], [0], [1], [0, 0, 1, 1], [], []>} : vector<32x32xbf16>, vector<32x256xbf16>, vector<32x256xf32> -> vector<32x256xf32>
    %356 = arith.addf %351, %355 : vector<32x256xf32>
    %357 = vector.extract_strided_slice %336 {offsets = [2, 0, 0], sizes = [1, 32, 32], strides = [1, 1, 1]} : vector<3x32x32xbf16> to vector<1x32x32xbf16>
    %358 = vector.shape_cast %357 : vector<1x32x32xbf16> to vector<32x32xbf16>
    %c252_i32_188 = arith.constant 252 : i32
    %359 = tpu.dynamic_rotate %334 by %c252_i32_188 dim 1 : vector<32x256xf32>, i32 -> vector<32x256xf32>
    %cst_189 = arith.constant 0.000000e+00 : f32
    %360 = vector.shape_cast %32 : vector<1x256xi1> to vector<1x256xi1>
    %361 = vector.broadcast %360 : vector<1x256xi1> to vector<32x256xi1>
    %362 = vector.broadcast %cst_189 : f32 to vector<32x256xf32>
    %363 = arith.select %361, %359, %362 : vector<32x256xi1>, vector<32x256xf32>
    %364 = arith.truncf %363 : vector<32x256xf32> to vector<32x256xbf16>
    %cst_190 = arith.constant dense<0.000000e+00> : vector<32x256xf32>
    %365 = tpu.matmul %358, %364, %cst_190 {dimension_numbers = #tpu.dot_dimension_numbers<[1], [0], [0], [1], [0, 0, 1, 1], [], []>} : vector<32x32xbf16>, vector<32x256xbf16>, vector<32x256xf32> -> vector<32x256xf32>
    %366 = arith.addf %356, %365 : vector<32x256xf32>
    %367 = vector.broadcast %338 : vector<32x1xf32> to vector<32x256xf32>
    %368 = arith.addf %366, %367 : vector<32x256xf32>
    %cst_191 = arith.constant 0.000000e+00 : f32
    %369 = vector.broadcast %cst_191 : f32 to vector<32x256xf32>
    %370 = arith.maximumf %368, %369 : vector<32x256xf32>
    %371 = arith.truncf %370 : vector<32x256xf32> to vector<32x256xbf16>
    %cst_192 = arith.constant dense<0.000000e+00> : vector<32x256xf32>
    %372 = tpu.matmul %340, %371, %cst_192 {dimension_numbers = #tpu.dot_dimension_numbers<[1], [0], [0], [1], [0, 0, 1, 1], [], []>} : vector<32x32xbf16>, vector<32x256xbf16>, vector<32x256xf32> -> vector<32x256xf32>
    %373 = vector.broadcast %342 : vector<32x1xf32> to vector<32x256xf32>
    %374 = arith.addf %372, %373 : vector<32x256xf32>
    %375 = arith.addf %334, %374 : vector<32x256xf32>
    %376 = vector.broadcast %3 : vector<1x256xf32> to vector<32x256xf32>
    %377 = arith.mulf %375, %376 : vector<32x256xf32>
    %c3_193 = arith.constant 3 : index
    %c0_194 = arith.constant 0 : index
    %c0_195 = arith.constant 0 : index
    %c0_196 = arith.constant 0 : index
    %378 = vector.load %arg13[%c3_193, %c0_194, %c0_195, %c0_196] : memref<12x3x32x32xbf16, #tpu.memory_space<vmem>>, vector<1x3x32x32xbf16>
    %379 = vector.shape_cast %378 : vector<1x3x32x32xbf16> to vector<3x32x32xbf16>
    %c0_197 = arith.constant 0 : index
    %c3_198 = arith.constant 3 : index
    %c0_199 = arith.constant 0 : index
    %c0_200 = arith.constant 0 : index
    %380 = vector.load %arg14[%c0_197, %c3_198, %c0_199, %c0_200] : memref<3x4x32x1xf32, #tpu.memory_space<vmem>>, vector<1x1x32x1xf32>
    %381 = vector.shape_cast %380 : vector<1x1x32x1xf32> to vector<32x1xf32>
    %c0_201 = arith.constant 0 : index
    %c3_202 = arith.constant 3 : index
    %c0_203 = arith.constant 0 : index
    %c0_204 = arith.constant 0 : index
    %382 = vector.load %arg15[%c0_201, %c3_202, %c0_203, %c0_204] : memref<3x4x32x32xbf16, #tpu.memory_space<vmem>>, vector<1x1x32x32xbf16>
    %383 = vector.shape_cast %382 : vector<1x1x32x32xbf16> to vector<32x32xbf16>
    %c0_205 = arith.constant 0 : index
    %c3_206 = arith.constant 3 : index
    %c0_207 = arith.constant 0 : index
    %c0_208 = arith.constant 0 : index
    %384 = vector.load %arg16[%c0_205, %c3_206, %c0_207, %c0_208] : memref<3x4x32x1xf32, #tpu.memory_space<vmem>>, vector<1x1x32x1xf32>
    %385 = vector.shape_cast %384 : vector<1x1x32x1xf32> to vector<32x1xf32>
    %386 = vector.extract_strided_slice %379 {offsets = [0, 0, 0], sizes = [1, 32, 32], strides = [1, 1, 1]} : vector<3x32x32xbf16> to vector<1x32x32xbf16>
    %387 = vector.shape_cast %386 : vector<1x32x32xbf16> to vector<32x32xbf16>
    %c8_i32_209 = arith.constant 8 : i32
    %388 = tpu.dynamic_rotate %377 by %c8_i32_209 dim 1 : vector<32x256xf32>, i32 -> vector<32x256xf32>
    %cst_210 = arith.constant 0.000000e+00 : f32
    %389 = vector.shape_cast %34 : vector<1x256xi1> to vector<1x256xi1>
    %390 = vector.broadcast %389 : vector<1x256xi1> to vector<32x256xi1>
    %391 = vector.broadcast %cst_210 : f32 to vector<32x256xf32>
    %392 = arith.select %390, %388, %391 : vector<32x256xi1>, vector<32x256xf32>
    %393 = arith.truncf %392 : vector<32x256xf32> to vector<32x256xbf16>
    %cst_211 = arith.constant dense<0.000000e+00> : vector<32x256xf32>
    %394 = tpu.matmul %387, %393, %cst_211 {dimension_numbers = #tpu.dot_dimension_numbers<[1], [0], [0], [1], [0, 0, 1, 1], [], []>} : vector<32x32xbf16>, vector<32x256xbf16>, vector<32x256xf32> -> vector<32x256xf32>
    %395 = vector.extract_strided_slice %379 {offsets = [1, 0, 0], sizes = [1, 32, 32], strides = [1, 1, 1]} : vector<3x32x32xbf16> to vector<1x32x32xbf16>
    %396 = vector.shape_cast %395 : vector<1x32x32xbf16> to vector<32x32xbf16>
    %397 = arith.truncf %377 : vector<32x256xf32> to vector<32x256xbf16>
    %cst_212 = arith.constant dense<0.000000e+00> : vector<32x256xf32>
    %398 = tpu.matmul %396, %397, %cst_212 {dimension_numbers = #tpu.dot_dimension_numbers<[1], [0], [0], [1], [0, 0, 1, 1], [], []>} : vector<32x32xbf16>, vector<32x256xbf16>, vector<32x256xf32> -> vector<32x256xf32>
    %399 = arith.addf %394, %398 : vector<32x256xf32>
    %400 = vector.extract_strided_slice %379 {offsets = [2, 0, 0], sizes = [1, 32, 32], strides = [1, 1, 1]} : vector<3x32x32xbf16> to vector<1x32x32xbf16>
    %401 = vector.shape_cast %400 : vector<1x32x32xbf16> to vector<32x32xbf16>
    %c248_i32_213 = arith.constant 248 : i32
    %402 = tpu.dynamic_rotate %377 by %c248_i32_213 dim 1 : vector<32x256xf32>, i32 -> vector<32x256xf32>
    %cst_214 = arith.constant 0.000000e+00 : f32
    %403 = vector.shape_cast %36 : vector<1x256xi1> to vector<1x256xi1>
    %404 = vector.broadcast %403 : vector<1x256xi1> to vector<32x256xi1>
    %405 = vector.broadcast %cst_214 : f32 to vector<32x256xf32>
    %406 = arith.select %404, %402, %405 : vector<32x256xi1>, vector<32x256xf32>
    %407 = arith.truncf %406 : vector<32x256xf32> to vector<32x256xbf16>
    %cst_215 = arith.constant dense<0.000000e+00> : vector<32x256xf32>
    %408 = tpu.matmul %401, %407, %cst_215 {dimension_numbers = #tpu.dot_dimension_numbers<[1], [0], [0], [1], [0, 0, 1, 1], [], []>} : vector<32x32xbf16>, vector<32x256xbf16>, vector<32x256xf32> -> vector<32x256xf32>
    %409 = arith.addf %399, %408 : vector<32x256xf32>
    %410 = vector.broadcast %381 : vector<32x1xf32> to vector<32x256xf32>
    %411 = arith.addf %409, %410 : vector<32x256xf32>
    %cst_216 = arith.constant 0.000000e+00 : f32
    %412 = vector.broadcast %cst_216 : f32 to vector<32x256xf32>
    %413 = arith.maximumf %411, %412 : vector<32x256xf32>
    %414 = arith.truncf %413 : vector<32x256xf32> to vector<32x256xbf16>
    %cst_217 = arith.constant dense<0.000000e+00> : vector<32x256xf32>
    %415 = tpu.matmul %383, %414, %cst_217 {dimension_numbers = #tpu.dot_dimension_numbers<[1], [0], [0], [1], [0, 0, 1, 1], [], []>} : vector<32x32xbf16>, vector<32x256xbf16>, vector<32x256xf32> -> vector<32x256xf32>
    %416 = vector.broadcast %385 : vector<32x1xf32> to vector<32x256xf32>
    %417 = arith.addf %415, %416 : vector<32x256xf32>
    %418 = arith.addf %377, %417 : vector<32x256xf32>
    %419 = vector.broadcast %3 : vector<1x256xf32> to vector<32x256xf32>
    %420 = arith.mulf %418, %419 : vector<32x256xf32>
    %421 = arith.truncf %420 : vector<32x256xf32> to vector<32x256xbf16>
    %cst_218 = arith.constant dense<0.000000e+00> : vector<8x256xf32>
    %422 = tpu.matmul %242, %421, %cst_218 {dimension_numbers = #tpu.dot_dimension_numbers<[1], [0], [0], [1], [0, 0, 1, 1], [], []>} : vector<8x32xbf16>, vector<32x256xbf16>, vector<8x256xf32> -> vector<8x256xf32>
    %423 = vector.broadcast %244 : vector<8x1xf32> to vector<8x256xf32>
    %424 = arith.addf %422, %423 : vector<8x256xf32>
    %425 = vector.broadcast %3 : vector<1x256xf32> to vector<8x256xf32>
    %426 = arith.mulf %424, %425 : vector<8x256xf32>
    %c0_219 = arith.constant 0 : index
    %c1_220 = arith.constant 1 : index
    %c0_221 = arith.constant 0 : index
    %c0_222 = arith.constant 0 : index
    %427 = vector.load %arg19[%c0_219, %c1_220, %c0_221, %c0_222] : memref<1x4x8x256xf32, #tpu.memory_space<vmem>>, vector<1x1x8x256xf32>
    %428 = vector.shape_cast %427 : vector<1x1x8x256xf32> to vector<8x256xf32>
    %429 = vector.shape_cast %426 : vector<8x256xf32> to vector<1x1x8x256xf32>
    tpu.vector_store %arg19[%c0_219, %c1_220, %c0_221, %c0_222], %429 {strides = array<i32>} : memref<1x4x8x256xf32, #tpu.memory_space<vmem>>, vector<1x1x8x256xf32>,
    %cst_223 = arith.constant dense<0xFF800000> : vector<256xf32>
    %430 = vector.multi_reduction <maximumf>, %426, %cst_223 [0] : vector<8x256xf32> to vector<256xf32>
    %431 = vector.shape_cast %430 : vector<256xf32> to vector<1x256xf32>
    %432 = vector.broadcast %431 : vector<1x256xf32> to vector<8x256xf32>
    %433 = arith.subf %426, %432 : vector<8x256xf32>
    %434 = math.exp %433 : vector<8x256xf32>
    %cst_224 = arith.constant dense<0.000000e+00> : vector<256xf32>
    %435 = vector.multi_reduction <add>, %434, %cst_224 [0] : vector<8x256xf32> to vector<256xf32>
    %436 = vector.shape_cast %435 : vector<256xf32> to vector<1x256xf32>
    %437 = tpu.reciprocal %436 {approx = true} : vector<1x256xf32> -> vector<1x256xf32>
    %438 = arith.mulf %437, %3 : vector<1x256xf32>
    %439 = vector.broadcast %438 : vector<1x256xf32> to vector<8x256xf32>
    %440 = arith.mulf %434, %439 : vector<8x256xf32>
    %c1_225 = arith.constant 1 : index
    %c0_226 = arith.constant 0 : index
    %c0_227 = arith.constant 0 : index
    %441 = vector.load %arg11[%c1_225, %c0_226, %c0_227] : memref<3x32x8xbf16, #tpu.memory_space<vmem>>, vector<1x32x8xbf16>
    %442 = vector.shape_cast %441 : vector<1x32x8xbf16> to vector<32x8xbf16>
    %c1_228 = arith.constant 1 : index
    %c0_229 = arith.constant 0 : index
    %c0_230 = arith.constant 0 : index
    %443 = vector.load %arg12[%c1_228, %c0_229, %c0_230] : memref<3x32x1xf32, #tpu.memory_space<vmem>>, vector<1x32x1xf32>
    %444 = vector.shape_cast %443 : vector<1x32x1xf32> to vector<32x1xf32>
    %c1_231 = arith.constant 1 : index
    %c0_232 = arith.constant 0 : index
    %c0_233 = arith.constant 0 : index
    %445 = vector.load %arg17[%c1_231, %c0_232, %c0_233] : memref<3x8x32xbf16, #tpu.memory_space<vmem>>, vector<1x8x32xbf16>
    %446 = vector.shape_cast %445 : vector<1x8x32xbf16> to vector<8x32xbf16>
    %c1_234 = arith.constant 1 : index
    %c0_235 = arith.constant 0 : index
    %c0_236 = arith.constant 0 : index
    %447 = vector.load %arg18[%c1_234, %c0_235, %c0_236] : memref<3x8x1xf32, #tpu.memory_space<vmem>>, vector<1x8x1xf32>
    %448 = vector.shape_cast %447 : vector<1x8x1xf32> to vector<8x1xf32>
    %449 = arith.truncf %440 : vector<8x256xf32> to vector<8x256xbf16>
    %cst_237 = arith.constant dense<0.000000e+00> : vector<32x256xf32>
    %450 = tpu.matmul %442, %449, %cst_237 {dimension_numbers = #tpu.dot_dimension_numbers<[1], [0], [0], [1], [0, 0, 1, 1], [], []>} : vector<32x8xbf16>, vector<8x256xbf16>, vector<32x256xf32> -> vector<32x256xf32>
    %451 = vector.broadcast %444 : vector<32x1xf32> to vector<32x256xf32>
    %452 = arith.addf %450, %451 : vector<32x256xf32>
    %c4 = arith.constant 4 : index
    %c0_238 = arith.constant 0 : index
    %c0_239 = arith.constant 0 : index
    %c0_240 = arith.constant 0 : index
    %453 = vector.load %arg13[%c4, %c0_238, %c0_239, %c0_240] : memref<12x3x32x32xbf16, #tpu.memory_space<vmem>>, vector<1x3x32x32xbf16>
    %454 = vector.shape_cast %453 : vector<1x3x32x32xbf16> to vector<3x32x32xbf16>
    %c1_241 = arith.constant 1 : index
    %c0_242 = arith.constant 0 : index
    %c0_243 = arith.constant 0 : index
    %c0_244 = arith.constant 0 : index
    %455 = vector.load %arg14[%c1_241, %c0_242, %c0_243, %c0_244] : memref<3x4x32x1xf32, #tpu.memory_space<vmem>>, vector<1x1x32x1xf32>
    %456 = vector.shape_cast %455 : vector<1x1x32x1xf32> to vector<32x1xf32>
    %c1_245 = arith.constant 1 : index
    %c0_246 = arith.constant 0 : index
    %c0_247 = arith.constant 0 : index
    %c0_248 = arith.constant 0 : index
    %457 = vector.load %arg15[%c1_245, %c0_246, %c0_247, %c0_248] : memref<3x4x32x32xbf16, #tpu.memory_space<vmem>>, vector<1x1x32x32xbf16>
    %458 = vector.shape_cast %457 : vector<1x1x32x32xbf16> to vector<32x32xbf16>
    %c1_249 = arith.constant 1 : index
    %c0_250 = arith.constant 0 : index
    %c0_251 = arith.constant 0 : index
    %c0_252 = arith.constant 0 : index
    %459 = vector.load %arg16[%c1_249, %c0_250, %c0_251, %c0_252] : memref<3x4x32x1xf32, #tpu.memory_space<vmem>>, vector<1x1x32x1xf32>
    %460 = vector.shape_cast %459 : vector<1x1x32x1xf32> to vector<32x1xf32>
    %461 = vector.extract_strided_slice %454 {offsets = [0, 0, 0], sizes = [1, 32, 32], strides = [1, 1, 1]} : vector<3x32x32xbf16> to vector<1x32x32xbf16>
    %462 = vector.shape_cast %461 : vector<1x32x32xbf16> to vector<32x32xbf16>
    %c1_i32_253 = arith.constant 1 : i32
    %463 = tpu.dynamic_rotate %452 by %c1_i32_253 dim 1 : vector<32x256xf32>, i32 -> vector<32x256xf32>
    %cst_254 = arith.constant 0.000000e+00 : f32
    %464 = vector.shape_cast %22 : vector<1x256xi1> to vector<1x256xi1>
    %465 = vector.broadcast %464 : vector<1x256xi1> to vector<32x256xi1>
    %466 = vector.broadcast %cst_254 : f32 to vector<32x256xf32>
    %467 = arith.select %465, %463, %466 : vector<32x256xi1>, vector<32x256xf32>
    %468 = arith.truncf %467 : vector<32x256xf32> to vector<32x256xbf16>
    %cst_255 = arith.constant dense<0.000000e+00> : vector<32x256xf32>
    %469 = tpu.matmul %462, %468, %cst_255 {dimension_numbers = #tpu.dot_dimension_numbers<[1], [0], [0], [1], [0, 0, 1, 1], [], []>} : vector<32x32xbf16>, vector<32x256xbf16>, vector<32x256xf32> -> vector<32x256xf32>
    %470 = vector.extract_strided_slice %454 {offsets = [1, 0, 0], sizes = [1, 32, 32], strides = [1, 1, 1]} : vector<3x32x32xbf16> to vector<1x32x32xbf16>
    %471 = vector.shape_cast %470 : vector<1x32x32xbf16> to vector<32x32xbf16>
    %472 = arith.truncf %452 : vector<32x256xf32> to vector<32x256xbf16>
    %cst_256 = arith.constant dense<0.000000e+00> : vector<32x256xf32>
    %473 = tpu.matmul %471, %472, %cst_256 {dimension_numbers = #tpu.dot_dimension_numbers<[1], [0], [0], [1], [0, 0, 1, 1], [], []>} : vector<32x32xbf16>, vector<32x256xbf16>, vector<32x256xf32> -> vector<32x256xf32>
    %474 = arith.addf %469, %473 : vector<32x256xf32>
    %475 = vector.extract_strided_slice %454 {offsets = [2, 0, 0], sizes = [1, 32, 32], strides = [1, 1, 1]} : vector<3x32x32xbf16> to vector<1x32x32xbf16>
    %476 = vector.shape_cast %475 : vector<1x32x32xbf16> to vector<32x32xbf16>
    %c255_i32_257 = arith.constant 255 : i32
    %477 = tpu.dynamic_rotate %452 by %c255_i32_257 dim 1 : vector<32x256xf32>, i32 -> vector<32x256xf32>
    %cst_258 = arith.constant 0.000000e+00 : f32
    %478 = vector.shape_cast %24 : vector<1x256xi1> to vector<1x256xi1>
    %479 = vector.broadcast %478 : vector<1x256xi1> to vector<32x256xi1>
    %480 = vector.broadcast %cst_258 : f32 to vector<32x256xf32>
    %481 = arith.select %479, %477, %480 : vector<32x256xi1>, vector<32x256xf32>
    %482 = arith.truncf %481 : vector<32x256xf32> to vector<32x256xbf16>
    %cst_259 = arith.constant dense<0.000000e+00> : vector<32x256xf32>
    %483 = tpu.matmul %476, %482, %cst_259 {dimension_numbers = #tpu.dot_dimension_numbers<[1], [0], [0], [1], [0, 0, 1, 1], [], []>} : vector<32x32xbf16>, vector<32x256xbf16>, vector<32x256xf32> -> vector<32x256xf32>
    %484 = arith.addf %474, %483 : vector<32x256xf32>
    %485 = vector.broadcast %456 : vector<32x1xf32> to vector<32x256xf32>
    %486 = arith.addf %484, %485 : vector<32x256xf32>
    %cst_260 = arith.constant 0.000000e+00 : f32
    %487 = vector.broadcast %cst_260 : f32 to vector<32x256xf32>
    %488 = arith.maximumf %486, %487 : vector<32x256xf32>
    %489 = arith.truncf %488 : vector<32x256xf32> to vector<32x256xbf16>
    %cst_261 = arith.constant dense<0.000000e+00> : vector<32x256xf32>
    %490 = tpu.matmul %458, %489, %cst_261 {dimension_numbers = #tpu.dot_dimension_numbers<[1], [0], [0], [1], [0, 0, 1, 1], [], []>} : vector<32x32xbf16>, vector<32x256xbf16>, vector<32x256xf32> -> vector<32x256xf32>
    %491 = vector.broadcast %460 : vector<32x1xf32> to vector<32x256xf32>
    %492 = arith.addf %490, %491 : vector<32x256xf32>
    %493 = arith.addf %452, %492 : vector<32x256xf32>
    %494 = vector.broadcast %3 : vector<1x256xf32> to vector<32x256xf32>
    %495 = arith.mulf %493, %494 : vector<32x256xf32>
    %c5 = arith.constant 5 : index
    %c0_262 = arith.constant 0 : index
    %c0_263 = arith.constant 0 : index
    %c0_264 = arith.constant 0 : index
    %496 = vector.load %arg13[%c5, %c0_262, %c0_263, %c0_264] : memref<12x3x32x32xbf16, #tpu.memory_space<vmem>>, vector<1x3x32x32xbf16>
    %497 = vector.shape_cast %496 : vector<1x3x32x32xbf16> to vector<3x32x32xbf16>
    %c1_265 = arith.constant 1 : index
    %c1_266 = arith.constant 1 : index
    %c0_267 = arith.constant 0 : index
    %c0_268 = arith.constant 0 : index
    %498 = vector.load %arg14[%c1_265, %c1_266, %c0_267, %c0_268] : memref<3x4x32x1xf32, #tpu.memory_space<vmem>>, vector<1x1x32x1xf32>
    %499 = vector.shape_cast %498 : vector<1x1x32x1xf32> to vector<32x1xf32>
    %c1_269 = arith.constant 1 : index
    %c1_270 = arith.constant 1 : index
    %c0_271 = arith.constant 0 : index
    %c0_272 = arith.constant 0 : index
    %500 = vector.load %arg15[%c1_269, %c1_270, %c0_271, %c0_272] : memref<3x4x32x32xbf16, #tpu.memory_space<vmem>>, vector<1x1x32x32xbf16>
    %501 = vector.shape_cast %500 : vector<1x1x32x32xbf16> to vector<32x32xbf16>
    %c1_273 = arith.constant 1 : index
    %c1_274 = arith.constant 1 : index
    %c0_275 = arith.constant 0 : index
    %c0_276 = arith.constant 0 : index
    %502 = vector.load %arg16[%c1_273, %c1_274, %c0_275, %c0_276] : memref<3x4x32x1xf32, #tpu.memory_space<vmem>>, vector<1x1x32x1xf32>
    %503 = vector.shape_cast %502 : vector<1x1x32x1xf32> to vector<32x1xf32>
    %504 = vector.extract_strided_slice %497 {offsets = [0, 0, 0], sizes = [1, 32, 32], strides = [1, 1, 1]} : vector<3x32x32xbf16> to vector<1x32x32xbf16>
    %505 = vector.shape_cast %504 : vector<1x32x32xbf16> to vector<32x32xbf16>
    %c2_i32_277 = arith.constant 2 : i32
    %506 = tpu.dynamic_rotate %495 by %c2_i32_277 dim 1 : vector<32x256xf32>, i32 -> vector<32x256xf32>
    %cst_278 = arith.constant 0.000000e+00 : f32
    %507 = vector.shape_cast %26 : vector<1x256xi1> to vector<1x256xi1>
    %508 = vector.broadcast %507 : vector<1x256xi1> to vector<32x256xi1>
    %509 = vector.broadcast %cst_278 : f32 to vector<32x256xf32>
    %510 = arith.select %508, %506, %509 : vector<32x256xi1>, vector<32x256xf32>
    %511 = arith.truncf %510 : vector<32x256xf32> to vector<32x256xbf16>
    %cst_279 = arith.constant dense<0.000000e+00> : vector<32x256xf32>
    %512 = tpu.matmul %505, %511, %cst_279 {dimension_numbers = #tpu.dot_dimension_numbers<[1], [0], [0], [1], [0, 0, 1, 1], [], []>} : vector<32x32xbf16>, vector<32x256xbf16>, vector<32x256xf32> -> vector<32x256xf32>
    %513 = vector.extract_strided_slice %497 {offsets = [1, 0, 0], sizes = [1, 32, 32], strides = [1, 1, 1]} : vector<3x32x32xbf16> to vector<1x32x32xbf16>
    %514 = vector.shape_cast %513 : vector<1x32x32xbf16> to vector<32x32xbf16>
    %515 = arith.truncf %495 : vector<32x256xf32> to vector<32x256xbf16>
    %cst_280 = arith.constant dense<0.000000e+00> : vector<32x256xf32>
    %516 = tpu.matmul %514, %515, %cst_280 {dimension_numbers = #tpu.dot_dimension_numbers<[1], [0], [0], [1], [0, 0, 1, 1], [], []>} : vector<32x32xbf16>, vector<32x256xbf16>, vector<32x256xf32> -> vector<32x256xf32>
    %517 = arith.addf %512, %516 : vector<32x256xf32>
    %518 = vector.extract_strided_slice %497 {offsets = [2, 0, 0], sizes = [1, 32, 32], strides = [1, 1, 1]} : vector<3x32x32xbf16> to vector<1x32x32xbf16>
    %519 = vector.shape_cast %518 : vector<1x32x32xbf16> to vector<32x32xbf16>
    %c254_i32_281 = arith.constant 254 : i32
    %520 = tpu.dynamic_rotate %495 by %c254_i32_281 dim 1 : vector<32x256xf32>, i32 -> vector<32x256xf32>
    %cst_282 = arith.constant 0.000000e+00 : f32
    %521 = vector.shape_cast %28 : vector<1x256xi1> to vector<1x256xi1>
    %522 = vector.broadcast %521 : vector<1x256xi1> to vector<32x256xi1>
    %523 = vector.broadcast %cst_282 : f32 to vector<32x256xf32>
    %524 = arith.select %522, %520, %523 : vector<32x256xi1>, vector<32x256xf32>
    %525 = arith.truncf %524 : vector<32x256xf32> to vector<32x256xbf16>
    %cst_283 = arith.constant dense<0.000000e+00> : vector<32x256xf32>
    %526 = tpu.matmul %519, %525, %cst_283 {dimension_numbers = #tpu.dot_dimension_numbers<[1], [0], [0], [1], [0, 0, 1, 1], [], []>} : vector<32x32xbf16>, vector<32x256xbf16>, vector<32x256xf32> -> vector<32x256xf32>
    %527 = arith.addf %517, %526 : vector<32x256xf32>
    %528 = vector.broadcast %499 : vector<32x1xf32> to vector<32x256xf32>
    %529 = arith.addf %527, %528 : vector<32x256xf32>
    %cst_284 = arith.constant 0.000000e+00 : f32
    %530 = vector.broadcast %cst_284 : f32 to vector<32x256xf32>
    %531 = arith.maximumf %529, %530 : vector<32x256xf32>
    %532 = arith.truncf %531 : vector<32x256xf32> to vector<32x256xbf16>
    %cst_285 = arith.constant dense<0.000000e+00> : vector<32x256xf32>
    %533 = tpu.matmul %501, %532, %cst_285 {dimension_numbers = #tpu.dot_dimension_numbers<[1], [0], [0], [1], [0, 0, 1, 1], [], []>} : vector<32x32xbf16>, vector<32x256xbf16>, vector<32x256xf32> -> vector<32x256xf32>
    %534 = vector.broadcast %503 : vector<32x1xf32> to vector<32x256xf32>
    %535 = arith.addf %533, %534 : vector<32x256xf32>
    %536 = arith.addf %495, %535 : vector<32x256xf32>
    %537 = vector.broadcast %3 : vector<1x256xf32> to vector<32x256xf32>
    %538 = arith.mulf %536, %537 : vector<32x256xf32>
    %c6 = arith.constant 6 : index
    %c0_286 = arith.constant 0 : index
    %c0_287 = arith.constant 0 : index
    %c0_288 = arith.constant 0 : index
    %539 = vector.load %arg13[%c6, %c0_286, %c0_287, %c0_288] : memref<12x3x32x32xbf16, #tpu.memory_space<vmem>>, vector<1x3x32x32xbf16>
    %540 = vector.shape_cast %539 : vector<1x3x32x32xbf16> to vector<3x32x32xbf16>
    %c1_289 = arith.constant 1 : index
    %c2_290 = arith.constant 2 : index
    %c0_291 = arith.constant 0 : index
    %c0_292 = arith.constant 0 : index
    %541 = vector.load %arg14[%c1_289, %c2_290, %c0_291, %c0_292] : memref<3x4x32x1xf32, #tpu.memory_space<vmem>>, vector<1x1x32x1xf32>
    %542 = vector.shape_cast %541 : vector<1x1x32x1xf32> to vector<32x1xf32>
    %c1_293 = arith.constant 1 : index
    %c2_294 = arith.constant 2 : index
    %c0_295 = arith.constant 0 : index
    %c0_296 = arith.constant 0 : index
    %543 = vector.load %arg15[%c1_293, %c2_294, %c0_295, %c0_296] : memref<3x4x32x32xbf16, #tpu.memory_space<vmem>>, vector<1x1x32x32xbf16>
    %544 = vector.shape_cast %543 : vector<1x1x32x32xbf16> to vector<32x32xbf16>
    %c1_297 = arith.constant 1 : index
    %c2_298 = arith.constant 2 : index
    %c0_299 = arith.constant 0 : index
    %c0_300 = arith.constant 0 : index
    %545 = vector.load %arg16[%c1_297, %c2_298, %c0_299, %c0_300] : memref<3x4x32x1xf32, #tpu.memory_space<vmem>>, vector<1x1x32x1xf32>
    %546 = vector.shape_cast %545 : vector<1x1x32x1xf32> to vector<32x1xf32>
    %547 = vector.extract_strided_slice %540 {offsets = [0, 0, 0], sizes = [1, 32, 32], strides = [1, 1, 1]} : vector<3x32x32xbf16> to vector<1x32x32xbf16>
    %548 = vector.shape_cast %547 : vector<1x32x32xbf16> to vector<32x32xbf16>
    %c4_i32_301 = arith.constant 4 : i32
    %549 = tpu.dynamic_rotate %538 by %c4_i32_301 dim 1 : vector<32x256xf32>, i32 -> vector<32x256xf32>
    %cst_302 = arith.constant 0.000000e+00 : f32
    %550 = vector.shape_cast %30 : vector<1x256xi1> to vector<1x256xi1>
    %551 = vector.broadcast %550 : vector<1x256xi1> to vector<32x256xi1>
    %552 = vector.broadcast %cst_302 : f32 to vector<32x256xf32>
    %553 = arith.select %551, %549, %552 : vector<32x256xi1>, vector<32x256xf32>
    %554 = arith.truncf %553 : vector<32x256xf32> to vector<32x256xbf16>
    %cst_303 = arith.constant dense<0.000000e+00> : vector<32x256xf32>
    %555 = tpu.matmul %548, %554, %cst_303 {dimension_numbers = #tpu.dot_dimension_numbers<[1], [0], [0], [1], [0, 0, 1, 1], [], []>} : vector<32x32xbf16>, vector<32x256xbf16>, vector<32x256xf32> -> vector<32x256xf32>
    %556 = vector.extract_strided_slice %540 {offsets = [1, 0, 0], sizes = [1, 32, 32], strides = [1, 1, 1]} : vector<3x32x32xbf16> to vector<1x32x32xbf16>
    %557 = vector.shape_cast %556 : vector<1x32x32xbf16> to vector<32x32xbf16>
    %558 = arith.truncf %538 : vector<32x256xf32> to vector<32x256xbf16>
    %cst_304 = arith.constant dense<0.000000e+00> : vector<32x256xf32>
    %559 = tpu.matmul %557, %558, %cst_304 {dimension_numbers = #tpu.dot_dimension_numbers<[1], [0], [0], [1], [0, 0, 1, 1], [], []>} : vector<32x32xbf16>, vector<32x256xbf16>, vector<32x256xf32> -> vector<32x256xf32>
    %560 = arith.addf %555, %559 : vector<32x256xf32>
    %561 = vector.extract_strided_slice %540 {offsets = [2, 0, 0], sizes = [1, 32, 32], strides = [1, 1, 1]} : vector<3x32x32xbf16> to vector<1x32x32xbf16>
    %562 = vector.shape_cast %561 : vector<1x32x32xbf16> to vector<32x32xbf16>
    %c252_i32_305 = arith.constant 252 : i32
    %563 = tpu.dynamic_rotate %538 by %c252_i32_305 dim 1 : vector<32x256xf32>, i32 -> vector<32x256xf32>
    %cst_306 = arith.constant 0.000000e+00 : f32
    %564 = vector.shape_cast %32 : vector<1x256xi1> to vector<1x256xi1>
    %565 = vector.broadcast %564 : vector<1x256xi1> to vector<32x256xi1>
    %566 = vector.broadcast %cst_306 : f32 to vector<32x256xf32>
    %567 = arith.select %565, %563, %566 : vector<32x256xi1>, vector<32x256xf32>
    %568 = arith.truncf %567 : vector<32x256xf32> to vector<32x256xbf16>
    %cst_307 = arith.constant dense<0.000000e+00> : vector<32x256xf32>
    %569 = tpu.matmul %562, %568, %cst_307 {dimension_numbers = #tpu.dot_dimension_numbers<[1], [0], [0], [1], [0, 0, 1, 1], [], []>} : vector<32x32xbf16>, vector<32x256xbf16>, vector<32x256xf32> -> vector<32x256xf32>
    %570 = arith.addf %560, %569 : vector<32x256xf32>
    %571 = vector.broadcast %542 : vector<32x1xf32> to vector<32x256xf32>
    %572 = arith.addf %570, %571 : vector<32x256xf32>
    %cst_308 = arith.constant 0.000000e+00 : f32
    %573 = vector.broadcast %cst_308 : f32 to vector<32x256xf32>
    %574 = arith.maximumf %572, %573 : vector<32x256xf32>
    %575 = arith.truncf %574 : vector<32x256xf32> to vector<32x256xbf16>
    %cst_309 = arith.constant dense<0.000000e+00> : vector<32x256xf32>
    %576 = tpu.matmul %544, %575, %cst_309 {dimension_numbers = #tpu.dot_dimension_numbers<[1], [0], [0], [1], [0, 0, 1, 1], [], []>} : vector<32x32xbf16>, vector<32x256xbf16>, vector<32x256xf32> -> vector<32x256xf32>
    %577 = vector.broadcast %546 : vector<32x1xf32> to vector<32x256xf32>
    %578 = arith.addf %576, %577 : vector<32x256xf32>
    %579 = arith.addf %538, %578 : vector<32x256xf32>
    %580 = vector.broadcast %3 : vector<1x256xf32> to vector<32x256xf32>
    %581 = arith.mulf %579, %580 : vector<32x256xf32>
    %c7 = arith.constant 7 : index
    %c0_310 = arith.constant 0 : index
    %c0_311 = arith.constant 0 : index
    %c0_312 = arith.constant 0 : index
    %582 = vector.load %arg13[%c7, %c0_310, %c0_311, %c0_312] : memref<12x3x32x32xbf16, #tpu.memory_space<vmem>>, vector<1x3x32x32xbf16>
    %583 = vector.shape_cast %582 : vector<1x3x32x32xbf16> to vector<3x32x32xbf16>
    %c1_313 = arith.constant 1 : index
    %c3_314 = arith.constant 3 : index
    %c0_315 = arith.constant 0 : index
    %c0_316 = arith.constant 0 : index
    %584 = vector.load %arg14[%c1_313, %c3_314, %c0_315, %c0_316] : memref<3x4x32x1xf32, #tpu.memory_space<vmem>>, vector<1x1x32x1xf32>
    %585 = vector.shape_cast %584 : vector<1x1x32x1xf32> to vector<32x1xf32>
    %c1_317 = arith.constant 1 : index
    %c3_318 = arith.constant 3 : index
    %c0_319 = arith.constant 0 : index
    %c0_320 = arith.constant 0 : index
    %586 = vector.load %arg15[%c1_317, %c3_318, %c0_319, %c0_320] : memref<3x4x32x32xbf16, #tpu.memory_space<vmem>>, vector<1x1x32x32xbf16>
    %587 = vector.shape_cast %586 : vector<1x1x32x32xbf16> to vector<32x32xbf16>
    %c1_321 = arith.constant 1 : index
    %c3_322 = arith.constant 3 : index
    %c0_323 = arith.constant 0 : index
    %c0_324 = arith.constant 0 : index
    %588 = vector.load %arg16[%c1_321, %c3_322, %c0_323, %c0_324] : memref<3x4x32x1xf32, #tpu.memory_space<vmem>>, vector<1x1x32x1xf32>
    %589 = vector.shape_cast %588 : vector<1x1x32x1xf32> to vector<32x1xf32>
    %590 = vector.extract_strided_slice %583 {offsets = [0, 0, 0], sizes = [1, 32, 32], strides = [1, 1, 1]} : vector<3x32x32xbf16> to vector<1x32x32xbf16>
    %591 = vector.shape_cast %590 : vector<1x32x32xbf16> to vector<32x32xbf16>
    %c8_i32_325 = arith.constant 8 : i32
    %592 = tpu.dynamic_rotate %581 by %c8_i32_325 dim 1 : vector<32x256xf32>, i32 -> vector<32x256xf32>
    %cst_326 = arith.constant 0.000000e+00 : f32
    %593 = vector.shape_cast %34 : vector<1x256xi1> to vector<1x256xi1>
    %594 = vector.broadcast %593 : vector<1x256xi1> to vector<32x256xi1>
    %595 = vector.broadcast %cst_326 : f32 to vector<32x256xf32>
    %596 = arith.select %594, %592, %595 : vector<32x256xi1>, vector<32x256xf32>
    %597 = arith.truncf %596 : vector<32x256xf32> to vector<32x256xbf16>
    %cst_327 = arith.constant dense<0.000000e+00> : vector<32x256xf32>
    %598 = tpu.matmul %591, %597, %cst_327 {dimension_numbers = #tpu.dot_dimension_numbers<[1], [0], [0], [1], [0, 0, 1, 1], [], []>} : vector<32x32xbf16>, vector<32x256xbf16>, vector<32x256xf32> -> vector<32x256xf32>
    %599 = vector.extract_strided_slice %583 {offsets = [1, 0, 0], sizes = [1, 32, 32], strides = [1, 1, 1]} : vector<3x32x32xbf16> to vector<1x32x32xbf16>
    %600 = vector.shape_cast %599 : vector<1x32x32xbf16> to vector<32x32xbf16>
    %601 = arith.truncf %581 : vector<32x256xf32> to vector<32x256xbf16>
    %cst_328 = arith.constant dense<0.000000e+00> : vector<32x256xf32>
    %602 = tpu.matmul %600, %601, %cst_328 {dimension_numbers = #tpu.dot_dimension_numbers<[1], [0], [0], [1], [0, 0, 1, 1], [], []>} : vector<32x32xbf16>, vector<32x256xbf16>, vector<32x256xf32> -> vector<32x256xf32>
    %603 = arith.addf %598, %602 : vector<32x256xf32>
    %604 = vector.extract_strided_slice %583 {offsets = [2, 0, 0], sizes = [1, 32, 32], strides = [1, 1, 1]} : vector<3x32x32xbf16> to vector<1x32x32xbf16>
    %605 = vector.shape_cast %604 : vector<1x32x32xbf16> to vector<32x32xbf16>
    %c248_i32_329 = arith.constant 248 : i32
    %606 = tpu.dynamic_rotate %581 by %c248_i32_329 dim 1 : vector<32x256xf32>, i32 -> vector<32x256xf32>
    %cst_330 = arith.constant 0.000000e+00 : f32
    %607 = vector.shape_cast %36 : vector<1x256xi1> to vector<1x256xi1>
    %608 = vector.broadcast %607 : vector<1x256xi1> to vector<32x256xi1>
    %609 = vector.broadcast %cst_330 : f32 to vector<32x256xf32>
    %610 = arith.select %608, %606, %609 : vector<32x256xi1>, vector<32x256xf32>
    %611 = arith.truncf %610 : vector<32x256xf32> to vector<32x256xbf16>
    %cst_331 = arith.constant dense<0.000000e+00> : vector<32x256xf32>
    %612 = tpu.matmul %605, %611, %cst_331 {dimension_numbers = #tpu.dot_dimension_numbers<[1], [0], [0], [1], [0, 0, 1, 1], [], []>} : vector<32x32xbf16>, vector<32x256xbf16>, vector<32x256xf32> -> vector<32x256xf32>
    %613 = arith.addf %603, %612 : vector<32x256xf32>
    %614 = vector.broadcast %585 : vector<32x1xf32> to vector<32x256xf32>
    %615 = arith.addf %613, %614 : vector<32x256xf32>
    %cst_332 = arith.constant 0.000000e+00 : f32
    %616 = vector.broadcast %cst_332 : f32 to vector<32x256xf32>
    %617 = arith.maximumf %615, %616 : vector<32x256xf32>
    %618 = arith.truncf %617 : vector<32x256xf32> to vector<32x256xbf16>
    %cst_333 = arith.constant dense<0.000000e+00> : vector<32x256xf32>
    %619 = tpu.matmul %587, %618, %cst_333 {dimension_numbers = #tpu.dot_dimension_numbers<[1], [0], [0], [1], [0, 0, 1, 1], [], []>} : vector<32x32xbf16>, vector<32x256xbf16>, vector<32x256xf32> -> vector<32x256xf32>
    %620 = vector.broadcast %589 : vector<32x1xf32> to vector<32x256xf32>
    %621 = arith.addf %619, %620 : vector<32x256xf32>
    %622 = arith.addf %581, %621 : vector<32x256xf32>
    %623 = vector.broadcast %3 : vector<1x256xf32> to vector<32x256xf32>
    %624 = arith.mulf %622, %623 : vector<32x256xf32>
    %625 = arith.truncf %624 : vector<32x256xf32> to vector<32x256xbf16>
    %cst_334 = arith.constant dense<0.000000e+00> : vector<8x256xf32>
    %626 = tpu.matmul %446, %625, %cst_334 {dimension_numbers = #tpu.dot_dimension_numbers<[1], [0], [0], [1], [0, 0, 1, 1], [], []>} : vector<8x32xbf16>, vector<32x256xbf16>, vector<8x256xf32> -> vector<8x256xf32>
    %627 = vector.broadcast %448 : vector<8x1xf32> to vector<8x256xf32>
    %628 = arith.addf %626, %627 : vector<8x256xf32>
    %629 = vector.broadcast %3 : vector<1x256xf32> to vector<8x256xf32>
    %630 = arith.mulf %628, %629 : vector<8x256xf32>
    %c0_335 = arith.constant 0 : index
    %c2_336 = arith.constant 2 : index
    %c0_337 = arith.constant 0 : index
    %c0_338 = arith.constant 0 : index
    %631 = vector.load %arg19[%c0_335, %c2_336, %c0_337, %c0_338] : memref<1x4x8x256xf32, #tpu.memory_space<vmem>>, vector<1x1x8x256xf32>
    %632 = vector.shape_cast %631 : vector<1x1x8x256xf32> to vector<8x256xf32>
    %633 = vector.shape_cast %630 : vector<8x256xf32> to vector<1x1x8x256xf32>
    tpu.vector_store %arg19[%c0_335, %c2_336, %c0_337, %c0_338], %633 {strides = array<i32>} : memref<1x4x8x256xf32, #tpu.memory_space<vmem>>, vector<1x1x8x256xf32>,
    %cst_339 = arith.constant dense<0xFF800000> : vector<256xf32>
    %634 = vector.multi_reduction <maximumf>, %630, %cst_339 [0] : vector<8x256xf32> to vector<256xf32>
    %635 = vector.shape_cast %634 : vector<256xf32> to vector<1x256xf32>
    %636 = vector.broadcast %635 : vector<1x256xf32> to vector<8x256xf32>
    %637 = arith.subf %630, %636 : vector<8x256xf32>
    %638 = math.exp %637 : vector<8x256xf32>
    %cst_340 = arith.constant dense<0.000000e+00> : vector<256xf32>
    %639 = vector.multi_reduction <add>, %638, %cst_340 [0] : vector<8x256xf32> to vector<256xf32>
    %640 = vector.shape_cast %639 : vector<256xf32> to vector<1x256xf32>
    %641 = tpu.reciprocal %640 {approx = true} : vector<1x256xf32> -> vector<1x256xf32>
    %642 = arith.mulf %641, %3 : vector<1x256xf32>
    %643 = vector.broadcast %642 : vector<1x256xf32> to vector<8x256xf32>
    %644 = arith.mulf %638, %643 : vector<8x256xf32>
    %c2_341 = arith.constant 2 : index
    %c0_342 = arith.constant 0 : index
    %c0_343 = arith.constant 0 : index
    %645 = vector.load %arg11[%c2_341, %c0_342, %c0_343] : memref<3x32x8xbf16, #tpu.memory_space<vmem>>, vector<1x32x8xbf16>
    %646 = vector.shape_cast %645 : vector<1x32x8xbf16> to vector<32x8xbf16>
    %c2_344 = arith.constant 2 : index
    %c0_345 = arith.constant 0 : index
    %c0_346 = arith.constant 0 : index
    %647 = vector.load %arg12[%c2_344, %c0_345, %c0_346] : memref<3x32x1xf32, #tpu.memory_space<vmem>>, vector<1x32x1xf32>
    %648 = vector.shape_cast %647 : vector<1x32x1xf32> to vector<32x1xf32>
    %c2_347 = arith.constant 2 : index
    %c0_348 = arith.constant 0 : index
    %c0_349 = arith.constant 0 : index
    %649 = vector.load %arg17[%c2_347, %c0_348, %c0_349] : memref<3x8x32xbf16, #tpu.memory_space<vmem>>, vector<1x8x32xbf16>
    %650 = vector.shape_cast %649 : vector<1x8x32xbf16> to vector<8x32xbf16>
    %c2_350 = arith.constant 2 : index
    %c0_351 = arith.constant 0 : index
    %c0_352 = arith.constant 0 : index
    %651 = vector.load %arg18[%c2_350, %c0_351, %c0_352] : memref<3x8x1xf32, #tpu.memory_space<vmem>>, vector<1x8x1xf32>
    %652 = vector.shape_cast %651 : vector<1x8x1xf32> to vector<8x1xf32>
    %653 = arith.truncf %644 : vector<8x256xf32> to vector<8x256xbf16>
    %cst_353 = arith.constant dense<0.000000e+00> : vector<32x256xf32>
    %654 = tpu.matmul %646, %653, %cst_353 {dimension_numbers = #tpu.dot_dimension_numbers<[1], [0], [0], [1], [0, 0, 1, 1], [], []>} : vector<32x8xbf16>, vector<8x256xbf16>, vector<32x256xf32> -> vector<32x256xf32>
    %655 = vector.broadcast %648 : vector<32x1xf32> to vector<32x256xf32>
    %656 = arith.addf %654, %655 : vector<32x256xf32>
    %c8 = arith.constant 8 : index
    %c0_354 = arith.constant 0 : index
    %c0_355 = arith.constant 0 : index
    %c0_356 = arith.constant 0 : index
    %657 = vector.load %arg13[%c8, %c0_354, %c0_355, %c0_356] : memref<12x3x32x32xbf16, #tpu.memory_space<vmem>>, vector<1x3x32x32xbf16>
    %658 = vector.shape_cast %657 : vector<1x3x32x32xbf16> to vector<3x32x32xbf16>
    %c2_357 = arith.constant 2 : index
    %c0_358 = arith.constant 0 : index
    %c0_359 = arith.constant 0 : index
    %c0_360 = arith.constant 0 : index
    %659 = vector.load %arg14[%c2_357, %c0_358, %c0_359, %c0_360] : memref<3x4x32x1xf32, #tpu.memory_space<vmem>>, vector<1x1x32x1xf32>
    %660 = vector.shape_cast %659 : vector<1x1x32x1xf32> to vector<32x1xf32>
    %c2_361 = arith.constant 2 : index
    %c0_362 = arith.constant 0 : index
    %c0_363 = arith.constant 0 : index
    %c0_364 = arith.constant 0 : index
    %661 = vector.load %arg15[%c2_361, %c0_362, %c0_363, %c0_364] : memref<3x4x32x32xbf16, #tpu.memory_space<vmem>>, vector<1x1x32x32xbf16>
    %662 = vector.shape_cast %661 : vector<1x1x32x32xbf16> to vector<32x32xbf16>
    %c2_365 = arith.constant 2 : index
    %c0_366 = arith.constant 0 : index
    %c0_367 = arith.constant 0 : index
    %c0_368 = arith.constant 0 : index
    %663 = vector.load %arg16[%c2_365, %c0_366, %c0_367, %c0_368] : memref<3x4x32x1xf32, #tpu.memory_space<vmem>>, vector<1x1x32x1xf32>
    %664 = vector.shape_cast %663 : vector<1x1x32x1xf32> to vector<32x1xf32>
    %665 = vector.extract_strided_slice %658 {offsets = [0, 0, 0], sizes = [1, 32, 32], strides = [1, 1, 1]} : vector<3x32x32xbf16> to vector<1x32x32xbf16>
    %666 = vector.shape_cast %665 : vector<1x32x32xbf16> to vector<32x32xbf16>
    %c1_i32_369 = arith.constant 1 : i32
    %667 = tpu.dynamic_rotate %656 by %c1_i32_369 dim 1 : vector<32x256xf32>, i32 -> vector<32x256xf32>
    %cst_370 = arith.constant 0.000000e+00 : f32
    %668 = vector.shape_cast %22 : vector<1x256xi1> to vector<1x256xi1>
    %669 = vector.broadcast %668 : vector<1x256xi1> to vector<32x256xi1>
    %670 = vector.broadcast %cst_370 : f32 to vector<32x256xf32>
    %671 = arith.select %669, %667, %670 : vector<32x256xi1>, vector<32x256xf32>
    %672 = arith.truncf %671 : vector<32x256xf32> to vector<32x256xbf16>
    %cst_371 = arith.constant dense<0.000000e+00> : vector<32x256xf32>
    %673 = tpu.matmul %666, %672, %cst_371 {dimension_numbers = #tpu.dot_dimension_numbers<[1], [0], [0], [1], [0, 0, 1, 1], [], []>} : vector<32x32xbf16>, vector<32x256xbf16>, vector<32x256xf32> -> vector<32x256xf32>
    %674 = vector.extract_strided_slice %658 {offsets = [1, 0, 0], sizes = [1, 32, 32], strides = [1, 1, 1]} : vector<3x32x32xbf16> to vector<1x32x32xbf16>
    %675 = vector.shape_cast %674 : vector<1x32x32xbf16> to vector<32x32xbf16>
    %676 = arith.truncf %656 : vector<32x256xf32> to vector<32x256xbf16>
    %cst_372 = arith.constant dense<0.000000e+00> : vector<32x256xf32>
    %677 = tpu.matmul %675, %676, %cst_372 {dimension_numbers = #tpu.dot_dimension_numbers<[1], [0], [0], [1], [0, 0, 1, 1], [], []>} : vector<32x32xbf16>, vector<32x256xbf16>, vector<32x256xf32> -> vector<32x256xf32>
    %678 = arith.addf %673, %677 : vector<32x256xf32>
    %679 = vector.extract_strided_slice %658 {offsets = [2, 0, 0], sizes = [1, 32, 32], strides = [1, 1, 1]} : vector<3x32x32xbf16> to vector<1x32x32xbf16>
    %680 = vector.shape_cast %679 : vector<1x32x32xbf16> to vector<32x32xbf16>
    %c255_i32_373 = arith.constant 255 : i32
    %681 = tpu.dynamic_rotate %656 by %c255_i32_373 dim 1 : vector<32x256xf32>, i32 -> vector<32x256xf32>
    %cst_374 = arith.constant 0.000000e+00 : f32
    %682 = vector.shape_cast %24 : vector<1x256xi1> to vector<1x256xi1>
    %683 = vector.broadcast %682 : vector<1x256xi1> to vector<32x256xi1>
    %684 = vector.broadcast %cst_374 : f32 to vector<32x256xf32>
    %685 = arith.select %683, %681, %684 : vector<32x256xi1>, vector<32x256xf32>
    %686 = arith.truncf %685 : vector<32x256xf32> to vector<32x256xbf16>
    %cst_375 = arith.constant dense<0.000000e+00> : vector<32x256xf32>
    %687 = tpu.matmul %680, %686, %cst_375 {dimension_numbers = #tpu.dot_dimension_numbers<[1], [0], [0], [1], [0, 0, 1, 1], [], []>} : vector<32x32xbf16>, vector<32x256xbf16>, vector<32x256xf32> -> vector<32x256xf32>
    %688 = arith.addf %678, %687 : vector<32x256xf32>
    %689 = vector.broadcast %660 : vector<32x1xf32> to vector<32x256xf32>
    %690 = arith.addf %688, %689 : vector<32x256xf32>
    %cst_376 = arith.constant 0.000000e+00 : f32
    %691 = vector.broadcast %cst_376 : f32 to vector<32x256xf32>
    %692 = arith.maximumf %690, %691 : vector<32x256xf32>
    %693 = arith.truncf %692 : vector<32x256xf32> to vector<32x256xbf16>
    %cst_377 = arith.constant dense<0.000000e+00> : vector<32x256xf32>
    %694 = tpu.matmul %662, %693, %cst_377 {dimension_numbers = #tpu.dot_dimension_numbers<[1], [0], [0], [1], [0, 0, 1, 1], [], []>} : vector<32x32xbf16>, vector<32x256xbf16>, vector<32x256xf32> -> vector<32x256xf32>
    %695 = vector.broadcast %664 : vector<32x1xf32> to vector<32x256xf32>
    %696 = arith.addf %694, %695 : vector<32x256xf32>
    %697 = arith.addf %656, %696 : vector<32x256xf32>
    %698 = vector.broadcast %3 : vector<1x256xf32> to vector<32x256xf32>
    %699 = arith.mulf %697, %698 : vector<32x256xf32>
    %c9 = arith.constant 9 : index
    %c0_378 = arith.constant 0 : index
    %c0_379 = arith.constant 0 : index
    %c0_380 = arith.constant 0 : index
    %700 = vector.load %arg13[%c9, %c0_378, %c0_379, %c0_380] : memref<12x3x32x32xbf16, #tpu.memory_space<vmem>>, vector<1x3x32x32xbf16>
    %701 = vector.shape_cast %700 : vector<1x3x32x32xbf16> to vector<3x32x32xbf16>
    %c2_381 = arith.constant 2 : index
    %c1_382 = arith.constant 1 : index
    %c0_383 = arith.constant 0 : index
    %c0_384 = arith.constant 0 : index
    %702 = vector.load %arg14[%c2_381, %c1_382, %c0_383, %c0_384] : memref<3x4x32x1xf32, #tpu.memory_space<vmem>>, vector<1x1x32x1xf32>
    %703 = vector.shape_cast %702 : vector<1x1x32x1xf32> to vector<32x1xf32>
    %c2_385 = arith.constant 2 : index
    %c1_386 = arith.constant 1 : index
    %c0_387 = arith.constant 0 : index
    %c0_388 = arith.constant 0 : index
    %704 = vector.load %arg15[%c2_385, %c1_386, %c0_387, %c0_388] : memref<3x4x32x32xbf16, #tpu.memory_space<vmem>>, vector<1x1x32x32xbf16>
    %705 = vector.shape_cast %704 : vector<1x1x32x32xbf16> to vector<32x32xbf16>
    %c2_389 = arith.constant 2 : index
    %c1_390 = arith.constant 1 : index
    %c0_391 = arith.constant 0 : index
    %c0_392 = arith.constant 0 : index
    %706 = vector.load %arg16[%c2_389, %c1_390, %c0_391, %c0_392] : memref<3x4x32x1xf32, #tpu.memory_space<vmem>>, vector<1x1x32x1xf32>
    %707 = vector.shape_cast %706 : vector<1x1x32x1xf32> to vector<32x1xf32>
    %708 = vector.extract_strided_slice %701 {offsets = [0, 0, 0], sizes = [1, 32, 32], strides = [1, 1, 1]} : vector<3x32x32xbf16> to vector<1x32x32xbf16>
    %709 = vector.shape_cast %708 : vector<1x32x32xbf16> to vector<32x32xbf16>
    %c2_i32_393 = arith.constant 2 : i32
    %710 = tpu.dynamic_rotate %699 by %c2_i32_393 dim 1 : vector<32x256xf32>, i32 -> vector<32x256xf32>
    %cst_394 = arith.constant 0.000000e+00 : f32
    %711 = vector.shape_cast %26 : vector<1x256xi1> to vector<1x256xi1>
    %712 = vector.broadcast %711 : vector<1x256xi1> to vector<32x256xi1>
    %713 = vector.broadcast %cst_394 : f32 to vector<32x256xf32>
    %714 = arith.select %712, %710, %713 : vector<32x256xi1>, vector<32x256xf32>
    %715 = arith.truncf %714 : vector<32x256xf32> to vector<32x256xbf16>
    %cst_395 = arith.constant dense<0.000000e+00> : vector<32x256xf32>
    %716 = tpu.matmul %709, %715, %cst_395 {dimension_numbers = #tpu.dot_dimension_numbers<[1], [0], [0], [1], [0, 0, 1, 1], [], []>} : vector<32x32xbf16>, vector<32x256xbf16>, vector<32x256xf32> -> vector<32x256xf32>
    %717 = vector.extract_strided_slice %701 {offsets = [1, 0, 0], sizes = [1, 32, 32], strides = [1, 1, 1]} : vector<3x32x32xbf16> to vector<1x32x32xbf16>
    %718 = vector.shape_cast %717 : vector<1x32x32xbf16> to vector<32x32xbf16>
    %719 = arith.truncf %699 : vector<32x256xf32> to vector<32x256xbf16>
    %cst_396 = arith.constant dense<0.000000e+00> : vector<32x256xf32>
    %720 = tpu.matmul %718, %719, %cst_396 {dimension_numbers = #tpu.dot_dimension_numbers<[1], [0], [0], [1], [0, 0, 1, 1], [], []>} : vector<32x32xbf16>, vector<32x256xbf16>, vector<32x256xf32> -> vector<32x256xf32>
    %721 = arith.addf %716, %720 : vector<32x256xf32>
    %722 = vector.extract_strided_slice %701 {offsets = [2, 0, 0], sizes = [1, 32, 32], strides = [1, 1, 1]} : vector<3x32x32xbf16> to vector<1x32x32xbf16>
    %723 = vector.shape_cast %722 : vector<1x32x32xbf16> to vector<32x32xbf16>
    %c254_i32_397 = arith.constant 254 : i32
    %724 = tpu.dynamic_rotate %699 by %c254_i32_397 dim 1 : vector<32x256xf32>, i32 -> vector<32x256xf32>
    %cst_398 = arith.constant 0.000000e+00 : f32
    %725 = vector.shape_cast %28 : vector<1x256xi1> to vector<1x256xi1>
    %726 = vector.broadcast %725 : vector<1x256xi1> to vector<32x256xi1>
    %727 = vector.broadcast %cst_398 : f32 to vector<32x256xf32>
    %728 = arith.select %726, %724, %727 : vector<32x256xi1>, vector<32x256xf32>
    %729 = arith.truncf %728 : vector<32x256xf32> to vector<32x256xbf16>
    %cst_399 = arith.constant dense<0.000000e+00> : vector<32x256xf32>
    %730 = tpu.matmul %723, %729, %cst_399 {dimension_numbers = #tpu.dot_dimension_numbers<[1], [0], [0], [1], [0, 0, 1, 1], [], []>} : vector<32x32xbf16>, vector<32x256xbf16>, vector<32x256xf32> -> vector<32x256xf32>
    %731 = arith.addf %721, %730 : vector<32x256xf32>
    %732 = vector.broadcast %703 : vector<32x1xf32> to vector<32x256xf32>
    %733 = arith.addf %731, %732 : vector<32x256xf32>
    %cst_400 = arith.constant 0.000000e+00 : f32
    %734 = vector.broadcast %cst_400 : f32 to vector<32x256xf32>
    %735 = arith.maximumf %733, %734 : vector<32x256xf32>
    %736 = arith.truncf %735 : vector<32x256xf32> to vector<32x256xbf16>
    %cst_401 = arith.constant dense<0.000000e+00> : vector<32x256xf32>
    %737 = tpu.matmul %705, %736, %cst_401 {dimension_numbers = #tpu.dot_dimension_numbers<[1], [0], [0], [1], [0, 0, 1, 1], [], []>} : vector<32x32xbf16>, vector<32x256xbf16>, vector<32x256xf32> -> vector<32x256xf32>
    %738 = vector.broadcast %707 : vector<32x1xf32> to vector<32x256xf32>
    %739 = arith.addf %737, %738 : vector<32x256xf32>
    %740 = arith.addf %699, %739 : vector<32x256xf32>
    %741 = vector.broadcast %3 : vector<1x256xf32> to vector<32x256xf32>
    %742 = arith.mulf %740, %741 : vector<32x256xf32>
    %c10 = arith.constant 10 : index
    %c0_402 = arith.constant 0 : index
    %c0_403 = arith.constant 0 : index
    %c0_404 = arith.constant 0 : index
    %743 = vector.load %arg13[%c10, %c0_402, %c0_403, %c0_404] : memref<12x3x32x32xbf16, #tpu.memory_space<vmem>>, vector<1x3x32x32xbf16>
    %744 = vector.shape_cast %743 : vector<1x3x32x32xbf16> to vector<3x32x32xbf16>
    %c2_405 = arith.constant 2 : index
    %c2_406 = arith.constant 2 : index
    %c0_407 = arith.constant 0 : index
    %c0_408 = arith.constant 0 : index
    %745 = vector.load %arg14[%c2_405, %c2_406, %c0_407, %c0_408] : memref<3x4x32x1xf32, #tpu.memory_space<vmem>>, vector<1x1x32x1xf32>
    %746 = vector.shape_cast %745 : vector<1x1x32x1xf32> to vector<32x1xf32>
    %c2_409 = arith.constant 2 : index
    %c2_410 = arith.constant 2 : index
    %c0_411 = arith.constant 0 : index
    %c0_412 = arith.constant 0 : index
    %747 = vector.load %arg15[%c2_409, %c2_410, %c0_411, %c0_412] : memref<3x4x32x32xbf16, #tpu.memory_space<vmem>>, vector<1x1x32x32xbf16>
    %748 = vector.shape_cast %747 : vector<1x1x32x32xbf16> to vector<32x32xbf16>
    %c2_413 = arith.constant 2 : index
    %c2_414 = arith.constant 2 : index
    %c0_415 = arith.constant 0 : index
    %c0_416 = arith.constant 0 : index
    %749 = vector.load %arg16[%c2_413, %c2_414, %c0_415, %c0_416] : memref<3x4x32x1xf32, #tpu.memory_space<vmem>>, vector<1x1x32x1xf32>
    %750 = vector.shape_cast %749 : vector<1x1x32x1xf32> to vector<32x1xf32>
    %751 = vector.extract_strided_slice %744 {offsets = [0, 0, 0], sizes = [1, 32, 32], strides = [1, 1, 1]} : vector<3x32x32xbf16> to vector<1x32x32xbf16>
    %752 = vector.shape_cast %751 : vector<1x32x32xbf16> to vector<32x32xbf16>
    %c4_i32_417 = arith.constant 4 : i32
    %753 = tpu.dynamic_rotate %742 by %c4_i32_417 dim 1 : vector<32x256xf32>, i32 -> vector<32x256xf32>
    %cst_418 = arith.constant 0.000000e+00 : f32
    %754 = vector.shape_cast %30 : vector<1x256xi1> to vector<1x256xi1>
    %755 = vector.broadcast %754 : vector<1x256xi1> to vector<32x256xi1>
    %756 = vector.broadcast %cst_418 : f32 to vector<32x256xf32>
    %757 = arith.select %755, %753, %756 : vector<32x256xi1>, vector<32x256xf32>
    %758 = arith.truncf %757 : vector<32x256xf32> to vector<32x256xbf16>
    %cst_419 = arith.constant dense<0.000000e+00> : vector<32x256xf32>
    %759 = tpu.matmul %752, %758, %cst_419 {dimension_numbers = #tpu.dot_dimension_numbers<[1], [0], [0], [1], [0, 0, 1, 1], [], []>} : vector<32x32xbf16>, vector<32x256xbf16>, vector<32x256xf32> -> vector<32x256xf32>
    %760 = vector.extract_strided_slice %744 {offsets = [1, 0, 0], sizes = [1, 32, 32], strides = [1, 1, 1]} : vector<3x32x32xbf16> to vector<1x32x32xbf16>
    %761 = vector.shape_cast %760 : vector<1x32x32xbf16> to vector<32x32xbf16>
    %762 = arith.truncf %742 : vector<32x256xf32> to vector<32x256xbf16>
    %cst_420 = arith.constant dense<0.000000e+00> : vector<32x256xf32>
    %763 = tpu.matmul %761, %762, %cst_420 {dimension_numbers = #tpu.dot_dimension_numbers<[1], [0], [0], [1], [0, 0, 1, 1], [], []>} : vector<32x32xbf16>, vector<32x256xbf16>, vector<32x256xf32> -> vector<32x256xf32>
    %764 = arith.addf %759, %763 : vector<32x256xf32>
    %765 = vector.extract_strided_slice %744 {offsets = [2, 0, 0], sizes = [1, 32, 32], strides = [1, 1, 1]} : vector<3x32x32xbf16> to vector<1x32x32xbf16>
    %766 = vector.shape_cast %765 : vector<1x32x32xbf16> to vector<32x32xbf16>
    %c252_i32_421 = arith.constant 252 : i32
    %767 = tpu.dynamic_rotate %742 by %c252_i32_421 dim 1 : vector<32x256xf32>, i32 -> vector<32x256xf32>
    %cst_422 = arith.constant 0.000000e+00 : f32
    %768 = vector.shape_cast %32 : vector<1x256xi1> to vector<1x256xi1>
    %769 = vector.broadcast %768 : vector<1x256xi1> to vector<32x256xi1>
    %770 = vector.broadcast %cst_422 : f32 to vector<32x256xf32>
    %771 = arith.select %769, %767, %770 : vector<32x256xi1>, vector<32x256xf32>
    %772 = arith.truncf %771 : vector<32x256xf32> to vector<32x256xbf16>
    %cst_423 = arith.constant dense<0.000000e+00> : vector<32x256xf32>
    %773 = tpu.matmul %766, %772, %cst_423 {dimension_numbers = #tpu.dot_dimension_numbers<[1], [0], [0], [1], [0, 0, 1, 1], [], []>} : vector<32x32xbf16>, vector<32x256xbf16>, vector<32x256xf32> -> vector<32x256xf32>
    %774 = arith.addf %764, %773 : vector<32x256xf32>
    %775 = vector.broadcast %746 : vector<32x1xf32> to vector<32x256xf32>
    %776 = arith.addf %774, %775 : vector<32x256xf32>
    %cst_424 = arith.constant 0.000000e+00 : f32
    %777 = vector.broadcast %cst_424 : f32 to vector<32x256xf32>
    %778 = arith.maximumf %776, %777 : vector<32x256xf32>
    %779 = arith.truncf %778 : vector<32x256xf32> to vector<32x256xbf16>
    %cst_425 = arith.constant dense<0.000000e+00> : vector<32x256xf32>
    %780 = tpu.matmul %748, %779, %cst_425 {dimension_numbers = #tpu.dot_dimension_numbers<[1], [0], [0], [1], [0, 0, 1, 1], [], []>} : vector<32x32xbf16>, vector<32x256xbf16>, vector<32x256xf32> -> vector<32x256xf32>
    %781 = vector.broadcast %750 : vector<32x1xf32> to vector<32x256xf32>
    %782 = arith.addf %780, %781 : vector<32x256xf32>
    %783 = arith.addf %742, %782 : vector<32x256xf32>
    %784 = vector.broadcast %3 : vector<1x256xf32> to vector<32x256xf32>
    %785 = arith.mulf %783, %784 : vector<32x256xf32>
    %c11 = arith.constant 11 : index
    %c0_426 = arith.constant 0 : index
    %c0_427 = arith.constant 0 : index
    %c0_428 = arith.constant 0 : index
    %786 = vector.load %arg13[%c11, %c0_426, %c0_427, %c0_428] : memref<12x3x32x32xbf16, #tpu.memory_space<vmem>>, vector<1x3x32x32xbf16>
    %787 = vector.shape_cast %786 : vector<1x3x32x32xbf16> to vector<3x32x32xbf16>
    %c2_429 = arith.constant 2 : index
    %c3_430 = arith.constant 3 : index
    %c0_431 = arith.constant 0 : index
    %c0_432 = arith.constant 0 : index
    %788 = vector.load %arg14[%c2_429, %c3_430, %c0_431, %c0_432] : memref<3x4x32x1xf32, #tpu.memory_space<vmem>>, vector<1x1x32x1xf32>
    %789 = vector.shape_cast %788 : vector<1x1x32x1xf32> to vector<32x1xf32>
    %c2_433 = arith.constant 2 : index
    %c3_434 = arith.constant 3 : index
    %c0_435 = arith.constant 0 : index
    %c0_436 = arith.constant 0 : index
    %790 = vector.load %arg15[%c2_433, %c3_434, %c0_435, %c0_436] : memref<3x4x32x32xbf16, #tpu.memory_space<vmem>>, vector<1x1x32x32xbf16>
    %791 = vector.shape_cast %790 : vector<1x1x32x32xbf16> to vector<32x32xbf16>
    %c2_437 = arith.constant 2 : index
    %c3_438 = arith.constant 3 : index
    %c0_439 = arith.constant 0 : index
    %c0_440 = arith.constant 0 : index
    %792 = vector.load %arg16[%c2_437, %c3_438, %c0_439, %c0_440] : memref<3x4x32x1xf32, #tpu.memory_space<vmem>>, vector<1x1x32x1xf32>
    %793 = vector.shape_cast %792 : vector<1x1x32x1xf32> to vector<32x1xf32>
    %794 = vector.extract_strided_slice %787 {offsets = [0, 0, 0], sizes = [1, 32, 32], strides = [1, 1, 1]} : vector<3x32x32xbf16> to vector<1x32x32xbf16>
    %795 = vector.shape_cast %794 : vector<1x32x32xbf16> to vector<32x32xbf16>
    %c8_i32_441 = arith.constant 8 : i32
    %796 = tpu.dynamic_rotate %785 by %c8_i32_441 dim 1 : vector<32x256xf32>, i32 -> vector<32x256xf32>
    %cst_442 = arith.constant 0.000000e+00 : f32
    %797 = vector.shape_cast %34 : vector<1x256xi1> to vector<1x256xi1>
    %798 = vector.broadcast %797 : vector<1x256xi1> to vector<32x256xi1>
    %799 = vector.broadcast %cst_442 : f32 to vector<32x256xf32>
    %800 = arith.select %798, %796, %799 : vector<32x256xi1>, vector<32x256xf32>
    %801 = arith.truncf %800 : vector<32x256xf32> to vector<32x256xbf16>
    %cst_443 = arith.constant dense<0.000000e+00> : vector<32x256xf32>
    %802 = tpu.matmul %795, %801, %cst_443 {dimension_numbers = #tpu.dot_dimension_numbers<[1], [0], [0], [1], [0, 0, 1, 1], [], []>} : vector<32x32xbf16>, vector<32x256xbf16>, vector<32x256xf32> -> vector<32x256xf32>
    %803 = vector.extract_strided_slice %787 {offsets = [1, 0, 0], sizes = [1, 32, 32], strides = [1, 1, 1]} : vector<3x32x32xbf16> to vector<1x32x32xbf16>
    %804 = vector.shape_cast %803 : vector<1x32x32xbf16> to vector<32x32xbf16>
    %805 = arith.truncf %785 : vector<32x256xf32> to vector<32x256xbf16>
    %cst_444 = arith.constant dense<0.000000e+00> : vector<32x256xf32>
    %806 = tpu.matmul %804, %805, %cst_444 {dimension_numbers = #tpu.dot_dimension_numbers<[1], [0], [0], [1], [0, 0, 1, 1], [], []>} : vector<32x32xbf16>, vector<32x256xbf16>, vector<32x256xf32> -> vector<32x256xf32>
    %807 = arith.addf %802, %806 : vector<32x256xf32>
    %808 = vector.extract_strided_slice %787 {offsets = [2, 0, 0], sizes = [1, 32, 32], strides = [1, 1, 1]} : vector<3x32x32xbf16> to vector<1x32x32xbf16>
    %809 = vector.shape_cast %808 : vector<1x32x32xbf16> to vector<32x32xbf16>
    %c248_i32_445 = arith.constant 248 : i32
    %810 = tpu.dynamic_rotate %785 by %c248_i32_445 dim 1 : vector<32x256xf32>, i32 -> vector<32x256xf32>
    %cst_446 = arith.constant 0.000000e+00 : f32
    %811 = vector.shape_cast %36 : vector<1x256xi1> to vector<1x256xi1>
    %812 = vector.broadcast %811 : vector<1x256xi1> to vector<32x256xi1>
    %813 = vector.broadcast %cst_446 : f32 to vector<32x256xf32>
    %814 = arith.select %812, %810, %813 : vector<32x256xi1>, vector<32x256xf32>
    %815 = arith.truncf %814 : vector<32x256xf32> to vector<32x256xbf16>
    %cst_447 = arith.constant dense<0.000000e+00> : vector<32x256xf32>
    %816 = tpu.matmul %809, %815, %cst_447 {dimension_numbers = #tpu.dot_dimension_numbers<[1], [0], [0], [1], [0, 0, 1, 1], [], []>} : vector<32x32xbf16>, vector<32x256xbf16>, vector<32x256xf32> -> vector<32x256xf32>
    %817 = arith.addf %807, %816 : vector<32x256xf32>
    %818 = vector.broadcast %789 : vector<32x1xf32> to vector<32x256xf32>
    %819 = arith.addf %817, %818 : vector<32x256xf32>
    %cst_448 = arith.constant 0.000000e+00 : f32
    %820 = vector.broadcast %cst_448 : f32 to vector<32x256xf32>
    %821 = arith.maximumf %819, %820 : vector<32x256xf32>
    %822 = arith.truncf %821 : vector<32x256xf32> to vector<32x256xbf16>
    %cst_449 = arith.constant dense<0.000000e+00> : vector<32x256xf32>
    %823 = tpu.matmul %791, %822, %cst_449 {dimension_numbers = #tpu.dot_dimension_numbers<[1], [0], [0], [1], [0, 0, 1, 1], [], []>} : vector<32x32xbf16>, vector<32x256xbf16>, vector<32x256xf32> -> vector<32x256xf32>
    %824 = vector.broadcast %793 : vector<32x1xf32> to vector<32x256xf32>
    %825 = arith.addf %823, %824 : vector<32x256xf32>
    %826 = arith.addf %785, %825 : vector<32x256xf32>
    %827 = vector.broadcast %3 : vector<1x256xf32> to vector<32x256xf32>
    %828 = arith.mulf %826, %827 : vector<32x256xf32>
    %829 = arith.truncf %828 : vector<32x256xf32> to vector<32x256xbf16>
    %cst_450 = arith.constant dense<0.000000e+00> : vector<8x256xf32>
    %830 = tpu.matmul %650, %829, %cst_450 {dimension_numbers = #tpu.dot_dimension_numbers<[1], [0], [0], [1], [0, 0, 1, 1], [], []>} : vector<8x32xbf16>, vector<32x256xbf16>, vector<8x256xf32> -> vector<8x256xf32>
    %831 = vector.broadcast %652 : vector<8x1xf32> to vector<8x256xf32>
    %832 = arith.addf %830, %831 : vector<8x256xf32>
    %833 = vector.broadcast %3 : vector<1x256xf32> to vector<8x256xf32>
    %834 = arith.mulf %832, %833 : vector<8x256xf32>
    %c0_451 = arith.constant 0 : index
    %c3_452 = arith.constant 3 : index
    %c0_453 = arith.constant 0 : index
    %c0_454 = arith.constant 0 : index
    %835 = vector.load %arg19[%c0_451, %c3_452, %c0_453, %c0_454] : memref<1x4x8x256xf32, #tpu.memory_space<vmem>>, vector<1x1x8x256xf32>
    %836 = vector.shape_cast %835 : vector<1x1x8x256xf32> to vector<8x256xf32>
    %837 = vector.shape_cast %834 : vector<8x256xf32> to vector<1x1x8x256xf32>
    tpu.vector_store %arg19[%c0_451, %c3_452, %c0_453, %c0_454], %837 {strides = array<i32>} : memref<1x4x8x256xf32, #tpu.memory_space<vmem>>, vector<1x1x8x256xf32>,
    %c0_455 = arith.constant 0 : index
    %c0_456 = arith.constant 0 : index
    %c0_457 = arith.constant 0 : index
    %838 = vector.load %arg20[%c0_455, %c0_456, %c0_457] : memref<1x32x256xf32, #tpu.memory_space<vmem>>, vector<1x32x256xf32>
    %839 = vector.shape_cast %838 : vector<1x32x256xf32> to vector<32x256xf32>
    %840 = vector.shape_cast %828 : vector<32x256xf32> to vector<1x32x256xf32>
    tpu.vector_store %arg20[%c0_455, %c0_456, %c0_457], %840 {strides = array<i32>} : memref<1x32x256xf32, #tpu.memory_space<vmem>>, vector<1x32x256xf32>,
    return
  }
  func.func @transform_0(%arg0: i32) -> (i32, i32, i32) {
    %c0_i32 = arith.constant 0 : i32
    %c0_i32_0 = arith.constant 0 : i32
    %c0_i32_1 = arith.constant 0 : i32
    return %arg0, %c0_i32, %c0_i32_0 : i32, i32, i32
  }
  func.func @transform_1(%arg0: i32) -> (i32, i32, i32) {
    %c0_i32 = arith.constant 0 : i32
    %c0_i32_0 = arith.constant 0 : i32
    %c0_i32_1 = arith.constant 0 : i32
    return %arg0, %c0_i32, %c0_i32_0 : i32, i32, i32
  }
  func.func @transform_2(%arg0: i32) -> (i32, i32) {
    %c0_i32 = arith.constant 0 : i32
    %c0_i32_0 = arith.constant 0 : i32
    %c0_i32_1 = arith.constant 0 : i32
    return %c0_i32, %c0_i32_0 : i32, i32
  }
  func.func @transform_3(%arg0: i32) -> (i32, i32) {
    %c0_i32 = arith.constant 0 : i32
    %c0_i32_0 = arith.constant 0 : i32
    %c0_i32_1 = arith.constant 0 : i32
    return %c0_i32, %c0_i32_0 : i32, i32
  }
  func.func @transform_4(%arg0: i32) -> (i32, i32, i32, i32) {
    %c0_i32 = arith.constant 0 : i32
    %c0_i32_0 = arith.constant 0 : i32
    %c0_i32_1 = arith.constant 0 : i32
    %c0_i32_2 = arith.constant 0 : i32
    %c0_i32_3 = arith.constant 0 : i32
    return %c0_i32, %c0_i32_0, %c0_i32_1, %c0_i32_2 : i32, i32, i32, i32
  }
  func.func @transform_5(%arg0: i32) -> (i32, i32, i32) {
    %c0_i32 = arith.constant 0 : i32
    %c0_i32_0 = arith.constant 0 : i32
    %c0_i32_1 = arith.constant 0 : i32
    %c0_i32_2 = arith.constant 0 : i32
    return %c0_i32, %c0_i32_0, %c0_i32_1 : i32, i32, i32
  }
  func.func @transform_6(%arg0: i32) -> (i32, i32, i32) {
    %c0_i32 = arith.constant 0 : i32
    %c0_i32_0 = arith.constant 0 : i32
    %c0_i32_1 = arith.constant 0 : i32
    %c0_i32_2 = arith.constant 0 : i32
    return %c0_i32, %c0_i32_0, %c0_i32_1 : i32, i32, i32
  }
  func.func @transform_7(%arg0: i32) -> (i32, i32, i32) {
    %c0_i32 = arith.constant 0 : i32
    %c0_i32_0 = arith.constant 0 : i32
    %c0_i32_1 = arith.constant 0 : i32
    %c0_i32_2 = arith.constant 0 : i32
    return %c0_i32, %c0_i32_0, %c0_i32_1 : i32, i32, i32
  }
  func.func @transform_8(%arg0: i32) -> (i32, i32) {
    %c0_i32 = arith.constant 0 : i32
    %c0_i32_0 = arith.constant 0 : i32
    %c0_i32_1 = arith.constant 0 : i32
    return %c0_i32, %c0_i32_0 : i32, i32
  }
  func.func @transform_9(%arg0: i32) -> (i32, i32) {
    %c0_i32 = arith.constant 0 : i32
    %c0_i32_0 = arith.constant 0 : i32
    %c0_i32_1 = arith.constant 0 : i32
    return %c0_i32, %c0_i32_0 : i32, i32
  }
  func.func @transform_10(%arg0: i32) -> (i32, i32, i32) {
    %c0_i32 = arith.constant 0 : i32
    %c0_i32_0 = arith.constant 0 : i32
    %c0_i32_1 = arith.constant 0 : i32
    %c0_i32_2 = arith.constant 0 : i32
    return %c0_i32, %c0_i32_0, %c0_i32_1 : i32, i32, i32
  }
  func.func @transform_11(%arg0: i32) -> (i32, i32, i32) {
    %c0_i32 = arith.constant 0 : i32
    %c0_i32_0 = arith.constant 0 : i32
    %c0_i32_1 = arith.constant 0 : i32
    %c0_i32_2 = arith.constant 0 : i32
    return %c0_i32, %c0_i32_0, %c0_i32_1 : i32, i32, i32
  }
  func.func @transform_12(%arg0: i32) -> (i32, i32, i32, i32) {
    %c0_i32 = arith.constant 0 : i32
    %c0_i32_0 = arith.constant 0 : i32
    %c0_i32_1 = arith.constant 0 : i32
    %c0_i32_2 = arith.constant 0 : i32
    %c0_i32_3 = arith.constant 0 : i32
    return %c0_i32, %c0_i32_0, %c0_i32_1, %c0_i32_2 : i32, i32, i32, i32
  }
  func.func @transform_13(%arg0: i32) -> (i32, i32, i32, i32) {
    %c0_i32 = arith.constant 0 : i32
    %c0_i32_0 = arith.constant 0 : i32
    %c0_i32_1 = arith.constant 0 : i32
    %c0_i32_2 = arith.constant 0 : i32
    %c0_i32_3 = arith.constant 0 : i32
    return %c0_i32, %c0_i32_0, %c0_i32_1, %c0_i32_2 : i32, i32, i32, i32
  }
  func.func @transform_14(%arg0: i32) -> (i32, i32, i32, i32) {
    %c0_i32 = arith.constant 0 : i32
    %c0_i32_0 = arith.constant 0 : i32
    %c0_i32_1 = arith.constant 0 : i32
    %c0_i32_2 = arith.constant 0 : i32
    %c0_i32_3 = arith.constant 0 : i32
    return %c0_i32, %c0_i32_0, %c0_i32_1, %c0_i32_2 : i32, i32, i32, i32
  }
  func.func @transform_15(%arg0: i32) -> (i32, i32, i32, i32) {
    %c0_i32 = arith.constant 0 : i32
    %c0_i32_0 = arith.constant 0 : i32
    %c0_i32_1 = arith.constant 0 : i32
    %c0_i32_2 = arith.constant 0 : i32
    %c0_i32_3 = arith.constant 0 : i32
    return %c0_i32, %c0_i32_0, %c0_i32_1, %c0_i32_2 : i32, i32, i32, i32
  }
  func.func @transform_16(%arg0: i32) -> (i32, i32, i32) {
    %c0_i32 = arith.constant 0 : i32
    %c0_i32_0 = arith.constant 0 : i32
    %c0_i32_1 = arith.constant 0 : i32
    %c0_i32_2 = arith.constant 0 : i32
    return %c0_i32, %c0_i32_0, %c0_i32_1 : i32, i32, i32
  }
  func.func @transform_17(%arg0: i32) -> (i32, i32, i32) {
    %c0_i32 = arith.constant 0 : i32
    %c0_i32_0 = arith.constant 0 : i32
    %c0_i32_1 = arith.constant 0 : i32
    %c0_i32_2 = arith.constant 0 : i32
    return %c0_i32, %c0_i32_0, %c0_i32_1 : i32, i32, i32
  }
  func.func @transform_18(%arg0: i32) -> (i32, i32, i32, i32) {
    %c0_i32 = arith.constant 0 : i32
    %c0_i32_0 = arith.constant 0 : i32
    %c0_i32_1 = arith.constant 0 : i32
    %c0_i32_2 = arith.constant 0 : i32
    return %arg0, %c0_i32, %c0_i32_0, %c0_i32_1 : i32, i32, i32, i32
  }
  func.func @transform_19(%arg0: i32) -> (i32, i32, i32) {
    %c0_i32 = arith.constant 0 : i32
    %c0_i32_0 = arith.constant 0 : i32
    %c0_i32_1 = arith.constant 0 : i32
    return %arg0, %c0_i32, %c0_i32_0 : i32, i32, i32
  }
}

</mosaic_0001>

<bundles_post_ra>
// kernel: multi_stage_forward.1
= control target key start
LH: loop header
LB: loop body
LE: loop exit
PB: predicated region body
PF: predicated region fallthrough
CT: control target
= control target key end

     0   :  { %s13635_s0 = inlined_call_operand.vmem [shape: f32[1,16,256], index: 0, kind: input, shape index: {}]   ;;  %s13636_s1 = inlined_call_operand.vmem [shape: f32[1,1,256], index: 1, kind: input, shape index: {}]   ;;  %s13637_s2 = inlined_call_operand.vmem [shape: bf16[32,16], index: 2, kind: input, shape index: {}]   ;;  %s13638_s3 = inlined_call_operand.vmem [shape: f32[32,1], index: 3, kind: input, shape index: {}]   ;;  %s13639_s4 = inlined_call_operand.vmem [shape: bf16[4,3,32,32], index: 4, kind: input, shape index: {}]   ;;  %s13640_s5 = inlined_call_operand.vmem [shape: f32[4,32,1], index: 5, kind: input, shape index: {}]   ;;  %s13641_s6 = inlined_call_operand.vmem [shape: bf16[4,32,32], index: 6, kind: input, shape index: {}]   ;;  %s13642_s7 = inlined_call_operand.vmem [shape: f32[4,32,1], index: 7, kind: input, shape index: {}]   ;;  %s13643_s8 = inlined_call_operand.vmem [shape: bf16[8,32], index: 8, kind: input, shape index: {}]   ;;  %s13644_s9 = inlined_call_operand.vmem [shape: f32[8,1], index: 9, kind: input, shape index: {}]   ;;  %s13645_s10 = inlined_call_operand.vmem [shape: bf16[3,32,8], index: 10, kind: input, shape index: {}]   ;;  %s13646_s11 = inlined_call_operand.vmem [shape: f32[3,32,1], index: 11, kind: input, shape index: {}]   ;;  %s13647_s12 = inlined_call_operand.vmem [shape: bf16[12,3,32,32], index: 12, kind: input, shape index: {}]   ;;  %s13648_s13 = inlined_call_operand.vmem [shape: f32[3,4,32,1], index: 13, kind: input, shape index: {}]   ;;  %s13649_s14 = inlined_call_operand.vmem [shape: bf16[3,4,32,32], index: 14, kind: input, shape index: {}]   ;;  %s13650_s15 = inlined_call_operand.vmem [shape: f32[3,4,32,1], index: 15, kind: input, shape index: {}]   ;;  %s13651_s16 = inlined_call_operand.vmem [shape: bf16[3,8,32], index: 16, kind: input, shape index: {}]   ;;  %s13652_s17 = inlined_call_operand.vmem [shape: f32[3,8,1], index: 17, kind: input, shape index: {}]   ;;  %s13653_s18 = inlined_call_operand.hbm [shape: f32[1,4,8,256], index: 18, kind: output, shape index: {0}]   ;;  %s13654_s19 = inlined_call_operand.vmem [shape: f32[1,32,256], index: 19, kind: output, shape index: {1}]  }
   0x1   :  { %13698 = sst [smem:[#allocation5_spill]] %s13635_s0 }
   0x2   :  { %13699 = sst [smem:[#allocation6_spill]] %s13636_s1 }
   0x3   :  { %13700 = sst [smem:[#allocation7_spill]] %s13637_s2 }
   0x4   :  { %13701 = sst [smem:[#allocation8_spill]] %s13638_s3 }
   0x5   :  { %s13702_s20 = sld [smem:[#allocation5_spill]]  ;;  %v10516_v5 = vmov 0   ;;  %s13703_s26 = sld [smem:[#allocation7_spill]]  ;;  %vm153_vm0 = vcmask 130048  }
   0x6   :  { %192 = vmatprep.mubr.bf16.mxu0 %v10516_v5  ;;  %9690 = vset.pattern.permute.xlu0 %v10516_v5  ;;  %s13704_s29 = sld [smem:[#allocation8_spill]] }
   0x7   :  { %9691 = vset.pattern.permute.xlu1 %v10516_v5  ;;  %331 = vmatprep.mubr.bf16.mxu1 %v10516_v5 }
   0xb   :  { %v64_v0 = vld [vmem:[%s13702_s20 + $0x8] sm:$0xff]  ;;  %v66_v1 = vld [vmem:[%s13702_s20 + $0x18] sm:$0xff]  ;;  %v63_v2 = vld [vmem:[%s13702_s20] sm:$0xff] }
   0xc   :  { %v122_v3 = vpack.c.bf16 %v66_v1, %v64_v0  ;;  %v65_v4 = vld [vmem:[%s13702_s20 + $0x10] sm:$0xff]  ;;  %v10332_v7 = vld [vmem:[%s13703_s26] sm:$0xff]   ;;  %v116_v9 = vld [vmem:[%s13704_s29 + $0x8] sm:$0xff] }
   0xd   :  { %v121_v6 = vpack.c.bf16 %v65_v4, %v63_v2  ;;  %v115_v8 = vld [vmem:[%s13704_s29] sm:$0xff]  ;;  %v117_v10 = vld [vmem:[%s13704_s29 + $0x10] sm:$0xff]  ;;  %v118_v11 = vld [vmem:[%s13704_s29 + $0x18] sm:$0xff] }
   0xe   :  { %160 = vmatprep.subr.bf16.mxu0 %v122_v3  ;;  %125 = vperm.xlu0 %9690, %v115_v8   ;;  %v10333_v12 = vld [vmem:[%s13703_s26 + $0x8] sm:$0xff]  }
   0xf   :  { %161 = vmatpush1.bf16.msra.mxu0 %v121_v6  ;;  %135 = vperm.xlu1 %9691, %v117_v10  }
  0x12   :  { %8405 = vmatmul.mubr.msk.bf16.vlgmr.msra.gmra.mrb[0].mxu0 %vm153_vm0, %v10332_v7  ;;  %130 = vperm.xlu0 %9690, %v116_v9  }
  0x13   :  { %202 = vmatprep.mubr.bf16.mxu0 %v10516_v5  ;;  %140 = vperm.xlu1 %9691, %v118_v11  }
  0x1a   :  { %8406 = vmatmul.mubr.msk.bf16.gmra.mrb[4].mxu0 %vm153_vm0, %v10333_v12 }
  0x1b   :  { %647 = vmatprep.mubr.bf16.mxu0 %v10516_v5 }
  0x1c   :  { %25 = vsyncpa [#allocation3], 0  ;;  %s10517_s24 = smov 1   ;;  %v10334_v41 = vld [vmem:[%s13639_s4 + $0x10] sm:$0xff]   ;;  %vm13670_vm1 = vcmask 261120   ;;  %s10518_s26 = smov 127   ;;  %v68_v51 = vlaneseq }
  0x1d   :  { %v225_v42 = vld [vmem:[%s13640_s5] sm:$0xff]  ;;  %v10335_v43 = vld [vmem:[%s13639_s4 + $0x18] sm:$0xff]   ;;  %v226_v44 = vld [vmem:[%s13640_s5 + $0x8] sm:$0xff]  ;;  %v13707_v4 = vmov 0  ;;  %s13713_s21 = sld [smem:[#allocation6_spill]]  ;;  %s10519_s1 = smov 2  }
  0x1e   :  { %v227_v45 = vld [vmem:[%s13640_s5 + $0x10] sm:$0xff]  ;;  %v228_v46 = vld [vmem:[%s13640_s5 + $0x18] sm:$0xff]  ;;  %v233_v47 = vld [vmem:[%s13642_s7] sm:$0xff]  ;;  %v10739_v52 = vand.u32 127, %v68_v51  ;;  %s10520_s23 = smov 126   ;;  %s13658_s25 = smov 124  }
  0x1f   :  { %v234_v48 = vld [vmem:[%s13642_s7 + $0x8] sm:$0xff]  ;;  %v235_v49 = vld [vmem:[%s13642_s7 + $0x10] sm:$0xff]  ;;  %v236_v50 = vld [vmem:[%s13642_s7 + $0x18] sm:$0xff]  ;;  %s13666_s3 = smov 8   ;;  %s13664_s29 = smov 120  }
  0x20   :  { %v70_v53 = vadd.s32 128, %v10739_v52  ;;  %vm13669_vm2 = vcmp.lt.s32.totalorder %v10739_v52, 1  ;;  %vm95_vm4 = vcmp.ge.s32.totalorder %v10739_v52, 1  ;;  %vm13662_vm7 = vcmp.lt.s32.totalorder %v10739_v52, 127  ;;  %s13788_s27 = smov 124   ;;  %s13814_s28 = smov 8  }
  0x21   :  { %vm10759_vm6 = vmpackc.low %vm95_vm4, %vm95_vm4  ;;  %vm13661_vm11 = vcmp.lt.s32.totalorder %v10739_v52, 2  ;;  %vm99_vm13 = vcmp.ge.s32.totalorder %v10739_v52, 2  ;;  %vm13660_vm0 = vcmp.lt.s32.totalorder %v10739_v52, 126 }
  0x22   :  { %v10742_v54 = vand.u32 127, %v70_v53  ;;  %v13708_v4 = vsel %vm10759_vm6, 4294967295, %v13707_v4  ;;  %vm10802_vm10 = vmpackc.low %vm13662_vm7, %vm13662_vm7 }
  0x23   :  { %vm10965_vm15 = vmpackc.low %vm99_vm13, %vm99_vm13 }
  0x24   :  { %vm96_vm3 = vcmp.ge.s32.totalorder %v10742_v54, 1  ;;  %vm98_vm8 = vcmp.lt.s32.totalorder %v10742_v54, 127  ;;  %vm100_vm12 = vcmp.ge.s32.totalorder %v10742_v54, 2  ;;  %vm104_vm13 = vcmp.ge.s32.totalorder %v10742_v54, 4 }
  0x25   :  { %vm10755_vm5 = vmpackc.low %vm96_vm3, %vm96_vm3  ;;  %vm102_vm3 = vcmp.lt.s32.totalorder %v10742_v54, 126 }
  0x26   :  { %vm10795_vm9 = vmpackc.low %vm98_vm8, %vm98_vm8 }
  0x27   :  { %vm10961_vm14 = vmpackc.low %vm100_vm12, %vm100_vm12  ;;  %vm13663_vm12 = vcmp.lt.s32.totalorder %v10739_v52, 4 }
  0x28   :  { %vm11001_vm4 = vmpackc.low %vm102_vm3, %vm102_vm3  ;;  %vm103_vm3 = vcmp.ge.s32.totalorder %v10739_v52, 4 }
  0x29   :  { %vm11008_vm8 = vmpackc.low %vm13660_vm0, %vm13660_vm0 }
  0x8d   :  { %v126_v13 = vpop.permute.xlu0 %125 }
  0x8e   :  { %v136_v22 = vpop.permute.xlu1 %135 }
  0x91   :  { %v131_v14 = vpop.permute.xlu0 %130 }
  0x92   :  { %v141_v30 = vpop.permute.xlu1 %140 }
  0xe5   :  { %v194_v15 = vpop.f32.mrb[0].mxu0 }
  0xe6   :  { %v196_v16 = vpop.f32.mrb[1].mxu0  ;;  %v10664_v18 = vadd.f32 %v194_v15, %v126_v13 }
  0xe7   :  { %v198_v17 = vpop.f32.mrb[2].mxu0  ;;  %v10668_v21 = vadd.f32 %v196_v16, %v126_v13 }
  0xe8   :  { %v10666_v19 = vadd.f32 %v198_v17, %v131_v14  ;;  %v200_v20 = vpop.f32.mrb[3].mxu0 }
  0xe9   :  { %v10670_v23 = vadd.f32 %v200_v20, %v131_v14 }
  0xea   :  { %v9692_v24 = vpack.i.bf16 %v10666_v19, %v10664_v18  ;;  %v278_v27 = vpack.c.bf16 %v10666_v19, %v10664_v18 }
  0xeb   :  { %v9697_v25 = vpack.i.bf16 %v10670_v23, %v10668_v21  ;;  %v279_v26 = vpack.c.bf16 %v10670_v23, %v10668_v21 }
  0xec   :  { %9693 = vrot.lane.b32.xlu0 %v9692_v24, %s10517_s24 }
  0xed   :  { %v204_v28 = vpop.f32.mrb[4].mxu0  ;;  %9698 = vrot.lane.b32.xlu1 %v9697_v25, %s10517_s24  ;;  %299 = vmatprep.subr.bf16.mxu1 %v279_v26 }
  0xee   :  { %v206_v29 = vpop.f32.mrb[5].mxu0  ;;  %300 = vmatpush1.bf16.msra.mxu1 %v278_v27  ;;  %v10682_v32 = vadd.f32 %v204_v28, %v136_v22  ;;  %v10336_v28 = vld [vmem:[%s13639_s4] sm:$0xff]  }
  0xef   :  { %v208_v31 = vpop.f32.mrb[6].mxu0  ;;  %v10686_v35 = vadd.f32 %v206_v29, %v136_v22 }
  0xf0   :  { %v10684_v33 = vadd.f32 %v208_v31, %v141_v30  ;;  %v210_v34 = vpop.f32.mrb[7].mxu0 }
  0xf1   :  { %v10688_v36 = vadd.f32 %v210_v34, %v141_v30 }
  0xf2   :  { %v9702_v37 = vpack.i.bf16 %v10684_v33, %v10682_v32  ;;  %v280_v40 = vpack.c.bf16 %v10684_v33, %v10682_v32 }
  0xf3   :  { %v9707_v38 = vpack.i.bf16 %v10688_v36, %v10686_v35  ;;  %v281_v39 = vpack.c.bf16 %v10688_v36, %v10686_v35 }
  0xf4   :  { %9703 = vrot.lane.b32.xlu0 %v9702_v37, %s10517_s24 }
  0xf5   :  { %9708 = vrot.lane.b32.xlu1 %v9707_v38, %s10517_s24  ;;  %301 = vmatprep.subr.bf16.mxu1 %v281_v39 }
  0xf6   :  { %302 = vmatpush1.bf16.msra.mxu1 %v280_v40 }
  0xf8   :  { %9713 = vrot.lane.b32.xlu0 %v9692_v24, %s10518_s26 }
  0xf9   :  { %9718 = vrot.lane.b32.xlu1 %v9697_v25, %s10518_s26  ;;  %8409 = vmatmul.mubr.msk.bf16.vlgmr.msra.gmra.mrb[0].mxu1 %vm13670_vm1, %v10334_v41 }
  0xfa   :  { %341 = vmatprep.mubr.bf16.mxu1 %v10516_v5 }
  0xfc   :  { %9723 = vrot.lane.b32.xlu0 %v9702_v37, %s10518_s26 }
  0xfd   :  { %9728 = vrot.lane.b32.xlu1 %v9707_v38, %s10518_s26  ;;  %v10441_v38 = vld [vmem:[%s13647_s12 + $0x1a8] sm:$0xff]  }
 0x100   :  { %541 = vperm.xlu0 %9690, %v225_v42  }
 0x101   :  { %546 = vperm.xlu1 %9691, %v226_v44   ;;  %8410 = vmatmul.mubr.msk.bf16.gmra.mrb[4].mxu1 %vm13670_vm1, %v10335_v43 }
 0x102   :  { %400 = vmatprep.mubr.bf16.mxu1 %v10516_v5 }
 0x104   :  { %551 = vperm.xlu0 %9690, %v227_v45  }
 0x105   :  { %556 = vperm.xlu1 %9691, %v228_v46  }
 0x108   :  { %581 = vperm.xlu0 %9690, %v233_v47  }
 0x109   :  { %586 = vperm.xlu1 %9691, %v234_v48  }
 0x10c   :  { %591 = vperm.xlu0 %9690, %v235_v49  }
 0x10d   :  { %596 = vperm.xlu1 %9691, %v236_v50  }
 0x15e   :  { %v9694_v55 = vpop.permute.xlu0 %9693 }
 0x15f   :  { %v9696_v56 = vunpack.i.h.bf16 %v9694_v55  ;;  %v9695_v57 = vunpack.i.l.bf16 %v9694_v55  ;;  %v9699_v58 = vpop.permute.xlu1 %9698 }
 0x160   :  { %v9701_v59 = vunpack.i.h.bf16 %v9699_v58  ;;  %v9700_v60 = vunpack.i.l.bf16 %v9699_v58  ;;  %v10339_v58 = vld [vmem:[%s13639_s4 + $0x28] sm:$0xff]  }
 0x162   :  { %v254_v61 = vsel %vm13669_vm2, %v9695_v57, %v9700_v60  ;;  %v255_v62 = vsel %vm13669_vm2, %v9696_v56, %v9701_v59  ;;  %v258_v63 = vsel %vm13669_vm2, %v9700_v60, %v9695_v57  ;;  %v259_v0 = vsel %vm13669_vm2, %v9701_v59, %v9696_v56  ;;  %v10337_v56 = vld [vmem:[%s13639_s4 + $0x8] sm:$0xff]   ;;  %v10338_v57 = vld [vmem:[%s13639_s4 + $0x20] sm:$0xff]  }
 0x163   :  { %v8417_v2 = vpack.c.bf16 %v259_v0, %v258_v63  ;;  %v8414_v3 = vpack.c.bf16 %v255_v62, %v254_v61 }
 0x165   :  { %8415 = vmatprep.subr.msk.bf16.mxu1 %vm10755_vm5, %v8414_v3 }
 0x166   :  { %v9704_v6 = vpop.permute.xlu0 %9703  ;;  %8418 = vmatpush1.bf16.msk.msra.mxu1 %vm10759_vm6, %v8417_v2 }
 0x167   :  { %v9706_v7 = vunpack.i.h.bf16 %v9704_v6  ;;  %v9705_v8 = vunpack.i.l.bf16 %v9704_v6  ;;  %v9709_v9 = vpop.permute.xlu1 %9708 }
 0x168   :  { %v9711_v10 = vunpack.i.h.bf16 %v9709_v9  ;;  %v9710_v11 = vunpack.i.l.bf16 %v9709_v9 }
 0x16a   :  { %v256_v12 = vsel %vm13669_vm2, %v9705_v8, %v9710_v11  ;;  %v257_v13 = vsel %vm13669_vm2, %v9706_v7, %v9711_v10  ;;  %v260_v14 = vsel %vm13669_vm2, %v9710_v11, %v9705_v8  ;;  %v261_v15 = vsel %vm13669_vm2, %v9711_v10, %v9706_v7  ;;  %v9714_v16 = vpop.permute.xlu0 %9713 }
 0x16b   :  { %v8423_v17 = vpack.c.bf16 %v261_v15, %v260_v14  ;;  %v9716_v20 = vunpack.i.h.bf16 %v9714_v16  ;;  %v9715_v22 = vunpack.i.l.bf16 %v9714_v16  ;;  %v9719_v24 = vpop.permute.xlu1 %9718  ;;  %v8420_v25 = vpack.c.bf16 %v257_v13, %v256_v12 }
 0x16c   :  { %v9721_v26 = vunpack.i.h.bf16 %v9719_v24  ;;  %v9720_v27 = vunpack.i.l.bf16 %v9719_v24  ;;  %vm107_vm2 = vcmp.ge.s32.totalorder %v10739_v52, 8 }
 0x16d   :  { %8421 = vmatprep.subr.msk.bf16.mxu1 %vm10755_vm5, %v8420_v25 }
 0x16e   :  { %v438_v29 = vsel %vm13662_vm7, %v9715_v22, %v9720_v27  ;;  %v439_v30 = vsel %vm13662_vm7, %v9716_v20, %v9721_v26  ;;  %v442_v31 = vsel %vm13662_vm7, %v9720_v27, %v9715_v22  ;;  %v443_v34 = vsel %vm13662_vm7, %v9721_v26, %v9716_v20  ;;  %v9724_v37 = vpop.permute.xlu0 %9723  ;;  %8424 = vmatpush1.bf16.msk.msra.mxu1 %vm10759_vm6, %v8423_v17 }
 0x16f   :  { %v8433_v39 = vpack.c.bf16 %v439_v30, %v438_v29  ;;  %v9726_v40 = vunpack.i.h.bf16 %v9724_v37  ;;  %v9725_v41 = vunpack.i.l.bf16 %v9724_v37  ;;  %v9729_v42 = vpop.permute.xlu1 %9728  ;;  %v8430_v43 = vpack.c.bf16 %v443_v34, %v442_v31 }
 0x170   :  { %v9731_v45 = vunpack.i.h.bf16 %v9729_v42  ;;  %v9730_v46 = vunpack.i.l.bf16 %v9729_v42 }
 0x171   :  { %8425 = vmatmul.mubr.msk.bf16.vlgmr.msra.gmra.mrb[0].mxu1 %vm13670_vm1, %v10336_v28  ;;  %8431 = vmatprep.subr.msk.bf16.mxu1 %vm10795_vm9, %v8430_v43  ;;  %v67_v43 = vld [vmem:[%s13713_s21] sm:$0x3]  ;;  %s10521_s21 = smov 4  }
 0x172   :  { %v440_v47 = vsel %vm13662_vm7, %v9725_v41, %v9730_v46  ;;  %v441_v48 = vsel %vm13662_vm7, %v9726_v40, %v9731_v45  ;;  %v444_v49 = vsel %vm13662_vm7, %v9730_v46, %v9725_v41  ;;  %v445_v50 = vsel %vm13662_vm7, %v9731_v45, %v9726_v40  ;;  %8434 = vmatpush1.bf16.msk.msra.mxu1 %vm10802_vm10, %v8433_v39  ;;  %v10340_v39 = vld [vmem:[%s13641_s6] sm:$0xff]   ;;  %v10341_v40 = vld [vmem:[%s13641_s6 + $0x8] sm:$0xff]  }
 0x173   :  { %v8439_v53 = vpack.c.bf16 %v441_v48, %v440_v47  ;;  %v8436_v55 = vpack.c.bf16 %v445_v50, %v444_v49  ;;  %410 = vmatprep.mubr.bf16.mxu1 %v10516_v5  ;;  %v678_v41 = vshrl.u32 %v68_v51, 7  ;;  %vm106_vm7 = vcmp.lt.s32.totalorder %v10742_v54, 124 }
 0x175   :  { %8437 = vmatprep.subr.msk.bf16.mxu1 %vm10795_vm9, %v8436_v55  ;;  %v10850_v42 = vsub.s32 0, %v678_v41  ;;  %v683_v45 = vsub.s32 1, %v678_v41  ;;  %v8468_v41 = vld [vmem:[%s13642_s7 + $0x28] sm:$0xff] }
 0x176   :  { %8440 = vmatpush1.bf16.msk.msra.mxu1 %vm10802_vm10, %v8439_v53 }
 0x179   :  { %8426 = vmatmul.mubr.msk.bf16.gmra.mrb[4].mxu1 %vm13670_vm1, %v10337_v56  ;;  %v10856_v56 = vrot.slane %v67_v43, %v10850_v42 }
 0x17a   :  { %510 = vmatprep.mubr.bf16.mxu1 %v10516_v5 }
 0x17f   :  { %v542_v59 = vpop.permute.xlu0 %541 }
 0x180   :  { %v547_v63 = vpop.permute.xlu1 %546 }
 0x181   :  { %8441 = vmatmul.mubr.msk.bf16.vlgmr.msra.gmra.mrb[0].mxu1 %vm13670_vm1, %v10338_v57 }
 0x182   :  { %520 = vmatprep.mubr.bf16.mxu1 %v10516_v5 }
 0x183   :  { %v552_v13 = vpop.permute.xlu0 %551 }
 0x184   :  { %v557_v20 = vpop.permute.xlu1 %556 }
 0x187   :  { %v582_v46 = vpop.permute.xlu0 %581 }
 0x188   :  { %v587_v50 = vpop.permute.xlu1 %586 }
 0x189   :  { %8442 = vmatmul.mubr.msk.bf16.gmra.mrb[4].mxu1 %vm13670_vm1, %v10339_v58 }
 0x18a   :  { %1132 = vmatprep.mubr.bf16.mxu1 %v10516_v5 }
 0x254   :  { %v512_v60 = vpop.f32.mrb[0].mxu1 }
 0x255   :  { %v559_v61 = vadd.f32 %v542_v59, %v512_v60  ;;  %v514_v62 = vpop.f32.mrb[1].mxu1 }
 0x256   :  { %v560_v0 = vadd.f32 %v542_v59, %v514_v62  ;;  %v516_v2 = vpop.f32.mrb[2].mxu1  ;;  %v10859_v59 = vrot.slane %v67_v43, %v683_v45  ;;  %v8469_v43 = vld [vmem:[%s13642_s7 + $0x30] sm:$0xff]  ;;  %v8470_v45 = vld [vmem:[%s13642_s7 + $0x38] sm:$0xff] }
 0x257   :  { %v561_v3 = vadd.f32 %v547_v63, %v516_v2  ;;  %v518_v6 = vpop.f32.mrb[3].mxu1  ;;  %v567_v8 = vmax.f32 %v559_v61, 0.0 }
 0x258   :  { %v562_v7 = vadd.f32 %v547_v63, %v518_v6  ;;  %v568_v10 = vmax.f32 %v560_v0, 0.0 }
 0x259   :  { %v569_v9 = vmax.f32 %v561_v3, 0.0  ;;  %v592_v3 = vpop.permute.xlu0 %591 }
 0x25a   :  { %v570_v11 = vmax.f32 %v562_v7, 0.0 }
 0x25b   :  { %v575_v12 = vpack.c.bf16 %v569_v9, %v567_v8 }
 0x25c   :  { %v576_v14 = vpack.c.bf16 %v570_v11, %v568_v10  ;;  %v522_v15 = vpop.f32.mrb[4].mxu1 }
 0x25d   :  { %v563_v16 = vadd.f32 %v552_v13, %v522_v15  ;;  %v524_v17 = vpop.f32.mrb[5].mxu1 }
 0x25e   :  { %v564_v22 = vadd.f32 %v552_v13, %v524_v17  ;;  %v526_v24 = vpop.f32.mrb[6].mxu1  ;;  %615 = vmatprep.subr.bf16.mxu0 %v576_v14 }
 0x25f   :  { %v565_v25 = vadd.f32 %v557_v20, %v526_v24  ;;  %v528_v26 = vpop.f32.mrb[7].mxu1  ;;  %616 = vmatpush1.bf16.msra.mxu0 %v575_v12  ;;  %v571_v28 = vmax.f32 %v563_v16, 0.0 }
 0x260   :  { %v566_v27 = vadd.f32 %v557_v20, %v528_v26  ;;  %v572_v30 = vmax.f32 %v564_v22, 0.0 }
 0x261   :  { %v573_v29 = vmax.f32 %v565_v25, 0.0 }
 0x262   :  { %v574_v31 = vmax.f32 %v566_v27, 0.0 }
 0x263   :  { %v577_v34 = vpack.c.bf16 %v573_v29, %v571_v28  ;;  %v10342_v29 = vld [vmem:[%s13639_s4 + $0x40] sm:$0xff]  }
 0x264   :  { %v578_v37 = vpack.c.bf16 %v574_v31, %v572_v30  ;;  %v8459_v30 = vld [vmem:[%s13640_s5 + $0x20] sm:$0xff]  ;;  %v10343_v31 = vld [vmem:[%s13639_s4 + $0x48] sm:$0xff]  }
 0x266   :  { %617 = vmatprep.subr.bf16.mxu0 %v578_v37  ;;  %v8461_v37 = vld [vmem:[%s13640_s5 + $0x30] sm:$0xff] }
 0x267   :  { %618 = vmatpush1.bf16.msra.mxu0 %v577_v34  ;;  %v8460_v34 = vld [vmem:[%s13640_s5 + $0x28] sm:$0xff] }
 0x26a   :  { %8445 = vmatmul.mubr.msk.bf16.vlgmr.msra.gmra.mrb[8].mxu0 %vm13670_vm1, %v10340_v39  ;;  %v8462_v39 = vld [vmem:[%s13640_s5 + $0x38] sm:$0xff] }
 0x26b   :  { %657 = vmatprep.mubr.bf16.mxu0 %v10516_v5 }
 0x272   :  { %8446 = vmatmul.mubr.msk.bf16.gmra.mrb[12].mxu0 %vm13670_vm1, %v10341_v40  ;;  %v8467_v40 = vld [vmem:[%s13642_s7 + $0x20] sm:$0xff] }
 0x273   :  { %816 = vmatprep.mubr.bf16.mxu0 %v10516_v5 }
 0x33d   :  { %v649_v47 = vpop.f32.mrb[8].mxu0 }
 0x33e   :  { %v650_v48 = vadd.f32 %v649_v47, %v582_v46  ;;  %v651_v49 = vpop.f32.mrb[9].mxu0 }
 0x33f   :  { %v652_v53 = vadd.f32 %v651_v49, %v582_v46  ;;  %v653_v55 = vpop.f32.mrb[10].mxu0 }
 0x340   :  { %v668_v57 = vadd.f32 %v650_v48, %v10664_v18  ;;  %v654_v51 = vadd.f32 %v653_v55, %v587_v50  ;;  %v655_v58 = vpop.f32.mrb[11].mxu0 }
 0x341   :  { %v669_v60 = vadd.f32 %v652_v53, %v10668_v21  ;;  %v656_v61 = vadd.f32 %v655_v58, %v587_v50 }
 0x342   :  { %v670_v62 = vadd.f32 %v654_v51, %v10666_v19  ;;  %v10865_v0 = vmul.f32 %v10856_v56, %v668_v57 }
 0x343   :  { %v671_v63 = vadd.f32 %v656_v61, %v10670_v23  ;;  %v10871_v18 = vmul.f32 %v10859_v59, %v669_v60  ;;  %v597_v23 = vpop.permute.xlu1 %596  ;;  %v13714_v60 = vmov 0 }
 0x344   :  { %v10868_v2 = vmul.f32 %v10856_v56, %v670_v62  ;;  %v13715_v60 = vsel %vm10961_vm14, 4294967295, %v13714_v60 }
 0x345   :  { %v10874_v6 = vmul.f32 %v10859_v59, %v671_v63  ;;  %v659_v7 = vpop.f32.mrb[12].mxu0  ;;  %v13716_v63 = vmov 0 }
 0x346   :  { %v660_v21 = vadd.f32 %v659_v7, %v592_v3  ;;  %v661_v8 = vpop.f32.mrb[13].mxu0  ;;  %v9732_v19 = vpack.i.bf16 %v10868_v2, %v10865_v0  ;;  %v764_v16 = vpack.c.bf16 %v10868_v2, %v10865_v0  ;;  %v13717_v63 = vsel %vm10965_vm15, 4294967295, %v13716_v63 }
 0x347   :  { %v662_v9 = vadd.f32 %v661_v8, %v592_v3  ;;  %v663_v10 = vpop.f32.mrb[14].mxu0  ;;  %v9737_v11 = vpack.i.bf16 %v10874_v6, %v10871_v18  ;;  %v765_v12 = vpack.c.bf16 %v10874_v6, %v10871_v18 }
 0x348   :  { %v672_v13 = vadd.f32 %v660_v21, %v10682_v32  ;;  %v664_v14 = vadd.f32 %v663_v10, %v597_v23  ;;  %v665_v15 = vpop.f32.mrb[15].mxu0  ;;  %9733 = vrot.lane.b32.xlu0 %v9732_v19, %s10519_s1 }
 0x349   :  { %v673_v17 = vadd.f32 %v662_v9, %v10686_v35  ;;  %v666_v20 = vadd.f32 %v665_v15, %v597_v23  ;;  %9738 = vrot.lane.b32.xlu1 %v9737_v11, %s10519_s1  ;;  %784 = vmatprep.subr.bf16.mxu0 %v765_v12 }
 0x34a   :  { %v674_v22 = vadd.f32 %v664_v14, %v10684_v33  ;;  %785 = vmatpush1.bf16.msra.mxu0 %v764_v16  ;;  %v10891_v32 = vmul.f32 %v10856_v56, %v672_v13 }
 0x34b   :  { %v675_v24 = vadd.f32 %v666_v20, %v10688_v36  ;;  %v10897_v26 = vmul.f32 %v10859_v59, %v673_v17 }
 0x34c   :  { %v10894_v25 = vmul.f32 %v10856_v56, %v674_v22 }
 0x34d   :  { %v10900_v35 = vmul.f32 %v10859_v59, %v675_v24 }
 0x34e   :  { %v9742_v27 = vpack.i.bf16 %v10894_v25, %v10891_v32  ;;  %v766_v28 = vpack.c.bf16 %v10894_v25, %v10891_v32 }
 0x34f   :  { %v9747_v33 = vpack.i.bf16 %v10900_v35, %v10897_v26  ;;  %v767_v36 = vpack.c.bf16 %v10900_v35, %v10897_v26 }
 0x350   :  { %9743 = vrot.lane.b32.xlu0 %v9742_v27, %s10519_s1 }
 0x351   :  { %9748 = vrot.lane.b32.xlu1 %v9747_v33, %s10519_s1  ;;  %786 = vmatprep.subr.bf16.mxu0 %v767_v36 }
 0x352   :  { %787 = vmatpush1.bf16.msra.mxu0 %v766_v28 }
 0x354   :  { %9753 = vrot.lane.b32.xlu0 %v9732_v19, %s10520_s23 }
 0x355   :  { %9758 = vrot.lane.b32.xlu1 %v9737_v11, %s10520_s23  ;;  %8473 = vmatmul.mubr.msk.bf16.vlgmr.msra.gmra.mrb[16].mxu0 %vm13670_vm1, %v10342_v29 }
 0x356   :  { %826 = vmatprep.mubr.bf16.mxu0 %v10516_v5 }
 0x358   :  { %9763 = vrot.lane.b32.xlu0 %v9742_v27, %s10520_s23  ;;  %v10344_v27 = vld [vmem:[%s13639_s4 + $0x30] sm:$0xff]  }
 0x359   :  { %9768 = vrot.lane.b32.xlu1 %v9747_v33, %s10520_s23 }
 0x35c   :  { %1026 = vperm.xlu0 %9690, %v8459_v30  }
 0x35d   :  { %1031 = vperm.xlu1 %9691, %v8460_v34   ;;  %8474 = vmatmul.mubr.msk.bf16.gmra.mrb[20].mxu0 %vm13670_vm1, %v10343_v31  ;;  %v13718_v31 = vmov 0 }
 0x35e   :  { %885 = vmatprep.mubr.bf16.mxu0 %v10516_v5  ;;  %v13719_v31 = vsel %vm11001_vm4, 4294967295, %v13718_v31 }
 0x360   :  { %1036 = vperm.xlu0 %9690, %v8461_v37  }
 0x361   :  { %1041 = vperm.xlu1 %9691, %v8462_v39  }
 0x364   :  { %1066 = vperm.xlu0 %9690, %v8467_v40  }
 0x365   :  { %1071 = vperm.xlu1 %9691, %v8468_v41  }
 0x368   :  { %1076 = vperm.xlu0 %9690, %v8469_v43   ;;  %v13720_v43 = vmov 0 }
 0x369   :  { %1081 = vperm.xlu1 %9691, %v8470_v45   ;;  %v13721_v43 = vsel %vm11008_vm8, 4294967295, %v13720_v43 }
 0x3ba   :  { %v9734_v46 = vpop.permute.xlu0 %9733 }
 0x3bb   :  { %v9736_v47 = vunpack.i.h.bf16 %v9734_v46  ;;  %v9735_v48 = vunpack.i.l.bf16 %v9734_v46  ;;  %v9739_v49 = vpop.permute.xlu1 %9738 }
 0x3bc   :  { %v9741_v50 = vunpack.i.h.bf16 %v9739_v49  ;;  %v9740_v53 = vunpack.i.l.bf16 %v9739_v49 }
 0x3be   :  { %v740_v55 = vsel %vm13661_vm11, %v9735_v48, %v9740_v53  ;;  %v741_v57 = vsel %vm13661_vm11, %v9736_v47, %v9741_v50  ;;  %v744_v51 = vsel %vm13661_vm11, %v9740_v53, %v9735_v48  ;;  %v745_v58 = vsel %vm13661_vm11, %v9741_v50, %v9736_v47 }
 0x3bf   :  { %v8481_v61 = vpack.c.bf16 %v745_v58, %v744_v51  ;;  %v8478_v62 = vpack.c.bf16 %v741_v57, %v740_v55  ;;  %v10345_v57 = vld [vmem:[%s13639_s4 + $0x38] sm:$0xff]   ;;  %v10346_v51 = vld [vmem:[%s13639_s4 + $0x50] sm:$0xff]  }
 0x3c0   :  { %v10347_v58 = vld [vmem:[%s13639_s4 + $0x58] sm:$0xff]  }
 0x3c1   :  { %8479 = vmatprep.subr.msk.bf16.mxu0 %vm10961_vm14, %v8478_v62 }
 0x3c2   :  { %v9744_v3 = vpop.permute.xlu0 %9743  ;;  %8482 = vmatpush1.bf16.msk.msra.mxu0 %vm10965_vm15, %v8481_v61 }
 0x3c3   :  { %v9746_v7 = vunpack.i.h.bf16 %v9744_v3  ;;  %v9745_v21 = vunpack.i.l.bf16 %v9744_v3  ;;  %v9749_v8 = vpop.permute.xlu1 %9748 }
 0x3c4   :  { %v9751_v19 = vunpack.i.h.bf16 %v9749_v8  ;;  %v9750_v23 = vunpack.i.l.bf16 %v9749_v8 }
 0x3c6   :  { %v742_v9 = vsel %vm13661_vm11, %v9745_v21, %v9750_v23  ;;  %v743_v10 = vsel %vm13661_vm11, %v9746_v7, %v9751_v19  ;;  %v746_v11 = vsel %vm13661_vm11, %v9750_v23, %v9745_v21  ;;  %v747_v12 = vsel %vm13661_vm11, %v9751_v19, %v9746_v7  ;;  %v9754_v13 = vpop.permute.xlu0 %9753  ;;  %vm11160_vm11 = vmpackc.low %vm103_vm3, %vm103_vm3 }
 0x3c7   :  { %v8487_v14 = vpack.c.bf16 %v747_v12, %v746_v11  ;;  %v9756_v15 = vunpack.i.h.bf16 %v9754_v13  ;;  %v9755_v16 = vunpack.i.l.bf16 %v9754_v13  ;;  %v9759_v17 = vpop.permute.xlu1 %9758  ;;  %v8484_v20 = vpack.c.bf16 %v743_v10, %v742_v9  ;;  %vm11196_vm3 = vmpackc.low %vm106_vm7, %vm106_vm7 }
 0x3c8   :  { %v9761_v22 = vunpack.i.h.bf16 %v9759_v17  ;;  %v9760_v24 = vunpack.i.l.bf16 %v9759_v17  ;;  %vm13673_vm7 = vcmp.lt.s32.totalorder %v10739_v52, 8 }
 0x3c9   :  { %8485 = vmatprep.subr.msk.bf16.mxu0 %vm10961_vm14, %v8484_v20 }
 0x3ca   :  { %v923_v33 = vsel %vm13660_vm0, %v9755_v16, %v9760_v24  ;;  %v924_v36 = vsel %vm13660_vm0, %v9756_v15, %v9761_v22  ;;  %v927_v28 = vsel %vm13660_vm0, %v9760_v24, %v9755_v16  ;;  %v928_v29 = vsel %vm13660_vm0, %v9761_v22, %v9756_v15  ;;  %v9764_v30 = vpop.permute.xlu0 %9763  ;;  %8488 = vmatpush1.bf16.msk.msra.mxu0 %vm10965_vm15, %v8487_v14 }
 0x3cb   :  { %v8497_v34 = vpack.c.bf16 %v924_v36, %v923_v33  ;;  %v9766_v37 = vunpack.i.h.bf16 %v9764_v30  ;;  %v9765_v39 = vunpack.i.l.bf16 %v9764_v30  ;;  %v9769_v40 = vpop.permute.xlu1 %9768  ;;  %v8494_v41 = vpack.c.bf16 %v928_v29, %v927_v28 }
 0x3cc   :  { %v9771_v45 = vunpack.i.h.bf16 %v9769_v40  ;;  %v9770_v46 = vunpack.i.l.bf16 %v9769_v40 }
 0x3cd   :  { %8489 = vmatmul.mubr.msk.bf16.vlgmr.msra.gmra.mrb[16].mxu0 %vm13670_vm1, %v10344_v27  ;;  %8495 = vmatprep.subr.msk.bf16.mxu0 %vm11001_vm4, %v8494_v41 }
 0x3ce   :  { %v925_v47 = vsel %vm13660_vm0, %v9765_v39, %v9770_v46  ;;  %v926_v48 = vsel %vm13660_vm0, %v9766_v37, %v9771_v45  ;;  %v929_v49 = vsel %vm13660_vm0, %v9770_v46, %v9765_v39  ;;  %v930_v50 = vsel %vm13660_vm0, %v9771_v45, %v9766_v37  ;;  %8498 = vmatpush1.bf16.msk.msra.mxu0 %vm11008_vm8, %v8497_v34  ;;  %v10348_v46 = vld [vmem:[%s13641_s6 + $0x10] sm:$0xff]   ;;  %vm11156_vm0 = vmpackc.low %vm104_vm13, %vm104_vm13 }
 0x3cf   :  { %v8503_v53 = vpack.c.bf16 %v926_v48, %v925_v47  ;;  %v8500_v55 = vpack.c.bf16 %v930_v50, %v929_v49  ;;  %895 = vmatprep.mubr.bf16.mxu0 %v10516_v5  ;;  %v10349_v47 = vld [vmem:[%s13641_s6 + $0x18] sm:$0xff]   ;;  %vm13668_vm13 = vcmp.lt.s32.totalorder %v10739_v52, 124 }
 0x3d1   :  { %8501 = vmatprep.subr.msk.bf16.mxu0 %vm11001_vm4, %v8500_v55 }
 0x3d2   :  { %8504 = vmatpush1.bf16.msk.msra.mxu0 %vm11008_vm8, %v8503_v53 }
 0x3d5   :  { %8490 = vmatmul.mubr.msk.bf16.gmra.mrb[20].mxu0 %vm13670_vm1, %v10345_v57 }
 0x3d6   :  { %995 = vmatprep.mubr.bf16.mxu0 %v10516_v5 }
 0x3db   :  { %v1027_v61 = vpop.permute.xlu0 %1026 }
 0x3dc   :  { %v1032_v21 = vpop.permute.xlu1 %1031 }
 0x3dd   :  { %8505 = vmatmul.mubr.msk.bf16.vlgmr.msra.gmra.mrb[16].mxu0 %vm13670_vm1, %v10346_v51 }
 0x3de   :  { %1005 = vmatprep.mubr.bf16.mxu0 %v10516_v5 }
 0x3df   :  { %v1037_v16 = vpop.permute.xlu0 %1036 }
 0x3e0   :  { %v1042_v27 = vpop.permute.xlu1 %1041 }
 0x3e3   :  { %v1067_v48 = vpop.permute.xlu0 %1066 }
 0x3e4   :  { %v1072_v55 = vpop.permute.xlu1 %1071 }
 0x3e5   :  { %8506 = vmatmul.mubr.msk.bf16.gmra.mrb[20].mxu0 %vm13670_vm1, %v10347_v58 }
 0x3e6   :  { %1606 = vmatprep.mubr.bf16.mxu0 %v10516_v5 }
 0x4b0   :  { %v997_v62 = vpop.f32.mrb[16].mxu0 }
 0x4b1   :  { %v1044_v3 = vadd.f32 %v1027_v61, %v997_v62  ;;  %v999_v7 = vpop.f32.mrb[17].mxu0 }
 0x4b2   :  { %v1045_v8 = vadd.f32 %v1027_v61, %v999_v7  ;;  %v1001_v19 = vpop.f32.mrb[18].mxu0 }
 0x4b3   :  { %v1046_v23 = vadd.f32 %v1032_v21, %v1001_v19  ;;  %v1003_v9 = vpop.f32.mrb[19].mxu0  ;;  %v1052_v11 = vmax.f32 %v1044_v3, 0.0 }
 0x4b4   :  { %v1047_v10 = vadd.f32 %v1032_v21, %v1003_v9  ;;  %v1053_v13 = vmax.f32 %v1045_v8, 0.0  ;;  %v1077_v9 = vpop.permute.xlu0 %1076 }
 0x4b5   :  { %v1054_v12 = vmax.f32 %v1046_v23, 0.0 }
 0x4b6   :  { %v1055_v14 = vmax.f32 %v1047_v10, 0.0 }
 0x4b7   :  { %v1060_v15 = vpack.c.bf16 %v1054_v12, %v1052_v11 }
 0x4b8   :  { %v1061_v17 = vpack.c.bf16 %v1055_v14, %v1053_v13  ;;  %v1007_v20 = vpop.f32.mrb[20].mxu0 }
 0x4b9   :  { %v1048_v22 = vadd.f32 %v1037_v16, %v1007_v20  ;;  %v1009_v24 = vpop.f32.mrb[21].mxu0 }
 0x4ba   :  { %v1049_v33 = vadd.f32 %v1037_v16, %v1009_v24  ;;  %v1011_v36 = vpop.f32.mrb[22].mxu0  ;;  %1100 = vmatprep.subr.bf16.mxu1 %v1061_v17 }
 0x4bb   :  { %v1050_v28 = vadd.f32 %v1042_v27, %v1011_v36  ;;  %v1013_v29 = vpop.f32.mrb[23].mxu0  ;;  %1101 = vmatpush1.bf16.msra.mxu1 %v1060_v15  ;;  %v1056_v34 = vmax.f32 %v1048_v22, 0.0 }
 0x4bc   :  { %v1051_v30 = vadd.f32 %v1042_v27, %v1013_v29  ;;  %v1057_v39 = vmax.f32 %v1049_v33, 0.0 }
 0x4bd   :  { %v1058_v37 = vmax.f32 %v1050_v28, 0.0 }
 0x4be   :  { %v1059_v40 = vmax.f32 %v1051_v30, 0.0 }
 0x4bf   :  { %v1062_v41 = vpack.c.bf16 %v1058_v37, %v1056_v34 }
 0x4c0   :  { %v1063_v45 = vpack.c.bf16 %v1059_v40, %v1057_v39  ;;  %v10350_v39 = vld [vmem:[%s13639_s4 + $0x70] sm:$0xff]   ;;  %v8523_v40 = vld [vmem:[%s13640_s5 + $0x40] sm:$0xff] }
 0x4c2   :  { %1102 = vmatprep.subr.bf16.mxu1 %v1063_v45  ;;  %v8524_v45 = vld [vmem:[%s13640_s5 + $0x48] sm:$0xff] }
 0x4c3   :  { %1103 = vmatpush1.bf16.msra.mxu1 %v1062_v41  ;;  %v10351_v41 = vld [vmem:[%s13639_s4 + $0x78] sm:$0xff]  }
 0x4c6   :  { %8509 = vmatmul.mubr.msk.bf16.vlgmr.msra.gmra.mrb[8].mxu1 %vm13670_vm1, %v10348_v46  ;;  %v8525_v46 = vld [vmem:[%s13640_s5 + $0x50] sm:$0xff] }
 0x4c7   :  { %1142 = vmatprep.mubr.bf16.mxu1 %v10516_v5 }
 0x4ce   :  { %8510 = vmatmul.mubr.msk.bf16.gmra.mrb[12].mxu1 %vm13670_vm1, %v10349_v47  ;;  %v8526_v47 = vld [vmem:[%s13640_s5 + $0x58] sm:$0xff] }
 0x4cf   :  { %1290 = vmatprep.mubr.bf16.mxu1 %v10516_v5 }
 0x599   :  { %v1134_v49 = vpop.f32.mrb[8].mxu1 }
 0x59a   :  { %v1135_v50 = vadd.f32 %v1134_v49, %v1067_v48  ;;  %v1136_v53 = vpop.f32.mrb[9].mxu1  ;;  %v8532_v49 = vld [vmem:[%s13642_s7 + $0x48] sm:$0xff] }
 0x59b   :  { %v1137_v57 = vadd.f32 %v1136_v53, %v1067_v48  ;;  %v1138_v51 = vpop.f32.mrb[10].mxu1  ;;  %v8531_v48 = vld [vmem:[%s13642_s7 + $0x40] sm:$0xff]  ;;  %v8534_v53 = vld [vmem:[%s13642_s7 + $0x58] sm:$0xff] }
 0x59c   :  { %v1153_v58 = vadd.f32 %v1135_v50, %v10865_v0  ;;  %v1139_v61 = vadd.f32 %v1138_v51, %v1072_v55  ;;  %v1140_v62 = vpop.f32.mrb[11].mxu1  ;;  %v8533_v50 = vld [vmem:[%s13642_s7 + $0x50] sm:$0xff] }
 0x59d   :  { %v1154_v3 = vadd.f32 %v1137_v57, %v10871_v18  ;;  %v1141_v7 = vadd.f32 %v1140_v62, %v1072_v55 }
 0x59e   :  { %v1155_v21 = vadd.f32 %v1139_v61, %v10868_v2  ;;  %v11060_v19 = vmul.f32 %v1153_v58, %v10856_v56 }
 0x59f   :  { %v1156_v8 = vadd.f32 %v1141_v7, %v10874_v6  ;;  %v11066_v10 = vmul.f32 %v1154_v3, %v10859_v59  ;;  %v1082_v6 = vpop.permute.xlu1 %1081 }
 0x5a0   :  { %v11063_v23 = vmul.f32 %v1155_v21, %v10856_v56 }
 0x5a1   :  { %v11069_v0 = vmul.f32 %v1156_v8, %v10859_v59  ;;  %v1144_v11 = vpop.f32.mrb[12].mxu1 }
 0x5a2   :  { %v1145_v18 = vadd.f32 %v1144_v11, %v1077_v9  ;;  %v1146_v12 = vpop.f32.mrb[13].mxu1  ;;  %v9772_v2 = vpack.i.bf16 %v11063_v23, %v11060_v19  ;;  %v1238_v24 = vpack.c.bf16 %v11063_v23, %v11060_v19 }
 0x5a3   :  { %v1147_v13 = vadd.f32 %v1146_v12, %v1077_v9  ;;  %v1148_v14 = vpop.f32.mrb[14].mxu1  ;;  %v9777_v15 = vpack.i.bf16 %v11069_v0, %v11066_v10  ;;  %v1239_v16 = vpack.c.bf16 %v11069_v0, %v11066_v10  ;;  %v13722_v9 = vmov 0 }
 0x5a4   :  { %v1157_v17 = vadd.f32 %v1145_v18, %v10891_v32  ;;  %v1149_v20 = vadd.f32 %v1148_v14, %v1082_v6  ;;  %v1150_v22 = vpop.f32.mrb[15].mxu1  ;;  %9773 = vrot.lane.b32.xlu0 %v9772_v2, %s10521_s21  ;;  %v13723_v9 = vsel %vm11156_vm0, 4294967295, %v13722_v9  ;;  %v13724_v12 = vmov 0 }
 0x5a5   :  { %v1158_v27 = vadd.f32 %v1147_v13, %v10897_v26  ;;  %v1151_v33 = vadd.f32 %v1150_v22, %v1082_v6  ;;  %9778 = vrot.lane.b32.xlu1 %v9777_v15, %s10521_s21  ;;  %1258 = vmatprep.subr.bf16.mxu1 %v1239_v16  ;;  %v13725_v12 = vsel %vm11160_vm11, 4294967295, %v13724_v12 }
 0x5a6   :  { %v1159_v36 = vadd.f32 %v1149_v20, %v10894_v25  ;;  %1259 = vmatpush1.bf16.msra.mxu1 %v1238_v24  ;;  %v11086_v32 = vmul.f32 %v1157_v17, %v10856_v56 }
 0x5a7   :  { %v1160_v28 = vadd.f32 %v1151_v33, %v10900_v35  ;;  %v11092_v30 = vmul.f32 %v1158_v27, %v10859_v59 }
 0x5a8   :  { %v11089_v29 = vmul.f32 %v1159_v36, %v10856_v56 }
 0x5a9   :  { %v11095_v26 = vmul.f32 %v1160_v28, %v10859_v59 }
 0x5aa   :  { %v9782_v34 = vpack.i.bf16 %v11089_v29, %v11086_v32  ;;  %v1240_v37 = vpack.c.bf16 %v11089_v29, %v11086_v32 }
 0x5ab   :  { %v9787_v25 = vpack.i.bf16 %v11095_v26, %v11092_v30  ;;  %v1241_v35 = vpack.c.bf16 %v11095_v26, %v11092_v30 }
 0x5ac   :  { %9783 = vrot.lane.b32.xlu0 %v9782_v34, %s10521_s21 }
 0x5ad   :  { %9788 = vrot.lane.b32.xlu1 %v9787_v25, %s10521_s21  ;;  %1260 = vmatprep.subr.bf16.mxu1 %v1241_v35 }
 0x5ae   :  { %1261 = vmatpush1.bf16.msra.mxu1 %v1240_v37 }
 0x5b0   :  { %9793 = vrot.lane.b32.xlu0 %v9772_v2, %s13658_s25 }
 0x5b1   :  { %9798 = vrot.lane.b32.xlu1 %v9777_v15, %s13658_s25  ;;  %8537 = vmatmul.mubr.msk.bf16.vlgmr.msra.gmra.mrb[16].mxu1 %vm13670_vm1, %v10350_v39  ;;  %v10352_v39 = vld [vmem:[%s13639_s4 + $0x60] sm:$0xff]  }
 0x5b2   :  { %1300 = vmatprep.mubr.bf16.mxu1 %v10516_v5 }
 0x5b4   :  { %9803 = vrot.lane.b32.xlu0 %v9782_v34, %s13658_s25 }
 0x5b5   :  { %9808 = vrot.lane.b32.xlu1 %v9787_v25, %s13658_s25 }
 0x5b8   :  { %1500 = vperm.xlu0 %9690, %v8523_v40  }
 0x5b9   :  { %1505 = vperm.xlu1 %9691, %v8524_v45   ;;  %8538 = vmatmul.mubr.msk.bf16.gmra.mrb[20].mxu1 %vm13670_vm1, %v10351_v41 }
 0x5ba   :  { %1359 = vmatprep.mubr.bf16.mxu1 %v10516_v5 }
 0x5bc   :  { %1510 = vperm.xlu0 %9690, %v8525_v46  }
 0x5bd   :  { %1515 = vperm.xlu1 %9691, %v8526_v47  }
 0x5c0   :  { %1540 = vperm.xlu0 %9690, %v8531_v48   ;;  %v13726_v48 = vmov 0 }
 0x5c1   :  { %1545 = vperm.xlu1 %9691, %v8532_v49   ;;  %v13727_v48 = vsel %vm11196_vm3, 4294967295, %v13726_v48 }
 0x5c4   :  { %1550 = vperm.xlu0 %9690, %v8533_v50  }
 0x5c5   :  { %1555 = vperm.xlu1 %9691, %v8534_v53  }
 0x616   :  { %v9774_v55 = vpop.permute.xlu0 %9773 }
 0x617   :  { %v9776_v57 = vunpack.i.h.bf16 %v9774_v55  ;;  %v9775_v51 = vunpack.i.l.bf16 %v9774_v55  ;;  %v9779_v58 = vpop.permute.xlu1 %9778 }
 0x618   :  { %v9781_v61 = vunpack.i.h.bf16 %v9779_v58  ;;  %v9780_v62 = vunpack.i.l.bf16 %v9779_v58 }
 0x61a   :  { %v1214_v3 = vsel %vm13663_vm12, %v9775_v51, %v9780_v62  ;;  %v1215_v7 = vsel %vm13663_vm12, %v9776_v57, %v9781_v61  ;;  %v1218_v21 = vsel %vm13663_vm12, %v9780_v62, %v9775_v51  ;;  %v1219_v8 = vsel %vm13663_vm12, %v9781_v61, %v9776_v57 }
 0x61b   :  { %v8545_v11 = vpack.c.bf16 %v1219_v8, %v1218_v21  ;;  %v8542_v18 = vpack.c.bf16 %v1215_v7, %v1214_v3  ;;  %v13728_v51 = vmov 0 }
 0x61d   :  { %8543 = vmatprep.subr.msk.bf16.mxu1 %vm11156_vm0, %v8542_v18  ;;  %v10353_v18 = vld [vmem:[%s13639_s4 + $0x68] sm:$0xff]  }
 0x61e   :  { %v9784_v2 = vpop.permute.xlu0 %9783  ;;  %8546 = vmatpush1.bf16.msk.msra.mxu1 %vm11160_vm11, %v8545_v11 }
 0x61f   :  { %v9786_v6 = vunpack.i.h.bf16 %v9784_v2  ;;  %v9785_v13 = vunpack.i.l.bf16 %v9784_v2  ;;  %v9789_v14 = vpop.permute.xlu1 %9788  ;;  %v10354_v2 = vld [vmem:[%s13639_s4 + $0x80] sm:$0xff]  }
 0x620   :  { %v9791_v15 = vunpack.i.h.bf16 %v9789_v14  ;;  %v9790_v16 = vunpack.i.l.bf16 %v9789_v14 }
 0x622   :  { %v1216_v17 = vsel %vm13663_vm12, %v9785_v13, %v9790_v16  ;;  %v1217_v20 = vsel %vm13663_vm12, %v9786_v6, %v9791_v15  ;;  %v1220_v22 = vsel %vm13663_vm12, %v9790_v16, %v9785_v13  ;;  %v1221_v24 = vsel %vm13663_vm12, %v9791_v15, %v9786_v6  ;;  %v9794_v27 = vpop.permute.xlu0 %9793  ;;  %vm11203_vm12 = vmpackc.low %vm13668_vm13, %vm13668_vm13  ;;  %v10355_v6 = vld [vmem:[%s13639_s4 + $0x88] sm:$0xff]  }
 0x623   :  { %v8551_v33 = vpack.c.bf16 %v1221_v24, %v1220_v22  ;;  %v9796_v36 = vunpack.i.h.bf16 %v9794_v27  ;;  %v9795_v28 = vunpack.i.l.bf16 %v9794_v27  ;;  %v9799_v34 = vpop.permute.xlu1 %9798  ;;  %v8548_v25 = vpack.c.bf16 %v1217_v20, %v1216_v17 }
 0x624   :  { %v9801_v35 = vunpack.i.h.bf16 %v9799_v34  ;;  %v9800_v37 = vunpack.i.l.bf16 %v9799_v34  ;;  %v13729_v51 = vsel %vm11203_vm12, 4294967295, %v13728_v51 }
 0x625   :  { %8549 = vmatprep.subr.msk.bf16.mxu1 %vm11156_vm0, %v8548_v25 }
 0x626   :  { %v1397_v40 = vsel %vm13668_vm13, %v9795_v28, %v9800_v37  ;;  %v1398_v41 = vsel %vm13668_vm13, %v9796_v36, %v9801_v35  ;;  %v1401_v45 = vsel %vm13668_vm13, %v9800_v37, %v9795_v28  ;;  %v1402_v46 = vsel %vm13668_vm13, %v9801_v35, %v9796_v36  ;;  %v9804_v47 = vpop.permute.xlu0 %9803  ;;  %8552 = vmatpush1.bf16.msk.msra.mxu1 %vm11160_vm11, %v8551_v33 }
 0x627   :  { %v8561_v49 = vpack.c.bf16 %v1398_v41, %v1397_v40  ;;  %v9806_v50 = vunpack.i.h.bf16 %v9804_v47  ;;  %v9805_v53 = vunpack.i.l.bf16 %v9804_v47  ;;  %v9809_v55 = vpop.permute.xlu1 %9808  ;;  %v8558_v57 = vpack.c.bf16 %v1402_v46, %v1401_v45 }
 0x628   :  { %v9811_v58 = vunpack.i.h.bf16 %v9809_v55  ;;  %v9810_v61 = vunpack.i.l.bf16 %v9809_v55 }
 0x629   :  { %8553 = vmatmul.mubr.msk.bf16.vlgmr.msra.gmra.mrb[16].mxu1 %vm13670_vm1, %v10352_v39  ;;  %8559 = vmatprep.subr.msk.bf16.mxu1 %vm11196_vm3, %v8558_v57 }
 0x62a   :  { %v1399_v62 = vsel %vm13668_vm13, %v9805_v53, %v9810_v61  ;;  %v1400_v3 = vsel %vm13668_vm13, %v9806_v50, %v9811_v58  ;;  %v1403_v7 = vsel %vm13668_vm13, %v9810_v61, %v9805_v53  ;;  %v1404_v21 = vsel %vm13668_vm13, %v9811_v58, %v9806_v50  ;;  %8562 = vmatpush1.bf16.msk.msra.mxu1 %vm11203_vm12, %v8561_v49 }
 0x62b   :  { %v8567_v8 = vpack.c.bf16 %v1400_v3, %v1399_v62  ;;  %v8564_v11 = vpack.c.bf16 %v1404_v21, %v1403_v7  ;;  %1369 = vmatprep.mubr.bf16.mxu1 %v10516_v5  ;;  %v10356_v21 = vld [vmem:[%s13641_s6 + $0x20] sm:$0xff]   ;;  %vm108_vm13 = vcmp.ge.s32.totalorder %v10742_v54, 8 }
 0x62d   :  { %8565 = vmatprep.subr.msk.bf16.mxu1 %vm11196_vm3, %v8564_v11 }
 0x62e   :  { %8568 = vmatpush1.bf16.msk.msra.mxu1 %vm11203_vm12, %v8567_v8  ;;  %v10357_v8 = vld [vmem:[%s13641_s6 + $0x28] sm:$0xff]   ;;  %vm11370_vm12 = vmpackc.low %vm107_vm2, %vm107_vm2  ;;  %vm13734_vm2 = vcmp.lt.s32.totalorder %v10739_v52, 8 }
 0x62f   :  { %vm13735_vm3 = vmmov %vm13734_vm2 }
 0x630   :  { %vm13736_vm11 = vmmov %vm13734_vm2 }
 0x631   :  { %8554 = vmatmul.mubr.msk.bf16.gmra.mrb[20].mxu1 %vm13670_vm1, %v10353_v18  ;;  %vm13737_vm0 = vmmov %vm13734_vm2 }
 0x632   :  { %1469 = vmatprep.mubr.bf16.mxu1 %v10516_v5 }
 0x637   :  { %v1501_v13 = vpop.permute.xlu0 %1500 }
 0x638   :  { %v1506_v17 = vpop.permute.xlu1 %1505 }
 0x639   :  { %8569 = vmatmul.mubr.msk.bf16.vlgmr.msra.gmra.mrb[16].mxu1 %vm13670_vm1, %v10354_v2 }
 0x63a   :  { %1479 = vmatprep.mubr.bf16.mxu1 %v10516_v5 }
 0x63b   :  { %v1511_v37 = vpop.permute.xlu0 %1510 }
 0x63c   :  { %v1516_v46 = vpop.permute.xlu1 %1515 }
 0x63f   :  { %v1541_v11 = vpop.permute.xlu0 %1540 }
 0x641   :  { %8570 = vmatmul.mubr.msk.bf16.gmra.mrb[20].mxu1 %vm13670_vm1, %v10355_v6 }
 0x642   :  { %2080 = vmatprep.mubr.bf16.mxu1 %v10516_v5 }
 0x70c   :  { %v1471_v14 = vpop.f32.mrb[16].mxu1 }
 0x70d   :  { %v1518_v15 = vadd.f32 %v1501_v13, %v1471_v14  ;;  %v1473_v16 = vpop.f32.mrb[17].mxu1 }
 0x70e   :  { %v1519_v20 = vadd.f32 %v1501_v13, %v1473_v16  ;;  %v1475_v22 = vpop.f32.mrb[18].mxu1  ;;  %v1546_v13 = vpop.permute.xlu1 %1545 }
 0x70f   :  { %v1520_v24 = vadd.f32 %v1506_v17, %v1475_v22  ;;  %v1477_v27 = vpop.f32.mrb[19].mxu1  ;;  %v1526_v36 = vmax.f32 %v1518_v15, 0.0 }
 0x710   :  { %v1521_v33 = vadd.f32 %v1506_v17, %v1477_v27  ;;  %v1527_v34 = vmax.f32 %v1519_v20, 0.0 }
 0x711   :  { %v1528_v28 = vmax.f32 %v1520_v24, 0.0 }
 0x712   :  { %v1529_v25 = vmax.f32 %v1521_v33, 0.0 }
 0x713   :  { %v1534_v35 = vpack.c.bf16 %v1528_v28, %v1526_v36 }
 0x714   :  { %v1535_v39 = vpack.c.bf16 %v1529_v25, %v1527_v34  ;;  %v1481_v40 = vpop.f32.mrb[20].mxu1  ;;  %v1551_v34 = vpop.permute.xlu0 %1550 }
 0x715   :  { %v1522_v41 = vadd.f32 %v1511_v37, %v1481_v40  ;;  %v1483_v45 = vpop.f32.mrb[21].mxu1 }
 0x716   :  { %v1523_v47 = vadd.f32 %v1511_v37, %v1483_v45  ;;  %v1485_v49 = vpop.f32.mrb[22].mxu1  ;;  %1574 = vmatprep.subr.bf16.mxu0 %v1535_v39 }
 0x717   :  { %v1524_v50 = vadd.f32 %v1516_v46, %v1485_v49  ;;  %v1487_v53 = vpop.f32.mrb[23].mxu1  ;;  %1575 = vmatpush1.bf16.msra.mxu0 %v1534_v35  ;;  %v1530_v57 = vmax.f32 %v1522_v41, 0.0 }
 0x718   :  { %v1525_v55 = vadd.f32 %v1516_v46, %v1487_v53  ;;  %v1531_v61 = vmax.f32 %v1523_v47, 0.0 }
 0x719   :  { %v1532_v58 = vmax.f32 %v1524_v50, 0.0 }
 0x71a   :  { %v1533_v62 = vmax.f32 %v1525_v55, 0.0 }
 0x71b   :  { %v1536_v3 = vpack.c.bf16 %v1532_v58, %v1530_v57 }
 0x71c   :  { %v1537_v7 = vpack.c.bf16 %v1533_v62, %v1531_v61 }
 0x71e   :  { %1576 = vmatprep.subr.bf16.mxu0 %v1537_v7 }
 0x71f   :  { %1577 = vmatpush1.bf16.msra.mxu0 %v1536_v3 }
 0x722   :  { %8573 = vmatmul.mubr.msk.bf16.vlgmr.msra.gmra.mrb[24].mxu0 %vm13670_vm1, %v10356_v21  ;;  %v10358_v21 = vld [vmem:[%s13639_s4 + $0xa0] sm:$0xff]  }
 0x723   :  { %1616 = vmatprep.mubr.bf16.mxu0 %v10516_v5 }
 0x72a   :  { %8574 = vmatmul.mubr.msk.bf16.gmra.mrb[28].mxu0 %vm13670_vm1, %v10357_v8  ;;  %v8587_v8 = vld [vmem:[%s13640_s5 + $0x60] sm:$0xff] }
 0x72b   :  { %1764 = vmatprep.mubr.bf16.mxu0 %v10516_v5 }
 0x7f5   :  { %v1608_v18 = vpop.f32.mrb[24].mxu0 }
 0x7f6   :  { %v1609_v2 = vadd.f32 %v1608_v18, %v1541_v11  ;;  %v1610_v6 = vpop.f32.mrb[25].mxu0  ;;  %v8588_v18 = vld [vmem:[%s13640_s5 + $0x68] sm:$0xff] }
 0x7f7   :  { %v1611_v14 = vadd.f32 %v1610_v6, %v1541_v11  ;;  %v1612_v15 = vpop.f32.mrb[26].mxu0  ;;  %v10359_v11 = vld [vmem:[%s13639_s4 + $0xa8] sm:$0xff]   ;;  %v8590_v6 = vld [vmem:[%s13640_s5 + $0x78] sm:$0xff] }
 0x7f8   :  { %v1627_v16 = vadd.f32 %v1609_v2, %v11060_v19  ;;  %v1613_v17 = vadd.f32 %v1612_v15, %v1546_v13  ;;  %v1614_v20 = vpop.f32.mrb[27].mxu0  ;;  %v8589_v2 = vld [vmem:[%s13640_s5 + $0x70] sm:$0xff] }
 0x7f9   :  { %v1628_v22 = vadd.f32 %v1611_v14, %v11066_v10  ;;  %v1615_v24 = vadd.f32 %v1614_v20, %v1546_v13  ;;  %v8595_v13 = vld [vmem:[%s13642_s7 + $0x60] sm:$0xff]  ;;  %v8596_v14 = vld [vmem:[%s13642_s7 + $0x68] sm:$0xff]  ;;  %v8597_v15 = vld [vmem:[%s13642_s7 + $0x70] sm:$0xff] }
 0x7fa   :  { %v1629_v27 = vadd.f32 %v1613_v17, %v11063_v23  ;;  %v11255_v36 = vmul.f32 %v1627_v16, %v10856_v56  ;;  %v8598_v16 = vld [vmem:[%s13642_s7 + $0x78] sm:$0xff]  ;;  %v120_v17 = vld [vmem:[%s13644_s9] sm:$0xff] }
 0x7fb   :  { %v1630_v33 = vadd.f32 %v1615_v24, %v11069_v0  ;;  %v11261_v25 = vmul.f32 %v1628_v22, %v10859_v59  ;;  %v1556_v0 = vpop.permute.xlu1 %1555  ;;  %v2222_v20 = vld [vmem:[%s13646_s11] sm:$0xff]  ;;  %v2223_v22 = vld [vmem:[%s13646_s11 + $0x8] sm:$0xff]  ;;  %v2224_v24 = vld [vmem:[%s13646_s11 + $0x10] sm:$0xff] }
 0x7fc   :  { %v11258_v28 = vmul.f32 %v1629_v27, %v10856_v56  ;;  %v2225_v27 = vld [vmem:[%s13646_s11 + $0x18] sm:$0xff] }
 0x7fd   :  { %v11264_v19 = vmul.f32 %v1630_v33, %v10859_v59  ;;  %v1618_v35 = vpop.f32.mrb[28].mxu0 }
 0x7fe   :  { %v1619_v10 = vadd.f32 %v1618_v35, %v1551_v34  ;;  %v1620_v37 = vpop.f32.mrb[29].mxu0  ;;  %v9812_v23 = vpack.i.bf16 %v11258_v28, %v11255_v36  ;;  %v1712_v50 = vpack.c.bf16 %v11258_v28, %v11255_v36 }
 0x7ff   :  { %v1621_v39 = vadd.f32 %v1620_v37, %v1551_v34  ;;  %v1622_v40 = vpop.f32.mrb[30].mxu0  ;;  %v9817_v41 = vpack.i.bf16 %v11264_v19, %v11261_v25  ;;  %v1713_v45 = vpack.c.bf16 %v11264_v19, %v11261_v25 }
 0x800   :  { %v1631_v46 = vadd.f32 %v1619_v10, %v11086_v32  ;;  %v1623_v47 = vadd.f32 %v1622_v40, %v1556_v0  ;;  %v1624_v49 = vpop.f32.mrb[31].mxu0  ;;  %9813 = vrot.lane.b32.xlu0 %v9812_v23, %s13666_s3 }
 0x801   :  { %v1632_v53 = vadd.f32 %v1621_v39, %v11092_v30  ;;  %v1625_v55 = vadd.f32 %v1624_v49, %v1556_v0  ;;  %9818 = vrot.lane.b32.xlu1 %v9817_v41, %s13666_s3  ;;  %1732 = vmatprep.subr.bf16.mxu0 %v1713_v45 }
 0x802   :  { %v1633_v57 = vadd.f32 %v1623_v47, %v11089_v29  ;;  %1733 = vmatpush1.bf16.msra.mxu0 %v1712_v50  ;;  %v11281_v32 = vmul.f32 %v1631_v46, %v10856_v56 }
 0x803   :  { %v1634_v58 = vadd.f32 %v1625_v55, %v11095_v26  ;;  %v11287_v62 = vmul.f32 %v1632_v53, %v10859_v59 }
 0x804   :  { %v11284_v61 = vmul.f32 %v1633_v57, %v10856_v56 }
 0x805   :  { %v11290_v30 = vmul.f32 %v1634_v58, %v10859_v59 }
 0x806   :  { %v9822_v3 = vpack.i.bf16 %v11284_v61, %v11281_v32  ;;  %v1714_v7 = vpack.c.bf16 %v11284_v61, %v11281_v32 }
 0x807   :  { %v9827_v29 = vpack.i.bf16 %v11290_v30, %v11287_v62  ;;  %v1715_v26 = vpack.c.bf16 %v11290_v30, %v11287_v62 }
 0x808   :  { %9823 = vrot.lane.b32.xlu0 %v9822_v3, %s13666_s3 }
 0x809   :  { %9828 = vrot.lane.b32.xlu1 %v9827_v29, %s13666_s3  ;;  %1734 = vmatprep.subr.bf16.mxu0 %v1715_v26 }
 0x80a   :  { %1735 = vmatpush1.bf16.msra.mxu0 %v1714_v7 }
 0x80c   :  { %9833 = vrot.lane.b32.xlu0 %v9812_v23, %s13664_s29 }
 0x80d   :  { %9838 = vrot.lane.b32.xlu1 %v9817_v41, %s13664_s29  ;;  %8601 = vmatmul.mubr.msk.bf16.vlgmr.msra.gmra.mrb[32].mxu0 %vm13670_vm1, %v10358_v21 }
 0x80e   :  { %1774 = vmatprep.mubr.bf16.mxu0 %v10516_v5 }
 0x810   :  { %9843 = vrot.lane.b32.xlu0 %v9822_v3, %s13664_s29 }
 0x811   :  { %9848 = vrot.lane.b32.xlu1 %v9827_v29, %s13664_s29 }
 0x814   :  { %1974 = vperm.xlu0 %9690, %v8587_v8  }
 0x815   :  { %1979 = vperm.xlu1 %9691, %v8588_v18   ;;  %8602 = vmatmul.mubr.msk.bf16.gmra.mrb[36].mxu0 %vm13670_vm1, %v10359_v11  ;;  %vm11366_vm1 = vmpackc.low %vm108_vm13, %vm108_vm13  ;;  %vm13682_vm13 = vcmp.lt.s32.totalorder %v10739_v52, 120 }
 0x816   :  { %1833 = vmatprep.mubr.bf16.mxu0 %v10516_v5 }
 0x818   :  { %1984 = vperm.xlu0 %9690, %v8589_v2  }
 0x819   :  { %1989 = vperm.xlu1 %9691, %v8590_v6  }
 0x81c   :  { %2014 = vperm.xlu0 %9690, %v8595_v13  }
 0x81d   :  { %2019 = vperm.xlu1 %9691, %v8596_v14  }
 0x820   :  { %2024 = vperm.xlu0 %9690, %v8597_v15  }
 0x821   :  { %2029 = vperm.xlu1 %9691, %v8598_v16   ;;  %v10360_v16 = vld [vmem:[%s13639_s4 + $0x90] sm:$0xff]  }
 0x824   :  { %2123 = vperm.xlu0 %9690, %v120_v17  }
 0x825   :  { %2232 = vperm.xlu1 %9691, %v2222_v20  }
 0x828   :  { %2237 = vperm.xlu0 %9690, %v2223_v22  }
 0x829   :  { %2242 = vperm.xlu1 %9691, %v2224_v24  }
 0x82c   :  { %2247 = vperm.xlu0 %9690, %v2225_v27  }
 0x872   :  { %v9814_v33 = vpop.permute.xlu0 %9813 }
 0x873   :  { %v9816_v34 = vunpack.i.h.bf16 %v9814_v33  ;;  %v9815_v35 = vunpack.i.l.bf16 %v9814_v33  ;;  %v9819_v10 = vpop.permute.xlu1 %9818  ;;  %v10465_v33 = vld [vmem:[%s13647_s12 + $0x238] sm:$0xff]  }
 0x874   :  { %v9821_v37 = vunpack.i.h.bf16 %v9819_v10  ;;  %v9820_v23 = vunpack.i.l.bf16 %v9819_v10 }
 0x876   :  { %v1688_v0 = vsel %vm13673_vm7, %v9815_v35, %v9820_v23  ;;  %v1689_v39 = vsel %vm13673_vm7, %v9816_v34, %v9821_v37  ;;  %v1692_v40 = vsel %vm13673_vm7, %v9820_v23, %v9815_v35  ;;  %v1693_v41 = vsel %vm13673_vm7, %v9821_v37, %v9816_v34 }
 0x877   :  { %v8609_v46 = vpack.c.bf16 %v1693_v41, %v1692_v40  ;;  %v8606_v47 = vpack.c.bf16 %v1689_v39, %v1688_v0  ;;  %vm110_vm7 = vcmp.lt.s32.totalorder %v10742_v54, 120 }
 0x879   :  { %8607 = vmatprep.subr.msk.bf16.mxu0 %vm11366_vm1, %v8606_v47 }
 0x87a   :  { %v9824_v50 = vpop.permute.xlu0 %9823  ;;  %8610 = vmatpush1.bf16.msk.msra.mxu0 %vm11370_vm12, %v8609_v46 }
 0x87b   :  { %v9826_v53 = vunpack.i.h.bf16 %v9824_v50  ;;  %v9825_v55 = vunpack.i.l.bf16 %v9824_v50  ;;  %v9829_v57 = vpop.permute.xlu1 %9828 }
 0x87c   :  { %v9831_v58 = vunpack.i.h.bf16 %v9829_v57  ;;  %v9830_v3 = vunpack.i.l.bf16 %v9829_v57  ;;  %v10362_v57 = vld [vmem:[%s13639_s4 + $0xb0] sm:$0xff]  }
 0x87e   :  { %v1690_v29 = vsel %vm13734_vm2, %v9825_v55, %v9830_v3  ;;  %v1691_v26 = vsel %vm13735_vm3, %v9826_v53, %v9831_v58  ;;  %v1694_v7 = vsel %vm13736_vm11, %v9830_v3, %v9825_v55  ;;  %v1695_v21 = vsel %vm13737_vm0, %v9831_v58, %v9826_v53  ;;  %v9834_v8 = vpop.permute.xlu0 %9833  ;;  %vm11406_vm11 = vmpackc.low %vm110_vm7, %vm110_vm7  ;;  %v10361_v55 = vld [vmem:[%s13639_s4 + $0x98] sm:$0xff]  }
 0x87f   :  { %v8615_v11 = vpack.c.bf16 %v1695_v21, %v1694_v7  ;;  %v9836_v18 = vunpack.i.h.bf16 %v9834_v8  ;;  %v9835_v2 = vunpack.i.l.bf16 %v9834_v8  ;;  %v9839_v6 = vpop.permute.xlu1 %9838  ;;  %v8612_v13 = vpack.c.bf16 %v1691_v26, %v1690_v29  ;;  %vm11413_vm0 = vmpackc.low %vm13682_vm13, %vm13682_vm13  ;;  %v10363_v58 = vld [vmem:[%s13639_s4 + $0xb8] sm:$0xff]   ;;  %s13815_s4 = smov 120  }
 0x880   :  { %v9841_v14 = vunpack.i.h.bf16 %v9839_v6  ;;  %v9840_v15 = vunpack.i.l.bf16 %v9839_v6  ;;  %vm13742_vm3 = vcmask 261120  }
 0x881   :  { %8613 = vmatprep.subr.msk.bf16.mxu0 %vm11366_vm1, %v8612_v13  ;;  %vm13743_vm7 = vmmov %vm13742_vm3 }
 0x882   :  { %v1871_v17 = vsel %vm13682_vm13, %v9835_v2, %v9840_v15  ;;  %v1872_v20 = vsel %vm13682_vm13, %v9836_v18, %v9841_v14  ;;  %v1875_v22 = vsel %vm13682_vm13, %v9840_v15, %v9835_v2  ;;  %v1876_v24 = vsel %vm13682_vm13, %v9841_v14, %v9836_v18  ;;  %v9844_v27 = vpop.permute.xlu0 %9843  ;;  %8616 = vmatpush1.bf16.msk.msra.mxu0 %vm11370_vm12, %v8615_v11  ;;  %vm13744_vm2 = vmmov %vm13742_vm3 }
 0x883   :  { %v8625_v34 = vpack.c.bf16 %v1872_v20, %v1871_v17  ;;  %v9846_v35 = vunpack.i.h.bf16 %v9844_v27  ;;  %v9845_v10 = vunpack.i.l.bf16 %v9844_v27  ;;  %v9849_v37 = vpop.permute.xlu1 %9848  ;;  %v8622_v23 = vpack.c.bf16 %v1876_v24, %v1875_v22 }
 0x884   :  { %v9851_v39 = vunpack.i.h.bf16 %v9849_v37  ;;  %v9850_v40 = vunpack.i.l.bf16 %v9849_v37 }
 0x885   :  { %8617 = vmatmul.mubr.msk.bf16.vlgmr.msra.gmra.mrb[32].mxu0 %vm13742_vm3, %v10360_v16  ;;  %8623 = vmatprep.subr.msk.bf16.mxu0 %vm11406_vm11, %v8622_v23  ;;  %vm13745_vm3 = vmmov %vm13744_vm2 }
 0x886   :  { %v1873_v54 = vsel %vm13682_vm13, %v9845_v10, %v9850_v40  ;;  %v1874_v41 = vsel %vm13682_vm13, %v9846_v35, %v9851_v39  ;;  %v1877_v46 = vsel %vm13682_vm13, %v9850_v40, %v9845_v10  ;;  %v1878_v47 = vsel %vm13682_vm13, %v9851_v39, %v9846_v35  ;;  %8626 = vmatpush1.bf16.msk.msra.mxu0 %vm11413_vm0, %v8625_v34 }
 0x887   :  { %v8631_v50 = vpack.c.bf16 %v1874_v41, %v1873_v54  ;;  %v8628_v53 = vpack.c.bf16 %v1878_v47, %v1877_v46  ;;  %1843 = vmatprep.mubr.bf16.mxu0 %v10516_v5 }
 0x889   :  { %8629 = vmatprep.subr.msk.bf16.mxu0 %vm11406_vm11, %v8628_v53 }
 0x88a   :  { %8632 = vmatpush1.bf16.msk.msra.mxu0 %vm11413_vm0, %v8631_v50 }
 0x88d   :  { %8618 = vmatmul.mubr.msk.bf16.gmra.mrb[36].mxu0 %vm13743_vm7, %v10361_v55  ;;  %v10364_v55 = vld [vmem:[%s13641_s6 + $0x30] sm:$0xff]   ;;  %vm13746_vm7 = vmmov %vm13744_vm2 }
 0x88e   :  { %1943 = vmatprep.mubr.bf16.mxu0 %v10516_v5 }
 0x893   :  { %v1975_v3 = vpop.permute.xlu0 %1974 }
 0x894   :  { %v1980_v21 = vpop.permute.xlu1 %1979 }
 0x895   :  { %8633 = vmatmul.mubr.msk.bf16.vlgmr.msra.gmra.mrb[32].mxu0 %vm13744_vm2, %v10362_v57  ;;  %v10365_v57 = vld [vmem:[%s13641_s6 + $0x38] sm:$0xff]  }
 0x896   :  { %1953 = vmatprep.mubr.bf16.mxu0 %v10516_v5 }
 0x897   :  { %v1985_v20 = vpop.permute.xlu0 %1984 }
 0x898   :  { %v1990_v35 = vpop.permute.xlu1 %1989 }
 0x89d   :  { %8634 = vmatmul.mubr.msk.bf16.gmra.mrb[36].mxu0 %vm13745_vm3, %v10363_v58  ;;  %v2015_v58 = vpop.permute.xlu0 %2014  ;;  %vm13747_vm3 = vmmov %vm13744_vm2 }
 0x89e   :  { %2439 = vmatprep.mubr.bf16.mxu0 %v10516_v5 }
 0x968   :  { %v1945_v29 = vpop.f32.mrb[32].mxu0 }
 0x969   :  { %v1992_v26 = vadd.f32 %v1975_v3, %v1945_v29  ;;  %v1947_v7 = vpop.f32.mrb[33].mxu0 }
 0x96a   :  { %v1993_v8 = vadd.f32 %v1975_v3, %v1947_v7  ;;  %v1949_v11 = vpop.f32.mrb[34].mxu0  ;;  %v2020_v7 = vpop.permute.xlu1 %2019 }
 0x96b   :  { %v1994_v18 = vadd.f32 %v1980_v21, %v1949_v11  ;;  %v1951_v2 = vpop.f32.mrb[35].mxu0  ;;  %v2000_v13 = vmax.f32 %v1992_v26, 0.0 }
 0x96c   :  { %v1995_v6 = vadd.f32 %v1980_v21, %v1951_v2  ;;  %v2001_v15 = vmax.f32 %v1993_v8, 0.0 }
 0x96d   :  { %v2002_v14 = vmax.f32 %v1994_v18, 0.0 }
 0x96e   :  { %v2003_v16 = vmax.f32 %v1995_v6, 0.0 }
 0x96f   :  { %v2008_v17 = vpack.c.bf16 %v2002_v14, %v2000_v13 }
 0x970   :  { %v2009_v22 = vpack.c.bf16 %v2003_v16, %v2001_v15  ;;  %v1955_v24 = vpop.f32.mrb[36].mxu0 }
 0x971   :  { %v1996_v27 = vadd.f32 %v1985_v20, %v1955_v24  ;;  %v1957_v34 = vpop.f32.mrb[37].mxu0 }
 0x972   :  { %v1997_v10 = vadd.f32 %v1985_v20, %v1957_v34  ;;  %v1959_v37 = vpop.f32.mrb[38].mxu0  ;;  %2048 = vmatprep.subr.bf16.mxu1 %v2009_v22  ;;  %v2025_v20 = vpop.permute.xlu0 %2024 }
 0x973   :  { %v1998_v23 = vadd.f32 %v1990_v35, %v1959_v37  ;;  %v1961_v39 = vpop.f32.mrb[39].mxu0  ;;  %2049 = vmatpush1.bf16.msra.mxu1 %v2008_v17  ;;  %v2004_v54 = vmax.f32 %v1996_v27, 0.0 }
 0x974   :  { %v1999_v40 = vadd.f32 %v1990_v35, %v1961_v39  ;;  %v2005_v46 = vmax.f32 %v1997_v10, 0.0  ;;  %v2030_v10 = vpop.permute.xlu1 %2029 }
 0x975   :  { %v2006_v41 = vmax.f32 %v1998_v23, 0.0 }
 0x976   :  { %v2007_v47 = vmax.f32 %v1999_v40, 0.0 }
 0x977   :  { %v2010_v50 = vpack.c.bf16 %v2006_v41, %v2004_v54 }
 0x978   :  { %v2011_v53 = vpack.c.bf16 %v2007_v47, %v2005_v46 }
 0x97a   :  { %2050 = vmatprep.subr.bf16.mxu1 %v2011_v53 }
 0x97b   :  { %2051 = vmatpush1.bf16.msra.mxu1 %v2010_v50 }
 0x97e   :  { %8637 = vmatmul.mubr.msk.bf16.vlgmr.msra.gmra.mrb[24].mxu1 %vm13746_vm7, %v10364_v55  ;;  %vm13681_vm7 = vcmask 1043456  }
 0x97f   :  { %2090 = vmatprep.mubr.bf16.mxu1 %v10516_v5 }
 0x986   :  { %8638 = vmatmul.mubr.msk.bf16.gmra.mrb[28].mxu1 %vm13744_vm2, %v10365_v57  ;;  %vm13680_vm2 = vcmask 64512  }
 0x987   :  { %2161 = vmatprep.mubr.bf16.mxu1 %v10516_v5 }
 0xa51   :  { %v2082_v3 = vpop.f32.mrb[24].mxu1 }
 0xa52   :  { %v2083_v29 = vadd.f32 %v2082_v3, %v2015_v58  ;;  %v2084_v26 = vpop.f32.mrb[25].mxu1 }
 0xa53   :  { %v2085_v21 = vadd.f32 %v2084_v26, %v2015_v58  ;;  %v2086_v8 = vpop.f32.mrb[26].mxu1 }
 0xa54   :  { %v2101_v11 = vadd.f32 %v2083_v29, %v11255_v36  ;;  %v2087_v18 = vadd.f32 %v2086_v8, %v2020_v7  ;;  %v2088_v2 = vpop.f32.mrb[27].mxu1 }
 0xa55   :  { %v2102_v6 = vadd.f32 %v2085_v21, %v11261_v25  ;;  %v2089_v13 = vadd.f32 %v2088_v2, %v2020_v7 }
 0xa56   :  { %v2103_v14 = vadd.f32 %v2087_v18, %v11258_v28  ;;  %v2109_v16 = vmul.f32 %v2101_v11, %v10856_v56 }
 0xa57   :  { %v2104_v15 = vadd.f32 %v2089_v13, %v11264_v19  ;;  %v2110_v22 = vmul.f32 %v2102_v6, %v10859_v59 }
 0xa58   :  { %v2111_v17 = vmul.f32 %v2103_v14, %v10856_v56 }
 0xa59   :  { %v2112_v24 = vmul.f32 %v2104_v15, %v10859_v59  ;;  %v2092_v27 = vpop.f32.mrb[28].mxu1 }
 0xa5a   :  { %v2117_v36 = vpack.c.bf16 %v2111_v17, %v2109_v16  ;;  %v2093_v34 = vadd.f32 %v2092_v27, %v2025_v20  ;;  %v2094_v35 = vpop.f32.mrb[29].mxu1 }
 0xa5b   :  { %v2095_v25 = vadd.f32 %v2094_v35, %v2025_v20  ;;  %v2096_v37 = vpop.f32.mrb[30].mxu1  ;;  %v2118_v23 = vpack.c.bf16 %v2112_v24, %v2110_v22 }
 0xa5c   :  { %v2105_v28 = vadd.f32 %v2093_v34, %v11281_v32  ;;  %v2097_v19 = vadd.f32 %v2096_v37, %v2030_v10  ;;  %v2098_v39 = vpop.f32.mrb[31].mxu1 }
 0xa5d   :  { %v2106_v40 = vadd.f32 %v2095_v25, %v11287_v62  ;;  %v2099_v54 = vadd.f32 %v2098_v39, %v2030_v10  ;;  %2129 = vmatprep.subr.bf16.mxu1 %v2118_v23  ;;  %v119_v62 = vld [vmem:[%s13643_s8] sm:$0xf] }
 0xa5e   :  { %v2107_v41 = vadd.f32 %v2097_v19, %v11284_v61  ;;  %2130 = vmatpush1.bf16.msra.mxu1 %v2117_v36  ;;  %v2113_v47 = vmul.f32 %v2105_v28, %v10856_v56  ;;  %v2124_v61 = vpop.permute.xlu0 %2123 }
 0xa5f   :  { %v2108_v46 = vadd.f32 %v2099_v54, %v11290_v30  ;;  %v2114_v53 = vmul.f32 %v2106_v40, %v10859_v59 }
 0xa60   :  { %v2115_v50 = vmul.f32 %v2107_v41, %v10856_v56 }
 0xa61   :  { %v2116_v55 = vmul.f32 %v2108_v46, %v10859_v59 }
 0xa62   :  { %v2119_v32 = vpack.c.bf16 %v2115_v50, %v2113_v47 }
 0xa63   :  { %v2120_v57 = vpack.c.bf16 %v2116_v55, %v2114_v53 }
 0xa65   :  { %2131 = vmatprep.subr.bf16.mxu1 %v2120_v57 }
 0xa66   :  { %2132 = vmatpush1.bf16.msra.mxu1 %v2119_v32 }
 0xa69   :  { %8639 = vmatmul.mubr.msk.bf16.vlgmr.msra.gmra.mrb[32].mxu1 %vm13747_vm3, %v119_v62 }
 0xa6a   :  { %2306 = vmatprep.mubr.bf16.mxu1 %v10516_v5 }
 0xb3c   :  { %v2163_v30 = vpop.f32.mrb[32].mxu1 }
 0xb3d   :  { %v2164_v58 = vadd.f32 %v2163_v30, %v2124_v61  ;;  %v2165_v3 = vpop.f32.mrb[33].mxu1 }
 0xb3e   :  { %v2166_v29 = vadd.f32 %v2165_v3, %v2124_v61  ;;  %v2167_v26 = vpop.f32.mrb[34].mxu1 }
 0xb3f   :  { %v2170_v7 = vmul.f32 %v2164_v58, %v10856_v56  ;;  %v2168_v21 = vpop.f32.mrb[35].mxu1 }
 0xb40   :  { %v2171_v8 = vmul.f32 %v2166_v29, %v10859_v59  ;;  %v10366_v21 = vld [vmem:[%s13645_s10] sm:$0xff]  }
 0xb41   :  { %2172 = vst [vmem:[#allocation2] sm:$0xff] %v2170_v7  ;;  %v2174_v11 = vrot.slane %v2170_v7, 4 }
 0xb42   :  { %2173 = vst [vmem:[#allocation2 + $0x8] sm:$0xff] %v2171_v8  ;;  %v2180_v18 = vrot.slane %v2171_v8, 4 }
 0xb43   :  { %v2175_v2 = vmax.f32 %v2170_v7, %v2174_v11 }
 0xb44   :  { %v2181_v6 = vmax.f32 %v2171_v8, %v2180_v18  ;;  %v2233_v18 = vpop.permute.xlu1 %2232 }
 0xb45   :  { %v2176_v13 = vrot.slane %v2175_v2, 2 }
 0xb46   :  { %v2182_v14 = vrot.slane %v2181_v6, 2 }
 0xb47   :  { %v2177_v15 = vmax.f32 %v2175_v2, %v2176_v13 }
 0xb48   :  { %v2183_v16 = vmax.f32 %v2181_v6, %v2182_v14  ;;  %v2238_v6 = vpop.permute.xlu0 %2237 }
 0xb49   :  { %v2178_v17 = vrot.slane %v2177_v15, 1 }
 0xb4a   :  { %v2184_v20 = vrot.slane %v2183_v16, 1 }
 0xb4b   :  { %v2179_v22 = vmax.f32 %v2177_v15, %v2178_v17 }
 0xb4c   :  { %v2185_v24 = vmax.f32 %v2183_v16, %v2184_v20 }
 0xb4d   :  { %v2186_v27 = vsub.f32 %v2170_v7, %v2179_v22 }
 0xb4e   :  { %v2187_v36 = vsub.f32 %v2171_v8, %v2185_v24  ;;  %v10367_v8 = vld [vmem:[%s13645_s10 + $0x8] sm:$0xff]  }
 0xb4f   :  { %v2188_v34 = vmul.f32 1.442695, %v2186_v27 }
 0xb50   :  { %v2190_v35 = vmul.f32 1.442695, %v2187_v36 }
 0xb51   :  { %10468 = vpow2.f32 %v2188_v34 }
 0xb52   :  { %10470 = vpow2.f32 %v2190_v35  ;;  %v2243_v35 = vpop.permute.xlu1 %2242 }
 0xb5b   :  { %v10469_v10 = vpop.eup %10468 }
 0xb5c   :  { %v10471_v25 = vpop.eup %10470  ;;  %v2192_v37 = vrot.slane %v10469_v10, 4 }
 0xb5d   :  { %v2198_v23 = vrot.slane %v10471_v25, 4 }
 0xb5e   :  { %v2193_v28 = vadd.f32 %v10469_v10, %v2192_v37 }
 0xb5f   :  { %v2199_v19 = vadd.f32 %v10471_v25, %v2198_v23 }
 0xb60   :  { %v2194_v39 = vrot.slane %v2193_v28, 2 }
 0xb61   :  { %v2200_v40 = vrot.slane %v2199_v19, 2 }
 0xb62   :  { %v2195_v54 = vadd.f32 %v2194_v39, %v2193_v28 }
 0xb63   :  { %v2201_v41 = vadd.f32 %v2200_v40, %v2199_v19 }
 0xb64   :  { %v2196_v46 = vrot.slane %v2195_v54, 1 }
 0xb65   :  { %v2202_v47 = vrot.slane %v2201_v41, 1 }
 0xb66   :  { %v2197_v50 = vadd.f32 %v2196_v46, %v2195_v54 }
 0xb67   :  { %v2203_v53 = vadd.f32 %v2202_v47, %v2201_v41 }
 0xb68   :  { %10472 = vrcp.f32 %v2197_v50  ;;  %v10368_v50 = vld [vmem:[%s13647_s12 + $0x10] sm:$0xff]  }
 0xb69   :  { %10474 = vrcp.f32 %v2203_v53  ;;  %v2339_v53 = vld [vmem:[%s13648_s13] sm:$0xff] }
 0xb72   :  { %v10473_v55 = vpop.eup %10472 }
 0xb73   :  { %v10475_v32 = vpop.eup %10474  ;;  %v2206_v57 = vmul.f32 %v10473_v55, %v10856_v56  ;;  %v10369_v55 = vld [vmem:[%s13647_s12 + $0x18] sm:$0xff]  }
 0xb74   :  { %v2207_v62 = vmul.f32 %v10475_v32, %v10859_v59  ;;  %v2340_v32 = vld [vmem:[%s13648_s13 + $0x8] sm:$0xff] }
 0xb75   :  { %v2211_v61 = vrot.slane %v2206_v57, %v10850_v42  ;;  %v2341_v57 = vld [vmem:[%s13648_s13 + $0x10] sm:$0xff] }
 0xb76   :  { %v2215_v30 = vrot.slane %v2207_v62, %v10850_v42  ;;  %v2342_v62 = vld [vmem:[%s13648_s13 + $0x18] sm:$0xff] }
 0xb77   :  { %v2216_v58 = vmul.f32 %v10469_v10, %v2211_v61  ;;  %v2347_v61 = vld [vmem:[%s13650_s15] sm:$0xff] }
 0xb78   :  { %v2217_v3 = vmul.f32 %v10471_v25, %v2215_v30  ;;  %v2248_v25 = vpop.permute.xlu0 %2247  ;;  %v2348_v30 = vld [vmem:[%s13650_s15 + $0x8] sm:$0xff] }
 0xb79   :  { %v2228_v29 = vpack.c.bf16 %v2216_v58, %v2216_v58  ;;  %v2349_v58 = vld [vmem:[%s13650_s15 + $0x10] sm:$0xff] }
 0xb7a   :  { %v2229_v26 = vpack.c.bf16 %v2217_v3, %v2217_v3  ;;  %v2350_v3 = vld [vmem:[%s13650_s15 + $0x18] sm:$0xff] }
 0xb7b   :  { %v2269_v7 = vsel %vm13681_vm7, %v2228_v29, 0 }
 0xb7c   :  { %8642 = vmatprep.subr.msk.bf16.mxu1 %vm13681_vm7, %v2229_v26 }
 0xb7d   :  { %2275 = vmatpush1.bf16.msra.mxu1 %v2269_v7 }
 0xb80   :  { %8643 = vmatmul.mubr.msk.bf16.vlgmr.msra.gmra.mrb[36].mxu1 %vm13680_vm2, %v10366_v21 }
 0xb81   :  { %2316 = vmatprep.mubr.bf16.mxu1 %v10516_v5 }
 0xb88   :  { %8644 = vmatmul.mubr.msk.bf16.gmra.mrb[40].mxu1 %vm13680_vm2, %v10367_v8 }
 0xb89   :  { %2750 = vmatprep.mubr.bf16.mxu1 %v10516_v5 }
 0xc53   :  { %v2308_v11 = vpop.f32.mrb[36].mxu1 }
 0xc54   :  { %v2310_v2 = vpop.f32.mrb[37].mxu1  ;;  %v11499_v14 = vadd.f32 %v2308_v11, %v2233_v18 }
 0xc55   :  { %v2312_v13 = vpop.f32.mrb[38].mxu1  ;;  %v11503_v17 = vadd.f32 %v2310_v2, %v2233_v18 }
 0xc56   :  { %v11501_v15 = vadd.f32 %v2312_v13, %v2238_v6  ;;  %v2314_v16 = vpop.f32.mrb[39].mxu1 }
 0xc57   :  { %v11505_v20 = vadd.f32 %v2314_v16, %v2238_v6 }
 0xc58   :  { %v9852_v22 = vpack.i.bf16 %v11501_v15, %v11499_v14  ;;  %v2387_v36 = vpack.c.bf16 %v11501_v15, %v11499_v14 }
 0xc59   :  { %v9857_v24 = vpack.i.bf16 %v11505_v20, %v11503_v17  ;;  %v2388_v27 = vpack.c.bf16 %v11505_v20, %v11503_v17 }
 0xc5a   :  { %9853 = vrot.lane.b32.xlu1 %v9852_v22, %s10517_s24 }
 0xc5b   :  { %v2318_v34 = vpop.f32.mrb[40].mxu1  ;;  %9858 = vrot.lane.b32.xlu0 %v9857_v24, %s10517_s24  ;;  %2407 = vmatprep.subr.bf16.mxu0 %v2388_v27 }
 0xc5c   :  { %v2320_v10 = vpop.f32.mrb[41].mxu1  ;;  %2408 = vmatpush1.bf16.msra.mxu0 %v2387_v36  ;;  %v11517_v23 = vadd.f32 %v2318_v34, %v2243_v35 }
 0xc5d   :  { %v2322_v37 = vpop.f32.mrb[42].mxu1  ;;  %v11521_v39 = vadd.f32 %v2320_v10, %v2243_v35 }
 0xc5e   :  { %v11519_v28 = vadd.f32 %v2322_v37, %v2248_v25  ;;  %v2324_v19 = vpop.f32.mrb[43].mxu1 }
 0xc5f   :  { %v11523_v40 = vadd.f32 %v2324_v19, %v2248_v25 }
 0xc60   :  { %v9862_v54 = vpack.i.bf16 %v11519_v28, %v11517_v23  ;;  %v2389_v47 = vpack.c.bf16 %v11519_v28, %v11517_v23 }
 0xc61   :  { %v9867_v41 = vpack.i.bf16 %v11523_v40, %v11521_v39  ;;  %v2390_v46 = vpack.c.bf16 %v11523_v40, %v11521_v39 }
 0xc62   :  { %9863 = vrot.lane.b32.xlu1 %v9862_v54, %s10517_s24 }
 0xc63   :  { %9868 = vrot.lane.b32.xlu0 %v9867_v41, %s10517_s24  ;;  %2409 = vmatprep.subr.bf16.mxu0 %v2390_v46 }
 0xc64   :  { %2410 = vmatpush1.bf16.msra.mxu0 %v2389_v47 }
 0xc66   :  { %9873 = vrot.lane.b32.xlu1 %v9852_v22, %s10518_s26 }
 0xc67   :  { %9878 = vrot.lane.b32.xlu0 %v9857_v24, %s10518_s26  ;;  %8647 = vmatmul.mubr.msk.bf16.vlgmr.msra.gmra.mrb[40].mxu0 %vm13747_vm3, %v10368_v50 }
 0xc68   :  { %2449 = vmatprep.mubr.bf16.mxu0 %v10516_v5 }
 0xc6a   :  { %9883 = vrot.lane.b32.xlu1 %v9862_v54, %s10518_s26 }
 0xc6b   :  { %9888 = vrot.lane.b32.xlu0 %v9867_v41, %s10518_s26 }
 0xc6e   :  { %2644 = vperm.xlu1 %9691, %v2339_v53  }
 0xc6f   :  { %2649 = vperm.xlu0 %9690, %v2340_v32   ;;  %8648 = vmatmul.mubr.msk.bf16.gmra.mrb[44].mxu0 %vm13747_vm3, %v10369_v55  ;;  %vm13748_vm3 = vcmp.lt.s32.totalorder %v10739_v52, 1 }
 0xc70   :  { %2508 = vmatprep.mubr.bf16.mxu0 %v10516_v5  ;;  %vm13749_vm2 = vmmov %vm13748_vm3 }
 0xc71   :  { %vm13750_vm7 = vmmov %vm13749_vm2 }
 0xc72   :  { %2654 = vperm.xlu1 %9691, %v2341_v57   ;;  %vm13751_vm13 = vmmov %vm13749_vm2 }
 0xc73   :  { %2659 = vperm.xlu0 %9690, %v2342_v62   ;;  %v10370_v62 = vld [vmem:[%s13647_s12] sm:$0xff]  }
 0xc76   :  { %2684 = vperm.xlu1 %9691, %v2347_v61  }
 0xc77   :  { %2689 = vperm.xlu0 %9690, %v2348_v30  }
 0xc7a   :  { %2694 = vperm.xlu1 %9691, %v2349_v58  }
 0xc7b   :  { %2699 = vperm.xlu0 %9690, %v2350_v3  }
 0xccc   :  { %v9854_v29 = vpop.permute.xlu1 %9853 }
 0xccd   :  { %v9856_v26 = vunpack.i.h.bf16 %v9854_v29  ;;  %v9855_v7 = vunpack.i.l.bf16 %v9854_v29  ;;  %v9859_v21 = vpop.permute.xlu0 %9858 }
 0xcce   :  { %v9861_v8 = vunpack.i.h.bf16 %v9859_v21  ;;  %v9860_v11 = vunpack.i.l.bf16 %v9859_v21 }
 0xcd0   :  { %v2367_v18 = vsel %vm13748_vm3, %v9855_v7, %v9860_v11  ;;  %v2368_v2 = vsel %vm13749_vm2, %v9856_v26, %v9861_v8  ;;  %v2371_v6 = vsel %vm13750_vm7, %v9860_v11, %v9855_v7  ;;  %v2372_v13 = vsel %vm13751_vm13, %v9861_v8, %v9856_v26  ;;  %vm13752_vm7 = vmmov %vm13749_vm2 }
 0xcd1   :  { %v8655_v16 = vpack.c.bf16 %v2372_v13, %v2371_v6  ;;  %v8652_v22 = vpack.c.bf16 %v2368_v2, %v2367_v18  ;;  %vm13753_vm13 = vmmov %vm13749_vm2 }
 0xcd2   :  { %vm13754_vm3 = vmmov %vm13749_vm2 }
 0xcd3   :  { %8653 = vmatprep.subr.msk.bf16.mxu0 %vm10755_vm5, %v8652_v22 }
 0xcd4   :  { %v9864_v24 = vpop.permute.xlu1 %9863  ;;  %8656 = vmatpush1.bf16.msk.msra.mxu0 %vm10759_vm6, %v8655_v16 }
 0xcd5   :  { %v9866_v27 = vunpack.i.h.bf16 %v9864_v24  ;;  %v9865_v36 = vunpack.i.l.bf16 %v9864_v24  ;;  %v9869_v34 = vpop.permute.xlu0 %9868 }
 0xcd6   :  { %v9871_v35 = vunpack.i.h.bf16 %v9869_v34  ;;  %v9870_v10 = vunpack.i.l.bf16 %v9869_v34  ;;  %v10372_v34 = vld [vmem:[%s13647_s12 + $0x20] sm:$0xff]  }
 0xcd8   :  { %v2369_v25 = vsel %vm13749_vm2, %v9865_v36, %v9870_v10  ;;  %v2370_v37 = vsel %vm13752_vm7, %v9866_v27, %v9871_v35  ;;  %v2373_v19 = vsel %vm13753_vm13, %v9870_v10, %v9865_v36  ;;  %v2374_v54 = vsel %vm13754_vm3, %v9871_v35, %v9866_v27  ;;  %v9874_v41 = vpop.permute.xlu1 %9873  ;;  %v10371_v36 = vld [vmem:[%s13647_s12 + $0x8] sm:$0xff]  }
 0xcd9   :  { %v8661_v46 = vpack.c.bf16 %v2374_v54, %v2373_v19  ;;  %v9876_v47 = vunpack.i.h.bf16 %v9874_v41  ;;  %v9875_v50 = vunpack.i.l.bf16 %v9874_v41  ;;  %v9879_v53 = vpop.permute.xlu0 %9878  ;;  %v8658_v55 = vpack.c.bf16 %v2370_v37, %v2369_v25  ;;  %v10373_v35 = vld [vmem:[%s13647_s12 + $0x28] sm:$0xff]  }
 0xcda   :  { %v9881_v32 = vunpack.i.h.bf16 %v9879_v53  ;;  %v9880_v57 = vunpack.i.l.bf16 %v9879_v53  ;;  %vm13755_vm2 = vcmp.lt.s32.totalorder %v10739_v52, 127 }
 0xcdb   :  { %8659 = vmatprep.subr.msk.bf16.mxu0 %vm10755_vm5, %v8658_v55  ;;  %vm13756_vm7 = vmmov %vm13755_vm2 }
 0xcdc   :  { %v2545_v61 = vsel %vm13755_vm2, %v9875_v50, %v9880_v57  ;;  %v2546_v30 = vsel %vm13756_vm7, %v9876_v47, %v9881_v32  ;;  %vm13757_vm13 = vmmov %vm13755_vm2  ;;  %v9884_v29 = vpop.permute.xlu1 %9883  ;;  %8662 = vmatpush1.bf16.msk.msra.mxu0 %vm10759_vm6, %v8661_v46 }
 0xcdd   :  { %v2549_v58 = vsel %vm13757_vm13, %v9880_v57, %v9875_v50  ;;  %vm13758_vm3 = vmmov %vm13755_vm2  ;;  %v8671_v26 = vpack.c.bf16 %v2546_v30, %v2545_v61  ;;  %v9886_v7 = vunpack.i.h.bf16 %v9884_v29  ;;  %v9885_v21 = vunpack.i.l.bf16 %v9884_v29  ;;  %v9889_v8 = vpop.permute.xlu0 %9888 }
 0xcde   :  { %v2550_v3 = vsel %vm13758_vm3, %v9881_v32, %v9876_v47  ;;  %v9891_v18 = vunpack.i.h.bf16 %v9889_v8  ;;  %v9890_v2 = vunpack.i.l.bf16 %v9889_v8  ;;  %vm13759_vm2 = vcmask 261120   ;;  %vm13760_vm7 = vmmov %vm13758_vm3 }
 0xcdf   :  { %v8668_v11 = vpack.c.bf16 %v2550_v3, %v2549_v58  ;;  %8663 = vmatmul.mubr.msk.bf16.vlgmr.msra.gmra.mrb[40].mxu0 %vm13759_vm2, %v10370_v62  ;;  %vm13761_vm13 = vmmov %vm13758_vm3 }
 0xce0   :  { %v2547_v6 = vsel %vm13760_vm7, %v9885_v21, %v9890_v2  ;;  %v2548_v13 = vsel %vm13761_vm13, %v9886_v7, %v9891_v18  ;;  %v2551_v16 = vsel %vm13758_vm3, %v9890_v2, %v9885_v21  ;;  %vm13762_vm6 = vmmov %vm13758_vm3  ;;  %2518 = vmatprep.mubr.bf16.mxu0 %v10516_v5 }
 0xce1   :  { %8669 = vmatprep.subr.msk.bf16.mxu0 %vm10795_vm9, %v8668_v11  ;;  %v2552_v22 = vsel %vm13762_vm6, %v9891_v18, %v9886_v7  ;;  %v8677_v24 = vpack.c.bf16 %v2548_v13, %v2547_v6  ;;  %vm13763_vm6 = vmmov %vm13759_vm2 }
 0xce2   :  { %8672 = vmatpush1.bf16.msk.msra.mxu0 %vm10802_vm10, %v8671_v26  ;;  %v8674_v27 = vpack.c.bf16 %v2552_v22, %v2551_v16  ;;  %vm13764_vm7 = vmmov %vm13759_vm2 }
 0xce3   :  { %vm13765_vm13 = vmmov %vm13759_vm2 }
 0xce4   :  { %8675 = vmatprep.subr.msk.bf16.mxu0 %vm10795_vm9, %v8674_v27  ;;  %vm13766_vm3 = vmmov %vm13759_vm2 }
 0xce6   :  { %8678 = vmatpush1.bf16.msk.msra.mxu0 %vm10802_vm10, %v8677_v24 }
 0xce7   :  { %8664 = vmatmul.mubr.msk.bf16.gmra.mrb[44].mxu0 %vm13759_vm2, %v10371_v36  ;;  %v10374_v36 = vld [vmem:[%s13649_s14] sm:$0xff]  }
 0xce8   :  { %2613 = vmatprep.mubr.bf16.mxu0 %v10516_v5 }
 0xced   :  { %v2645_v10 = vpop.permute.xlu1 %2644 }
 0xcee   :  { %v2650_v54 = vpop.permute.xlu0 %2649 }
 0xcef   :  { %8679 = vmatmul.mubr.msk.bf16.vlgmr.msra.gmra.mrb[40].mxu0 %vm13763_vm6, %v10372_v34  ;;  %v10375_v34 = vld [vmem:[%s13649_s14 + $0x8] sm:$0xff]   ;;  %vm13767_vm6 = vmmov %vm13759_vm2 }
 0xcf0   :  { %2623 = vmatprep.mubr.bf16.mxu0 %v10516_v5 }
 0xcf1   :  { %v2655_v30 = vpop.permute.xlu1 %2654 }
 0xcf2   :  { %v2660_v7 = vpop.permute.xlu0 %2659 }
 0xcf7   :  { %8680 = vmatmul.mubr.msk.bf16.gmra.mrb[44].mxu0 %vm13764_vm7, %v10373_v35  ;;  %v2685_v35 = vpop.permute.xlu1 %2684  ;;  %vm13768_vm7 = vcmp.lt.s32.totalorder %v10739_v52, 2 }
 0xcf8   :  { %3214 = vmatprep.mubr.bf16.mxu0 %v10516_v5 }
 0xdc2   :  { %v2615_v25 = vpop.f32.mrb[40].mxu0 }
 0xdc3   :  { %v2662_v37 = vadd.f32 %v2645_v10, %v2615_v25  ;;  %v2617_v19 = vpop.f32.mrb[41].mxu0 }
 0xdc4   :  { %v2663_v41 = vadd.f32 %v2645_v10, %v2617_v19  ;;  %v2619_v46 = vpop.f32.mrb[42].mxu0  ;;  %v2690_v19 = vpop.permute.xlu0 %2689 }
 0xdc5   :  { %v2664_v47 = vadd.f32 %v2650_v54, %v2619_v46  ;;  %v2621_v50 = vpop.f32.mrb[43].mxu0  ;;  %v2670_v55 = vmax.f32 %v2662_v37, 0.0 }
 0xdc6   :  { %v2665_v53 = vadd.f32 %v2650_v54, %v2621_v50  ;;  %v2671_v57 = vmax.f32 %v2663_v41, 0.0 }
 0xdc7   :  { %v2672_v32 = vmax.f32 %v2664_v47, 0.0 }
 0xdc8   :  { %v2673_v62 = vmax.f32 %v2665_v53, 0.0 }
 0xdc9   :  { %v2678_v61 = vpack.c.bf16 %v2672_v32, %v2670_v55 }
 0xdca   :  { %v2679_v58 = vpack.c.bf16 %v2673_v62, %v2671_v57  ;;  %v2625_v3 = vpop.f32.mrb[44].mxu0 }
 0xdcb   :  { %v2666_v29 = vadd.f32 %v2655_v30, %v2625_v3  ;;  %v2627_v26 = vpop.f32.mrb[45].mxu0 }
 0xdcc   :  { %v2667_v21 = vadd.f32 %v2655_v30, %v2627_v26  ;;  %v2629_v8 = vpop.f32.mrb[46].mxu0  ;;  %2718 = vmatprep.subr.bf16.mxu1 %v2679_v58  ;;  %v2695_v30 = vpop.permute.xlu1 %2694 }
 0xdcd   :  { %v2668_v11 = vadd.f32 %v2660_v7, %v2629_v8  ;;  %v2631_v18 = vpop.f32.mrb[47].mxu0  ;;  %2719 = vmatpush1.bf16.msra.mxu1 %v2678_v61  ;;  %v2674_v6 = vmax.f32 %v2666_v29, 0.0 }
 0xdce   :  { %v2669_v2 = vadd.f32 %v2660_v7, %v2631_v18  ;;  %v2675_v16 = vmax.f32 %v2667_v21, 0.0 }
 0xdcf   :  { %v2676_v13 = vmax.f32 %v2668_v11, 0.0 }
 0xdd0   :  { %v2677_v22 = vmax.f32 %v2669_v2, 0.0 }
 0xdd1   :  { %v2680_v24 = vpack.c.bf16 %v2676_v13, %v2674_v6 }
 0xdd2   :  { %v2681_v27 = vpack.c.bf16 %v2677_v22, %v2675_v16 }
 0xdd4   :  { %2720 = vmatprep.subr.bf16.mxu1 %v2681_v27 }
 0xdd5   :  { %2721 = vmatpush1.bf16.msra.mxu1 %v2680_v24 }
 0xdd8   :  { %8683 = vmatmul.mubr.msk.bf16.vlgmr.msra.gmra.mrb[44].mxu1 %vm13765_vm13, %v10374_v36  ;;  %vm13769_vm13 = vmmov %vm13768_vm7 }
 0xdd9   :  { %2760 = vmatprep.mubr.bf16.mxu1 %v10516_v5 }
 0xde0   :  { %8684 = vmatmul.mubr.msk.bf16.gmra.mrb[48].mxu1 %vm13766_vm3, %v10375_v34  ;;  %vm13770_vm3 = vmmov %vm13768_vm7 }
 0xde1   :  { %2903 = vmatprep.mubr.bf16.mxu1 %v10516_v5 }
 0xeab   :  { %v2752_v10 = vpop.f32.mrb[44].mxu1 }
 0xeac   :  { %v2753_v25 = vadd.f32 %v2752_v10, %v2685_v35  ;;  %v2754_v37 = vpop.f32.mrb[45].mxu1  ;;  %v10376_v10 = vld [vmem:[%s13647_s12 + $0x40] sm:$0xff]  }
 0xead   :  { %v2755_v54 = vadd.f32 %v2754_v37, %v2685_v35  ;;  %v2756_v41 = vpop.f32.mrb[46].mxu1  ;;  %v10377_v37 = vld [vmem:[%s13647_s12 + $0x48] sm:$0xff]  }
 0xeae   :  { %v2771_v46 = vadd.f32 %v2753_v25, %v11499_v14  ;;  %v2757_v47 = vadd.f32 %v2756_v41, %v2690_v19  ;;  %v2758_v50 = vpop.f32.mrb[47].mxu1  ;;  %v8697_v25 = vld [vmem:[%s13648_s13 + $0x20] sm:$0xff]  ;;  %v8700_v41 = vld [vmem:[%s13648_s13 + $0x38] sm:$0xff] }
 0xeaf   :  { %v2772_v53 = vadd.f32 %v2755_v54, %v11503_v17  ;;  %v2759_v55 = vadd.f32 %v2758_v50, %v2690_v19  ;;  %v8698_v19 = vld [vmem:[%s13648_s13 + $0x28] sm:$0xff]  ;;  %v8699_v54 = vld [vmem:[%s13648_s13 + $0x30] sm:$0xff] }
 0xeb0   :  { %v2773_v32 = vadd.f32 %v2757_v47, %v11501_v15  ;;  %v11656_v62 = vmul.f32 %v2771_v46, %v10856_v56  ;;  %v8705_v46 = vld [vmem:[%s13650_s15 + $0x20] sm:$0xff]  ;;  %v8706_v47 = vld [vmem:[%s13650_s15 + $0x28] sm:$0xff]  ;;  %v8707_v50 = vld [vmem:[%s13650_s15 + $0x30] sm:$0xff] }
 0xeb1   :  { %v2774_v57 = vadd.f32 %v2759_v55, %v11505_v20  ;;  %v11662_v58 = vmul.f32 %v2772_v53, %v10859_v59  ;;  %v2700_v20 = vpop.permute.xlu0 %2699  ;;  %v8708_v53 = vld [vmem:[%s13650_s15 + $0x38] sm:$0xff] }
 0xeb2   :  { %v11659_v61 = vmul.f32 %v2773_v32, %v10856_v56 }
 0xeb3   :  { %v11665_v14 = vmul.f32 %v2774_v57, %v10859_v59  ;;  %v2762_v3 = vpop.f32.mrb[48].mxu1 }
 0xeb4   :  { %v2763_v17 = vadd.f32 %v2762_v3, %v2695_v30  ;;  %v2764_v29 = vpop.f32.mrb[49].mxu1  ;;  %v9892_v15 = vpack.i.bf16 %v11659_v61, %v11656_v62  ;;  %v2851_v6 = vpack.c.bf16 %v11659_v61, %v11656_v62 }
 0xeb5   :  { %v2765_v26 = vadd.f32 %v2764_v29, %v2695_v30  ;;  %v2766_v7 = vpop.f32.mrb[50].mxu1  ;;  %v9897_v21 = vpack.i.bf16 %v11665_v14, %v11662_v58  ;;  %v2852_v8 = vpack.c.bf16 %v11665_v14, %v11662_v58 }
 0xeb6   :  { %v2775_v11 = vadd.f32 %v2763_v17, %v11517_v23  ;;  %v2767_v18 = vadd.f32 %v2766_v7, %v2700_v20  ;;  %v2768_v2 = vpop.f32.mrb[51].mxu1  ;;  %9893 = vrot.lane.b32.xlu1 %v9892_v15, %s10519_s1 }
 0xeb7   :  { %v2776_v13 = vadd.f32 %v2765_v26, %v11521_v39  ;;  %v2769_v16 = vadd.f32 %v2768_v2, %v2700_v20  ;;  %9898 = vrot.lane.b32.xlu0 %v9897_v21, %s10519_s1  ;;  %2871 = vmatprep.subr.bf16.mxu1 %v2852_v8 }
 0xeb8   :  { %v2777_v22 = vadd.f32 %v2767_v18, %v11519_v28  ;;  %2872 = vmatpush1.bf16.msra.mxu1 %v2851_v6  ;;  %v11682_v23 = vmul.f32 %v2775_v11, %v10856_v56 }
 0xeb9   :  { %v2778_v24 = vadd.f32 %v2769_v16, %v11523_v40  ;;  %v11688_v36 = vmul.f32 %v2776_v13, %v10859_v59 }
 0xeba   :  { %v11685_v27 = vmul.f32 %v2777_v22, %v10856_v56 }
 0xebb   :  { %v11691_v39 = vmul.f32 %v2778_v24, %v10859_v59 }
 0xebc   :  { %v9902_v34 = vpack.i.bf16 %v11685_v27, %v11682_v23  ;;  %v2853_v35 = vpack.c.bf16 %v11685_v27, %v11682_v23 }
 0xebd   :  { %v9907_v28 = vpack.i.bf16 %v11691_v39, %v11688_v36  ;;  %v2854_v40 = vpack.c.bf16 %v11691_v39, %v11688_v36 }
 0xebe   :  { %9903 = vrot.lane.b32.xlu1 %v9902_v34, %s10519_s1 }
 0xebf   :  { %9908 = vrot.lane.b32.xlu0 %v9907_v28, %s10519_s1  ;;  %2873 = vmatprep.subr.bf16.mxu1 %v2854_v40 }
 0xec0   :  { %2874 = vmatpush1.bf16.msra.mxu1 %v2853_v35 }
 0xec2   :  { %9913 = vrot.lane.b32.xlu1 %v9892_v15, %s10520_s23 }
 0xec3   :  { %9918 = vrot.lane.b32.xlu0 %v9897_v21, %s10520_s23  ;;  %8711 = vmatmul.mubr.msk.bf16.vlgmr.msra.gmra.mrb[52].mxu1 %vm13759_vm2, %v10376_v10  ;;  %vm13771_vm2 = vmmov %vm13770_vm3 }
 0xec4   :  { %2913 = vmatprep.mubr.bf16.mxu1 %v10516_v5 }
 0xec6   :  { %9923 = vrot.lane.b32.xlu1 %v9902_v34, %s10520_s23 }
 0xec7   :  { %9928 = vrot.lane.b32.xlu0 %v9907_v28, %s10520_s23 }
 0xeca   :  { %3108 = vperm.xlu1 %9691, %v8697_v25  }
 0xecb   :  { %3113 = vperm.xlu0 %9690, %v8698_v19   ;;  %8712 = vmatmul.mubr.msk.bf16.gmra.mrb[56].mxu1 %vm13767_vm6, %v10377_v37  ;;  %vm13772_vm6 = vmmov %vm13771_vm2 }
 0xecc   :  { %2972 = vmatprep.mubr.bf16.mxu1 %v10516_v5 }
 0xece   :  { %3118 = vperm.xlu1 %9691, %v8699_v54  }
 0xecf   :  { %3123 = vperm.xlu0 %9690, %v8700_v41   ;;  %v10378_v41 = vld [vmem:[%s13647_s12 + $0x30] sm:$0xff]  }
 0xed2   :  { %3148 = vperm.xlu1 %9691, %v8705_v46  }
 0xed3   :  { %3153 = vperm.xlu0 %9690, %v8706_v47  }
 0xed6   :  { %3158 = vperm.xlu1 %9691, %v8707_v50  }
 0xed7   :  { %3163 = vperm.xlu0 %9690, %v8708_v53  }
 0xf28   :  { %v9894_v55 = vpop.permute.xlu1 %9893 }
 0xf29   :  { %v9896_v32 = vunpack.i.h.bf16 %v9894_v55  ;;  %v9895_v57 = vunpack.i.l.bf16 %v9894_v55  ;;  %v9899_v30 = vpop.permute.xlu0 %9898 }
 0xf2a   :  { %v9901_v3 = vunpack.i.h.bf16 %v9899_v30  ;;  %v9900_v17 = vunpack.i.l.bf16 %v9899_v30 }
 0xf2c   :  { %v2831_v29 = vsel %vm13768_vm7, %v9895_v57, %v9900_v17  ;;  %v2832_v15 = vsel %vm13769_vm13, %v9896_v32, %v9901_v3  ;;  %v2835_v20 = vsel %vm13770_vm3, %v9900_v17, %v9895_v57  ;;  %v2836_v26 = vsel %vm13771_vm2, %v9901_v3, %v9896_v32  ;;  %vm13773_vm7 = vmmov %vm13771_vm2 }
 0xf2d   :  { %v8719_v7 = vpack.c.bf16 %v2836_v26, %v2835_v20  ;;  %v8716_v21 = vpack.c.bf16 %v2832_v15, %v2831_v29  ;;  %vm13774_vm13 = vmmov %vm13771_vm2 }
 0xf2e   :  { %vm13775_vm3 = vmmov %vm13771_vm2  ;;  %vm13776_vm2 = vcmp.lt.s32.totalorder %v10739_v52, 126 }
 0xf2f   :  { %8717 = vmatprep.subr.msk.bf16.mxu1 %vm10961_vm14, %v8716_v21 }
 0xf30   :  { %v9904_v8 = vpop.permute.xlu1 %9903  ;;  %8720 = vmatpush1.bf16.msk.msra.mxu1 %vm10965_vm15, %v8719_v7 }
 0xf31   :  { %v9906_v11 = vunpack.i.h.bf16 %v9904_v8  ;;  %v9905_v18 = vunpack.i.l.bf16 %v9904_v8  ;;  %v9909_v2 = vpop.permute.xlu0 %9908 }
 0xf32   :  { %v9911_v6 = vunpack.i.h.bf16 %v9909_v2  ;;  %v9910_v13 = vunpack.i.l.bf16 %v9909_v2  ;;  %v10380_v2 = vld [vmem:[%s13647_s12 + $0x50] sm:$0xff]  }
 0xf34   :  { %v2833_v16 = vsel %vm13772_vm6, %v9905_v18, %v9910_v13  ;;  %v2834_v22 = vsel %vm13773_vm7, %v9906_v11, %v9911_v6  ;;  %v2837_v24 = vsel %vm13774_vm13, %v9910_v13, %v9905_v18  ;;  %v2838_v34 = vsel %vm13775_vm3, %v9911_v6, %v9906_v11  ;;  %v9914_v28 = vpop.permute.xlu1 %9913  ;;  %vm13777_vm6 = vmmov %vm13776_vm2  ;;  %v10379_v18 = vld [vmem:[%s13647_s12 + $0x38] sm:$0xff]  }
 0xf35   :  { %v8725_v40 = vpack.c.bf16 %v2838_v34, %v2837_v24  ;;  %v9916_v35 = vunpack.i.h.bf16 %v9914_v28  ;;  %v9915_v10 = vunpack.i.l.bf16 %v9914_v28  ;;  %v9919_v25 = vpop.permute.xlu0 %9918  ;;  %v8722_v37 = vpack.c.bf16 %v2834_v22, %v2833_v16  ;;  %vm13778_vm7 = vmmov %vm13776_vm2  ;;  %v10381_v6 = vld [vmem:[%s13647_s12 + $0x58] sm:$0xff]  }
 0xf36   :  { %v9921_v19 = vunpack.i.h.bf16 %v9919_v25  ;;  %v9920_v54 = vunpack.i.l.bf16 %v9919_v25  ;;  %vm13779_vm13 = vmmov %vm13776_vm2  ;;  %vm13780_vm3 = vcmask 261120  }
 0xf37   :  { %8723 = vmatprep.subr.msk.bf16.mxu1 %vm10961_vm14, %v8722_v37 }
 0xf38   :  { %v3009_v46 = vsel %vm13776_vm2, %v9915_v10, %v9920_v54  ;;  %v3010_v47 = vsel %vm13777_vm6, %v9916_v35, %v9921_v19  ;;  %v3013_v50 = vsel %vm13778_vm7, %v9920_v54, %v9915_v10  ;;  %v3014_v53 = vsel %vm13779_vm13, %v9921_v19, %v9916_v35  ;;  %v9924_v55 = vpop.permute.xlu1 %9923  ;;  %8726 = vmatpush1.bf16.msk.msra.mxu1 %vm10965_vm15, %v8725_v40  ;;  %vm13781_vm6 = vmmov %vm13776_vm2 }
 0xf39   :  { %v8735_v32 = vpack.c.bf16 %v3010_v47, %v3009_v46  ;;  %v9926_v57 = vunpack.i.h.bf16 %v9924_v55  ;;  %v9925_v30 = vunpack.i.l.bf16 %v9924_v55  ;;  %v9929_v3 = vpop.permute.xlu0 %9928  ;;  %v8732_v17 = vpack.c.bf16 %v3014_v53, %v3013_v50  ;;  %vm13782_vm7 = vmmov %vm13776_vm2 }
 0xf3a   :  { %v9931_v29 = vunpack.i.h.bf16 %v9929_v3  ;;  %v9930_v15 = vunpack.i.l.bf16 %v9929_v3  ;;  %vm13783_vm13 = vmmov %vm13776_vm2 }
 0xf3b   :  { %8727 = vmatmul.mubr.msk.bf16.vlgmr.msra.gmra.mrb[52].mxu1 %vm13780_vm3, %v10378_v41  ;;  %8733 = vmatprep.subr.msk.bf16.mxu1 %vm11001_vm4, %v8732_v17 }
 0xf3c   :  { %v3011_v20 = vsel %vm13776_vm2, %v9925_v30, %v9930_v15  ;;  %v3012_v26 = vsel %vm13781_vm6, %v9926_v57, %v9931_v29  ;;  %v3015_v7 = vsel %vm13782_vm7, %v9930_v15, %v9925_v30  ;;  %v3016_v21 = vsel %vm13783_vm13, %v9931_v29, %v9926_v57  ;;  %8736 = vmatpush1.bf16.msk.msra.mxu1 %vm11008_vm8, %v8735_v32  ;;  %vm13784_vm2 = vmmov %vm13780_vm3 }
 0xf3d   :  { %v8741_v8 = vpack.c.bf16 %v3012_v26, %v3011_v20  ;;  %v8738_v11 = vpack.c.bf16 %v3016_v21, %v3015_v7  ;;  %2982 = vmatprep.mubr.bf16.mxu1 %v10516_v5  ;;  %vm13785_vm6 = vmmov %vm13784_vm2 }
 0xf3e   :  { %vm13786_vm7 = vmmov %vm13784_vm2 }
 0xf3f   :  { %8739 = vmatprep.subr.msk.bf16.mxu1 %vm11001_vm4, %v8738_v11  ;;  %vm13787_vm13 = vmmov %vm13784_vm2  ;;  %vm13808_vm4 = vnez %v13729_v51 }
 0xf40   :  { %8742 = vmatpush1.bf16.msk.msra.mxu1 %vm11008_vm8, %v8741_v8  ;;  %vm13795_vm8 = vnez %v13725_v12 }
 0xf43   :  { %8728 = vmatmul.mubr.msk.bf16.gmra.mrb[56].mxu1 %vm13780_vm3, %v10379_v18  ;;  %v10382_v18 = vld [vmem:[%s13649_s14 + $0x10] sm:$0xff]   ;;  %vm13789_vm3 = vmmov %vm13784_vm2 }
 0xf44   :  { %3077 = vmatprep.mubr.bf16.mxu1 %v10516_v5 }
 0xf49   :  { %v3109_v13 = vpop.permute.xlu1 %3108 }
 0xf4a   :  { %v3114_v34 = vpop.permute.xlu0 %3113 }
 0xf4b   :  { %8743 = vmatmul.mubr.msk.bf16.vlgmr.msra.gmra.mrb[52].mxu1 %vm13784_vm2, %v10380_v2  ;;  %v10383_v2 = vld [vmem:[%s13649_s14 + $0x18] sm:$0xff]  }
 0xf4c   :  { %3087 = vmatprep.mubr.bf16.mxu1 %v10516_v5 }
 0xf4d   :  { %v3119_v47 = vpop.permute.xlu1 %3118 }
 0xf4e   :  { %v3124_v57 = vpop.permute.xlu0 %3123 }
 0xf53   :  { %8744 = vmatmul.mubr.msk.bf16.gmra.mrb[56].mxu1 %vm13785_vm6, %v10381_v6  ;;  %v3149_v6 = vpop.permute.xlu1 %3148  ;;  %vm13790_vm6 = vcmp.lt.s32.totalorder %v10739_v52, 4 }
 0xf54   :  { %3678 = vmatprep.mubr.bf16.mxu1 %v10516_v5 }
0x101e   :  { %v3079_v16 = vpop.f32.mrb[52].mxu1 }
0x101f   :  { %v3126_v22 = vadd.f32 %v3109_v13, %v3079_v16  ;;  %v3081_v24 = vpop.f32.mrb[53].mxu1 }
0x1020   :  { %v3127_v28 = vadd.f32 %v3109_v13, %v3081_v24  ;;  %v3083_v40 = vpop.f32.mrb[54].mxu1  ;;  %v3154_v24 = vpop.permute.xlu0 %3153 }
0x1021   :  { %v3128_v35 = vadd.f32 %v3114_v34, %v3083_v40  ;;  %v3085_v10 = vpop.f32.mrb[55].mxu1  ;;  %v3134_v37 = vmax.f32 %v3126_v22, 0.0 }
0x1022   :  { %v3129_v25 = vadd.f32 %v3114_v34, %v3085_v10  ;;  %v3135_v54 = vmax.f32 %v3127_v28, 0.0 }
0x1023   :  { %v3136_v19 = vmax.f32 %v3128_v35, 0.0 }
0x1024   :  { %v3137_v41 = vmax.f32 %v3129_v25, 0.0 }
0x1025   :  { %v3142_v46 = vpack.c.bf16 %v3136_v19, %v3134_v37 }
0x1026   :  { %v3143_v50 = vpack.c.bf16 %v3137_v41, %v3135_v54  ;;  %v3089_v53 = vpop.f32.mrb[56].mxu1 }
0x1027   :  { %v3130_v55 = vadd.f32 %v3119_v47, %v3089_v53  ;;  %v3091_v32 = vpop.f32.mrb[57].mxu1 }
0x1028   :  { %v3131_v30 = vadd.f32 %v3119_v47, %v3091_v32  ;;  %v3093_v3 = vpop.f32.mrb[58].mxu1  ;;  %3182 = vmatprep.subr.bf16.mxu0 %v3143_v50  ;;  %v3159_v47 = vpop.permute.xlu1 %3158 }
0x1029   :  { %v3132_v17 = vadd.f32 %v3124_v57, %v3093_v3  ;;  %v3095_v29 = vpop.f32.mrb[59].mxu1  ;;  %3183 = vmatpush1.bf16.msra.mxu0 %v3142_v46  ;;  %v3138_v20 = vmax.f32 %v3130_v55, 0.0 }
0x102a   :  { %v3133_v15 = vadd.f32 %v3124_v57, %v3095_v29  ;;  %v3139_v7 = vmax.f32 %v3131_v30, 0.0 }
0x102b   :  { %v3140_v26 = vmax.f32 %v3132_v17, 0.0 }
0x102c   :  { %v3141_v21 = vmax.f32 %v3133_v15, 0.0 }
0x102d   :  { %v3144_v8 = vpack.c.bf16 %v3140_v26, %v3138_v20 }
0x102e   :  { %v3145_v11 = vpack.c.bf16 %v3141_v21, %v3139_v7 }
0x1030   :  { %3184 = vmatprep.subr.bf16.mxu0 %v3145_v11 }
0x1031   :  { %3185 = vmatpush1.bf16.msra.mxu0 %v3144_v8 }
0x1034   :  { %8747 = vmatmul.mubr.msk.bf16.vlgmr.msra.gmra.mrb[48].mxu0 %vm13786_vm7, %v10382_v18  ;;  %vm13791_vm7 = vmmov %vm13790_vm6 }
0x1035   :  { %3224 = vmatprep.mubr.bf16.mxu0 %v10516_v5 }
0x103c   :  { %8748 = vmatmul.mubr.msk.bf16.gmra.mrb[52].mxu0 %vm13787_vm13, %v10383_v2  ;;  %vm13792_vm13 = vmmov %vm13790_vm6 }
0x103d   :  { %3367 = vmatprep.mubr.bf16.mxu0 %v10516_v5 }
0x1107   :  { %v3216_v13 = vpop.f32.mrb[48].mxu0 }
0x1108   :  { %v3217_v16 = vadd.f32 %v3216_v13, %v3149_v6  ;;  %v3218_v22 = vpop.f32.mrb[49].mxu0  ;;  %v10384_v13 = vld [vmem:[%s13647_s12 + $0x70] sm:$0xff]  }
0x1109   :  { %v3219_v34 = vadd.f32 %v3218_v22, %v3149_v6  ;;  %v3220_v28 = vpop.f32.mrb[50].mxu0  ;;  %v10385_v22 = vld [vmem:[%s13647_s12 + $0x78] sm:$0xff]  }
0x110a   :  { %v3235_v40 = vadd.f32 %v3217_v16, %v11656_v62  ;;  %v3221_v35 = vadd.f32 %v3220_v28, %v3154_v24  ;;  %v3222_v10 = vpop.f32.mrb[51].mxu0  ;;  %v8761_v16 = vld [vmem:[%s13648_s13 + $0x40] sm:$0xff]  ;;  %v8764_v28 = vld [vmem:[%s13648_s13 + $0x58] sm:$0xff] }
0x110b   :  { %v3236_v25 = vadd.f32 %v3219_v34, %v11662_v58  ;;  %v3223_v37 = vadd.f32 %v3222_v10, %v3154_v24  ;;  %v8762_v24 = vld [vmem:[%s13648_s13 + $0x48] sm:$0xff]  ;;  %v8763_v34 = vld [vmem:[%s13648_s13 + $0x50] sm:$0xff] }
0x110c   :  { %v3237_v19 = vadd.f32 %v3221_v35, %v11659_v61  ;;  %v11824_v41 = vmul.f32 %v3235_v40, %v10856_v56  ;;  %v8769_v40 = vld [vmem:[%s13650_s15 + $0x40] sm:$0xff]  ;;  %v8770_v35 = vld [vmem:[%s13650_s15 + $0x48] sm:$0xff]  ;;  %v8771_v10 = vld [vmem:[%s13650_s15 + $0x50] sm:$0xff] }
0x110d   :  { %v3238_v54 = vadd.f32 %v3223_v37, %v11665_v14  ;;  %v11830_v50 = vmul.f32 %v3236_v25, %v10859_v59  ;;  %v3164_v14 = vpop.permute.xlu0 %3163  ;;  %v8772_v25 = vld [vmem:[%s13650_s15 + $0x58] sm:$0xff] }
0x110e   :  { %v11827_v46 = vmul.f32 %v3237_v19, %v10856_v56 }
0x110f   :  { %v11833_v62 = vmul.f32 %v3238_v54, %v10859_v59  ;;  %v3226_v53 = vpop.f32.mrb[52].mxu0 }
0x1110   :  { %v3227_v58 = vadd.f32 %v3226_v53, %v3159_v47  ;;  %v3228_v55 = vpop.f32.mrb[53].mxu0  ;;  %v9932_v61 = vpack.i.bf16 %v11827_v46, %v11824_v41  ;;  %v3315_v20 = vpack.c.bf16 %v11827_v46, %v11824_v41 }
0x1111   :  { %v3229_v32 = vadd.f32 %v3228_v55, %v3159_v47  ;;  %v3230_v57 = vpop.f32.mrb[54].mxu0  ;;  %v9937_v30 = vpack.i.bf16 %v11833_v62, %v11830_v50  ;;  %v3316_v3 = vpack.c.bf16 %v11833_v62, %v11830_v50 }
0x1112   :  { %v3239_v17 = vadd.f32 %v3227_v58, %v11682_v23  ;;  %v3231_v29 = vadd.f32 %v3230_v57, %v3164_v14  ;;  %v3232_v15 = vpop.f32.mrb[55].mxu0  ;;  %9933 = vrot.lane.b32.xlu1 %v9932_v61, %s10521_s21 }
0x1113   :  { %v3240_v26 = vadd.f32 %v3229_v32, %v11688_v36  ;;  %v3233_v7 = vadd.f32 %v3232_v15, %v3164_v14  ;;  %9938 = vrot.lane.b32.xlu0 %v9937_v30, %s10521_s21  ;;  %3335 = vmatprep.subr.bf16.mxu0 %v3316_v3 }
0x1114   :  { %v3241_v21 = vadd.f32 %v3231_v29, %v11685_v27  ;;  %3336 = vmatpush1.bf16.msra.mxu0 %v3315_v20  ;;  %v11850_v23 = vmul.f32 %v3239_v17, %v10856_v56 }
0x1115   :  { %v3242_v8 = vadd.f32 %v3233_v7, %v11691_v39  ;;  %v11856_v18 = vmul.f32 %v3240_v26, %v10859_v59 }
0x1116   :  { %v11853_v11 = vmul.f32 %v3241_v21, %v10856_v56 }
0x1117   :  { %v11859_v36 = vmul.f32 %v3242_v8, %v10859_v59 }
0x1118   :  { %v9942_v2 = vpack.i.bf16 %v11853_v11, %v11850_v23  ;;  %v3317_v6 = vpack.c.bf16 %v11853_v11, %v11850_v23 }
0x1119   :  { %v9947_v27 = vpack.i.bf16 %v11859_v36, %v11856_v18  ;;  %v3318_v39 = vpack.c.bf16 %v11859_v36, %v11856_v18 }
0x111a   :  { %9943 = vrot.lane.b32.xlu1 %v9942_v2, %s10521_s21 }
0x111b   :  { %9948 = vrot.lane.b32.xlu0 %v9947_v27, %s10521_s21  ;;  %3337 = vmatprep.subr.bf16.mxu0 %v3318_v39 }
0x111c   :  { %3338 = vmatpush1.bf16.msra.mxu0 %v3317_v6 }
0x111e   :  { %9953 = vrot.lane.b32.xlu1 %v9932_v61, %s13788_s27 }
0x111f   :  { %9958 = vrot.lane.b32.xlu0 %v9937_v30, %s13788_s27  ;;  %8775 = vmatmul.mubr.msk.bf16.vlgmr.msra.gmra.mrb[56].mxu0 %vm13789_vm3, %v10384_v13  ;;  %vm13793_vm3 = vmmov %vm13790_vm6 }
0x1120   :  { %3377 = vmatprep.mubr.bf16.mxu0 %v10516_v5 }
0x1122   :  { %9963 = vrot.lane.b32.xlu1 %v9942_v2, %s13788_s27 }
0x1123   :  { %9968 = vrot.lane.b32.xlu0 %v9947_v27, %s13788_s27 }
0x1126   :  { %3572 = vperm.xlu1 %9691, %v8761_v16  }
0x1127   :  { %3577 = vperm.xlu0 %9690, %v8762_v24   ;;  %8776 = vmatmul.mubr.msk.bf16.gmra.mrb[60].mxu0 %vm13784_vm2, %v10385_v22  ;;  %vm13794_vm2 = vnez %v13723_v9 }
0x1128   :  { %3436 = vmatprep.mubr.bf16.mxu0 %v10516_v5 }
0x112a   :  { %3582 = vperm.xlu1 %9691, %v8763_v34  }
0x112b   :  { %3587 = vperm.xlu0 %9690, %v8764_v28   ;;  %v10386_v28 = vld [vmem:[%s13647_s12 + $0x60] sm:$0xff]  }
0x112e   :  { %3612 = vperm.xlu1 %9691, %v8769_v40  }
0x112f   :  { %3617 = vperm.xlu0 %9690, %v8770_v35  }
0x1132   :  { %3622 = vperm.xlu1 %9691, %v8771_v10  }
0x1133   :  { %3627 = vperm.xlu0 %9690, %v8772_v25  }
0x1184   :  { %v9934_v37 = vpop.permute.xlu1 %9933 }
0x1185   :  { %v9936_v19 = vunpack.i.h.bf16 %v9934_v37  ;;  %v9935_v54 = vunpack.i.l.bf16 %v9934_v37  ;;  %v9939_v47 = vpop.permute.xlu0 %9938 }
0x1186   :  { %v9941_v53 = vunpack.i.h.bf16 %v9939_v47  ;;  %v9940_v58 = vunpack.i.l.bf16 %v9939_v47 }
0x1188   :  { %v3295_v55 = vsel %vm13790_vm6, %v9935_v54, %v9940_v58  ;;  %v3296_v61 = vsel %vm13791_vm7, %v9936_v19, %v9941_v53  ;;  %v3299_v14 = vsel %vm13792_vm13, %v9940_v58, %v9935_v54  ;;  %v3300_v32 = vsel %vm13793_vm3, %v9941_v53, %v9936_v19  ;;  %vm13796_vm6 = vmmov %vm13793_vm3 }
0x1189   :  { %v8783_v57 = vpack.c.bf16 %v3300_v32, %v3299_v14  ;;  %v8780_v30 = vpack.c.bf16 %v3296_v61, %v3295_v55  ;;  %vm13797_vm7 = vmmov %vm13793_vm3 }
0x118a   :  { %vm13798_vm13 = vmmov %vm13793_vm3 }
0x118b   :  { %8781 = vmatprep.subr.msk.bf16.mxu0 %vm13794_vm2, %v8780_v30 }
0x118c   :  { %v9944_v3 = vpop.permute.xlu1 %9943  ;;  %8784 = vmatpush1.bf16.msk.msra.mxu0 %vm13795_vm8, %v8783_v57 }
0x118d   :  { %v9946_v17 = vunpack.i.h.bf16 %v9944_v3  ;;  %v9945_v29 = vunpack.i.l.bf16 %v9944_v3  ;;  %v9949_v15 = vpop.permute.xlu0 %9948 }
0x118e   :  { %v9951_v20 = vunpack.i.h.bf16 %v9949_v15  ;;  %v9950_v26 = vunpack.i.l.bf16 %v9949_v15  ;;  %v10388_v15 = vld [vmem:[%s13647_s12 + $0x80] sm:$0xff]  }
0x1190   :  { %v3297_v7 = vsel %vm13796_vm6, %v9945_v29, %v9950_v26  ;;  %v3298_v21 = vsel %vm13797_vm7, %v9946_v17, %v9951_v20  ;;  %v3301_v8 = vsel %vm13798_vm13, %v9950_v26, %v9945_v29  ;;  %v3302_v2 = vsel %vm13793_vm3, %v9951_v20, %v9946_v17  ;;  %v9954_v27 = vpop.permute.xlu1 %9953  ;;  %v10387_v29 = vld [vmem:[%s13647_s12 + $0x68] sm:$0xff]  }
0x1191   :  { %v8789_v39 = vpack.c.bf16 %v3302_v2, %v3301_v8  ;;  %v9956_v6 = vunpack.i.h.bf16 %v9954_v27  ;;  %v9955_v13 = vunpack.i.l.bf16 %v9954_v27  ;;  %v9959_v16 = vpop.permute.xlu0 %9958  ;;  %v8786_v22 = vpack.c.bf16 %v3298_v21, %v3297_v7  ;;  %v10389_v20 = vld [vmem:[%s13647_s12 + $0x88] sm:$0xff]  }
0x1192   :  { %v9961_v24 = vunpack.i.h.bf16 %v9959_v16  ;;  %v9960_v34 = vunpack.i.l.bf16 %v9959_v16  ;;  %vm13799_vm6 = vcmp.lt.s32.totalorder %v10739_v52, 124 }
0x1193   :  { %8787 = vmatprep.subr.msk.bf16.mxu0 %vm13794_vm2, %v8786_v22  ;;  %vm13800_vm7 = vmmov %vm13799_vm6 }
0x1194   :  { %v3473_v40 = vsel %vm13799_vm6, %v9955_v13, %v9960_v34  ;;  %v3474_v35 = vsel %vm13800_vm7, %v9956_v6, %v9961_v24  ;;  %vm13801_vm13 = vmmov %vm13799_vm6  ;;  %v9964_v37 = vpop.permute.xlu1 %9963  ;;  %8790 = vmatpush1.bf16.msk.msra.mxu0 %vm13795_vm8, %v8789_v39  ;;  %vm13804_vm7 = vnez %v13727_v48  ;;  %v10457_v48 = vld [vmem:[%s13647_s12 + $0x208] sm:$0xff]  }
0x1195   :  { %v3477_v10 = vsel %vm13801_vm13, %v9960_v34, %v9955_v13  ;;  %vm13802_vm3 = vmmov %vm13799_vm6  ;;  %v8799_v19 = vpack.c.bf16 %v3474_v35, %v3473_v40  ;;  %v9966_v54 = vunpack.i.h.bf16 %v9964_v37  ;;  %v9965_v47 = vunpack.i.l.bf16 %v9964_v37  ;;  %v9969_v53 = vpop.permute.xlu0 %9968 }
0x1196   :  { %v3478_v25 = vsel %vm13802_vm3, %v9961_v24, %v9956_v6  ;;  %v9971_v55 = vunpack.i.h.bf16 %v9969_v53  ;;  %v9970_v61 = vunpack.i.l.bf16 %v9969_v53  ;;  %vm13803_vm6 = vcmask 261120   ;;  %vm13805_vm13 = vmmov %vm13802_vm3 }
0x1197   :  { %v8796_v58 = vpack.c.bf16 %v3478_v25, %v3477_v10  ;;  %8791 = vmatmul.mubr.msk.bf16.vlgmr.msra.gmra.mrb[56].mxu0 %vm13803_vm6, %v10386_v28  ;;  %vm13806_vm8 = vmmov %vm13802_vm3 }
0x1198   :  { %v3475_v14 = vsel %vm13805_vm13, %v9965_v47, %v9970_v61  ;;  %v3476_v32 = vsel %vm13802_vm3, %v9966_v54, %v9971_v55  ;;  %v3479_v57 = vsel %vm13806_vm8, %v9970_v61, %v9965_v47  ;;  %vm13807_vm2 = vmmov %vm13802_vm3  ;;  %3446 = vmatprep.mubr.bf16.mxu0 %v10516_v5 }
0x1199   :  { %8797 = vmatprep.subr.msk.bf16.mxu0 %vm13804_vm7, %v8796_v58  ;;  %v3480_v30 = vsel %vm13807_vm2, %v9971_v55, %v9966_v54  ;;  %v8805_v3 = vpack.c.bf16 %v3476_v32, %v3475_v14  ;;  %vm13809_vm8 = vmmov %vm13803_vm6 }
0x119a   :  { %8800 = vmatpush1.bf16.msk.msra.mxu0 %vm13808_vm4, %v8799_v19  ;;  %v8802_v17 = vpack.c.bf16 %v3480_v30, %v3479_v57  ;;  %vm13810_vm2 = vmmov %vm13803_vm6 }
0x119b   :  { %vm13811_vm6 = vmmov %vm13810_vm2 }
0x119c   :  { %8803 = vmatprep.subr.msk.bf16.mxu0 %vm13804_vm7, %v8802_v17  ;;  %vm13812_vm13 = vmmov %vm13810_vm2 }
0x119d   :  { %vm13813_vm3 = vmmov %vm13810_vm2 }
0x119e   :  { %8806 = vmatpush1.bf16.msk.msra.mxu0 %vm13808_vm4, %v8805_v3 }
0x119f   :  { %8792 = vmatmul.mubr.msk.bf16.gmra.mrb[60].mxu0 %vm13809_vm8, %v10387_v29  ;;  %v10390_v29 = vld [vmem:[%s13649_s14 + $0x20] sm:$0xff]   ;;  %vm13816_vm8 = vmmov %vm13810_vm2 }
0x11a0   :  { %3541 = vmatprep.mubr.bf16.mxu0 %v10516_v5 }
0x11a5   :  { %v3573_v26 = vpop.permute.xlu1 %3572 }
0x11a6   :  { %v3578_v2 = vpop.permute.xlu0 %3577 }
0x11a7   :  { %8807 = vmatmul.mubr.msk.bf16.vlgmr.msra.gmra.mrb[56].mxu0 %vm13810_vm2, %v10388_v15  ;;  %v10391_v15 = vld [vmem:[%s13649_s14 + $0x28] sm:$0xff]  }
0x11a8   :  { %3551 = vmatprep.mubr.bf16.mxu0 %v10516_v5 }
0x11a9   :  { %v3583_v35 = vpop.permute.xlu1 %3582 }
0x11aa   :  { %v3588_v54 = vpop.permute.xlu0 %3587 }
0x11af   :  { %8808 = vmatmul.mubr.msk.bf16.gmra.mrb[60].mxu0 %vm13811_vm6, %v10389_v20  ;;  %v3613_v20 = vpop.permute.xlu1 %3612  ;;  %vm13817_vm6 = vcmp.lt.s32.totalorder %v10739_v52, 8 }
0x11b0   :  { %4142 = vmatprep.mubr.bf16.mxu0 %v10516_v5 }
0x127a   :  { %v3543_v7 = vpop.f32.mrb[56].mxu0 }
0x127b   :  { %v3590_v21 = vadd.f32 %v3573_v26, %v3543_v7  ;;  %v3545_v8 = vpop.f32.mrb[57].mxu0 }
0x127c   :  { %v3591_v27 = vadd.f32 %v3573_v26, %v3545_v8  ;;  %v3547_v39 = vpop.f32.mrb[58].mxu0  ;;  %v3618_v8 = vpop.permute.xlu0 %3617 }
0x127d   :  { %v3592_v6 = vadd.f32 %v3578_v2, %v3547_v39  ;;  %v3549_v13 = vpop.f32.mrb[59].mxu0  ;;  %v3598_v22 = vmax.f32 %v3590_v21, 0.0 }
0x127e   :  { %v3593_v16 = vadd.f32 %v3578_v2, %v3549_v13  ;;  %v3599_v34 = vmax.f32 %v3591_v27, 0.0 }
0x127f   :  { %v3600_v24 = vmax.f32 %v3592_v6, 0.0 }
0x1280   :  { %v3601_v28 = vmax.f32 %v3593_v16, 0.0 }
0x1281   :  { %v3606_v40 = vpack.c.bf16 %v3600_v24, %v3598_v22 }
0x1282   :  { %v3607_v10 = vpack.c.bf16 %v3601_v28, %v3599_v34  ;;  %v3553_v25 = vpop.f32.mrb[60].mxu0 }
0x1283   :  { %v3594_v37 = vadd.f32 %v3583_v35, %v3553_v25  ;;  %v3555_v19 = vpop.f32.mrb[61].mxu0 }
0x1284   :  { %v3595_v47 = vadd.f32 %v3583_v35, %v3555_v19  ;;  %v3557_v53 = vpop.f32.mrb[62].mxu0  ;;  %3646 = vmatprep.subr.bf16.mxu1 %v3607_v10  ;;  %v3623_v35 = vpop.permute.xlu1 %3622 }
0x1285   :  { %v3596_v58 = vadd.f32 %v3588_v54, %v3557_v53  ;;  %v3559_v55 = vpop.f32.mrb[63].mxu0  ;;  %3647 = vmatpush1.bf16.msra.mxu1 %v3606_v40  ;;  %v3602_v14 = vmax.f32 %v3594_v37, 0.0 }
0x1286   :  { %v3597_v61 = vadd.f32 %v3588_v54, %v3559_v55  ;;  %v3603_v57 = vmax.f32 %v3595_v47, 0.0 }
0x1287   :  { %v3604_v32 = vmax.f32 %v3596_v58, 0.0 }
0x1288   :  { %v3605_v30 = vmax.f32 %v3597_v61, 0.0 }
0x1289   :  { %v3608_v3 = vpack.c.bf16 %v3604_v32, %v3602_v14 }
0x128a   :  { %v3609_v17 = vpack.c.bf16 %v3605_v30, %v3603_v57 }
0x128c   :  { %3648 = vmatprep.subr.bf16.mxu1 %v3609_v17 }
0x128d   :  { %3649 = vmatpush1.bf16.msra.mxu1 %v3608_v3 }
0x1290   :  { %8811 = vmatmul.mubr.msk.bf16.vlgmr.msra.gmra.mrb[60].mxu1 %vm13812_vm13, %v10390_v29  ;;  %vm13818_vm13 = vmmov %vm13817_vm6 }
0x1291   :  { %3688 = vmatprep.mubr.bf16.mxu1 %v10516_v5 }
0x1298   :  { %8812 = vmatmul.mubr.msk.bf16.gmra.mrb[64].mxu1 %vm13813_vm3, %v10391_v15  ;;  %vm13819_vm3 = vmmov %vm13817_vm6 }
0x1299   :  { %3831 = vmatprep.mubr.bf16.mxu1 %v10516_v5 }
0x1363   :  { %v3680_v26 = vpop.f32.mrb[60].mxu1 }
0x1364   :  { %v3681_v7 = vadd.f32 %v3680_v26, %v3613_v20  ;;  %v3682_v21 = vpop.f32.mrb[61].mxu1  ;;  %v10392_v26 = vld [vmem:[%s13647_s12 + $0xa0] sm:$0xff]  }
0x1365   :  { %v3683_v2 = vadd.f32 %v3682_v21, %v3613_v20  ;;  %v3684_v27 = vpop.f32.mrb[62].mxu1  ;;  %v10393_v21 = vld [vmem:[%s13647_s12 + $0xa8] sm:$0xff]  }
0x1366   :  { %v3699_v39 = vadd.f32 %v3681_v7, %v11824_v41  ;;  %v3685_v6 = vadd.f32 %v3684_v27, %v3618_v8  ;;  %v3686_v13 = vpop.f32.mrb[63].mxu1  ;;  %v8825_v7 = vld [vmem:[%s13648_s13 + $0x60] sm:$0xff]  ;;  %v8828_v27 = vld [vmem:[%s13648_s13 + $0x78] sm:$0xff] }
0x1367   :  { %v3700_v16 = vadd.f32 %v3683_v2, %v11830_v50  ;;  %v3687_v22 = vadd.f32 %v3686_v13, %v3618_v8  ;;  %v8826_v8 = vld [vmem:[%s13648_s13 + $0x68] sm:$0xff]  ;;  %v8827_v2 = vld [vmem:[%s13648_s13 + $0x70] sm:$0xff] }
0x1368   :  { %v3701_v24 = vadd.f32 %v3685_v6, %v11827_v46  ;;  %v11992_v28 = vmul.f32 %v3699_v39, %v10856_v56  ;;  %v8833_v39 = vld [vmem:[%s13650_s15 + $0x60] sm:$0xff]  ;;  %v8834_v6 = vld [vmem:[%s13650_s15 + $0x68] sm:$0xff]  ;;  %v8835_v13 = vld [vmem:[%s13650_s15 + $0x70] sm:$0xff] }
0x1369   :  { %v3702_v34 = vadd.f32 %v3687_v22, %v11833_v62  ;;  %v11998_v10 = vmul.f32 %v3700_v16, %v10859_v59  ;;  %v3628_v62 = vpop.permute.xlu0 %3627  ;;  %v8836_v16 = vld [vmem:[%s13650_s15 + $0x78] sm:$0xff]  ;;  %v2227_v22 = vld [vmem:[%s13652_s17] sm:$0xff] }
0x136a   :  { %v11995_v40 = vmul.f32 %v3701_v24, %v10856_v56  ;;  %v8882_v24 = vld [vmem:[%s13646_s11 + $0x20] sm:$0xff] }
0x136b   :  { %v12001_v41 = vmul.f32 %v3702_v34, %v10859_v59  ;;  %v3690_v25 = vpop.f32.mrb[64].mxu1  ;;  %v8883_v34 = vld [vmem:[%s13646_s11 + $0x28] sm:$0xff] }
0x136c   :  { %v3691_v50 = vadd.f32 %v3690_v25, %v3623_v35  ;;  %v3692_v37 = vpop.f32.mrb[65].mxu1  ;;  %v9972_v46 = vpack.i.bf16 %v11995_v40, %v11992_v28  ;;  %v3779_v14 = vpack.c.bf16 %v11995_v40, %v11992_v28  ;;  %v8885_v25 = vld [vmem:[%s13646_s11 + $0x38] sm:$0xff] }
0x136d   :  { %v3693_v19 = vadd.f32 %v3692_v37, %v3623_v35  ;;  %v3694_v54 = vpop.f32.mrb[66].mxu1  ;;  %v9977_v47 = vpack.i.bf16 %v12001_v41, %v11998_v10  ;;  %v3780_v53 = vpack.c.bf16 %v12001_v41, %v11998_v10  ;;  %v8884_v35 = vld [vmem:[%s13646_s11 + $0x30] sm:$0xff] }
0x136e   :  { %v3703_v58 = vadd.f32 %v3691_v50, %v11850_v23  ;;  %v3695_v55 = vadd.f32 %v3694_v54, %v3628_v62  ;;  %v3696_v61 = vpop.f32.mrb[67].mxu1  ;;  %9973 = vrot.lane.b32.xlu1 %v9972_v46, %s13814_s28 }
0x136f   :  { %v3704_v32 = vadd.f32 %v3693_v19, %v11856_v18  ;;  %v3697_v57 = vadd.f32 %v3696_v61, %v3628_v62  ;;  %9978 = vrot.lane.b32.xlu0 %v9977_v47, %s13814_s28  ;;  %3799 = vmatprep.subr.bf16.mxu1 %v3780_v53 }
0x1370   :  { %v3705_v30 = vadd.f32 %v3695_v55, %v11853_v11  ;;  %3800 = vmatpush1.bf16.msra.mxu1 %v3779_v14  ;;  %v12018_v23 = vmul.f32 %v3703_v58, %v10856_v56 }
0x1371   :  { %v3706_v3 = vadd.f32 %v3697_v57, %v11859_v36  ;;  %v12024_v29 = vmul.f32 %v3704_v32, %v10859_v59 }
0x1372   :  { %v12021_v17 = vmul.f32 %v3705_v30, %v10856_v56 }
0x1373   :  { %v12027_v18 = vmul.f32 %v3706_v3, %v10859_v59 }
0x1374   :  { %v9982_v15 = vpack.i.bf16 %v12021_v17, %v12018_v23  ;;  %v3781_v20 = vpack.c.bf16 %v12021_v17, %v12018_v23 }
0x1375   :  { %v9987_v11 = vpack.i.bf16 %v12027_v18, %v12024_v29  ;;  %v3782_v36 = vpack.c.bf16 %v12027_v18, %v12024_v29 }
0x1376   :  { %9983 = vrot.lane.b32.xlu1 %v9982_v15, %s13814_s28 }
0x1377   :  { %9988 = vrot.lane.b32.xlu0 %v9987_v11, %s13814_s28  ;;  %3801 = vmatprep.subr.bf16.mxu1 %v3782_v36 }
0x1378   :  { %3802 = vmatpush1.bf16.msra.mxu1 %v3781_v20 }
0x137a   :  { %9993 = vrot.lane.b32.xlu1 %v9972_v46, %s13815_s4 }
0x137b   :  { %9998 = vrot.lane.b32.xlu0 %v9977_v47, %s13815_s4  ;;  %8839 = vmatmul.mubr.msk.bf16.vlgmr.msra.gmra.mrb[68].mxu1 %vm13816_vm8, %v10392_v26  ;;  %vm13820_vm8 = vmmov %vm13819_vm3 }
0x137c   :  { %3841 = vmatprep.mubr.bf16.mxu1 %v10516_v5 }
0x137e   :  { %10003 = vrot.lane.b32.xlu1 %v9982_v15, %s13815_s4 }
0x137f   :  { %10008 = vrot.lane.b32.xlu0 %v9987_v11, %s13815_s4 }
0x1382   :  { %4036 = vperm.xlu1 %9691, %v8825_v7  }
0x1383   :  { %4041 = vperm.xlu0 %9690, %v8826_v8   ;;  %8840 = vmatmul.mubr.msk.bf16.gmra.mrb[72].mxu1 %vm13810_vm2, %v10393_v21  ;;  %vm13821_vm2 = vmmov %vm13819_vm3 }
0x1384   :  { %3900 = vmatprep.mubr.bf16.mxu1 %v10516_v5 }
0x1386   :  { %4046 = vperm.xlu1 %9691, %v8827_v2  }
0x1387   :  { %4051 = vperm.xlu0 %9690, %v8828_v27  }
0x138a   :  { %4076 = vperm.xlu1 %9691, %v8833_v39  }
0x138b   :  { %4081 = vperm.xlu0 %9690, %v8834_v6  }
0x138e   :  { %4086 = vperm.xlu1 %9691, %v8835_v13  }
0x138f   :  { %4091 = vperm.xlu0 %9690, %v8836_v16  }
0x1392   :  { %4185 = vperm.xlu1 %9691, %v2227_v22   ;;  %v10394_v22 = vld [vmem:[%s13647_s12 + $0x90] sm:$0xff]  }
0x1393   :  { %4299 = vperm.xlu0 %9690, %v8882_v24  }
0x1396   :  { %4304 = vperm.xlu1 %9691, %v8883_v34  }
0x1397   :  { %4309 = vperm.xlu0 %9690, %v8884_v35  }
0x139a   :  { %4314 = vperm.xlu1 %9691, %v8885_v25  }
0x13e0   :  { %v9974_v50 = vpop.permute.xlu1 %9973 }
0x13e1   :  { %v9976_v37 = vunpack.i.h.bf16 %v9974_v50  ;;  %v9975_v46 = vunpack.i.l.bf16 %v9974_v50  ;;  %v9979_v62 = vpop.permute.xlu0 %9978 }
0x13e2   :  { %v9981_v19 = vunpack.i.h.bf16 %v9979_v62  ;;  %v9980_v54 = vunpack.i.l.bf16 %v9979_v62 }
0x13e4   :  { %v3759_v47 = vsel %vm13817_vm6, %v9975_v46, %v9980_v54  ;;  %v3760_v53 = vsel %vm13818_vm13, %v9976_v37, %v9981_v19  ;;  %v3763_v58 = vsel %vm13819_vm3, %v9980_v54, %v9975_v46  ;;  %v3764_v55 = vsel %vm13820_vm8, %v9981_v19, %v9976_v37  ;;  %vm13822_vm6 = vmmov %vm13821_vm2 }
0x13e5   :  { %v8847_v61 = vpack.c.bf16 %v3764_v55, %v3763_v58  ;;  %v8844_v14 = vpack.c.bf16 %v3760_v53, %v3759_v47  ;;  %vm13823_vm13 = vmmov %vm13821_vm2  ;;  %vm13825_vm8 = vcmp.lt.s32.totalorder %v10739_v52, 120 }
0x13e6   :  { %vm13824_vm3 = vmmov %vm13821_vm2 }
0x13e7   :  { %8845 = vmatprep.subr.msk.bf16.mxu1 %vm11366_vm1, %v8844_v14 }
0x13e8   :  { %v9984_v32 = vpop.permute.xlu1 %9983  ;;  %8848 = vmatpush1.bf16.msk.msra.mxu1 %vm11370_vm12, %v8847_v61 }
0x13e9   :  { %v9986_v57 = vunpack.i.h.bf16 %v9984_v32  ;;  %v9985_v30 = vunpack.i.l.bf16 %v9984_v32  ;;  %v9989_v3 = vpop.permute.xlu0 %9988 }
0x13ea   :  { %v9991_v15 = vunpack.i.h.bf16 %v9989_v3  ;;  %v9990_v11 = vunpack.i.l.bf16 %v9989_v3  ;;  %v10396_v3 = vld [vmem:[%s13647_s12 + $0xb0] sm:$0xff]  }
0x13ec   :  { %v3761_v36 = vsel %vm13821_vm2, %v9985_v30, %v9990_v11  ;;  %v3762_v20 = vsel %vm13822_vm6, %v9986_v57, %v9991_v15  ;;  %v3765_v26 = vsel %vm13823_vm13, %v9990_v11, %v9985_v30  ;;  %v3766_v7 = vsel %vm13824_vm3, %v9991_v15, %v9986_v57  ;;  %v9994_v21 = vpop.permute.xlu1 %9993  ;;  %vm13826_vm2 = vmmov %vm13825_vm8  ;;  %v10395_v30 = vld [vmem:[%s13647_s12 + $0x98] sm:$0xff]  }
0x13ed   :  { %v8853_v8 = vpack.c.bf16 %v3766_v7, %v3765_v26  ;;  %v9996_v2 = vunpack.i.h.bf16 %v9994_v21  ;;  %v9995_v27 = vunpack.i.l.bf16 %v9994_v21  ;;  %v9999_v39 = vpop.permute.xlu0 %9998  ;;  %v8850_v6 = vpack.c.bf16 %v3762_v20, %v3761_v36  ;;  %vm13827_vm6 = vmmov %vm13826_vm2  ;;  %v10397_v15 = vld [vmem:[%s13647_s12 + $0xb8] sm:$0xff]  }
0x13ee   :  { %v10001_v13 = vunpack.i.h.bf16 %v9999_v39  ;;  %v10000_v16 = vunpack.i.l.bf16 %v9999_v39  ;;  %vm13828_vm13 = vmmov %vm13826_vm2  ;;  %vm13829_vm3 = vcmask 261120  }
0x13ef   :  { %8851 = vmatprep.subr.msk.bf16.mxu1 %vm11366_vm1, %v8850_v6 }
0x13f0   :  { %v3937_v24 = vsel %vm13825_vm8, %v9995_v27, %v10000_v16  ;;  %v3938_v34 = vsel %vm13826_vm2, %v9996_v2, %v10001_v13  ;;  %v3941_v35 = vsel %vm13827_vm6, %v10000_v16, %v9995_v27  ;;  %v3942_v25 = vsel %vm13828_vm13, %v10001_v13, %v9996_v2  ;;  %v10004_v50 = vpop.permute.xlu1 %10003  ;;  %8854 = vmatpush1.bf16.msk.msra.mxu1 %vm11370_vm12, %v8853_v8  ;;  %vm13830_vm8 = vmmov %vm13826_vm2 }
0x13f1   :  { %v8863_v37 = vpack.c.bf16 %v3938_v34, %v3937_v24  ;;  %v10006_v46 = vunpack.i.h.bf16 %v10004_v50  ;;  %v10005_v62 = vunpack.i.l.bf16 %v10004_v50  ;;  %v10009_v19 = vpop.permute.xlu0 %10008  ;;  %v8860_v54 = vpack.c.bf16 %v3942_v25, %v3941_v35  ;;  %vm13831_vm6 = vmmov %vm13826_vm2 }
0x13f2   :  { %v10011_v47 = vunpack.i.h.bf16 %v10009_v19  ;;  %v10010_v53 = vunpack.i.l.bf16 %v10009_v19  ;;  %vm13832_vm13 = vmmov %vm13826_vm2 }
0x13f3   :  { %8855 = vmatmul.mubr.msk.bf16.vlgmr.msra.gmra.mrb[68].mxu1 %vm13829_vm3, %v10394_v22  ;;  %8861 = vmatprep.subr.msk.bf16.mxu1 %vm11406_vm11, %v8860_v54 }
0x13f4   :  { %v3939_v58 = vsel %vm13830_vm8, %v10005_v62, %v10010_v53  ;;  %v3940_v55 = vsel %vm13826_vm2, %v10006_v46, %v10011_v47  ;;  %v3943_v61 = vsel %vm13831_vm6, %v10010_v53, %v10005_v62  ;;  %v3944_v14 = vsel %vm13832_vm13, %v10011_v47, %v10006_v46  ;;  %8864 = vmatpush1.bf16.msk.msra.mxu1 %vm11413_vm0, %v8863_v37  ;;  %vm13833_vm8 = vmmov %vm13829_vm3 }
0x13f5   :  { %v8869_v32 = vpack.c.bf16 %v3940_v55, %v3939_v58  ;;  %v8866_v57 = vpack.c.bf16 %v3944_v14, %v3943_v61  ;;  %3910 = vmatprep.mubr.bf16.mxu1 %v10516_v5  ;;  %vm13834_vm2 = vmmov %vm13829_vm3 }
0x13f6   :  { %vm13835_vm6 = vmmov %vm13834_vm2 }
0x13f7   :  { %8867 = vmatprep.subr.msk.bf16.mxu1 %vm11406_vm11, %v8866_v57  ;;  %vm13836_vm13 = vmmov %vm13834_vm2 }
0x13f8   :  { %8870 = vmatpush1.bf16.msk.msra.mxu1 %vm11413_vm0, %v8869_v32 }
0x13fb   :  { %8856 = vmatmul.mubr.msk.bf16.gmra.mrb[72].mxu1 %vm13829_vm3, %v10395_v30  ;;  %v10398_v30 = vld [vmem:[%s13649_s14 + $0x30] sm:$0xff]   ;;  %vm13837_vm3 = vmmov %vm13834_vm2 }
0x13fc   :  { %4005 = vmatprep.mubr.bf16.mxu1 %v10516_v5 }
0x1401   :  { %v4037_v11 = vpop.permute.xlu1 %4036 }
0x1402   :  { %v4042_v7 = vpop.permute.xlu0 %4041 }
0x1403   :  { %8871 = vmatmul.mubr.msk.bf16.vlgmr.msra.gmra.mrb[68].mxu1 %vm13833_vm8, %v10396_v3  ;;  %v10399_v3 = vld [vmem:[%s13649_s14 + $0x38] sm:$0xff]   ;;  %vm13838_vm8 = vcmask 1043456  }
0x1404   :  { %4015 = vmatprep.mubr.bf16.mxu1 %v10516_v5 }
0x1405   :  { %v4047_v34 = vpop.permute.xlu1 %4046 }
0x1406   :  { %v4052_v46 = vpop.permute.xlu0 %4051 }
0x140b   :  { %8872 = vmatmul.mubr.msk.bf16.gmra.mrb[72].mxu1 %vm13834_vm2, %v10397_v15  ;;  %v4077_v15 = vpop.permute.xlu1 %4076  ;;  %vm13839_vm2 = vmmov %vm13838_vm8 }
0x140c   :  { %4508 = vmatprep.mubr.bf16.mxu1 %v10516_v5 }
0x14d6   :  { %v4007_v36 = vpop.f32.mrb[68].mxu1 }
0x14d7   :  { %v4054_v20 = vadd.f32 %v4037_v11, %v4007_v36  ;;  %v4009_v26 = vpop.f32.mrb[69].mxu1 }
0x14d8   :  { %v4055_v21 = vadd.f32 %v4037_v11, %v4009_v26  ;;  %v4011_v8 = vpop.f32.mrb[70].mxu1  ;;  %v4082_v26 = vpop.permute.xlu0 %4081 }
0x14d9   :  { %v4056_v2 = vadd.f32 %v4042_v7, %v4011_v8  ;;  %v4013_v27 = vpop.f32.mrb[71].mxu1  ;;  %v4062_v6 = vmax.f32 %v4054_v20, 0.0 }
0x14da   :  { %v4057_v39 = vadd.f32 %v4042_v7, %v4013_v27  ;;  %v4063_v16 = vmax.f32 %v4055_v21, 0.0 }
0x14db   :  { %v4064_v13 = vmax.f32 %v4056_v2, 0.0 }
0x14dc   :  { %v4065_v22 = vmax.f32 %v4057_v39, 0.0 }
0x14dd   :  { %v4070_v24 = vpack.c.bf16 %v4064_v13, %v4062_v6 }
0x14de   :  { %v4071_v35 = vpack.c.bf16 %v4065_v22, %v4063_v16  ;;  %v4017_v25 = vpop.f32.mrb[72].mxu1 }
0x14df   :  { %v4058_v50 = vadd.f32 %v4047_v34, %v4017_v25  ;;  %v4019_v37 = vpop.f32.mrb[73].mxu1 }
0x14e0   :  { %v4059_v62 = vadd.f32 %v4047_v34, %v4019_v37  ;;  %v4021_v19 = vpop.f32.mrb[74].mxu1  ;;  %4110 = vmatprep.subr.bf16.mxu0 %v4071_v35  ;;  %v4087_v34 = vpop.permute.xlu1 %4086 }
0x14e1   :  { %v4060_v54 = vadd.f32 %v4052_v46, %v4021_v19  ;;  %v4023_v47 = vpop.f32.mrb[75].mxu1  ;;  %4111 = vmatpush1.bf16.msra.mxu0 %v4070_v24  ;;  %v4066_v58 = vmax.f32 %v4058_v50, 0.0 }
0x14e2   :  { %v4061_v53 = vadd.f32 %v4052_v46, %v4023_v47  ;;  %v4067_v61 = vmax.f32 %v4059_v62, 0.0  ;;  %v4092_v62 = vpop.permute.xlu0 %4091 }
0x14e3   :  { %v4068_v55 = vmax.f32 %v4060_v54, 0.0 }
0x14e4   :  { %v4069_v14 = vmax.f32 %v4061_v53, 0.0 }
0x14e5   :  { %v4072_v32 = vpack.c.bf16 %v4068_v55, %v4066_v58 }
0x14e6   :  { %v4073_v57 = vpack.c.bf16 %v4069_v14, %v4067_v61 }
0x14e8   :  { %4112 = vmatprep.subr.bf16.mxu0 %v4073_v57 }
0x14e9   :  { %4113 = vmatpush1.bf16.msra.mxu0 %v4072_v32 }
0x14ec   :  { %8875 = vmatmul.mubr.msk.bf16.vlgmr.msra.gmra.mrb[64].mxu0 %vm13835_vm6, %v10398_v30  ;;  %vm13840_vm6 = vcmask 64512  }
0x14ed   :  { %4152 = vmatprep.mubr.bf16.mxu0 %v10516_v5 }
0x14f4   :  { %8876 = vmatmul.mubr.msk.bf16.gmra.mrb[68].mxu0 %vm13836_vm13, %v10399_v3  ;;  %vm13841_vm13 = vmmov %vm13840_vm6 }
0x14f5   :  { %4223 = vmatprep.mubr.bf16.mxu0 %v10516_v5 }
0x15bf   :  { %v4144_v11 = vpop.f32.mrb[64].mxu0 }
0x15c0   :  { %v4145_v36 = vadd.f32 %v4144_v11, %v4077_v15  ;;  %v4146_v20 = vpop.f32.mrb[65].mxu0 }
0x15c1   :  { %v4147_v7 = vadd.f32 %v4146_v20, %v4077_v15  ;;  %v4148_v21 = vpop.f32.mrb[66].mxu0 }
0x15c2   :  { %v4163_v8 = vadd.f32 %v4145_v36, %v11992_v28  ;;  %v4149_v2 = vadd.f32 %v4148_v21, %v4082_v26  ;;  %v4150_v27 = vpop.f32.mrb[67].mxu0 }
0x15c3   :  { %v4164_v39 = vadd.f32 %v4147_v7, %v11998_v10  ;;  %v4151_v6 = vadd.f32 %v4150_v27, %v4082_v26 }
0x15c4   :  { %v4165_v13 = vadd.f32 %v4149_v2, %v11995_v40  ;;  %v4171_v22 = vmul.f32 %v4163_v8, %v10856_v56 }
0x15c5   :  { %v4166_v16 = vadd.f32 %v4151_v6, %v12001_v41  ;;  %v4172_v35 = vmul.f32 %v4164_v39, %v10859_v59 }
0x15c6   :  { %v4173_v24 = vmul.f32 %v4165_v13, %v10856_v56 }
0x15c7   :  { %v4174_v25 = vmul.f32 %v4166_v16, %v10859_v59  ;;  %v4154_v50 = vpop.f32.mrb[68].mxu0 }
0x15c8   :  { %v4179_v28 = vpack.c.bf16 %v4173_v24, %v4171_v22  ;;  %v4155_v37 = vadd.f32 %v4154_v50, %v4087_v34  ;;  %v4156_v46 = vpop.f32.mrb[69].mxu0 }
0x15c9   :  { %v4157_v10 = vadd.f32 %v4156_v46, %v4087_v34  ;;  %v4158_v19 = vpop.f32.mrb[70].mxu0  ;;  %v4180_v54 = vpack.c.bf16 %v4174_v25, %v4172_v35 }
0x15ca   :  { %v4167_v40 = vadd.f32 %v4155_v37, %v12018_v23  ;;  %v4159_v41 = vadd.f32 %v4158_v19, %v4092_v62  ;;  %v4160_v47 = vpop.f32.mrb[71].mxu0 }
0x15cb   :  { %v4168_v53 = vadd.f32 %v4157_v10, %v12024_v29  ;;  %v4161_v58 = vadd.f32 %v4160_v47, %v4092_v62  ;;  %4191 = vmatprep.subr.bf16.mxu0 %v4180_v54  ;;  %v2226_v29 = vld [vmem:[%s13651_s16] sm:$0xf] }
0x15cc   :  { %v4169_v55 = vadd.f32 %v4159_v41, %v12021_v17  ;;  %4192 = vmatpush1.bf16.msra.mxu0 %v4179_v28  ;;  %v4175_v14 = vmul.f32 %v4167_v40, %v10856_v56  ;;  %v4186_v17 = vpop.permute.xlu1 %4185 }
0x15cd   :  { %v4170_v61 = vadd.f32 %v4161_v58, %v12027_v18  ;;  %v4176_v57 = vmul.f32 %v4168_v53, %v10859_v59 }
0x15ce   :  { %v4177_v32 = vmul.f32 %v4169_v55, %v10856_v56 }
0x15cf   :  { %v4178_v30 = vmul.f32 %v4170_v61, %v10859_v59 }
0x15d0   :  { %v4181_v23 = vpack.c.bf16 %v4177_v32, %v4175_v14 }
0x15d1   :  { %v4182_v3 = vpack.c.bf16 %v4178_v30, %v4176_v57 }
0x15d3   :  { %4193 = vmatprep.subr.bf16.mxu0 %v4182_v3 }
0x15d4   :  { %4194 = vmatpush1.bf16.msra.mxu0 %v4181_v23 }
0x15d7   :  { %8877 = vmatmul.mubr.msk.bf16.vlgmr.msra.gmra.mrb[72].mxu0 %vm13837_vm3, %v2226_v29 }
0x15d8   :  { %4371 = vmatprep.mubr.bf16.mxu0 %v10516_v5 }
0x16aa   :  { %v4225_v18 = vpop.f32.mrb[72].mxu0 }
0x16ab   :  { %v4226_v15 = vadd.f32 %v4225_v18, %v4186_v17  ;;  %v4227_v11 = vpop.f32.mrb[73].mxu0 }
0x16ac   :  { %v4228_v36 = vadd.f32 %v4227_v11, %v4186_v17  ;;  %v4229_v20 = vpop.f32.mrb[74].mxu0 }
0x16ad   :  { %v4232_v26 = vmul.f32 %v4226_v15, %v10856_v56  ;;  %v4230_v7 = vpop.f32.mrb[75].mxu0 }
0x16ae   :  { %v4233_v21 = vmul.f32 %v4228_v36, %v10859_v59  ;;  %v10400_v7 = vld [vmem:[%s13645_s10 + $0x10] sm:$0xff]  }
0x16af   :  { %4235 = vst [vmem:[#allocation2 + $0x10] sm:$0xff] %v4232_v26  ;;  %v4237_v8 = vrot.slane %v4232_v26, 4 }
0x16b0   :  { %4236 = vst [vmem:[#allocation2 + $0x18] sm:$0xff] %v4233_v21  ;;  %v4243_v2 = vrot.slane %v4233_v21, 4 }
0x16b1   :  { %v4238_v27 = vmax.f32 %v4232_v26, %v4237_v8 }
0x16b2   :  { %v4244_v39 = vmax.f32 %v4233_v21, %v4243_v2  ;;  %v4300_v2 = vpop.permute.xlu0 %4299 }
0x16b3   :  { %v4239_v6 = vrot.slane %v4238_v27, 2 }
0x16b4   :  { %v4245_v13 = vrot.slane %v4244_v39, 2 }
0x16b5   :  { %v4240_v16 = vmax.f32 %v4238_v27, %v4239_v6 }
0x16b6   :  { %v4246_v22 = vmax.f32 %v4244_v39, %v4245_v13  ;;  %v4305_v39 = vpop.permute.xlu1 %4304 }
0x16b7   :  { %v4241_v24 = vrot.slane %v4240_v16, 1 }
0x16b8   :  { %v4247_v34 = vrot.slane %v4246_v22, 1 }
0x16b9   :  { %v4242_v35 = vmax.f32 %v4240_v16, %v4241_v24 }
0x16ba   :  { %v4248_v25 = vmax.f32 %v4246_v22, %v4247_v34 }
0x16bb   :  { %v4249_v50 = vsub.f32 %v4232_v26, %v4242_v35 }
0x16bc   :  { %v4250_v28 = vsub.f32 %v4233_v21, %v4248_v25  ;;  %v10401_v21 = vld [vmem:[%s13645_s10 + $0x18] sm:$0xff]  }
0x16bd   :  { %v4251_v37 = vmul.f32 1.442695, %v4249_v50 }
0x16be   :  { %v4253_v46 = vmul.f32 1.442695, %v4250_v28 }
0x16bf   :  { %10476 = vpow2.f32 %v4251_v37 }
0x16c0   :  { %10478 = vpow2.f32 %v4253_v46  ;;  %v4310_v46 = vpop.permute.xlu0 %4309 }
0x16c9   :  { %v10477_v62 = vpop.eup %10476 }
0x16ca   :  { %v10479_v10 = vpop.eup %10478  ;;  %v4255_v19 = vrot.slane %v10477_v62, 4 }
0x16cb   :  { %v4261_v54 = vrot.slane %v10479_v10, 4 }
0x16cc   :  { %v4256_v40 = vadd.f32 %v10477_v62, %v4255_v19 }
0x16cd   :  { %v4262_v41 = vadd.f32 %v10479_v10, %v4261_v54 }
0x16ce   :  { %v4257_v47 = vrot.slane %v4256_v40, 2 }
0x16cf   :  { %v4263_v53 = vrot.slane %v4262_v41, 2 }
0x16d0   :  { %v4258_v58 = vadd.f32 %v4257_v47, %v4256_v40 }
0x16d1   :  { %v4264_v55 = vadd.f32 %v4263_v53, %v4262_v41 }
0x16d2   :  { %v4259_v61 = vrot.slane %v4258_v58, 1 }
0x16d3   :  { %v4265_v14 = vrot.slane %v4264_v55, 1 }
0x16d4   :  { %v4260_v32 = vadd.f32 %v4259_v61, %v4258_v58 }
0x16d5   :  { %v4266_v57 = vadd.f32 %v4265_v14, %v4264_v55 }
0x16d6   :  { %10480 = vrcp.f32 %v4260_v32  ;;  %v10402_v32 = vld [vmem:[%s13647_s12 + $0xd0] sm:$0xff]  }
0x16d7   :  { %10482 = vrcp.f32 %v4266_v57  ;;  %v8905_v57 = vld [vmem:[%s13648_s13 + $0x80] sm:$0xff] }
0x16e0   :  { %v10481_v30 = vpop.eup %10480 }
0x16e1   :  { %v10483_v23 = vpop.eup %10482  ;;  %v4269_v3 = vmul.f32 %v10481_v30, %v10856_v56  ;;  %v10403_v30 = vld [vmem:[%s13647_s12 + $0xd8] sm:$0xff]  }
0x16e2   :  { %v4270_v29 = vmul.f32 %v10483_v23, %v10859_v59  ;;  %v8906_v23 = vld [vmem:[%s13648_s13 + $0x88] sm:$0xff] }
0x16e3   :  { %v4274_v17 = vrot.slane %v4269_v3, %v10850_v42  ;;  %v8907_v3 = vld [vmem:[%s13648_s13 + $0x90] sm:$0xff] }
0x16e4   :  { %v4278_v18 = vrot.slane %v4270_v29, %v10850_v42  ;;  %v8908_v29 = vld [vmem:[%s13648_s13 + $0x98] sm:$0xff] }
0x16e5   :  { %v4279_v15 = vmul.f32 %v10477_v62, %v4274_v17  ;;  %v8913_v17 = vld [vmem:[%s13650_s15 + $0x80] sm:$0xff] }
0x16e6   :  { %v4280_v11 = vmul.f32 %v10479_v10, %v4278_v18  ;;  %v4315_v10 = vpop.permute.xlu1 %4314  ;;  %v8914_v18 = vld [vmem:[%s13650_s15 + $0x88] sm:$0xff] }
0x16e7   :  { %v4295_v36 = vpack.c.bf16 %v4279_v15, %v4279_v15  ;;  %v8915_v15 = vld [vmem:[%s13650_s15 + $0x90] sm:$0xff] }
0x16e8   :  { %v4296_v20 = vpack.c.bf16 %v4280_v11, %v4280_v11  ;;  %v8916_v11 = vld [vmem:[%s13650_s15 + $0x98] sm:$0xff] }
0x16e9   :  { %v4334_v26 = vsel %vm13838_vm8, %v4295_v36, 0  ;;  %vm13842_vm8 = vmmov %vm13837_vm3 }
0x16ea   :  { %8890 = vmatprep.subr.msk.bf16.mxu0 %vm13839_vm2, %v4296_v20  ;;  %vm13843_vm2 = vcmp.lt.s32.totalorder %v10739_v52, 1 }
0x16eb   :  { %4340 = vmatpush1.bf16.msra.mxu0 %v4334_v26 }
0x16ee   :  { %8891 = vmatmul.mubr.msk.bf16.vlgmr.msra.gmra.mrb[76].mxu0 %vm13840_vm6, %v10400_v7  ;;  %vm13844_vm6 = vmmov %vm13843_vm2 }
0x16ef   :  { %4381 = vmatprep.mubr.bf16.mxu0 %v10516_v5 }
0x16f6   :  { %8892 = vmatmul.mubr.msk.bf16.gmra.mrb[80].mxu0 %vm13841_vm13, %v10401_v21  ;;  %vm13845_vm13 = vmmov %vm13843_vm2 }
0x16f7   :  { %4819 = vmatprep.mubr.bf16.mxu0 %v10516_v5 }
0x17c1   :  { %v4373_v8 = vpop.f32.mrb[76].mxu0 }
0x17c2   :  { %v4375_v27 = vpop.f32.mrb[77].mxu0  ;;  %v12209_v13 = vadd.f32 %v4373_v8, %v4300_v2 }
0x17c3   :  { %v4377_v6 = vpop.f32.mrb[78].mxu0  ;;  %v12213_v24 = vadd.f32 %v4375_v27, %v4300_v2 }
0x17c4   :  { %v12211_v16 = vadd.f32 %v4377_v6, %v4305_v39  ;;  %v4379_v22 = vpop.f32.mrb[79].mxu0 }
0x17c5   :  { %v12215_v34 = vadd.f32 %v4379_v22, %v4305_v39 }
0x17c6   :  { %v10012_v35 = vpack.i.bf16 %v12211_v16, %v12209_v13  ;;  %v4456_v28 = vpack.c.bf16 %v12211_v16, %v12209_v13 }
0x17c7   :  { %v10017_v25 = vpack.i.bf16 %v12215_v34, %v12213_v24  ;;  %v4457_v50 = vpack.c.bf16 %v12215_v34, %v12213_v24 }
0x17c8   :  { %10013 = vrot.lane.b32.xlu0 %v10012_v35, %s10517_s24 }
0x17c9   :  { %v4383_v37 = vpop.f32.mrb[80].mxu0  ;;  %10018 = vrot.lane.b32.xlu1 %v10017_v25, %s10517_s24  ;;  %4476 = vmatprep.subr.bf16.mxu1 %v4457_v50 }
0x17ca   :  { %v4385_v62 = vpop.f32.mrb[81].mxu0  ;;  %4477 = vmatpush1.bf16.msra.mxu1 %v4456_v28  ;;  %v12227_v54 = vadd.f32 %v4383_v37, %v4310_v46 }
0x17cb   :  { %v4387_v19 = vpop.f32.mrb[82].mxu0  ;;  %v12231_v47 = vadd.f32 %v4385_v62, %v4310_v46 }
0x17cc   :  { %v12229_v40 = vadd.f32 %v4387_v19, %v4315_v10  ;;  %v4389_v41 = vpop.f32.mrb[83].mxu0 }
0x17cd   :  { %v12233_v53 = vadd.f32 %v4389_v41, %v4315_v10 }
0x17ce   :  { %v10022_v58 = vpack.i.bf16 %v12229_v40, %v12227_v54  ;;  %v4458_v14 = vpack.c.bf16 %v12229_v40, %v12227_v54 }
0x17cf   :  { %v10027_v55 = vpack.i.bf16 %v12233_v53, %v12231_v47  ;;  %v4459_v61 = vpack.c.bf16 %v12233_v53, %v12231_v47 }
0x17d0   :  { %10023 = vrot.lane.b32.xlu0 %v10022_v58, %s10517_s24 }
0x17d1   :  { %10028 = vrot.lane.b32.xlu1 %v10027_v55, %s10517_s24  ;;  %4478 = vmatprep.subr.bf16.mxu1 %v4459_v61 }
0x17d2   :  { %4479 = vmatpush1.bf16.msra.mxu1 %v4458_v14 }
0x17d4   :  { %10033 = vrot.lane.b32.xlu0 %v10012_v35, %s10518_s26 }
0x17d5   :  { %10038 = vrot.lane.b32.xlu1 %v10017_v25, %s10518_s26  ;;  %8919 = vmatmul.mubr.msk.bf16.vlgmr.msra.gmra.mrb[76].mxu1 %vm13837_vm3, %v10402_v32  ;;  %vm13846_vm3 = vmmov %vm13843_vm2 }
0x17d6   :  { %4518 = vmatprep.mubr.bf16.mxu1 %v10516_v5 }
0x17d8   :  { %10043 = vrot.lane.b32.xlu0 %v10022_v58, %s10518_s26 }
0x17d9   :  { %10048 = vrot.lane.b32.xlu1 %v10027_v55, %s10518_s26 }
0x17dc   :  { %4713 = vperm.xlu0 %9690, %v8905_v57  }
0x17dd   :  { %4718 = vperm.xlu1 %9691, %v8906_v23   ;;  %8920 = vmatmul.mubr.msk.bf16.gmra.mrb[80].mxu1 %vm13842_vm8, %v10403_v30  ;;  %vm13847_vm8 = vnez %v13708_v4 }
0x17de   :  { %4577 = vmatprep.mubr.bf16.mxu1 %v10516_v5 }
0x17e0   :  { %4723 = vperm.xlu0 %9690, %v8907_v3  }
0x17e1   :  { %4728 = vperm.xlu1 %9691, %v8908_v29   ;;  %v10404_v29 = vld [vmem:[%s13647_s12 + $0xc0] sm:$0xff]  }
0x17e4   :  { %4753 = vperm.xlu0 %9690, %v8913_v17  }
0x17e5   :  { %4758 = vperm.xlu1 %9691, %v8914_v18  }
0x17e8   :  { %4763 = vperm.xlu0 %9690, %v8915_v15  }
0x17e9   :  { %4768 = vperm.xlu1 %9691, %v8916_v11  }
0x183a   :  { %v10014_v36 = vpop.permute.xlu0 %10013 }
0x183b   :  { %v10016_v20 = vunpack.i.h.bf16 %v10014_v36  ;;  %v10015_v26 = vunpack.i.l.bf16 %v10014_v36  ;;  %v10019_v7 = vpop.permute.xlu1 %10018 }
0x183c   :  { %v10021_v21 = vunpack.i.h.bf16 %v10019_v7  ;;  %v10020_v8 = vunpack.i.l.bf16 %v10019_v7 }
0x183e   :  { %v4436_v2 = vsel %vm13843_vm2, %v10015_v26, %v10020_v8  ;;  %v4437_v27 = vsel %vm13844_vm6, %v10016_v20, %v10021_v21  ;;  %v4440_v39 = vsel %vm13845_vm13, %v10020_v8, %v10015_v26  ;;  %v4441_v6 = vsel %vm13846_vm3, %v10021_v21, %v10016_v20  ;;  %vm13848_vm6 = vmmov %vm13843_vm2 }
0x183f   :  { %v8927_v22 = vpack.c.bf16 %v4441_v6, %v4440_v39  ;;  %v8924_v35 = vpack.c.bf16 %v4437_v27, %v4436_v2  ;;  %vm13849_vm13 = vmmov %vm13843_vm2 }
0x1840   :  { %vm13850_vm3 = vmmov %vm13843_vm2 }
0x1841   :  { %8925 = vmatprep.subr.msk.bf16.mxu1 %vm10755_vm5, %v8924_v35 }
0x1842   :  { %v10024_v25 = vpop.permute.xlu0 %10023  ;;  %8928 = vmatpush1.bf16.msk.msra.mxu1 %vm13847_vm8, %v8927_v22 }
0x1843   :  { %v10026_v50 = vunpack.i.h.bf16 %v10024_v25  ;;  %v10025_v28 = vunpack.i.l.bf16 %v10024_v25  ;;  %v10029_v37 = vpop.permute.xlu1 %10028 }
0x1844   :  { %v10031_v46 = vunpack.i.h.bf16 %v10029_v37  ;;  %v10030_v62 = vunpack.i.l.bf16 %v10029_v37  ;;  %v10406_v37 = vld [vmem:[%s13647_s12 + $0xe0] sm:$0xff]  }
0x1846   :  { %v4438_v10 = vsel %vm13843_vm2, %v10025_v28, %v10030_v62  ;;  %v4439_v19 = vsel %vm13848_vm6, %v10026_v50, %v10031_v46  ;;  %v4442_v41 = vsel %vm13849_vm13, %v10030_v62, %v10025_v28  ;;  %v4443_v58 = vsel %vm13850_vm3, %v10031_v46, %v10026_v50  ;;  %v10034_v55 = vpop.permute.xlu0 %10033  ;;  %v10405_v28 = vld [vmem:[%s13647_s12 + $0xc8] sm:$0xff]  }
0x1847   :  { %v8933_v61 = vpack.c.bf16 %v4443_v58, %v4442_v41  ;;  %v10036_v14 = vunpack.i.h.bf16 %v10034_v55  ;;  %v10035_v32 = vunpack.i.l.bf16 %v10034_v55  ;;  %v10039_v57 = vpop.permute.xlu1 %10038  ;;  %v8930_v30 = vpack.c.bf16 %v4439_v19, %v4438_v10  ;;  %v10407_v46 = vld [vmem:[%s13647_s12 + $0xe8] sm:$0xff]  }
0x1848   :  { %v10041_v23 = vunpack.i.h.bf16 %v10039_v57  ;;  %v10040_v3 = vunpack.i.l.bf16 %v10039_v57  ;;  %vm13851_vm2 = vcmp.lt.s32.totalorder %v10739_v52, 127 }
0x1849   :  { %8931 = vmatprep.subr.msk.bf16.mxu1 %vm10755_vm5, %v8930_v30  ;;  %vm13852_vm6 = vmmov %vm13851_vm2 }
0x184a   :  { %v4614_v17 = vsel %vm13851_vm2, %v10035_v32, %v10040_v3  ;;  %v4615_v18 = vsel %vm13852_vm6, %v10036_v14, %v10041_v23  ;;  %vm13853_vm13 = vmmov %vm13851_vm2  ;;  %v10044_v36 = vpop.permute.xlu0 %10043  ;;  %8934 = vmatpush1.bf16.msk.msra.mxu1 %vm13847_vm8, %v8933_v61 }
0x184b   :  { %v4618_v15 = vsel %vm13853_vm13, %v10040_v3, %v10035_v32  ;;  %vm13854_vm3 = vmmov %vm13851_vm2  ;;  %v8943_v20 = vpack.c.bf16 %v4615_v18, %v4614_v17  ;;  %v10046_v26 = vunpack.i.h.bf16 %v10044_v36  ;;  %v10045_v7 = vunpack.i.l.bf16 %v10044_v36  ;;  %v10049_v21 = vpop.permute.xlu1 %10048 }
0x184c   :  { %v4619_v11 = vsel %vm13854_vm3, %v10041_v23, %v10036_v14  ;;  %v10051_v2 = vunpack.i.h.bf16 %v10049_v21  ;;  %v10050_v27 = vunpack.i.l.bf16 %v10049_v21  ;;  %vm13855_vm2 = vcmask 261120   ;;  %vm13856_vm6 = vmmov %vm13854_vm3 }
0x184d   :  { %v8940_v8 = vpack.c.bf16 %v4619_v11, %v4618_v15  ;;  %8935 = vmatmul.mubr.msk.bf16.vlgmr.msra.gmra.mrb[76].mxu1 %vm13855_vm2, %v10404_v29  ;;  %vm13857_vm13 = vmmov %vm13854_vm3 }
0x184e   :  { %v4616_v39 = vsel %vm13856_vm6, %v10045_v7, %v10050_v27  ;;  %v4617_v6 = vsel %vm13857_vm13, %v10046_v26, %v10051_v2  ;;  %v4620_v22 = vsel %vm13854_vm3, %v10050_v27, %v10045_v7  ;;  %vm13858_vm8 = vmmov %vm13854_vm3  ;;  %4587 = vmatprep.mubr.bf16.mxu1 %v10516_v5 }
0x184f   :  { %8941 = vmatprep.subr.msk.bf16.mxu1 %vm10795_vm9, %v8940_v8  ;;  %v4621_v35 = vsel %vm13858_vm8, %v10051_v2, %v10046_v26  ;;  %v8949_v25 = vpack.c.bf16 %v4617_v6, %v4616_v39  ;;  %vm13859_vm8 = vmmov %vm13855_vm2 }
0x1850   :  { %8944 = vmatpush1.bf16.msk.msra.mxu1 %vm10802_vm10, %v8943_v20  ;;  %v8946_v50 = vpack.c.bf16 %v4621_v35, %v4620_v22  ;;  %vm13860_vm6 = vmmov %vm13855_vm2 }
0x1851   :  { %vm13861_vm13 = vmmov %vm13855_vm2 }
0x1852   :  { %8947 = vmatprep.subr.msk.bf16.mxu1 %vm10795_vm9, %v8946_v50  ;;  %vm13862_vm3 = vmmov %vm13855_vm2 }
0x1854   :  { %8950 = vmatpush1.bf16.msk.msra.mxu1 %vm10802_vm10, %v8949_v25 }
0x1855   :  { %8936 = vmatmul.mubr.msk.bf16.gmra.mrb[80].mxu1 %vm13855_vm2, %v10405_v28  ;;  %v10408_v28 = vld [vmem:[%s13649_s14 + $0x40] sm:$0xff]  }
0x1856   :  { %4682 = vmatprep.mubr.bf16.mxu1 %v10516_v5 }
0x185b   :  { %v4714_v62 = vpop.permute.xlu0 %4713 }
0x185c   :  { %v4719_v58 = vpop.permute.xlu1 %4718 }
0x185d   :  { %8951 = vmatmul.mubr.msk.bf16.vlgmr.msra.gmra.mrb[76].mxu1 %vm13859_vm8, %v10406_v37  ;;  %v10409_v37 = vld [vmem:[%s13649_s14 + $0x48] sm:$0xff]   ;;  %vm13863_vm8 = vmmov %vm13855_vm2 }
0x185e   :  { %4692 = vmatprep.mubr.bf16.mxu1 %v10516_v5 }
0x185f   :  { %v4724_v18 = vpop.permute.xlu0 %4723 }
0x1860   :  { %v4729_v26 = vpop.permute.xlu1 %4728 }
0x1865   :  { %8952 = vmatmul.mubr.msk.bf16.gmra.mrb[80].mxu1 %vm13860_vm6, %v10407_v46  ;;  %v4754_v46 = vpop.permute.xlu0 %4753  ;;  %vm13864_vm6 = vcmp.lt.s32.totalorder %v10739_v52, 2 }
0x1866   :  { %5283 = vmatprep.mubr.bf16.mxu1 %v10516_v5 }
0x1930   :  { %v4684_v10 = vpop.f32.mrb[76].mxu1 }
0x1931   :  { %v4731_v19 = vadd.f32 %v4714_v62, %v4684_v10  ;;  %v4686_v41 = vpop.f32.mrb[77].mxu1 }
0x1932   :  { %v4732_v55 = vadd.f32 %v4714_v62, %v4686_v41  ;;  %v4688_v61 = vpop.f32.mrb[78].mxu1  ;;  %v4759_v41 = vpop.permute.xlu1 %4758 }
0x1933   :  { %v4733_v14 = vadd.f32 %v4719_v58, %v4688_v61  ;;  %v4690_v32 = vpop.f32.mrb[79].mxu1  ;;  %v4739_v30 = vmax.f32 %v4731_v19, 0.0 }
0x1934   :  { %v4734_v57 = vadd.f32 %v4719_v58, %v4690_v32  ;;  %v4740_v3 = vmax.f32 %v4732_v55, 0.0 }
0x1935   :  { %v4741_v23 = vmax.f32 %v4733_v14, 0.0 }
0x1936   :  { %v4742_v29 = vmax.f32 %v4734_v57, 0.0 }
0x1937   :  { %v4747_v17 = vpack.c.bf16 %v4741_v23, %v4739_v30 }
0x1938   :  { %v4748_v15 = vpack.c.bf16 %v4742_v29, %v4740_v3  ;;  %v4694_v11 = vpop.f32.mrb[80].mxu1 }
0x1939   :  { %v4735_v36 = vadd.f32 %v4724_v18, %v4694_v11  ;;  %v4696_v20 = vpop.f32.mrb[81].mxu1 }
0x193a   :  { %v4736_v7 = vadd.f32 %v4724_v18, %v4696_v20  ;;  %v4698_v21 = vpop.f32.mrb[82].mxu1  ;;  %4787 = vmatprep.subr.bf16.mxu0 %v4748_v15  ;;  %v4764_v18 = vpop.permute.xlu0 %4763 }
0x193b   :  { %v4737_v8 = vadd.f32 %v4729_v26, %v4698_v21  ;;  %v4700_v2 = vpop.f32.mrb[83].mxu1  ;;  %4788 = vmatpush1.bf16.msra.mxu0 %v4747_v17  ;;  %v4743_v39 = vmax.f32 %v4735_v36, 0.0 }
0x193c   :  { %v4738_v27 = vadd.f32 %v4729_v26, %v4700_v2  ;;  %v4744_v22 = vmax.f32 %v4736_v7, 0.0 }
0x193d   :  { %v4745_v6 = vmax.f32 %v4737_v8, 0.0 }
0x193e   :  { %v4746_v35 = vmax.f32 %v4738_v27, 0.0 }
0x193f   :  { %v4749_v25 = vpack.c.bf16 %v4745_v6, %v4743_v39 }
0x1940   :  { %v4750_v50 = vpack.c.bf16 %v4746_v35, %v4744_v22 }
0x1942   :  { %4789 = vmatprep.subr.bf16.mxu0 %v4750_v50 }
0x1943   :  { %4790 = vmatpush1.bf16.msra.mxu0 %v4749_v25 }
0x1946   :  { %8955 = vmatmul.mubr.msk.bf16.vlgmr.msra.gmra.mrb[84].mxu0 %vm13861_vm13, %v10408_v28  ;;  %vm13865_vm13 = vmmov %vm13864_vm6 }
0x1947   :  { %4829 = vmatprep.mubr.bf16.mxu0 %v10516_v5 }
0x194e   :  { %8956 = vmatmul.mubr.msk.bf16.gmra.mrb[88].mxu0 %vm13862_vm3, %v10409_v37  ;;  %vm13866_vm3 = vmmov %vm13864_vm6 }
0x194f   :  { %4972 = vmatprep.mubr.bf16.mxu0 %v10516_v5 }
0x1a19   :  { %v4821_v62 = vpop.f32.mrb[84].mxu0 }
0x1a1a   :  { %v4822_v10 = vadd.f32 %v4821_v62, %v4754_v46  ;;  %v4823_v19 = vpop.f32.mrb[85].mxu0  ;;  %v10410_v62 = vld [vmem:[%s13647_s12 + $0x100] sm:$0xff]  }
0x1a1b   :  { %v4824_v58 = vadd.f32 %v4823_v19, %v4754_v46  ;;  %v4825_v55 = vpop.f32.mrb[86].mxu0  ;;  %v10411_v19 = vld [vmem:[%s13647_s12 + $0x108] sm:$0xff]  }
0x1a1c   :  { %v4840_v61 = vadd.f32 %v4822_v10, %v12209_v13  ;;  %v4826_v14 = vadd.f32 %v4825_v55, %v4759_v41  ;;  %v4827_v32 = vpop.f32.mrb[87].mxu0  ;;  %v8969_v10 = vld [vmem:[%s13648_s13 + $0xa0] sm:$0xff]  ;;  %v8972_v55 = vld [vmem:[%s13648_s13 + $0xb8] sm:$0xff] }
0x1a1d   :  { %v4841_v57 = vadd.f32 %v4824_v58, %v12213_v24  ;;  %v4828_v30 = vadd.f32 %v4827_v32, %v4759_v41  ;;  %v8970_v41 = vld [vmem:[%s13648_s13 + $0xa8] sm:$0xff]  ;;  %v8971_v58 = vld [vmem:[%s13648_s13 + $0xb0] sm:$0xff] }
0x1a1e   :  { %v4842_v23 = vadd.f32 %v4826_v14, %v12211_v16  ;;  %v12366_v29 = vmul.f32 %v4840_v61, %v10856_v56  ;;  %v8977_v61 = vld [vmem:[%s13650_s15 + $0xa0] sm:$0xff]  ;;  %v8978_v14 = vld [vmem:[%s13650_s15 + $0xa8] sm:$0xff]  ;;  %v8979_v32 = vld [vmem:[%s13650_s15 + $0xb0] sm:$0xff] }
0x1a1f   :  { %v4843_v3 = vadd.f32 %v4828_v30, %v12215_v34  ;;  %v12372_v15 = vmul.f32 %v4841_v57, %v10859_v59  ;;  %v4769_v34 = vpop.permute.xlu1 %4768  ;;  %v8980_v57 = vld [vmem:[%s13650_s15 + $0xb8] sm:$0xff] }
0x1a20   :  { %v12369_v17 = vmul.f32 %v4842_v23, %v10856_v56 }
0x1a21   :  { %v12375_v13 = vmul.f32 %v4843_v3, %v10859_v59  ;;  %v4831_v11 = vpop.f32.mrb[88].mxu0 }
0x1a22   :  { %v4832_v24 = vadd.f32 %v4831_v11, %v4764_v18  ;;  %v4833_v36 = vpop.f32.mrb[89].mxu0  ;;  %v10052_v16 = vpack.i.bf16 %v12369_v17, %v12366_v29  ;;  %v4920_v39 = vpack.c.bf16 %v12369_v17, %v12366_v29 }
0x1a23   :  { %v4834_v20 = vadd.f32 %v4833_v36, %v4764_v18  ;;  %v4835_v26 = vpop.f32.mrb[90].mxu0  ;;  %v10057_v7 = vpack.i.bf16 %v12375_v13, %v12372_v15  ;;  %v4921_v21 = vpack.c.bf16 %v12375_v13, %v12372_v15 }
0x1a24   :  { %v4844_v8 = vadd.f32 %v4832_v24, %v12227_v54  ;;  %v4836_v2 = vadd.f32 %v4835_v26, %v4769_v34  ;;  %v4837_v27 = vpop.f32.mrb[91].mxu0  ;;  %10053 = vrot.lane.b32.xlu0 %v10052_v16, %s10519_s1 }
0x1a25   :  { %v4845_v6 = vadd.f32 %v4834_v20, %v12231_v47  ;;  %v4838_v22 = vadd.f32 %v4837_v27, %v4769_v34  ;;  %10058 = vrot.lane.b32.xlu1 %v10057_v7, %s10519_s1  ;;  %4940 = vmatprep.subr.bf16.mxu0 %v4921_v21 }
0x1a26   :  { %v4846_v35 = vadd.f32 %v4836_v2, %v12229_v40  ;;  %4941 = vmatpush1.bf16.msra.mxu0 %v4920_v39  ;;  %v12392_v54 = vmul.f32 %v4844_v8, %v10856_v56 }
0x1a27   :  { %v4847_v25 = vadd.f32 %v4838_v22, %v12233_v53  ;;  %v12398_v28 = vmul.f32 %v4845_v6, %v10859_v59 }
0x1a28   :  { %v12395_v50 = vmul.f32 %v4846_v35, %v10856_v56 }
0x1a29   :  { %v12401_v47 = vmul.f32 %v4847_v25, %v10859_v59 }
0x1a2a   :  { %v10062_v37 = vpack.i.bf16 %v12395_v50, %v12392_v54  ;;  %v4922_v46 = vpack.c.bf16 %v12395_v50, %v12392_v54 }
0x1a2b   :  { %v10067_v40 = vpack.i.bf16 %v12401_v47, %v12398_v28  ;;  %v4923_v53 = vpack.c.bf16 %v12401_v47, %v12398_v28 }
0x1a2c   :  { %10063 = vrot.lane.b32.xlu0 %v10062_v37, %s10519_s1 }
0x1a2d   :  { %10068 = vrot.lane.b32.xlu1 %v10067_v40, %s10519_s1  ;;  %4942 = vmatprep.subr.bf16.mxu0 %v4923_v53 }
0x1a2e   :  { %4943 = vmatpush1.bf16.msra.mxu0 %v4922_v46 }
0x1a30   :  { %10073 = vrot.lane.b32.xlu0 %v10052_v16, %s10520_s23 }
0x1a31   :  { %10078 = vrot.lane.b32.xlu1 %v10057_v7, %s10520_s23  ;;  %8983 = vmatmul.mubr.msk.bf16.vlgmr.msra.gmra.mrb[92].mxu0 %vm13855_vm2, %v10410_v62  ;;  %vm13867_vm2 = vmmov %vm13866_vm3 }
0x1a32   :  { %4982 = vmatprep.mubr.bf16.mxu0 %v10516_v5 }
0x1a34   :  { %10083 = vrot.lane.b32.xlu0 %v10062_v37, %s10520_s23 }
0x1a35   :  { %10088 = vrot.lane.b32.xlu1 %v10067_v40, %s10520_s23 }
0x1a38   :  { %5177 = vperm.xlu0 %9690, %v8969_v10  }
0x1a39   :  { %5182 = vperm.xlu1 %9691, %v8970_v41   ;;  %8984 = vmatmul.mubr.msk.bf16.gmra.mrb[96].mxu0 %vm13863_vm8, %v10411_v19  ;;  %vm13868_vm8 = vmmov %vm13867_vm2 }
0x1a3a   :  { %5041 = vmatprep.mubr.bf16.mxu0 %v10516_v5 }
0x1a3c   :  { %5187 = vperm.xlu0 %9690, %v8971_v58  }
0x1a3d   :  { %5192 = vperm.xlu1 %9691, %v8972_v55   ;;  %v10412_v55 = vld [vmem:[%s13647_s12 + $0xf0] sm:$0xff]  }
0x1a40   :  { %5217 = vperm.xlu0 %9690, %v8977_v61  }
0x1a41   :  { %5222 = vperm.xlu1 %9691, %v8978_v14  }
0x1a44   :  { %5227 = vperm.xlu0 %9690, %v8979_v32  }
0x1a45   :  { %5232 = vperm.xlu1 %9691, %v8980_v57  }
0x1a96   :  { %v10054_v30 = vpop.permute.xlu0 %10053 }
0x1a97   :  { %v10056_v23 = vunpack.i.h.bf16 %v10054_v30  ;;  %v10055_v3 = vunpack.i.l.bf16 %v10054_v30  ;;  %v10059_v18 = vpop.permute.xlu1 %10058 }
0x1a98   :  { %v10061_v11 = vunpack.i.h.bf16 %v10059_v18  ;;  %v10060_v24 = vunpack.i.l.bf16 %v10059_v18 }
0x1a9a   :  { %v4900_v36 = vsel %vm13864_vm6, %v10055_v3, %v10060_v24  ;;  %v4901_v16 = vsel %vm13865_vm13, %v10056_v23, %v10061_v11  ;;  %v4904_v34 = vsel %vm13866_vm3, %v10060_v24, %v10055_v3  ;;  %v4905_v20 = vsel %vm13867_vm2, %v10061_v11, %v10056_v23  ;;  %vm13869_vm6 = vmmov %vm13867_vm2 }
0x1a9b   :  { %v8991_v26 = vpack.c.bf16 %v4905_v20, %v4904_v34  ;;  %v8988_v7 = vpack.c.bf16 %v4901_v16, %v4900_v36  ;;  %vm13870_vm13 = vmmov %vm13867_vm2 }
0x1a9c   :  { %vm13871_vm3 = vmmov %vm13867_vm2  ;;  %vm13872_vm2 = vcmp.lt.s32.totalorder %v10739_v52, 126 }
0x1a9d   :  { %8989 = vmatprep.subr.msk.bf16.mxu0 %vm10961_vm14, %v8988_v7 }
0x1a9e   :  { %v10064_v21 = vpop.permute.xlu0 %10063  ;;  %8992 = vmatpush1.bf16.msk.msra.mxu0 %vm10965_vm15, %v8991_v26 }
0x1a9f   :  { %v10066_v8 = vunpack.i.h.bf16 %v10064_v21  ;;  %v10065_v2 = vunpack.i.l.bf16 %v10064_v21  ;;  %v10069_v27 = vpop.permute.xlu1 %10068 }
0x1aa0   :  { %v10071_v39 = vunpack.i.h.bf16 %v10069_v27  ;;  %v10070_v6 = vunpack.i.l.bf16 %v10069_v27  ;;  %v10414_v27 = vld [vmem:[%s13647_s12 + $0x110] sm:$0xff]  }
0x1aa2   :  { %v4902_v22 = vsel %vm13868_vm8, %v10065_v2, %v10070_v6  ;;  %v4903_v35 = vsel %vm13869_vm6, %v10066_v8, %v10071_v39  ;;  %v4906_v25 = vsel %vm13870_vm13, %v10070_v6, %v10065_v2  ;;  %v4907_v37 = vsel %vm13871_vm3, %v10071_v39, %v10066_v8  ;;  %v10074_v40 = vpop.permute.xlu0 %10073  ;;  %vm13873_vm8 = vmmov %vm13872_vm2  ;;  %v10413_v2 = vld [vmem:[%s13647_s12 + $0xf8] sm:$0xff]  }
0x1aa3   :  { %v8997_v53 = vpack.c.bf16 %v4907_v37, %v4906_v25  ;;  %v10076_v46 = vunpack.i.h.bf16 %v10074_v40  ;;  %v10075_v62 = vunpack.i.l.bf16 %v10074_v40  ;;  %v10079_v10 = vpop.permute.xlu1 %10078  ;;  %v8994_v19 = vpack.c.bf16 %v4903_v35, %v4902_v22  ;;  %vm13874_vm6 = vmmov %vm13872_vm2  ;;  %v10415_v39 = vld [vmem:[%s13647_s12 + $0x118] sm:$0xff]  }
0x1aa4   :  { %v10081_v41 = vunpack.i.h.bf16 %v10079_v10  ;;  %v10080_v58 = vunpack.i.l.bf16 %v10079_v10  ;;  %vm13875_vm13 = vmmov %vm13872_vm2  ;;  %vm13876_vm3 = vcmask 261120  }
0x1aa5   :  { %8995 = vmatprep.subr.msk.bf16.mxu0 %vm10961_vm14, %v8994_v19  ;;  %vm13881_vm14 = vnez %v13721_v43 }
0x1aa6   :  { %v5078_v61 = vsel %vm13872_vm2, %v10075_v62, %v10080_v58  ;;  %v5079_v14 = vsel %vm13873_vm8, %v10076_v46, %v10081_v41  ;;  %v5082_v32 = vsel %vm13874_vm6, %v10080_v58, %v10075_v62  ;;  %v5083_v57 = vsel %vm13875_vm13, %v10081_v41, %v10076_v46  ;;  %v10084_v30 = vpop.permute.xlu0 %10083  ;;  %8998 = vmatpush1.bf16.msk.msra.mxu0 %vm10965_vm15, %v8997_v53  ;;  %vm13878_vm8 = vmmov %vm13874_vm6 }
0x1aa7   :  { %v9007_v23 = vpack.c.bf16 %v5079_v14, %v5078_v61  ;;  %v10086_v3 = vunpack.i.h.bf16 %v10084_v30  ;;  %v10085_v18 = vunpack.i.l.bf16 %v10084_v30  ;;  %v10089_v11 = vpop.permute.xlu1 %10088  ;;  %v9004_v24 = vpack.c.bf16 %v5083_v57, %v5082_v32  ;;  %vm13879_vm13 = vmmov %vm13874_vm6 }
0x1aa8   :  { %v10091_v36 = vunpack.i.h.bf16 %v10089_v11  ;;  %v10090_v16 = vunpack.i.l.bf16 %v10089_v11  ;;  %vm13877_vm2 = vnez %v13719_v31  ;;  %vm13880_vm15 = vmmov %vm13874_vm6  ;;  %v10449_v31 = vld [vmem:[%s13647_s12 + $0x1d8] sm:$0xff]  }
0x1aa9   :  { %8999 = vmatmul.mubr.msk.bf16.vlgmr.msra.gmra.mrb[92].mxu0 %vm13876_vm3, %v10412_v55  ;;  %9005 = vmatprep.subr.msk.bf16.mxu0 %vm13877_vm2, %v9004_v24 }
0x1aaa   :  { %v5080_v34 = vsel %vm13878_vm8, %v10085_v18, %v10090_v16  ;;  %v5081_v20 = vsel %vm13874_vm6, %v10086_v3, %v10091_v36  ;;  %v5084_v26 = vsel %vm13879_vm13, %v10090_v16, %v10085_v18  ;;  %v5085_v7 = vsel %vm13880_vm15, %v10091_v36, %v10086_v3  ;;  %9008 = vmatpush1.bf16.msk.msra.mxu0 %vm13881_vm14, %v9007_v23  ;;  %vm13882_vm15 = vmmov %vm13876_vm3 }
0x1aab   :  { %v9013_v21 = vpack.c.bf16 %v5081_v20, %v5080_v34  ;;  %v9010_v8 = vpack.c.bf16 %v5085_v7, %v5084_v26  ;;  %5051 = vmatprep.mubr.bf16.mxu0 %v10516_v5  ;;  %vm13883_vm8 = vmmov %vm13876_vm3 }
0x1aac   :  { %vm13884_vm6 = vmmov %vm13876_vm3 }
0x1aad   :  { %9011 = vmatprep.subr.msk.bf16.mxu0 %vm13877_vm2, %v9010_v8  ;;  %vm13885_vm13 = vmmov %vm13876_vm3 }
0x1aae   :  { %9014 = vmatpush1.bf16.msk.msra.mxu0 %vm13881_vm14, %v9013_v21  ;;  %vm13892_vm14 = vnez %v13725_v12 }
0x1ab1   :  { %9000 = vmatmul.mubr.msk.bf16.gmra.mrb[96].mxu0 %vm13876_vm3, %v10413_v2  ;;  %v10416_v2 = vld [vmem:[%s13649_s14 + $0x50] sm:$0xff]  }
0x1ab2   :  { %5146 = vmatprep.mubr.bf16.mxu0 %v10516_v5 }
0x1ab7   :  { %v5178_v6 = vpop.permute.xlu0 %5177 }
0x1ab8   :  { %v5183_v37 = vpop.permute.xlu1 %5182 }
0x1ab9   :  { %9015 = vmatmul.mubr.msk.bf16.vlgmr.msra.gmra.mrb[92].mxu0 %vm13882_vm15, %v10414_v27  ;;  %v10417_v27 = vld [vmem:[%s13649_s14 + $0x58] sm:$0xff]   ;;  %vm13886_vm15 = vmmov %vm13876_vm3 }
0x1aba   :  { %5156 = vmatprep.mubr.bf16.mxu0 %v10516_v5 }
0x1abb   :  { %v5188_v14 = vpop.permute.xlu0 %5187 }
0x1abc   :  { %v5193_v3 = vpop.permute.xlu1 %5192 }
0x1ac1   :  { %9016 = vmatmul.mubr.msk.bf16.gmra.mrb[96].mxu0 %vm13883_vm8, %v10415_v39  ;;  %v5218_v39 = vpop.permute.xlu0 %5217  ;;  %vm13887_vm8 = vcmp.lt.s32.totalorder %v10739_v52, 4 }
0x1ac2   :  { %5747 = vmatprep.mubr.bf16.mxu0 %v10516_v5 }
0x1b8c   :  { %v5148_v22 = vpop.f32.mrb[92].mxu0 }
0x1b8d   :  { %v5195_v35 = vadd.f32 %v5178_v6, %v5148_v22  ;;  %v5150_v25 = vpop.f32.mrb[93].mxu0 }
0x1b8e   :  { %v5196_v40 = vadd.f32 %v5178_v6, %v5150_v25  ;;  %v5152_v53 = vpop.f32.mrb[94].mxu0  ;;  %v5223_v25 = vpop.permute.xlu1 %5222 }
0x1b8f   :  { %v5197_v46 = vadd.f32 %v5183_v37, %v5152_v53  ;;  %v5154_v62 = vpop.f32.mrb[95].mxu0  ;;  %v5203_v19 = vmax.f32 %v5195_v35, 0.0 }
0x1b90   :  { %v5198_v10 = vadd.f32 %v5183_v37, %v5154_v62  ;;  %v5204_v58 = vmax.f32 %v5196_v40, 0.0 }
0x1b91   :  { %v5205_v41 = vmax.f32 %v5197_v46, 0.0 }
0x1b92   :  { %v5206_v55 = vmax.f32 %v5198_v10, 0.0 }
0x1b93   :  { %v5211_v61 = vpack.c.bf16 %v5205_v41, %v5203_v19 }
0x1b94   :  { %v5212_v32 = vpack.c.bf16 %v5206_v55, %v5204_v58  ;;  %v5158_v57 = vpop.f32.mrb[96].mxu0 }
0x1b95   :  { %v5199_v30 = vadd.f32 %v5188_v14, %v5158_v57  ;;  %v5160_v23 = vpop.f32.mrb[97].mxu0 }
0x1b96   :  { %v5200_v18 = vadd.f32 %v5188_v14, %v5160_v23  ;;  %v5162_v11 = vpop.f32.mrb[98].mxu0  ;;  %5251 = vmatprep.subr.bf16.mxu1 %v5212_v32  ;;  %v5228_v14 = vpop.permute.xlu0 %5227 }
0x1b97   :  { %v5201_v24 = vadd.f32 %v5193_v3, %v5162_v11  ;;  %v5164_v36 = vpop.f32.mrb[99].mxu0  ;;  %5252 = vmatpush1.bf16.msra.mxu1 %v5211_v61  ;;  %v5207_v34 = vmax.f32 %v5199_v30, 0.0 }
0x1b98   :  { %v5202_v16 = vadd.f32 %v5193_v3, %v5164_v36  ;;  %v5208_v26 = vmax.f32 %v5200_v18, 0.0 }
0x1b99   :  { %v5209_v20 = vmax.f32 %v5201_v24, 0.0 }
0x1b9a   :  { %v5210_v7 = vmax.f32 %v5202_v16, 0.0 }
0x1b9b   :  { %v5213_v21 = vpack.c.bf16 %v5209_v20, %v5207_v34 }
0x1b9c   :  { %v5214_v8 = vpack.c.bf16 %v5210_v7, %v5208_v26 }
0x1b9e   :  { %5253 = vmatprep.subr.bf16.mxu1 %v5214_v8 }
0x1b9f   :  { %5254 = vmatpush1.bf16.msra.mxu1 %v5213_v21 }
0x1ba2   :  { %9019 = vmatmul.mubr.msk.bf16.vlgmr.msra.gmra.mrb[84].mxu1 %vm13884_vm6, %v10416_v2  ;;  %vm13888_vm6 = vmmov %vm13887_vm8 }
0x1ba3   :  { %5293 = vmatprep.mubr.bf16.mxu1 %v10516_v5 }
0x1baa   :  { %9020 = vmatmul.mubr.msk.bf16.gmra.mrb[88].mxu1 %vm13885_vm13, %v10417_v27  ;;  %vm13889_vm13 = vmmov %vm13888_vm6 }
0x1bab   :  { %5436 = vmatprep.mubr.bf16.mxu1 %v10516_v5 }
0x1c75   :  { %v5285_v6 = vpop.f32.mrb[84].mxu1 }
0x1c76   :  { %v5286_v22 = vadd.f32 %v5285_v6, %v5218_v39  ;;  %v5287_v35 = vpop.f32.mrb[85].mxu1  ;;  %v10418_v6 = vld [vmem:[%s13647_s12 + $0x130] sm:$0xff]  }
0x1c77   :  { %v5288_v37 = vadd.f32 %v5287_v35, %v5218_v39  ;;  %v5289_v40 = vpop.f32.mrb[86].mxu1  ;;  %v10419_v35 = vld [vmem:[%s13647_s12 + $0x138] sm:$0xff]  }
0x1c78   :  { %v5304_v53 = vadd.f32 %v5286_v22, %v12366_v29  ;;  %v5290_v46 = vadd.f32 %v5289_v40, %v5223_v25  ;;  %v5291_v62 = vpop.f32.mrb[87].mxu1  ;;  %v9033_v22 = vld [vmem:[%s13648_s13 + $0xc0] sm:$0xff]  ;;  %v9036_v40 = vld [vmem:[%s13648_s13 + $0xd8] sm:$0xff] }
0x1c79   :  { %v5305_v10 = vadd.f32 %v5288_v37, %v12372_v15  ;;  %v5292_v19 = vadd.f32 %v5291_v62, %v5223_v25  ;;  %v9034_v25 = vld [vmem:[%s13648_s13 + $0xc8] sm:$0xff]  ;;  %v9035_v37 = vld [vmem:[%s13648_s13 + $0xd0] sm:$0xff] }
0x1c7a   :  { %v5306_v41 = vadd.f32 %v5290_v46, %v12369_v17  ;;  %v12534_v55 = vmul.f32 %v5304_v53, %v10856_v56  ;;  %v9041_v53 = vld [vmem:[%s13650_s15 + $0xc0] sm:$0xff]  ;;  %v9042_v46 = vld [vmem:[%s13650_s15 + $0xc8] sm:$0xff]  ;;  %v9043_v62 = vld [vmem:[%s13650_s15 + $0xd0] sm:$0xff] }
0x1c7b   :  { %v5307_v58 = vadd.f32 %v5292_v19, %v12375_v13  ;;  %v12540_v32 = vmul.f32 %v5305_v10, %v10859_v59  ;;  %v5233_v13 = vpop.permute.xlu1 %5232  ;;  %v9044_v10 = vld [vmem:[%s13650_s15 + $0xd8] sm:$0xff] }
0x1c7c   :  { %v12537_v61 = vmul.f32 %v5306_v41, %v10856_v56 }
0x1c7d   :  { %v12543_v29 = vmul.f32 %v5307_v58, %v10859_v59  ;;  %v5295_v57 = vpop.f32.mrb[88].mxu1 }
0x1c7e   :  { %v5296_v15 = vadd.f32 %v5295_v57, %v5228_v14  ;;  %v5297_v30 = vpop.f32.mrb[89].mxu1  ;;  %v10092_v17 = vpack.i.bf16 %v12537_v61, %v12534_v55  ;;  %v5384_v34 = vpack.c.bf16 %v12537_v61, %v12534_v55 }
0x1c7f   :  { %v5298_v23 = vadd.f32 %v5297_v30, %v5228_v14  ;;  %v5299_v3 = vpop.f32.mrb[90].mxu1  ;;  %v10097_v18 = vpack.i.bf16 %v12543_v29, %v12540_v32  ;;  %v5385_v11 = vpack.c.bf16 %v12543_v29, %v12540_v32 }
0x1c80   :  { %v5308_v24 = vadd.f32 %v5296_v15, %v12392_v54  ;;  %v5300_v36 = vadd.f32 %v5299_v3, %v5233_v13  ;;  %v5301_v16 = vpop.f32.mrb[91].mxu1  ;;  %10093 = vrot.lane.b32.xlu0 %v10092_v17, %s10521_s21 }
0x1c81   :  { %v5309_v20 = vadd.f32 %v5298_v23, %v12398_v28  ;;  %v5302_v26 = vadd.f32 %v5301_v16, %v5233_v13  ;;  %10098 = vrot.lane.b32.xlu1 %v10097_v18, %s10521_s21  ;;  %5404 = vmatprep.subr.bf16.mxu1 %v5385_v11 }
0x1c82   :  { %v5310_v7 = vadd.f32 %v5300_v36, %v12395_v50  ;;  %5405 = vmatpush1.bf16.msra.mxu1 %v5384_v34  ;;  %v12560_v54 = vmul.f32 %v5308_v24, %v10856_v56 }
0x1c83   :  { %v5311_v21 = vadd.f32 %v5302_v26, %v12401_v47  ;;  %v12566_v2 = vmul.f32 %v5309_v20, %v10859_v59 }
0x1c84   :  { %v12563_v8 = vmul.f32 %v5310_v7, %v10856_v56 }
0x1c85   :  { %v12569_v28 = vmul.f32 %v5311_v21, %v10859_v59 }
0x1c86   :  { %v10102_v27 = vpack.i.bf16 %v12563_v8, %v12560_v54  ;;  %v5386_v39 = vpack.c.bf16 %v12563_v8, %v12560_v54 }
0x1c87   :  { %v10107_v50 = vpack.i.bf16 %v12569_v28, %v12566_v2  ;;  %v5387_v47 = vpack.c.bf16 %v12569_v28, %v12566_v2 }
0x1c88   :  { %10103 = vrot.lane.b32.xlu0 %v10102_v27, %s10521_s21 }
0x1c89   :  { %10108 = vrot.lane.b32.xlu1 %v10107_v50, %s10521_s21  ;;  %5406 = vmatprep.subr.bf16.mxu1 %v5387_v47 }
0x1c8a   :  { %5407 = vmatpush1.bf16.msra.mxu1 %v5386_v39 }
0x1c8c   :  { %10113 = vrot.lane.b32.xlu0 %v10092_v17, %s13788_s27 }
0x1c8d   :  { %10118 = vrot.lane.b32.xlu1 %v10097_v18, %s13788_s27  ;;  %9047 = vmatmul.mubr.msk.bf16.vlgmr.msra.gmra.mrb[92].mxu1 %vm13876_vm3, %v10418_v6  ;;  %vm13890_vm3 = vmmov %vm13888_vm6 }
0x1c8e   :  { %5446 = vmatprep.mubr.bf16.mxu1 %v10516_v5 }
0x1c90   :  { %10123 = vrot.lane.b32.xlu0 %v10102_v27, %s13788_s27 }
0x1c91   :  { %10128 = vrot.lane.b32.xlu1 %v10107_v50, %s13788_s27 }
0x1c94   :  { %5641 = vperm.xlu0 %9690, %v9033_v22  }
0x1c95   :  { %5646 = vperm.xlu1 %9691, %v9034_v25   ;;  %9048 = vmatmul.mubr.msk.bf16.gmra.mrb[96].mxu1 %vm13886_vm15, %v10419_v35  ;;  %vm13891_vm15 = vnez %v13723_v9 }
0x1c96   :  { %5505 = vmatprep.mubr.bf16.mxu1 %v10516_v5 }
0x1c98   :  { %5651 = vperm.xlu0 %9690, %v9035_v37  }
0x1c99   :  { %5656 = vperm.xlu1 %9691, %v9036_v40   ;;  %v10420_v40 = vld [vmem:[%s13647_s12 + $0x120] sm:$0xff]  }
0x1c9c   :  { %5681 = vperm.xlu0 %9690, %v9041_v53  }
0x1c9d   :  { %5686 = vperm.xlu1 %9691, %v9042_v46  }
0x1ca0   :  { %5691 = vperm.xlu0 %9690, %v9043_v62  }
0x1ca1   :  { %5696 = vperm.xlu1 %9691, %v9044_v10  }
0x1cf2   :  { %v10094_v19 = vpop.permute.xlu0 %10093 }
0x1cf3   :  { %v10096_v41 = vunpack.i.h.bf16 %v10094_v19  ;;  %v10095_v58 = vunpack.i.l.bf16 %v10094_v19  ;;  %v10099_v14 = vpop.permute.xlu1 %10098 }
0x1cf4   :  { %v10101_v57 = vunpack.i.h.bf16 %v10099_v14  ;;  %v10100_v15 = vunpack.i.l.bf16 %v10099_v14 }
0x1cf6   :  { %v5364_v30 = vsel %vm13887_vm8, %v10095_v58, %v10100_v15  ;;  %v5365_v17 = vsel %vm13888_vm6, %v10096_v41, %v10101_v57  ;;  %v5368_v13 = vsel %vm13889_vm13, %v10100_v15, %v10095_v58  ;;  %v5369_v23 = vsel %vm13890_vm3, %v10101_v57, %v10096_v41  ;;  %vm13893_vm8 = vmmov %vm13890_vm3 }
0x1cf7   :  { %v9055_v3 = vpack.c.bf16 %v5369_v23, %v5368_v13  ;;  %v9052_v18 = vpack.c.bf16 %v5365_v17, %v5364_v30  ;;  %vm13894_vm6 = vmmov %vm13890_vm3 }
0x1cf8   :  { %vm13895_vm13 = vmmov %vm13890_vm3 }
0x1cf9   :  { %9053 = vmatprep.subr.msk.bf16.mxu1 %vm13891_vm15, %v9052_v18 }
0x1cfa   :  { %v10104_v11 = vpop.permute.xlu0 %10103  ;;  %9056 = vmatpush1.bf16.msk.msra.mxu1 %vm13892_vm14, %v9055_v3 }
0x1cfb   :  { %v10106_v24 = vunpack.i.h.bf16 %v10104_v11  ;;  %v10105_v36 = vunpack.i.l.bf16 %v10104_v11  ;;  %v10109_v16 = vpop.permute.xlu1 %10108 }
0x1cfc   :  { %v10111_v34 = vunpack.i.h.bf16 %v10109_v16  ;;  %v10110_v20 = vunpack.i.l.bf16 %v10109_v16  ;;  %v10422_v16 = vld [vmem:[%s13647_s12 + $0x140] sm:$0xff]  }
0x1cfe   :  { %v5366_v26 = vsel %vm13893_vm8, %v10105_v36, %v10110_v20  ;;  %v5367_v7 = vsel %vm13894_vm6, %v10106_v24, %v10111_v34  ;;  %v5370_v21 = vsel %vm13895_vm13, %v10110_v20, %v10105_v36  ;;  %v5371_v27 = vsel %vm13890_vm3, %v10111_v34, %v10106_v24  ;;  %v10114_v50 = vpop.permute.xlu0 %10113  ;;  %v10421_v36 = vld [vmem:[%s13647_s12 + $0x128] sm:$0xff]  }
0x1cff   :  { %v9061_v47 = vpack.c.bf16 %v5371_v27, %v5370_v21  ;;  %v10116_v39 = vunpack.i.h.bf16 %v10114_v50  ;;  %v10115_v6 = vunpack.i.l.bf16 %v10114_v50  ;;  %v10119_v22 = vpop.permute.xlu1 %10118  ;;  %v9058_v35 = vpack.c.bf16 %v5367_v7, %v5366_v26  ;;  %v10423_v34 = vld [vmem:[%s13647_s12 + $0x148] sm:$0xff]  }
0x1d00   :  { %v10121_v25 = vunpack.i.h.bf16 %v10119_v22  ;;  %v10120_v37 = vunpack.i.l.bf16 %v10119_v22  ;;  %vm13896_vm8 = vcmp.lt.s32.totalorder %v10739_v52, 124 }
0x1d01   :  { %9059 = vmatprep.subr.msk.bf16.mxu1 %vm13891_vm15, %v9058_v35  ;;  %vm13897_vm6 = vmmov %vm13896_vm8 }
0x1d02   :  { %v5542_v53 = vsel %vm13896_vm8, %v10115_v6, %v10120_v37  ;;  %v5543_v46 = vsel %vm13897_vm6, %v10116_v39, %v10121_v25  ;;  %vm13898_vm13 = vmmov %vm13897_vm6  ;;  %v10124_v19 = vpop.permute.xlu0 %10123  ;;  %9062 = vmatpush1.bf16.msk.msra.mxu1 %vm13892_vm14, %v9061_v47  ;;  %vm13900_vm8 = vcmask 261120  }
0x1d03   :  { %v5546_v62 = vsel %vm13898_vm13, %v10120_v37, %v10115_v6  ;;  %vm13899_vm3 = vmmov %vm13897_vm6  ;;  %v9071_v58 = vpack.c.bf16 %v5543_v46, %v5542_v53  ;;  %v10126_v14 = vunpack.i.h.bf16 %v10124_v19  ;;  %v10125_v57 = vunpack.i.l.bf16 %v10124_v19  ;;  %v10129_v15 = vpop.permute.xlu1 %10128 }
0x1d04   :  { %v5547_v10 = vsel %vm13899_vm3, %v10121_v25, %v10116_v39  ;;  %v10131_v30 = vunpack.i.h.bf16 %v10129_v15  ;;  %v10130_v17 = vunpack.i.l.bf16 %v10129_v15  ;;  %vm13901_vm6 = vmmov %vm13899_vm3 }
0x1d05   :  { %v9068_v41 = vpack.c.bf16 %v5547_v10, %v5546_v62  ;;  %9063 = vmatmul.mubr.msk.bf16.vlgmr.msra.gmra.mrb[92].mxu1 %vm13900_vm8, %v10420_v40  ;;  %vm13902_vm13 = vmmov %vm13899_vm3 }
0x1d06   :  { %v5544_v13 = vsel %vm13901_vm6, %v10125_v57, %v10130_v17  ;;  %v5545_v23 = vsel %vm13902_vm13, %v10126_v14, %v10131_v30  ;;  %v5548_v3 = vsel %vm13899_vm3, %v10130_v17, %v10125_v57  ;;  %vm13903_vm14 = vmmov %vm13899_vm3  ;;  %5515 = vmatprep.mubr.bf16.mxu1 %v10516_v5 }
0x1d07   :  { %9069 = vmatprep.subr.msk.bf16.mxu1 %vm13804_vm7, %v9068_v41  ;;  %v5549_v18 = vsel %vm13903_vm14, %v10131_v30, %v10126_v14  ;;  %v9077_v24 = vpack.c.bf16 %v5545_v23, %v5544_v13  ;;  %vm13904_vm14 = vmmov %vm13900_vm8 }
0x1d08   :  { %9072 = vmatpush1.bf16.msk.msra.mxu1 %vm13808_vm4, %v9071_v58  ;;  %v9074_v11 = vpack.c.bf16 %v5549_v18, %v5548_v3  ;;  %vm13905_vm6 = vmmov %vm13900_vm8 }
0x1d09   :  { %vm13906_vm13 = vmmov %vm13905_vm6 }
0x1d0a   :  { %9075 = vmatprep.subr.msk.bf16.mxu1 %vm13804_vm7, %v9074_v11  ;;  %vm13907_vm3 = vmmov %vm13905_vm6 }
0x1d0c   :  { %9078 = vmatpush1.bf16.msk.msra.mxu1 %vm13808_vm4, %v9077_v24 }
0x1d0d   :  { %9064 = vmatmul.mubr.msk.bf16.gmra.mrb[96].mxu1 %vm13900_vm8, %v10421_v36  ;;  %v10424_v36 = vld [vmem:[%s13649_s14 + $0x60] sm:$0xff]   ;;  %vm13908_vm8 = vmmov %vm13907_vm3 }
0x1d0e   :  { %5610 = vmatprep.mubr.bf16.mxu1 %v10516_v5 }
0x1d13   :  { %v5642_v20 = vpop.permute.xlu0 %5641 }
0x1d14   :  { %v5647_v27 = vpop.permute.xlu1 %5646 }
0x1d15   :  { %9079 = vmatmul.mubr.msk.bf16.vlgmr.msra.gmra.mrb[92].mxu1 %vm13904_vm14, %v10422_v16  ;;  %v10425_v16 = vld [vmem:[%s13649_s14 + $0x68] sm:$0xff]   ;;  %vm13909_vm14 = vmmov %vm13907_vm3 }
0x1d16   :  { %5620 = vmatprep.mubr.bf16.mxu1 %v10516_v5 }
0x1d17   :  { %v5652_v46 = vpop.permute.xlu0 %5651 }
0x1d18   :  { %v5657_v58 = vpop.permute.xlu1 %5656 }
0x1d1d   :  { %9080 = vmatmul.mubr.msk.bf16.gmra.mrb[96].mxu1 %vm13905_vm6, %v10423_v34  ;;  %v5682_v34 = vpop.permute.xlu0 %5681  ;;  %vm13910_vm6 = vcmp.lt.s32.totalorder %v10739_v52, 8 }
0x1d1e   :  { %6211 = vmatprep.mubr.bf16.mxu1 %v10516_v5 }
0x1de8   :  { %v5612_v26 = vpop.f32.mrb[92].mxu1 }
0x1de9   :  { %v5659_v7 = vadd.f32 %v5642_v20, %v5612_v26  ;;  %v5614_v21 = vpop.f32.mrb[93].mxu1 }
0x1dea   :  { %v5660_v50 = vadd.f32 %v5642_v20, %v5614_v21  ;;  %v5616_v47 = vpop.f32.mrb[94].mxu1  ;;  %v5687_v21 = vpop.permute.xlu1 %5686 }
0x1deb   :  { %v5661_v39 = vadd.f32 %v5647_v27, %v5616_v47  ;;  %v5618_v6 = vpop.f32.mrb[95].mxu1  ;;  %v5667_v35 = vmax.f32 %v5659_v7, 0.0 }
0x1dec   :  { %v5662_v22 = vadd.f32 %v5647_v27, %v5618_v6  ;;  %v5668_v37 = vmax.f32 %v5660_v50, 0.0 }
0x1ded   :  { %v5669_v25 = vmax.f32 %v5661_v39, 0.0 }
0x1dee   :  { %v5670_v40 = vmax.f32 %v5662_v22, 0.0 }
0x1def   :  { %v5675_v53 = vpack.c.bf16 %v5669_v25, %v5667_v35 }
0x1df0   :  { %v5676_v62 = vpack.c.bf16 %v5670_v40, %v5668_v37  ;;  %v5622_v10 = vpop.f32.mrb[96].mxu1 }
0x1df1   :  { %v5663_v19 = vadd.f32 %v5652_v46, %v5622_v10  ;;  %v5624_v41 = vpop.f32.mrb[97].mxu1 }
0x1df2   :  { %v5664_v14 = vadd.f32 %v5652_v46, %v5624_v41  ;;  %v5626_v57 = vpop.f32.mrb[98].mxu1  ;;  %5715 = vmatprep.subr.bf16.mxu0 %v5676_v62  ;;  %v5692_v46 = vpop.permute.xlu0 %5691 }
0x1df3   :  { %v5665_v15 = vadd.f32 %v5657_v58, %v5626_v57  ;;  %v5628_v30 = vpop.f32.mrb[99].mxu1  ;;  %5716 = vmatpush1.bf16.msra.mxu0 %v5675_v53  ;;  %v5671_v13 = vmax.f32 %v5663_v19, 0.0 }
0x1df4   :  { %v5666_v17 = vadd.f32 %v5657_v58, %v5628_v30  ;;  %v5672_v3 = vmax.f32 %v5664_v14, 0.0 }
0x1df5   :  { %v5673_v23 = vmax.f32 %v5665_v15, 0.0 }
0x1df6   :  { %v5674_v18 = vmax.f32 %v5666_v17, 0.0 }
0x1df7   :  { %v5677_v11 = vpack.c.bf16 %v5673_v23, %v5671_v13 }
0x1df8   :  { %v5678_v24 = vpack.c.bf16 %v5674_v18, %v5672_v3 }
0x1dfa   :  { %5717 = vmatprep.subr.bf16.mxu0 %v5678_v24 }
0x1dfb   :  { %5718 = vmatpush1.bf16.msra.mxu0 %v5677_v11 }
0x1dfe   :  { %9083 = vmatmul.mubr.msk.bf16.vlgmr.msra.gmra.mrb[100].mxu0 %vm13906_vm13, %v10424_v36  ;;  %vm13911_vm13 = vmmov %vm13910_vm6 }
0x1dff   :  { %5757 = vmatprep.mubr.bf16.mxu0 %v10516_v5 }
0x1e06   :  { %9084 = vmatmul.mubr.msk.bf16.gmra.mrb[104].mxu0 %vm13907_vm3, %v10425_v16  ;;  %vm13912_vm3 = vmmov %vm13910_vm6 }
0x1e07   :  { %5900 = vmatprep.mubr.bf16.mxu0 %v10516_v5 }
0x1ed1   :  { %v5749_v20 = vpop.f32.mrb[100].mxu0 }
0x1ed2   :  { %v5750_v26 = vadd.f32 %v5749_v20, %v5682_v34  ;;  %v5751_v7 = vpop.f32.mrb[101].mxu0  ;;  %v10426_v20 = vld [vmem:[%s13647_s12 + $0x160] sm:$0xff]  }
0x1ed3   :  { %v5752_v27 = vadd.f32 %v5751_v7, %v5682_v34  ;;  %v5753_v50 = vpop.f32.mrb[102].mxu0  ;;  %v10427_v7 = vld [vmem:[%s13647_s12 + $0x168] sm:$0xff]  }
0x1ed4   :  { %v5768_v47 = vadd.f32 %v5750_v26, %v12534_v55  ;;  %v5754_v39 = vadd.f32 %v5753_v50, %v5687_v21  ;;  %v5755_v6 = vpop.f32.mrb[103].mxu0  ;;  %v9097_v26 = vld [vmem:[%s13648_s13 + $0xe0] sm:$0xff]  ;;  %v9100_v50 = vld [vmem:[%s13648_s13 + $0xf8] sm:$0xff] }
0x1ed5   :  { %v5769_v22 = vadd.f32 %v5752_v27, %v12540_v32  ;;  %v5756_v35 = vadd.f32 %v5755_v6, %v5687_v21  ;;  %v9098_v21 = vld [vmem:[%s13648_s13 + $0xe8] sm:$0xff]  ;;  %v9099_v27 = vld [vmem:[%s13648_s13 + $0xf0] sm:$0xff] }
0x1ed6   :  { %v5770_v25 = vadd.f32 %v5754_v39, %v12537_v61  ;;  %v12702_v40 = vmul.f32 %v5768_v47, %v10856_v56  ;;  %v9105_v47 = vld [vmem:[%s13650_s15 + $0xe0] sm:$0xff]  ;;  %v9106_v39 = vld [vmem:[%s13650_s15 + $0xe8] sm:$0xff]  ;;  %v9107_v6 = vld [vmem:[%s13650_s15 + $0xf0] sm:$0xff] }
0x1ed7   :  { %v5771_v37 = vadd.f32 %v5756_v35, %v12543_v29  ;;  %v12708_v62 = vmul.f32 %v5769_v22, %v10859_v59  ;;  %v5697_v29 = vpop.permute.xlu1 %5696  ;;  %v9108_v22 = vld [vmem:[%s13650_s15 + $0xf8] sm:$0xff]  ;;  %v8887_v35 = vld [vmem:[%s13652_s17 + $0x8] sm:$0xff] }
0x1ed8   :  { %v12705_v53 = vmul.f32 %v5770_v25, %v10856_v56  ;;  %v9154_v25 = vld [vmem:[%s13646_s11 + $0x40] sm:$0xff] }
0x1ed9   :  { %v12711_v55 = vmul.f32 %v5771_v37, %v10859_v59  ;;  %v5759_v10 = vpop.f32.mrb[104].mxu0  ;;  %v9155_v37 = vld [vmem:[%s13646_s11 + $0x48] sm:$0xff] }
0x1eda   :  { %v5760_v32 = vadd.f32 %v5759_v10, %v5692_v46  ;;  %v5761_v19 = vpop.f32.mrb[105].mxu0  ;;  %v10132_v61 = vpack.i.bf16 %v12705_v53, %v12702_v40  ;;  %v5848_v13 = vpack.c.bf16 %v12705_v53, %v12702_v40  ;;  %v9157_v10 = vld [vmem:[%s13646_s11 + $0x58] sm:$0xff] }
0x1edb   :  { %v5762_v41 = vadd.f32 %v5761_v19, %v5692_v46  ;;  %v5763_v58 = vpop.f32.mrb[106].mxu0  ;;  %v10137_v14 = vpack.i.bf16 %v12711_v55, %v12708_v62  ;;  %v5849_v57 = vpack.c.bf16 %v12711_v55, %v12708_v62  ;;  %v9156_v46 = vld [vmem:[%s13646_s11 + $0x50] sm:$0xff] }
0x1edc   :  { %v5772_v15 = vadd.f32 %v5760_v32, %v12560_v54  ;;  %v5764_v30 = vadd.f32 %v5763_v58, %v5697_v29  ;;  %v5765_v17 = vpop.f32.mrb[107].mxu0  ;;  %10133 = vrot.lane.b32.xlu0 %v10132_v61, %s13814_s28 }
0x1edd   :  { %v5773_v23 = vadd.f32 %v5762_v41, %v12566_v2  ;;  %v5766_v3 = vadd.f32 %v5765_v17, %v5697_v29  ;;  %10138 = vrot.lane.b32.xlu1 %v10137_v14, %s13814_s28  ;;  %5868 = vmatprep.subr.bf16.mxu0 %v5849_v57 }
0x1ede   :  { %v5774_v18 = vadd.f32 %v5764_v30, %v12563_v8  ;;  %5869 = vmatpush1.bf16.msra.mxu0 %v5848_v13  ;;  %v12728_v54 = vmul.f32 %v5772_v15, %v10856_v56 }
0x1edf   :  { %v5775_v11 = vadd.f32 %v5766_v3, %v12569_v28  ;;  %v12734_v36 = vmul.f32 %v5773_v23, %v10859_v59 }
0x1ee0   :  { %v12731_v24 = vmul.f32 %v5774_v18, %v10856_v56 }
0x1ee1   :  { %v12737_v2 = vmul.f32 %v5775_v11, %v10859_v59 }
0x1ee2   :  { %v10142_v16 = vpack.i.bf16 %v12731_v24, %v12728_v54  ;;  %v5850_v34 = vpack.c.bf16 %v12731_v24, %v12728_v54 }
0x1ee3   :  { %v10147_v8 = vpack.i.bf16 %v12737_v2, %v12734_v36  ;;  %v5851_v28 = vpack.c.bf16 %v12737_v2, %v12734_v36 }
0x1ee4   :  { %10143 = vrot.lane.b32.xlu0 %v10142_v16, %s13814_s28 }
0x1ee5   :  { %10148 = vrot.lane.b32.xlu1 %v10147_v8, %s13814_s28  ;;  %5870 = vmatprep.subr.bf16.mxu0 %v5851_v28 }
0x1ee6   :  { %5871 = vmatpush1.bf16.msra.mxu0 %v5850_v34 }
0x1ee8   :  { %10153 = vrot.lane.b32.xlu0 %v10132_v61, %s13815_s4 }
0x1ee9   :  { %10158 = vrot.lane.b32.xlu1 %v10137_v14, %s13815_s4  ;;  %9111 = vmatmul.mubr.msk.bf16.vlgmr.msra.gmra.mrb[108].mxu0 %vm13908_vm8, %v10426_v20  ;;  %vm13913_vm8 = vmmov %vm13912_vm3 }
0x1eea   :  { %5910 = vmatprep.mubr.bf16.mxu0 %v10516_v5 }
0x1eec   :  { %10163 = vrot.lane.b32.xlu0 %v10142_v16, %s13815_s4 }
0x1eed   :  { %10168 = vrot.lane.b32.xlu1 %v10147_v8, %s13815_s4 }
0x1ef0   :  { %6105 = vperm.xlu0 %9690, %v9097_v26  }
0x1ef1   :  { %6110 = vperm.xlu1 %9691, %v9098_v21   ;;  %9112 = vmatmul.mubr.msk.bf16.gmra.mrb[112].mxu0 %vm13909_vm14, %v10427_v7  ;;  %vm13914_vm14 = vmmov %vm13912_vm3 }
0x1ef2   :  { %5969 = vmatprep.mubr.bf16.mxu0 %v10516_v5 }
0x1ef4   :  { %6115 = vperm.xlu0 %9690, %v9099_v27  }
0x1ef5   :  { %6120 = vperm.xlu1 %9691, %v9100_v50  }
0x1ef8   :  { %6145 = vperm.xlu0 %9690, %v9105_v47  }
0x1ef9   :  { %6150 = vperm.xlu1 %9691, %v9106_v39  }
0x1efc   :  { %6155 = vperm.xlu0 %9690, %v9107_v6  }
0x1efd   :  { %6160 = vperm.xlu1 %9691, %v9108_v22  }
0x1f00   :  { %6254 = vperm.xlu0 %9690, %v8887_v35   ;;  %v10428_v35 = vld [vmem:[%s13647_s12 + $0x150] sm:$0xff]  }
0x1f01   :  { %6368 = vperm.xlu1 %9691, %v9154_v25  }
0x1f04   :  { %6373 = vperm.xlu0 %9690, %v9155_v37  }
0x1f05   :  { %6378 = vperm.xlu1 %9691, %v9156_v46  }
0x1f08   :  { %6383 = vperm.xlu0 %9690, %v9157_v10  }
0x1f4e   :  { %v10134_v32 = vpop.permute.xlu0 %10133 }
0x1f4f   :  { %v10136_v19 = vunpack.i.h.bf16 %v10134_v32  ;;  %v10135_v61 = vunpack.i.l.bf16 %v10134_v32  ;;  %v10139_v29 = vpop.permute.xlu1 %10138 }
0x1f50   :  { %v10141_v41 = vunpack.i.h.bf16 %v10139_v29  ;;  %v10140_v58 = vunpack.i.l.bf16 %v10139_v29 }
0x1f52   :  { %v5828_v14 = vsel %vm13910_vm6, %v10135_v61, %v10140_v58  ;;  %v5829_v57 = vsel %vm13911_vm13, %v10136_v19, %v10141_v41  ;;  %v5832_v15 = vsel %vm13912_vm3, %v10140_v58, %v10135_v61  ;;  %v5833_v30 = vsel %vm13913_vm8, %v10141_v41, %v10136_v19  ;;  %vm13915_vm6 = vmmov %vm13912_vm3 }
0x1f53   :  { %v9116_v17 = vpack.c.bf16 %v5829_v57, %v5828_v14  ;;  %v9119_v13 = vpack.c.bf16 %v5833_v30, %v5832_v15  ;;  %vm13916_vm13 = vmmov %vm13912_vm3  ;;  %vm13917_vm8 = vcmp.lt.s32.totalorder %v10739_v52, 120 }
0x1f55   :  { %9117 = vmatprep.subr.msk.bf16.mxu0 %vm11366_vm1, %v9116_v17 }
0x1f56   :  { %v10144_v23 = vpop.permute.xlu0 %10143  ;;  %9120 = vmatpush1.bf16.msk.msra.mxu0 %vm11370_vm12, %v9119_v13 }
0x1f57   :  { %v10146_v3 = vunpack.i.h.bf16 %v10144_v23  ;;  %v10145_v18 = vunpack.i.l.bf16 %v10144_v23  ;;  %v10149_v11 = vpop.permute.xlu1 %10148 }
0x1f58   :  { %v10151_v16 = vunpack.i.h.bf16 %v10149_v11  ;;  %v10150_v8 = vunpack.i.l.bf16 %v10149_v11  ;;  %v10430_v11 = vld [vmem:[%s13647_s12 + $0x170] sm:$0xff]  }
0x1f5a   :  { %v5830_v28 = vsel %vm13914_vm14, %v10145_v18, %v10150_v8  ;;  %v5831_v34 = vsel %vm13915_vm6, %v10146_v3, %v10151_v16  ;;  %v5834_v20 = vsel %vm13916_vm13, %v10150_v8, %v10145_v18  ;;  %v5835_v26 = vsel %vm13912_vm3, %v10151_v16, %v10146_v3  ;;  %v10154_v7 = vpop.permute.xlu0 %10153  ;;  %vm13918_vm14 = vmmov %vm13917_vm8  ;;  %v10429_v18 = vld [vmem:[%s13647_s12 + $0x158] sm:$0xff]  }
0x1f5b   :  { %v9122_v21 = vpack.c.bf16 %v5831_v34, %v5830_v28  ;;  %v9125_v27 = vpack.c.bf16 %v5835_v26, %v5834_v20  ;;  %v10156_v50 = vunpack.i.h.bf16 %v10154_v7  ;;  %v10155_v47 = vunpack.i.l.bf16 %v10154_v7  ;;  %v10159_v39 = vpop.permute.xlu1 %10158  ;;  %vm13919_vm6 = vmmov %vm13917_vm8  ;;  %v10431_v16 = vld [vmem:[%s13647_s12 + $0x178] sm:$0xff]  }
0x1f5c   :  { %v10161_v6 = vunpack.i.h.bf16 %v10159_v39  ;;  %v10160_v22 = vunpack.i.l.bf16 %v10159_v39  ;;  %vm13920_vm13 = vmmov %vm13919_vm6  ;;  %vm13921_vm3 = vcmask 261120  }
0x1f5d   :  { %9123 = vmatprep.subr.msk.bf16.mxu0 %vm11366_vm1, %v9122_v21 }
0x1f5e   :  { %v6006_v25 = vsel %vm13917_vm8, %v10155_v47, %v10160_v22  ;;  %v6007_v37 = vsel %vm13918_vm14, %v10156_v50, %v10161_v6  ;;  %v6010_v46 = vsel %vm13919_vm6, %v10160_v22, %v10155_v47  ;;  %v6011_v10 = vsel %vm13920_vm13, %v10161_v6, %v10156_v50  ;;  %v10164_v32 = vpop.permute.xlu0 %10163  ;;  %9126 = vmatpush1.bf16.msk.msra.mxu0 %vm11370_vm12, %v9125_v27  ;;  %vm13922_vm8 = vmmov %vm13919_vm6 }
0x1f5f   :  { %v9132_v19 = vpack.c.bf16 %v6011_v10, %v6010_v46  ;;  %v9135_v61 = vpack.c.bf16 %v6007_v37, %v6006_v25  ;;  %v10166_v29 = vunpack.i.h.bf16 %v10164_v32  ;;  %v10165_v41 = vunpack.i.l.bf16 %v10164_v32  ;;  %v10169_v58 = vpop.permute.xlu1 %10168  ;;  %vm13923_vm14 = vmmov %vm13919_vm6 }
0x1f60   :  { %v10171_v14 = vunpack.i.h.bf16 %v10169_v58  ;;  %v10170_v57 = vunpack.i.l.bf16 %v10169_v58  ;;  %vm13924_vm13 = vmmov %vm13919_vm6 }
0x1f61   :  { %9127 = vmatmul.mubr.msk.bf16.vlgmr.msra.gmra.mrb[108].mxu0 %vm13921_vm3, %v10428_v35  ;;  %9133 = vmatprep.subr.msk.bf16.mxu0 %vm11406_vm11, %v9132_v19 }
0x1f62   :  { %v6008_v15 = vsel %vm13922_vm8, %v10165_v41, %v10170_v57  ;;  %v6009_v30 = vsel %vm13923_vm14, %v10166_v29, %v10171_v14  ;;  %v6012_v17 = vsel %vm13919_vm6, %v10170_v57, %v10165_v41  ;;  %v6013_v13 = vsel %vm13924_vm13, %v10171_v14, %v10166_v29  ;;  %9136 = vmatpush1.bf16.msk.msra.mxu0 %vm11413_vm0, %v9135_v61  ;;  %vm13925_vm8 = vmmov %vm13921_vm3 }
0x1f63   :  { %v9138_v23 = vpack.c.bf16 %v6013_v13, %v6012_v17  ;;  %v9141_v3 = vpack.c.bf16 %v6009_v30, %v6008_v15  ;;  %5979 = vmatprep.mubr.bf16.mxu0 %v10516_v5  ;;  %vm13926_vm14 = vmmov %vm13921_vm3 }
0x1f64   :  { %vm13927_vm6 = vmmov %vm13921_vm3 }
0x1f65   :  { %9139 = vmatprep.subr.msk.bf16.mxu0 %vm11406_vm11, %v9138_v23  ;;  %vm13928_vm13 = vmmov %vm13921_vm3 }
0x1f66   :  { %9142 = vmatpush1.bf16.msk.msra.mxu0 %vm11413_vm0, %v9141_v3 }
0x1f69   :  { %9128 = vmatmul.mubr.msk.bf16.gmra.mrb[112].mxu0 %vm13921_vm3, %v10429_v18  ;;  %v10432_v18 = vld [vmem:[%s13649_s14 + $0x70] sm:$0xff]  }
0x1f6a   :  { %6074 = vmatprep.mubr.bf16.mxu0 %v10516_v5 }
0x1f6f   :  { %v6106_v8 = vpop.permute.xlu0 %6105 }
0x1f70   :  { %v6111_v26 = vpop.permute.xlu1 %6110 }
0x1f71   :  { %9143 = vmatmul.mubr.msk.bf16.vlgmr.msra.gmra.mrb[108].mxu0 %vm13925_vm8, %v10430_v11  ;;  %v10433_v11 = vld [vmem:[%s13649_s14 + $0x78] sm:$0xff]   ;;  %vm13929_vm8 = vcmask 1043456  }
0x1f72   :  { %6084 = vmatprep.mubr.bf16.mxu0 %v10516_v5 }
0x1f73   :  { %v6116_v37 = vpop.permute.xlu0 %6115 }
0x1f74   :  { %v6121_v61 = vpop.permute.xlu1 %6120 }
0x1f79   :  { %9144 = vmatmul.mubr.msk.bf16.gmra.mrb[112].mxu0 %vm13926_vm14, %v10431_v16  ;;  %v6146_v16 = vpop.permute.xlu0 %6145  ;;  %vm13930_vm14 = vmmov %vm13929_vm8 }
0x1f7a   :  { %6577 = vmatprep.mubr.bf16.mxu0 %v10516_v5 }
0x2044   :  { %v6076_v28 = vpop.f32.mrb[108].mxu0 }
0x2045   :  { %v6123_v34 = vadd.f32 %v6106_v8, %v6076_v28  ;;  %v6078_v20 = vpop.f32.mrb[109].mxu0 }
0x2046   :  { %v6124_v7 = vadd.f32 %v6106_v8, %v6078_v20  ;;  %v6080_v21 = vpop.f32.mrb[110].mxu0  ;;  %v6151_v20 = vpop.permute.xlu1 %6150 }
0x2047   :  { %v6125_v27 = vadd.f32 %v6111_v26, %v6080_v21  ;;  %v6082_v50 = vpop.f32.mrb[111].mxu0  ;;  %v6131_v39 = vmax.f32 %v6123_v34, 0.0 }
0x2048   :  { %v6126_v47 = vadd.f32 %v6111_v26, %v6082_v50  ;;  %v6132_v22 = vmax.f32 %v6124_v7, 0.0 }
0x2049   :  { %v6133_v6 = vmax.f32 %v6125_v27, 0.0 }
0x204a   :  { %v6134_v35 = vmax.f32 %v6126_v47, 0.0 }
0x204b   :  { %v6139_v25 = vpack.c.bf16 %v6133_v6, %v6131_v39 }
0x204c   :  { %v6140_v46 = vpack.c.bf16 %v6134_v35, %v6132_v22  ;;  %v6086_v10 = vpop.f32.mrb[112].mxu0 }
0x204d   :  { %v6127_v32 = vadd.f32 %v6116_v37, %v6086_v10  ;;  %v6088_v19 = vpop.f32.mrb[113].mxu0 }
0x204e   :  { %v6128_v29 = vadd.f32 %v6116_v37, %v6088_v19  ;;  %v6090_v41 = vpop.f32.mrb[114].mxu0  ;;  %6179 = vmatprep.subr.bf16.mxu1 %v6140_v46  ;;  %v6156_v37 = vpop.permute.xlu0 %6155 }
0x204f   :  { %v6129_v58 = vadd.f32 %v6121_v61, %v6090_v41  ;;  %v6092_v14 = vpop.f32.mrb[115].mxu0  ;;  %6180 = vmatpush1.bf16.msra.mxu1 %v6139_v25  ;;  %v6135_v15 = vmax.f32 %v6127_v32, 0.0 }
0x2050   :  { %v6130_v57 = vadd.f32 %v6121_v61, %v6092_v14  ;;  %v6136_v17 = vmax.f32 %v6128_v29, 0.0  ;;  %v6161_v29 = vpop.permute.xlu1 %6160 }
0x2051   :  { %v6137_v30 = vmax.f32 %v6129_v58, 0.0 }
0x2052   :  { %v6138_v13 = vmax.f32 %v6130_v57, 0.0 }
0x2053   :  { %v6141_v23 = vpack.c.bf16 %v6137_v30, %v6135_v15 }
0x2054   :  { %v6142_v3 = vpack.c.bf16 %v6138_v13, %v6136_v17 }
0x2056   :  { %6181 = vmatprep.subr.bf16.mxu1 %v6142_v3 }
0x2057   :  { %6182 = vmatpush1.bf16.msra.mxu1 %v6141_v23 }
0x205a   :  { %9147 = vmatmul.mubr.msk.bf16.vlgmr.msra.gmra.mrb[100].mxu1 %vm13927_vm6, %v10432_v18  ;;  %vm13931_vm6 = vcmask 64512  }
0x205b   :  { %6221 = vmatprep.mubr.bf16.mxu1 %v10516_v5 }
0x2062   :  { %9148 = vmatmul.mubr.msk.bf16.gmra.mrb[104].mxu1 %vm13928_vm13, %v10433_v11  ;;  %vm13932_vm13 = vmmov %vm13931_vm6 }
0x2063   :  { %6292 = vmatprep.mubr.bf16.mxu1 %v10516_v5 }
0x212d   :  { %v6213_v8 = vpop.f32.mrb[100].mxu1 }
0x212e   :  { %v6214_v28 = vadd.f32 %v6213_v8, %v6146_v16  ;;  %v6215_v34 = vpop.f32.mrb[101].mxu1 }
0x212f   :  { %v6216_v26 = vadd.f32 %v6215_v34, %v6146_v16  ;;  %v6217_v7 = vpop.f32.mrb[102].mxu1 }
0x2130   :  { %v6232_v21 = vadd.f32 %v6214_v28, %v12702_v40  ;;  %v6218_v27 = vadd.f32 %v6217_v7, %v6151_v20  ;;  %v6219_v50 = vpop.f32.mrb[103].mxu1 }
0x2131   :  { %v6233_v47 = vadd.f32 %v6216_v26, %v12708_v62  ;;  %v6220_v39 = vadd.f32 %v6219_v50, %v6151_v20 }
0x2132   :  { %v6234_v6 = vadd.f32 %v6218_v27, %v12705_v53  ;;  %v6240_v35 = vmul.f32 %v6232_v21, %v10856_v56 }
0x2133   :  { %v6235_v22 = vadd.f32 %v6220_v39, %v12711_v55  ;;  %v6241_v46 = vmul.f32 %v6233_v47, %v10859_v59 }
0x2134   :  { %v6242_v25 = vmul.f32 %v6234_v6, %v10856_v56 }
0x2135   :  { %v6243_v10 = vmul.f32 %v6235_v22, %v10859_v59  ;;  %v6223_v32 = vpop.f32.mrb[104].mxu1 }
0x2136   :  { %v6248_v40 = vpack.c.bf16 %v6242_v25, %v6240_v35  ;;  %v6224_v19 = vadd.f32 %v6223_v32, %v6156_v37  ;;  %v6225_v61 = vpop.f32.mrb[105].mxu1 }
0x2137   :  { %v6226_v62 = vadd.f32 %v6225_v61, %v6156_v37  ;;  %v6227_v41 = vpop.f32.mrb[106].mxu1  ;;  %v6249_v58 = vpack.c.bf16 %v6243_v10, %v6241_v46 }
0x2138   :  { %v6236_v53 = vadd.f32 %v6224_v19, %v12728_v54  ;;  %v6228_v55 = vadd.f32 %v6227_v41, %v6161_v29  ;;  %v6229_v14 = vpop.f32.mrb[107].mxu1 }
0x2139   :  { %v6237_v57 = vadd.f32 %v6226_v62, %v12734_v36  ;;  %v6230_v15 = vadd.f32 %v6229_v14, %v6161_v29  ;;  %6260 = vmatprep.subr.bf16.mxu1 %v6249_v58  ;;  %v8886_v36 = vld [vmem:[%s13651_s16 + $0x4] sm:$0xf] }
0x213a   :  { %v6238_v30 = vadd.f32 %v6228_v55, %v12731_v24  ;;  %6261 = vmatpush1.bf16.msra.mxu1 %v6248_v40  ;;  %v6244_v13 = vmul.f32 %v6236_v53, %v10856_v56  ;;  %v6255_v24 = vpop.permute.xlu0 %6254 }
0x213b   :  { %v6239_v17 = vadd.f32 %v6230_v15, %v12737_v2  ;;  %v6245_v3 = vmul.f32 %v6237_v57, %v10859_v59 }
0x213c   :  { %v6246_v23 = vmul.f32 %v6238_v30, %v10856_v56 }
0x213d   :  { %v6247_v18 = vmul.f32 %v6239_v17, %v10859_v59 }
0x213e   :  { %v6250_v54 = vpack.c.bf16 %v6246_v23, %v6244_v13 }
0x213f   :  { %v6251_v11 = vpack.c.bf16 %v6247_v18, %v6245_v3 }
0x2141   :  { %6262 = vmatprep.subr.bf16.mxu1 %v6251_v11 }
0x2142   :  { %6263 = vmatpush1.bf16.msra.mxu1 %v6250_v54 }
0x2145   :  { %9149 = vmatmul.mubr.msk.bf16.vlgmr.msra.gmra.mrb[108].mxu1 %vm13921_vm3, %v8886_v36 }
0x2146   :  { %6440 = vmatprep.mubr.bf16.mxu1 %v10516_v5 }
0x2218   :  { %v6294_v2 = vpop.f32.mrb[108].mxu1 }
0x2219   :  { %v6295_v16 = vadd.f32 %v6294_v2, %v6255_v24  ;;  %v6296_v8 = vpop.f32.mrb[109].mxu1 }
0x221a   :  { %v6297_v28 = vadd.f32 %v6296_v8, %v6255_v24  ;;  %v6298_v34 = vpop.f32.mrb[110].mxu1 }
0x221b   :  { %v6301_v20 = vmul.f32 %v6295_v16, %v10856_v56  ;;  %v6299_v26 = vpop.f32.mrb[111].mxu1 }
0x221c   :  { %v6302_v7 = vmul.f32 %v6297_v28, %v10859_v59  ;;  %v10434_v26 = vld [vmem:[%s13645_s10 + $0x20] sm:$0xff]  }
0x221d   :  { %6304 = vst [vmem:[#allocation2 + $0x20] sm:$0xff] %v6301_v20  ;;  %v6306_v21 = vrot.slane %v6301_v20, 4 }
0x221e   :  { %6305 = vst [vmem:[#allocation2 + $0x28] sm:$0xff] %v6302_v7  ;;  %v6312_v27 = vrot.slane %v6302_v7, 4 }
0x221f   :  { %v6307_v50 = vmax.f32 %v6301_v20, %v6306_v21  ;;  %v6369_v21 = vpop.permute.xlu1 %6368 }
0x2220   :  { %v6313_v47 = vmax.f32 %v6302_v7, %v6312_v27 }
0x2221   :  { %v6308_v39 = vrot.slane %v6307_v50, 2 }
0x2222   :  { %v6314_v6 = vrot.slane %v6313_v47, 2 }
0x2223   :  { %v6309_v22 = vmax.f32 %v6307_v50, %v6308_v39  ;;  %v6374_v50 = vpop.permute.xlu0 %6373 }
0x2224   :  { %v6315_v35 = vmax.f32 %v6313_v47, %v6314_v6 }
0x2225   :  { %v6310_v25 = vrot.slane %v6309_v22, 1 }
0x2226   :  { %v6316_v37 = vrot.slane %v6315_v35, 1 }
0x2227   :  { %v6311_v46 = vmax.f32 %v6309_v22, %v6310_v25 }
0x2228   :  { %v6317_v10 = vmax.f32 %v6315_v35, %v6316_v37 }
0x2229   :  { %v6318_v32 = vsub.f32 %v6301_v20, %v6311_v46 }
0x222a   :  { %v6319_v40 = vsub.f32 %v6302_v7, %v6317_v10 }
0x222b   :  { %v6320_v19 = vmul.f32 1.442695, %v6318_v32 }
0x222c   :  { %v6322_v61 = vmul.f32 1.442695, %v6319_v40 }
0x222d   :  { %10484 = vpow2.f32 %v6320_v19  ;;  %v6379_v19 = vpop.permute.xlu1 %6378 }
0x222e   :  { %10486 = vpow2.f32 %v6322_v61 }
0x2237   :  { %v10485_v29 = vpop.eup %10484 }
0x2238   :  { %v10487_v62 = vpop.eup %10486  ;;  %v6324_v41 = vrot.slane %v10485_v29, 4 }
0x2239   :  { %v6330_v58 = vrot.slane %v10487_v62, 4 }
0x223a   :  { %v6325_v53 = vadd.f32 %v10485_v29, %v6324_v41 }
0x223b   :  { %v6331_v55 = vadd.f32 %v10487_v62, %v6330_v58 }
0x223c   :  { %v6326_v14 = vrot.slane %v6325_v53, 2 }
0x223d   :  { %v6332_v57 = vrot.slane %v6331_v55, 2 }
0x223e   :  { %v6327_v15 = vadd.f32 %v6326_v14, %v6325_v53 }
0x223f   :  { %v6333_v30 = vadd.f32 %v6332_v57, %v6331_v55 }
0x2240   :  { %v6328_v17 = vrot.slane %v6327_v15, 1 }
0x2241   :  { %v6334_v13 = vrot.slane %v6333_v30, 1 }
0x2242   :  { %v6329_v23 = vadd.f32 %v6328_v17, %v6327_v15 }
0x2243   :  { %v6335_v3 = vadd.f32 %v6334_v13, %v6333_v30  ;;  %v10436_v13 = vld [vmem:[%s13647_s12 + $0x190] sm:$0xff]  }
0x2244   :  { %10488 = vrcp.f32 %v6329_v23  ;;  %v9177_v23 = vld [vmem:[%s13648_s13 + $0x100] sm:$0xff] }
0x2245   :  { %10490 = vrcp.f32 %v6335_v3  ;;  %v10437_v3 = vld [vmem:[%s13647_s12 + $0x198] sm:$0xff]  }
0x224e   :  { %v10489_v18 = vpop.eup %10488 }
0x224f   :  { %v10491_v54 = vpop.eup %10490  ;;  %v6338_v11 = vmul.f32 %v10489_v18, %v10856_v56  ;;  %v9178_v18 = vld [vmem:[%s13648_s13 + $0x108] sm:$0xff] }
0x2250   :  { %v6339_v36 = vmul.f32 %v10491_v54, %v10859_v59  ;;  %v9179_v54 = vld [vmem:[%s13648_s13 + $0x110] sm:$0xff] }
0x2251   :  { %v6343_v24 = vrot.slane %v6338_v11, %v10850_v42  ;;  %v9180_v11 = vld [vmem:[%s13648_s13 + $0x118] sm:$0xff] }
0x2252   :  { %v6347_v2 = vrot.slane %v6339_v36, %v10850_v42  ;;  %v10435_v42 = vld [vmem:[%s13645_s10 + $0x28] sm:$0xff]   ;;  %v9185_v36 = vld [vmem:[%s13650_s15 + $0x100] sm:$0xff]  ;;  %s10525_s10 = smov [#allocation2]  }
0x2253   :  { %v6348_v16 = vmul.f32 %v10485_v29, %v6343_v24  ;;  %v6384_v29 = vpop.permute.xlu0 %6383  ;;  %v9186_v24 = vld [vmem:[%s13650_s15 + $0x108] sm:$0xff] }
0x2254   :  { %v6349_v8 = vmul.f32 %v10487_v62, %v6347_v2  ;;  %v9187_v2 = vld [vmem:[%s13650_s15 + $0x110] sm:$0xff] }
0x2255   :  { %v6364_v28 = vpack.c.bf16 %v6348_v16, %v6348_v16  ;;  %v9188_v16 = vld [vmem:[%s13650_s15 + $0x118] sm:$0xff] }
0x2256   :  { %v6365_v34 = vpack.c.bf16 %v6349_v8, %v6349_v8 }
0x2257   :  { %v6403_v20 = vsel %vm13929_vm8, %v6364_v28, 0  ;;  %vm13933_vm8 = vmmov %vm13921_vm3 }
0x2258   :  { %9162 = vmatprep.subr.msk.bf16.mxu1 %vm13930_vm14, %v6365_v34  ;;  %vm13934_vm14 = vcmp.lt.s32.totalorder %v10739_v52, 1 }
0x2259   :  { %6409 = vmatpush1.bf16.msra.mxu1 %v6403_v20 }
0x225c   :  { %9163 = vmatmul.mubr.msk.bf16.vlgmr.msra.gmra.mrb[112].mxu1 %vm13931_vm6, %v10434_v26  ;;  %vm13935_vm6 = vmmov %vm13934_vm14 }
0x225d   :  { %6450 = vmatprep.mubr.bf16.mxu1 %v10516_v5 }
0x2264   :  { %9164 = vmatmul.mubr.msk.bf16.gmra.mrb[116].mxu1 %vm13932_vm13, %v10435_v42  ;;  %vm13936_vm13 = vmmov %vm13935_vm6 }
0x2265   :  { %6888 = vmatprep.mubr.bf16.mxu1 %v10516_v5 }
0x232f   :  { %v6442_v7 = vpop.f32.mrb[112].mxu1 }
0x2330   :  { %v6444_v27 = vpop.f32.mrb[113].mxu1  ;;  %v12919_v39 = vadd.f32 %v6442_v7, %v6369_v21 }
0x2331   :  { %v6446_v47 = vpop.f32.mrb[114].mxu1  ;;  %v12923_v35 = vadd.f32 %v6444_v27, %v6369_v21 }
0x2332   :  { %v12921_v6 = vadd.f32 %v6446_v47, %v6374_v50  ;;  %v6448_v22 = vpop.f32.mrb[115].mxu1 }
0x2333   :  { %v12925_v25 = vadd.f32 %v6448_v22, %v6374_v50 }
0x2334   :  { %v10172_v37 = vpack.i.bf16 %v12921_v6, %v12919_v39  ;;  %v6525_v32 = vpack.c.bf16 %v12921_v6, %v12919_v39 }
0x2335   :  { %v10177_v46 = vpack.i.bf16 %v12925_v25, %v12923_v35  ;;  %v6526_v10 = vpack.c.bf16 %v12925_v25, %v12923_v35 }
0x2336   :  { %10173 = vrot.lane.b32.xlu1 %v10172_v37, %s10517_s24 }
0x2337   :  { %v6452_v40 = vpop.f32.mrb[116].mxu1  ;;  %10178 = vrot.lane.b32.xlu0 %v10177_v46, %s10517_s24  ;;  %6545 = vmatprep.subr.bf16.mxu0 %v6526_v10 }
0x2338   :  { %v6454_v61 = vpop.f32.mrb[117].mxu1  ;;  %6546 = vmatpush1.bf16.msra.mxu0 %v6525_v32  ;;  %v12937_v41 = vadd.f32 %v6452_v40, %v6379_v19 }
0x2339   :  { %v6456_v62 = vpop.f32.mrb[118].mxu1  ;;  %v12941_v55 = vadd.f32 %v6454_v61, %v6379_v19 }
0x233a   :  { %v12939_v58 = vadd.f32 %v6456_v62, %v6384_v29  ;;  %v6458_v53 = vpop.f32.mrb[119].mxu1 }
0x233b   :  { %v12943_v14 = vadd.f32 %v6458_v53, %v6384_v29 }
0x233c   :  { %v10182_v57 = vpack.i.bf16 %v12939_v58, %v12937_v41  ;;  %v6527_v17 = vpack.c.bf16 %v12939_v58, %v12937_v41 }
0x233d   :  { %v10187_v15 = vpack.i.bf16 %v12943_v14, %v12941_v55  ;;  %v6528_v30 = vpack.c.bf16 %v12943_v14, %v12941_v55 }
0x233e   :  { %10183 = vrot.lane.b32.xlu1 %v10182_v57, %s10517_s24 }
0x233f   :  { %10188 = vrot.lane.b32.xlu0 %v10187_v15, %s10517_s24  ;;  %6547 = vmatprep.subr.bf16.mxu0 %v6528_v30 }
0x2340   :  { %6548 = vmatpush1.bf16.msra.mxu0 %v6527_v17 }
0x2342   :  { %10193 = vrot.lane.b32.xlu1 %v10172_v37, %s10518_s26 }
0x2343   :  { %10198 = vrot.lane.b32.xlu0 %v10177_v46, %s10518_s26  ;;  %9191 = vmatmul.mubr.msk.bf16.vlgmr.msra.gmra.mrb[116].mxu0 %vm13921_vm3, %v10436_v13  ;;  %vm13937_vm3 = vmmov %vm13935_vm6 }
0x2344   :  { %6587 = vmatprep.mubr.bf16.mxu0 %v10516_v5 }
0x2346   :  { %10203 = vrot.lane.b32.xlu1 %v10182_v57, %s10518_s26 }
0x2347   :  { %10208 = vrot.lane.b32.xlu0 %v10187_v15, %s10518_s26 }
0x234a   :  { %6782 = vperm.xlu1 %9691, %v9177_v23  }
0x234b   :  { %6787 = vperm.xlu0 %9690, %v9178_v18   ;;  %9192 = vmatmul.mubr.msk.bf16.gmra.mrb[120].mxu0 %vm13933_vm8, %v10437_v3  ;;  %vm13938_vm8 = vnez %v13708_v4 }
0x234c   :  { %6646 = vmatprep.mubr.bf16.mxu0 %v10516_v5 }
0x234e   :  { %6792 = vperm.xlu1 %9691, %v9179_v54   ;;  %v10438_v54 = vld [vmem:[%s13647_s12 + $0x180] sm:$0xff]  }
0x234f   :  { %6797 = vperm.xlu0 %9690, %v9180_v11  }
0x2352   :  { %6822 = vperm.xlu1 %9691, %v9185_v36  }
0x2353   :  { %6827 = vperm.xlu0 %9690, %v9186_v24  }
0x2356   :  { %6832 = vperm.xlu1 %9691, %v9187_v2  }
0x2357   :  { %6837 = vperm.xlu0 %9690, %v9188_v16  }
0x23a8   :  { %v10174_v8 = vpop.permute.xlu1 %10173 }
0x23a9   :  { %v10176_v28 = vunpack.i.h.bf16 %v10174_v8  ;;  %v10175_v34 = vunpack.i.l.bf16 %v10174_v8  ;;  %v10179_v20 = vpop.permute.xlu0 %10178 }
0x23aa   :  { %v10181_v26 = vunpack.i.h.bf16 %v10179_v20  ;;  %v10180_v42 = vunpack.i.l.bf16 %v10179_v20 }
0x23ac   :  { %v6505_v7 = vsel %vm13934_vm14, %v10175_v34, %v10180_v42  ;;  %v6506_v21 = vsel %vm13935_vm6, %v10176_v28, %v10181_v26  ;;  %v6509_v27 = vsel %vm13936_vm13, %v10180_v42, %v10175_v34  ;;  %v6510_v50 = vsel %vm13937_vm3, %v10181_v26, %v10176_v28  ;;  %vm13939_vm14 = vmmov %vm13937_vm3 }
0x23ad   :  { %v9196_v47 = vpack.c.bf16 %v6506_v21, %v6505_v7  ;;  %v9199_v22 = vpack.c.bf16 %v6510_v50, %v6509_v27  ;;  %vm13940_vm6 = vmmov %vm13937_vm3 }
0x23ae   :  { %vm13941_vm13 = vmmov %vm13937_vm3 }
0x23af   :  { %9197 = vmatprep.subr.msk.bf16.mxu0 %vm10755_vm5, %v9196_v47 }
0x23b0   :  { %v10184_v37 = vpop.permute.xlu1 %10183  ;;  %9200 = vmatpush1.bf16.msk.msra.mxu0 %vm13938_vm8, %v9199_v22  ;;  %v10439_v22 = vld [vmem:[%s13647_s12 + $0x188] sm:$0xff]  }
0x23b1   :  { %v10186_v46 = vunpack.i.h.bf16 %v10184_v37  ;;  %v10185_v10 = vunpack.i.l.bf16 %v10184_v37  ;;  %v10189_v32 = vpop.permute.xlu0 %10188  ;;  %v10440_v37 = vld [vmem:[%s13647_s12 + $0x1a0] sm:$0xff]  }
0x23b2   :  { %v10191_v40 = vunpack.i.h.bf16 %v10189_v32  ;;  %v10190_v19 = vunpack.i.l.bf16 %v10189_v32 }
0x23b4   :  { %v6507_v61 = vsel %vm13939_vm14, %v10185_v10, %v10190_v19  ;;  %v6508_v29 = vsel %vm13940_vm6, %v10186_v46, %v10191_v40  ;;  %v6511_v62 = vsel %vm13941_vm13, %v10190_v19, %v10185_v10  ;;  %v6512_v53 = vsel %vm13937_vm3, %v10191_v40, %v10186_v46  ;;  %v10194_v57 = vpop.permute.xlu1 %10193 }
0x23b5   :  { %v9202_v15 = vpack.c.bf16 %v6508_v29, %v6507_v61  ;;  %v9205_v30 = vpack.c.bf16 %v6512_v53, %v6511_v62  ;;  %v10196_v17 = vunpack.i.h.bf16 %v10194_v57  ;;  %v10195_v13 = vunpack.i.l.bf16 %v10194_v57  ;;  %v10199_v23 = vpop.permute.xlu0 %10198 }
0x23b6   :  { %v10201_v3 = vunpack.i.h.bf16 %v10199_v23  ;;  %v10200_v18 = vunpack.i.l.bf16 %v10199_v23  ;;  %vm13942_vm14 = vcmp.lt.s32.totalorder %v10739_v52, 127 }
0x23b7   :  { %9203 = vmatprep.subr.msk.bf16.mxu0 %vm10755_vm5, %v9202_v15  ;;  %vm13943_vm6 = vmmov %vm13942_vm14  ;;  %vm13946_vm5 = vcmask 261120  }
0x23b8   :  { %v6683_v11 = vsel %vm13942_vm14, %v10195_v13, %v10200_v18  ;;  %v6684_v36 = vsel %vm13943_vm6, %v10196_v17, %v10201_v3  ;;  %vm13944_vm13 = vmmov %vm13943_vm6  ;;  %v10204_v16 = vpop.permute.xlu1 %10203  ;;  %9206 = vmatpush1.bf16.msk.msra.mxu0 %vm13938_vm8, %v9205_v30 }
0x23b9   :  { %v6687_v24 = vsel %vm13944_vm13, %v10200_v18, %v10195_v13  ;;  %vm13945_vm3 = vmmov %vm13943_vm6  ;;  %v9215_v8 = vpack.c.bf16 %v6684_v36, %v6683_v11  ;;  %v10206_v28 = vunpack.i.h.bf16 %v10204_v16  ;;  %v10205_v34 = vunpack.i.l.bf16 %v10204_v16  ;;  %v10209_v20 = vpop.permute.xlu0 %10208 }
0x23ba   :  { %v6688_v2 = vsel %vm13945_vm3, %v10201_v3, %v10196_v17  ;;  %v10211_v26 = vunpack.i.h.bf16 %v10209_v20  ;;  %v10210_v42 = vunpack.i.l.bf16 %v10209_v20  ;;  %vm13947_vm14 = vmmov %vm13945_vm3 }
0x23bb   :  { %v9212_v1 = vpack.c.bf16 %v6688_v2, %v6687_v24  ;;  %9207 = vmatmul.mubr.msk.bf16.vlgmr.msra.gmra.mrb[116].mxu0 %vm13946_vm5, %v10438_v54  ;;  %vm13948_vm6 = vmmov %vm13945_vm3 }
0x23bc   :  { %v6685_v7 = vsel %vm13947_vm14, %v10205_v34, %v10210_v42  ;;  %v6686_v21 = vsel %vm13948_vm6, %v10206_v28, %v10211_v26  ;;  %vm13949_vm8 = vmmov %vm13945_vm3  ;;  %6656 = vmatprep.mubr.bf16.mxu0 %v10516_v5 }
0x23bd   :  { %9213 = vmatprep.subr.msk.bf16.mxu0 %vm10795_vm9, %v9212_v1  ;;  %v6689_v4 = vsel %vm13949_vm8, %v10210_v42, %v10205_v34  ;;  %vm13950_vm13 = vmmov %vm13945_vm3  ;;  %v9221_v47 = vpack.c.bf16 %v6686_v21, %v6685_v7  ;;  %v10442_v21 = vld [vmem:[%s13649_s14 + $0x80] sm:$0xff]  }
0x23be   :  { %v6690_v27 = vsel %vm13950_vm13, %v10211_v26, %v10206_v28  ;;  %9216 = vmatpush1.bf16.msk.msra.mxu0 %vm10802_vm10, %v9215_v8  ;;  %vm13951_vm3 = vmmov %vm13946_vm5  ;;  %vm13958_vm13 = vcmp.lt.s32.totalorder %v10739_v52, 2 }
0x23bf   :  { %v9218_v50 = vpack.c.bf16 %v6690_v27, %v6689_v4  ;;  %vm13952_vm5 = vmmov %vm13951_vm3  ;;  %v10443_v4 = vld [vmem:[%s13649_s14 + $0x88] sm:$0xff]  }
0x23c0   :  { %vm13955_vm14 = vmmov %vm13951_vm3 }
0x23c1   :  { %9219 = vmatprep.subr.msk.bf16.mxu0 %vm10795_vm9, %v9218_v50  ;;  %vm13953_vm9 = vmmov %vm13951_vm3 }
0x23c2   :  { %9222 = vmatpush1.bf16.msk.msra.mxu0 %vm10802_vm10, %v9221_v47  ;;  %vm13954_vm10 = vmmov %vm13951_vm3 }
0x23c3   :  { %9208 = vmatmul.mubr.msk.bf16.gmra.mrb[120].mxu0 %vm13951_vm3, %v10439_v22  ;;  %vm13956_vm6 = vmmov %vm13951_vm3 }
0x23c4   :  { %6751 = vmatprep.mubr.bf16.mxu0 %v10516_v5  ;;  %vm13957_vm8 = vmmov %vm13951_vm3 }
0x23c5   :  { %vm13959_vm3 = vmmov %vm13958_vm13 }
0x23c9   :  { %v6783_v44 = vpop.permute.xlu1 %6782 }
0x23ca   :  { %v6788_v40 = vpop.permute.xlu0 %6787 }
0x23cb   :  { %9223 = vmatmul.mubr.msk.bf16.vlgmr.msra.gmra.mrb[116].mxu0 %vm13952_vm5, %v10440_v37  ;;  %vm13960_vm5 = vmmov %vm13959_vm3 }
0x23cc   :  { %6761 = vmatprep.mubr.bf16.mxu0 %v10516_v5 }
0x23cd   :  { %v6793_v23 = vpop.permute.xlu1 %6792 }
0x23ce   :  { %v6798_v36 = vpop.permute.xlu0 %6797 }
0x23d1   :  { %v6823_v27 = vpop.permute.xlu1 %6822 }
0x23d2   :  { %v6828_v37 = vpop.permute.xlu0 %6827 }
0x23d3   :  { %9224 = vmatmul.mubr.msk.bf16.gmra.mrb[120].mxu0 %vm13953_vm9, %v10441_v38  ;;  %vm13961_vm9 = vmmov %vm13959_vm3 }
0x23d4   :  { %7352 = vmatprep.mubr.bf16.mxu0 %v10516_v5 }
0x249e   :  { %v6753_v46 = vpop.f32.mrb[116].mxu0 }
0x249f   :  { %v6800_v10 = vadd.f32 %v6783_v44, %v6753_v46  ;;  %v6755_v32 = vpop.f32.mrb[117].mxu0 }
0x24a0   :  { %v6801_v19 = vadd.f32 %v6783_v44, %v6755_v32  ;;  %v6757_v61 = vpop.f32.mrb[118].mxu0 }
0x24a1   :  { %v6802_v29 = vadd.f32 %v6788_v40, %v6757_v61  ;;  %v6759_v62 = vpop.f32.mrb[119].mxu0  ;;  %v6808_v57 = vmax.f32 %v6800_v10, 0.0 }
0x24a2   :  { %v6803_v53 = vadd.f32 %v6788_v40, %v6759_v62  ;;  %v6809_v30 = vmax.f32 %v6801_v19, 0.0 }
0x24a3   :  { %v6810_v15 = vmax.f32 %v6802_v29, 0.0 }
0x24a4   :  { %v6811_v17 = vmax.f32 %v6803_v53, 0.0 }
0x24a5   :  { %v6816_v13 = vpack.c.bf16 %v6810_v15, %v6808_v57  ;;  %v6833_v57 = vpop.permute.xlu1 %6832 }
0x24a6   :  { %v6817_v3 = vpack.c.bf16 %v6811_v17, %v6809_v30  ;;  %v6763_v18 = vpop.f32.mrb[120].mxu0 }
0x24a7   :  { %v6804_v54 = vadd.f32 %v6793_v23, %v6763_v18  ;;  %v6765_v11 = vpop.f32.mrb[121].mxu0 }
0x24a8   :  { %v6805_v24 = vadd.f32 %v6793_v23, %v6765_v11  ;;  %v6767_v2 = vpop.f32.mrb[122].mxu0  ;;  %6856 = vmatprep.subr.bf16.mxu1 %v6817_v3 }
0x24a9   :  { %v6806_v16 = vadd.f32 %v6798_v36, %v6767_v2  ;;  %v6769_v1 = vpop.f32.mrb[123].mxu0  ;;  %6857 = vmatpush1.bf16.msra.mxu1 %v6816_v13  ;;  %v6812_v28 = vmax.f32 %v6804_v54, 0.0 }
0x24aa   :  { %v6807_v8 = vadd.f32 %v6798_v36, %v6769_v1  ;;  %v6813_v20 = vmax.f32 %v6805_v24, 0.0 }
0x24ab   :  { %v6814_v34 = vmax.f32 %v6806_v16, 0.0 }
0x24ac   :  { %v6815_v26 = vmax.f32 %v6807_v8, 0.0 }
0x24ad   :  { %v6818_v42 = vpack.c.bf16 %v6814_v34, %v6812_v28 }
0x24ae   :  { %v6819_v7 = vpack.c.bf16 %v6815_v26, %v6813_v20 }
0x24b0   :  { %6858 = vmatprep.subr.bf16.mxu1 %v6819_v7  ;;  %v9241_v7 = vld [vmem:[%s13648_s13 + $0x120] sm:$0xff] }
0x24b1   :  { %6859 = vmatpush1.bf16.msra.mxu1 %v6818_v42  ;;  %v10444_v42 = vld [vmem:[%s13647_s12 + $0x1c0] sm:$0xff]  }
0x24b4   :  { %9227 = vmatmul.mubr.msk.bf16.vlgmr.msra.gmra.mrb[120].mxu1 %vm13954_vm10, %v10442_v21  ;;  %v10445_v21 = vld [vmem:[%s13647_s12 + $0x1c8] sm:$0xff]   ;;  %vm13962_vm10 = vnez %v13715_v60 }
0x24b5   :  { %6898 = vmatprep.mubr.bf16.mxu1 %v10516_v5 }
0x24bc   :  { %9228 = vmatmul.mubr.msk.bf16.gmra.mrb[124].mxu1 %vm13955_vm14, %v10443_v4  ;;  %v9242_v4 = vld [vmem:[%s13648_s13 + $0x128] sm:$0xff]  ;;  %vm13963_vm14 = vnez %v13717_v63 }
0x24bd   :  { %7041 = vmatprep.mubr.bf16.mxu1 %v10516_v5 }
0x2587   :  { %v6890_v50 = vpop.f32.mrb[120].mxu1 }
0x2588   :  { %v6891_v47 = vadd.f32 %v6890_v50, %v6823_v27  ;;  %v6892_v22 = vpop.f32.mrb[121].mxu1  ;;  %v9244_v50 = vld [vmem:[%s13648_s13 + $0x138] sm:$0xff] }
0x2589   :  { %v6893_v38 = vadd.f32 %v6892_v22, %v6823_v27  ;;  %v6894_v44 = vpop.f32.mrb[122].mxu1  ;;  %v9243_v27 = vld [vmem:[%s13648_s13 + $0x130] sm:$0xff]  ;;  %v9250_v22 = vld [vmem:[%s13650_s15 + $0x128] sm:$0xff] }
0x258a   :  { %v6909_v46 = vadd.f32 %v6891_v47, %v12919_v39  ;;  %v6895_v10 = vadd.f32 %v6894_v44, %v6828_v37  ;;  %v6896_v32 = vpop.f32.mrb[123].mxu1  ;;  %v9249_v47 = vld [vmem:[%s13650_s15 + $0x120] sm:$0xff] }
0x258b   :  { %v6910_v40 = vadd.f32 %v6893_v38, %v12923_v35  ;;  %v6897_v19 = vadd.f32 %v6896_v32, %v6828_v37  ;;  %v9251_v37 = vld [vmem:[%s13650_s15 + $0x130] sm:$0xff]  ;;  %v9252_v38 = vld [vmem:[%s13650_s15 + $0x138] sm:$0xff] }
0x258c   :  { %v6911_v61 = vadd.f32 %v6895_v10, %v12921_v6  ;;  %v13076_v62 = vmul.f32 %v6909_v46, %v10856_v56 }
0x258d   :  { %v6912_v29 = vadd.f32 %v6897_v19, %v12925_v25  ;;  %v13082_v15 = vmul.f32 %v6910_v40, %v10859_v59  ;;  %v6838_v25 = vpop.permute.xlu0 %6837 }
0x258e   :  { %v13079_v53 = vmul.f32 %v6911_v61, %v10856_v56 }
0x258f   :  { %v13085_v39 = vmul.f32 %v6912_v29, %v10859_v59  ;;  %v6900_v30 = vpop.f32.mrb[124].mxu1 }
0x2590   :  { %v6901_v35 = vadd.f32 %v6900_v30, %v6833_v57  ;;  %v6902_v17 = vpop.f32.mrb[125].mxu1  ;;  %v10212_v6 = vpack.i.bf16 %v13079_v53, %v13076_v62  ;;  %v6989_v24 = vpack.c.bf16 %v13079_v53, %v13076_v62 }
0x2591   :  { %v6903_v13 = vadd.f32 %v6902_v17, %v6833_v57  ;;  %v6904_v23 = vpop.f32.mrb[126].mxu1  ;;  %v10217_v3 = vpack.i.bf16 %v13085_v39, %v13082_v15  ;;  %v6990_v18 = vpack.c.bf16 %v13085_v39, %v13082_v15 }
0x2592   :  { %v6913_v54 = vadd.f32 %v6901_v35, %v12937_v41  ;;  %v6905_v11 = vadd.f32 %v6904_v23, %v6838_v25  ;;  %v6906_v36 = vpop.f32.mrb[127].mxu1  ;;  %10213 = vrot.lane.b32.xlu1 %v10212_v6, %s10519_s1 }
0x2593   :  { %v6914_v2 = vadd.f32 %v6903_v13, %v12941_v55  ;;  %v6907_v16 = vadd.f32 %v6906_v36, %v6838_v25  ;;  %10218 = vrot.lane.b32.xlu0 %v10217_v3, %s10519_s1  ;;  %7009 = vmatprep.subr.bf16.mxu1 %v6990_v18 }
0x2594   :  { %v6915_v1 = vadd.f32 %v6905_v11, %v12939_v58  ;;  %7010 = vmatpush1.bf16.msra.mxu1 %v6989_v24  ;;  %v13102_v41 = vmul.f32 %v6913_v54, %v10856_v56 }
0x2595   :  { %v6916_v8 = vadd.f32 %v6907_v16, %v12943_v14  ;;  %v13108_v34 = vmul.f32 %v6914_v2, %v10859_v59 }
0x2596   :  { %v13105_v28 = vmul.f32 %v6915_v1, %v10856_v56 }
0x2597   :  { %v13111_v55 = vmul.f32 %v6916_v8, %v10859_v59 }
0x2598   :  { %v10222_v20 = vpack.i.bf16 %v13105_v28, %v13102_v41  ;;  %v6991_v26 = vpack.c.bf16 %v13105_v28, %v13102_v41 }
0x2599   :  { %v10227_v58 = vpack.i.bf16 %v13111_v55, %v13108_v34  ;;  %v6992_v14 = vpack.c.bf16 %v13111_v55, %v13108_v34 }
0x259a   :  { %10223 = vrot.lane.b32.xlu1 %v10222_v20, %s10519_s1 }
0x259b   :  { %10228 = vrot.lane.b32.xlu0 %v10227_v58, %s10519_s1  ;;  %7011 = vmatprep.subr.bf16.mxu1 %v6992_v14 }
0x259c   :  { %7012 = vmatpush1.bf16.msra.mxu1 %v6991_v26 }
0x259e   :  { %10233 = vrot.lane.b32.xlu1 %v10212_v6, %s10520_s23 }
0x259f   :  { %10238 = vrot.lane.b32.xlu0 %v10217_v3, %s10520_s23  ;;  %9255 = vmatmul.mubr.msk.bf16.vlgmr.msra.gmra.mrb[128].mxu1 %vm13956_vm6, %v10444_v42  ;;  %vm13964_vm6 = vmmov %vm13959_vm3  ;;  %v10446_v42 = vld [vmem:[%s13647_s12 + $0x1b0] sm:$0xff]  }
0x25a0   :  { %7051 = vmatprep.mubr.bf16.mxu1 %v10516_v5 }
0x25a2   :  { %10243 = vrot.lane.b32.xlu1 %v10222_v20, %s10520_s23 }
0x25a3   :  { %10248 = vrot.lane.b32.xlu0 %v10227_v58, %s10520_s23 }
0x25a6   :  { %7246 = vperm.xlu1 %9691, %v9241_v7  }
0x25a7   :  { %7251 = vperm.xlu0 %9690, %v9242_v4   ;;  %9256 = vmatmul.mubr.msk.bf16.gmra.mrb[132].mxu1 %vm13957_vm8, %v10445_v21  ;;  %vm13965_vm8 = vmmov %vm13959_vm3 }
0x25a8   :  { %7110 = vmatprep.mubr.bf16.mxu1 %v10516_v5 }
0x25aa   :  { %7256 = vperm.xlu1 %9691, %v9243_v27  }
0x25ab   :  { %7261 = vperm.xlu0 %9690, %v9244_v50  }
0x25ae   :  { %7286 = vperm.xlu1 %9691, %v9249_v47  }
0x25af   :  { %7291 = vperm.xlu0 %9690, %v9250_v22  }
0x25b2   :  { %7296 = vperm.xlu1 %9691, %v9251_v37  }
0x25b3   :  { %7301 = vperm.xlu0 %9690, %v9252_v38  }
0x2604   :  { %v10214_v44 = vpop.permute.xlu1 %10213 }
0x2605   :  { %v10216_v46 = vunpack.i.h.bf16 %v10214_v44  ;;  %v10215_v10 = vunpack.i.l.bf16 %v10214_v44  ;;  %v10219_v32 = vpop.permute.xlu0 %10218 }
0x2606   :  { %v10221_v40 = vunpack.i.h.bf16 %v10219_v32  ;;  %v10220_v19 = vunpack.i.l.bf16 %v10219_v32 }
0x2608   :  { %v6969_v61 = vsel %vm13958_vm13, %v10215_v10, %v10220_v19  ;;  %v6970_v29 = vsel %vm13959_vm3, %v10216_v46, %v10221_v40  ;;  %v6973_v57 = vsel %vm13960_vm5, %v10220_v19, %v10215_v10  ;;  %v6974_v30 = vsel %vm13961_vm9, %v10221_v40, %v10216_v46  ;;  %vm13966_vm13 = vmmov %vm13959_vm3 }
0x2609   :  { %v9260_v35 = vpack.c.bf16 %v6970_v29, %v6969_v61  ;;  %v9263_v17 = vpack.c.bf16 %v6974_v30, %v6973_v57  ;;  %vm13967_vm5 = vcmp.lt.s32.totalorder %v10739_v52, 126  ;;  %v10447_v29 = vld [vmem:[%s13647_s12 + $0x1b8] sm:$0xff]   ;;  %v10448_v57 = vld [vmem:[%s13647_s12 + $0x1d0] sm:$0xff]  }
0x260a   :  { %vm13968_vm9 = vmmov %vm13967_vm5 }
0x260b   :  { %9261 = vmatprep.subr.msk.bf16.mxu1 %vm13962_vm10, %v9260_v35 }
0x260c   :  { %v10224_v6 = vpop.permute.xlu1 %10223  ;;  %9264 = vmatpush1.bf16.msk.msra.mxu1 %vm13963_vm14, %v9263_v17 }
0x260d   :  { %v10226_v25 = vunpack.i.h.bf16 %v10224_v6  ;;  %v10225_v13 = vunpack.i.l.bf16 %v10224_v6  ;;  %v10229_v23 = vpop.permute.xlu0 %10228 }
0x260e   :  { %v10231_v3 = vunpack.i.h.bf16 %v10229_v23  ;;  %v10230_v18 = vunpack.i.l.bf16 %v10229_v23 }
0x2610   :  { %v6971_v54 = vsel %vm13964_vm6, %v10225_v13, %v10230_v18  ;;  %v6972_v11 = vsel %vm13965_vm8, %v10226_v25, %v10231_v3  ;;  %v6975_v36 = vsel %vm13966_vm13, %v10230_v18, %v10225_v13  ;;  %v6976_v24 = vsel %vm13959_vm3, %v10231_v3, %v10226_v25  ;;  %v10234_v2 = vpop.permute.xlu1 %10233  ;;  %vm13969_vm6 = vmmov %vm13967_vm5 }
0x2611   :  { %v9266_v16 = vpack.c.bf16 %v6972_v11, %v6971_v54  ;;  %v9269_v1 = vpack.c.bf16 %v6976_v24, %v6975_v36  ;;  %v10236_v8 = vunpack.i.h.bf16 %v10234_v2  ;;  %v10235_v20 = vunpack.i.l.bf16 %v10234_v2  ;;  %v10239_v58 = vpop.permute.xlu0 %10238  ;;  %vm13970_vm8 = vmmov %vm13967_vm5 }
0x2612   :  { %v10241_v14 = vunpack.i.h.bf16 %v10239_v58  ;;  %v10240_v26 = vunpack.i.l.bf16 %v10239_v58  ;;  %vm13972_vm13 = vmmov %vm13967_vm5 }
0x2613   :  { %9267 = vmatprep.subr.msk.bf16.mxu1 %vm13962_vm10, %v9266_v16  ;;  %vm13971_vm10 = vcmask 261120   ;;  %vm13973_vm3 = vmmov %vm13967_vm5 }
0x2614   :  { %v7147_v7 = vsel %vm13967_vm5, %v10235_v20, %v10240_v26  ;;  %v7148_v21 = vsel %vm13968_vm9, %v10236_v8, %v10241_v14  ;;  %v7151_v4 = vsel %vm13969_vm6, %v10240_v26, %v10235_v20  ;;  %v7152_v27 = vsel %vm13970_vm8, %v10241_v14, %v10236_v8  ;;  %v10244_v50 = vpop.permute.xlu1 %10243  ;;  %9270 = vmatpush1.bf16.msk.msra.mxu1 %vm13963_vm14, %v9269_v1  ;;  %vm13974_vm14 = vmmov %vm13973_vm3 }
0x2615   :  { %v9276_v60 = vpack.c.bf16 %v7152_v27, %v7151_v4  ;;  %v9279_v47 = vpack.c.bf16 %v7148_v21, %v7147_v7  ;;  %v10246_v22 = vunpack.i.h.bf16 %v10244_v50  ;;  %v10245_v37 = vunpack.i.l.bf16 %v10244_v50  ;;  %v10249_v38 = vpop.permute.xlu0 %10248  ;;  %vm13975_vm5 = vmmov %vm13973_vm3 }
0x2616   :  { %v10251_v44 = vunpack.i.h.bf16 %v10249_v38  ;;  %v10250_v46 = vunpack.i.l.bf16 %v10249_v38  ;;  %vm13976_vm9 = vnez %v13721_v43  ;;  %vm13977_vm6 = vmmov %vm13971_vm10  ;;  %v10450_v38 = vld [vmem:[%s13649_s14 + $0x90] sm:$0xff]  }
0x2617   :  { %9271 = vmatmul.mubr.msk.bf16.vlgmr.msra.gmra.mrb[128].mxu1 %vm13971_vm10, %v10446_v42  ;;  %9277 = vmatprep.subr.msk.bf16.mxu1 %vm13877_vm2, %v9276_v60  ;;  %vm13978_vm8 = vmmov %vm13977_vm6 }
0x2618   :  { %v7149_v10 = vsel %vm13972_vm13, %v10245_v37, %v10250_v46  ;;  %v7150_v32 = vsel %vm13973_vm3, %v10246_v22, %v10251_v44  ;;  %v7153_v63 = vsel %vm13974_vm14, %v10250_v46, %v10245_v37  ;;  %v7154_v40 = vsel %vm13975_vm5, %v10251_v44, %v10246_v22  ;;  %9280 = vmatpush1.bf16.msk.msra.mxu1 %vm13976_vm9, %v9279_v47  ;;  %v10451_v44 = vld [vmem:[%s13649_s14 + $0x98] sm:$0xff]  }
0x2619   :  { %v9282_v19 = vpack.c.bf16 %v7154_v40, %v7153_v63  ;;  %v9285_v61 = vpack.c.bf16 %v7150_v32, %v7149_v10  ;;  %7120 = vmatprep.mubr.bf16.mxu1 %v10516_v5  ;;  %vm13984_vm5 = vcmp.lt.s32.totalorder %v10739_v52, 4 }
0x261b   :  { %9283 = vmatprep.subr.msk.bf16.mxu1 %vm13877_vm2, %v9282_v19  ;;  %vm13979_vm2 = vmmov %vm13977_vm6 }
0x261c   :  { %9286 = vmatpush1.bf16.msk.msra.mxu1 %vm13976_vm9, %v9285_v61  ;;  %vm13980_vm10 = vmmov %vm13979_vm2 }
0x261d   :  { %vm13981_vm13 = vmmov %vm13979_vm2 }
0x261e   :  { %vm13982_vm3 = vmmov %vm13979_vm2 }
0x261f   :  { %9272 = vmatmul.mubr.msk.bf16.gmra.mrb[132].mxu1 %vm13977_vm6, %v10447_v29  ;;  %vm13983_vm14 = vmmov %vm13979_vm2 }
0x2620   :  { %7215 = vmatprep.mubr.bf16.mxu1 %v10516_v5  ;;  %vm13985_vm9 = vmmov %vm13984_vm5 }
0x2621   :  { %vm13986_vm6 = vmmov %vm13984_vm5 }
0x2625   :  { %v7247_v43 = vpop.permute.xlu1 %7246 }
0x2626   :  { %v7252_v6 = vpop.permute.xlu0 %7251 }
0x2627   :  { %9287 = vmatmul.mubr.msk.bf16.vlgmr.msra.gmra.mrb[128].mxu1 %vm13978_vm8, %v10448_v57  ;;  %vm13987_vm8 = vmmov %vm13984_vm5 }
0x2628   :  { %7225 = vmatprep.mubr.bf16.mxu1 %v10516_v5 }
0x2629   :  { %v7257_v16 = vpop.permute.xlu1 %7256 }
0x262a   :  { %v7262_v14 = vpop.permute.xlu0 %7261 }
0x262d   :  { %v7287_v46 = vpop.permute.xlu1 %7286 }
0x262e   :  { %v7292_v40 = vpop.permute.xlu0 %7291 }
0x262f   :  { %9288 = vmatmul.mubr.msk.bf16.gmra.mrb[132].mxu1 %vm13979_vm2, %v10449_v31  ;;  %vm13988_vm2 = vnez %v13725_v12 }
0x2630   :  { %7816 = vmatprep.mubr.bf16.mxu1 %v10516_v5 }
0x26fa   :  { %v7217_v30 = vpop.f32.mrb[128].mxu1 }
0x26fb   :  { %v7264_v35 = vadd.f32 %v7247_v43, %v7217_v30  ;;  %v7219_v17 = vpop.f32.mrb[129].mxu1 }
0x26fc   :  { %v7265_v25 = vadd.f32 %v7247_v43, %v7219_v17  ;;  %v7221_v13 = vpop.f32.mrb[130].mxu1 }
0x26fd   :  { %v7266_v23 = vadd.f32 %v7252_v6, %v7221_v13  ;;  %v7223_v3 = vpop.f32.mrb[131].mxu1  ;;  %v7272_v54 = vmax.f32 %v7264_v35, 0.0  ;;  %v7297_v13 = vpop.permute.xlu1 %7296 }
0x26fe   :  { %v7267_v18 = vadd.f32 %v7252_v6, %v7223_v3  ;;  %v7273_v36 = vmax.f32 %v7265_v25, 0.0 }
0x26ff   :  { %v7274_v11 = vmax.f32 %v7266_v23, 0.0 }
0x2700   :  { %v7275_v24 = vmax.f32 %v7267_v18, 0.0 }
0x2701   :  { %v7280_v2 = vpack.c.bf16 %v7274_v11, %v7272_v54 }
0x2702   :  { %v7281_v1 = vpack.c.bf16 %v7275_v24, %v7273_v36  ;;  %v7227_v8 = vpop.f32.mrb[132].mxu1 }
0x2703   :  { %v7268_v20 = vadd.f32 %v7257_v16, %v7227_v8  ;;  %v7229_v58 = vpop.f32.mrb[133].mxu1 }
0x2704   :  { %v7269_v26 = vadd.f32 %v7257_v16, %v7229_v58  ;;  %v7231_v42 = vpop.f32.mrb[134].mxu1  ;;  %7320 = vmatprep.subr.bf16.mxu0 %v7281_v1 }
0x2705   :  { %v7270_v7 = vadd.f32 %v7262_v14, %v7231_v42  ;;  %v7233_v21 = vpop.f32.mrb[135].mxu1  ;;  %7321 = vmatpush1.bf16.msra.mxu0 %v7280_v2  ;;  %v7276_v27 = vmax.f32 %v7268_v20, 0.0 }
0x2706   :  { %v7271_v4 = vadd.f32 %v7262_v14, %v7233_v21  ;;  %v7277_v60 = vmax.f32 %v7269_v26, 0.0 }
0x2707   :  { %v7278_v50 = vmax.f32 %v7270_v7, 0.0 }
0x2708   :  { %v7279_v47 = vmax.f32 %v7271_v4, 0.0 }
0x2709   :  { %v7282_v22 = vpack.c.bf16 %v7278_v50, %v7276_v27  ;;  %v10452_v27 = vld [vmem:[%s13647_s12 + $0x1f0] sm:$0xff]   ;;  %v9305_v50 = vld [vmem:[%s13648_s13 + $0x140] sm:$0xff] }
0x270a   :  { %v7283_v37 = vpack.c.bf16 %v7279_v47, %v7277_v60  ;;  %v10453_v60 = vld [vmem:[%s13647_s12 + $0x1f8] sm:$0xff]   ;;  %v9306_v47 = vld [vmem:[%s13648_s13 + $0x148] sm:$0xff] }
0x270c   :  { %7322 = vmatprep.subr.bf16.mxu0 %v7283_v37  ;;  %v9308_v37 = vld [vmem:[%s13648_s13 + $0x158] sm:$0xff] }
0x270d   :  { %7323 = vmatpush1.bf16.msra.mxu0 %v7282_v22  ;;  %v9307_v22 = vld [vmem:[%s13648_s13 + $0x150] sm:$0xff] }
0x2710   :  { %9291 = vmatmul.mubr.msk.bf16.vlgmr.msra.gmra.mrb[124].mxu0 %vm13980_vm10, %v10450_v38  ;;  %v9313_v38 = vld [vmem:[%s13650_s15 + $0x140] sm:$0xff]  ;;  %vm13989_vm10 = vmmov %vm13984_vm5 }
0x2711   :  { %7362 = vmatprep.mubr.bf16.mxu0 %v10516_v5 }
0x2718   :  { %9292 = vmatmul.mubr.msk.bf16.gmra.mrb[128].mxu0 %vm13981_vm13, %v10451_v44  ;;  %v9314_v44 = vld [vmem:[%s13650_s15 + $0x148] sm:$0xff]  ;;  %vm13990_vm13 = vmmov %vm13984_vm5 }
0x2719   :  { %7505 = vmatprep.mubr.bf16.mxu0 %v10516_v5 }
0x27e3   :  { %v7354_v10 = vpop.f32.mrb[124].mxu0 }
0x27e4   :  { %v7355_v32 = vadd.f32 %v7354_v10, %v7287_v46  ;;  %v7356_v63 = vpop.f32.mrb[125].mxu0  ;;  %v9316_v10 = vld [vmem:[%s13650_s15 + $0x158] sm:$0xff] }
0x27e5   :  { %v7357_v19 = vadd.f32 %v7356_v63, %v7287_v46  ;;  %v7358_v61 = vpop.f32.mrb[126].mxu0  ;;  %v9315_v46 = vld [vmem:[%s13650_s15 + $0x150] sm:$0xff] }
0x27e6   :  { %v7373_v29 = vadd.f32 %v7355_v32, %v13076_v62  ;;  %v7359_v57 = vadd.f32 %v7358_v61, %v7292_v40  ;;  %v7360_v31 = vpop.f32.mrb[127].mxu0 }
0x27e7   :  { %v7374_v43 = vadd.f32 %v7357_v19, %v13082_v15  ;;  %v7361_v30 = vadd.f32 %v7360_v31, %v7292_v40 }
0x27e8   :  { %v7375_v35 = vadd.f32 %v7359_v57, %v13079_v53  ;;  %v13244_v6 = vmul.f32 %v7373_v29, %v10856_v56 }
0x27e9   :  { %v7376_v17 = vadd.f32 %v7361_v30, %v13085_v39  ;;  %v13250_v23 = vmul.f32 %v7374_v43, %v10859_v59  ;;  %v7302_v39 = vpop.permute.xlu0 %7301 }
0x27ea   :  { %v13247_v25 = vmul.f32 %v7375_v35, %v10856_v56 }
0x27eb   :  { %v13253_v62 = vmul.f32 %v7376_v17, %v10859_v59  ;;  %v7364_v3 = vpop.f32.mrb[128].mxu0 }
0x27ec   :  { %v7365_v15 = vadd.f32 %v7364_v3, %v7297_v13  ;;  %v7366_v18 = vpop.f32.mrb[129].mxu0  ;;  %v10252_v53 = vpack.i.bf16 %v13247_v25, %v13244_v6  ;;  %v7453_v8 = vpack.c.bf16 %v13247_v25, %v13244_v6 }
0x27ed   :  { %v7367_v54 = vadd.f32 %v7366_v18, %v7297_v13  ;;  %v7368_v11 = vpop.f32.mrb[130].mxu0  ;;  %v10257_v36 = vpack.i.bf16 %v13253_v62, %v13250_v23  ;;  %v7454_v24 = vpack.c.bf16 %v13253_v62, %v13250_v23 }
0x27ee   :  { %v7377_v2 = vadd.f32 %v7365_v15, %v13102_v41  ;;  %v7369_v16 = vadd.f32 %v7368_v11, %v7302_v39  ;;  %v7370_v1 = vpop.f32.mrb[131].mxu0  ;;  %10253 = vrot.lane.b32.xlu1 %v10252_v53, %s10521_s21 }
0x27ef   :  { %v7378_v20 = vadd.f32 %v7367_v54, %v13108_v34  ;;  %v7371_v58 = vadd.f32 %v7370_v1, %v7302_v39  ;;  %10258 = vrot.lane.b32.xlu0 %v10257_v36, %s10521_s21  ;;  %7473 = vmatprep.subr.bf16.mxu0 %v7454_v24 }
0x27f0   :  { %v7379_v14 = vadd.f32 %v7369_v16, %v13105_v28  ;;  %7474 = vmatpush1.bf16.msra.mxu0 %v7453_v8  ;;  %v13270_v41 = vmul.f32 %v7377_v2, %v10856_v56 }
0x27f1   :  { %v7380_v26 = vadd.f32 %v7371_v58, %v13111_v55  ;;  %v13276_v7 = vmul.f32 %v7378_v20, %v10859_v59 }
0x27f2   :  { %v13273_v42 = vmul.f32 %v7379_v14, %v10856_v56 }
0x27f3   :  { %v13279_v34 = vmul.f32 %v7380_v26, %v10859_v59 }
0x27f4   :  { %v10262_v21 = vpack.i.bf16 %v13273_v42, %v13270_v41  ;;  %v7455_v4 = vpack.c.bf16 %v13273_v42, %v13270_v41 }
0x27f5   :  { %v10267_v28 = vpack.i.bf16 %v13279_v34, %v13276_v7  ;;  %v7456_v55 = vpack.c.bf16 %v13279_v34, %v13276_v7 }
0x27f6   :  { %10263 = vrot.lane.b32.xlu1 %v10262_v21, %s10521_s21 }
0x27f7   :  { %10268 = vrot.lane.b32.xlu0 %v10267_v28, %s10521_s21  ;;  %7475 = vmatprep.subr.bf16.mxu0 %v7456_v55 }
0x27f8   :  { %7476 = vmatpush1.bf16.msra.mxu0 %v7455_v4 }
0x27fa   :  { %10273 = vrot.lane.b32.xlu1 %v10252_v53, %s13788_s27 }
0x27fb   :  { %10278 = vrot.lane.b32.xlu0 %v10257_v36, %s13788_s27  ;;  %9319 = vmatmul.mubr.msk.bf16.vlgmr.msra.gmra.mrb[132].mxu0 %vm13982_vm3, %v10452_v27  ;;  %vm13991_vm3 = vmmov %vm13984_vm5 }
0x27fc   :  { %7515 = vmatprep.mubr.bf16.mxu0 %v10516_v5 }
0x27fe   :  { %10283 = vrot.lane.b32.xlu1 %v10262_v21, %s13788_s27  ;;  %v10454_v21 = vld [vmem:[%s13647_s12 + $0x1e0] sm:$0xff]  }
0x27ff   :  { %10288 = vrot.lane.b32.xlu0 %v10267_v28, %s13788_s27  ;;  %s8388_s27 = sshll.u32 %s10525_s10, 4  ;;  %s8389_s27 = int_to_ptr.vmem [resolvable:$true] %s8388_s27 }
0x2800   :  { %p10497_p1 = scmp.lt.s32.totalorder %s8389_s27, %s8389_s27 }
0x2802   :  { %7710 = vperm.xlu1 %9691, %v9305_v50  }
0x2803   :  { %7715 = vperm.xlu0 %9690, %v9306_v47   ;;  %9320 = vmatmul.mubr.msk.bf16.gmra.mrb[136].mxu0 %vm13983_vm14, %v10453_v60  ;;  %vm13992_vm14 = vmmov %vm13991_vm3 }
0x2804   :  { %7574 = vmatprep.mubr.bf16.mxu0 %v10516_v5 }
0x2806   :  { %7720 = vperm.xlu1 %9691, %v9307_v22  }
0x2807   :  { %7725 = vperm.xlu0 %9690, %v9308_v37  }
0x280a   :  { %7750 = vperm.xlu1 %9691, %v9313_v38  }
0x280b   :  { %7755 = vperm.xlu0 %9690, %v9314_v44  }
0x280e   :  { %7760 = vperm.xlu1 %9691, %v9315_v46  }
0x280f   :  { %7765 = vperm.xlu0 %9690, %v9316_v10  }
0x2860   :  { %v10254_v32 = vpop.permute.xlu1 %10253 }
0x2861   :  { %v10256_v63 = vunpack.i.h.bf16 %v10254_v32  ;;  %v10255_v40 = vunpack.i.l.bf16 %v10254_v32  ;;  %v10259_v19 = vpop.permute.xlu0 %10258 }
0x2862   :  { %v10261_v61 = vunpack.i.h.bf16 %v10259_v19  ;;  %v10260_v29 = vunpack.i.l.bf16 %v10259_v19  ;;  %v10455_v19 = vld [vmem:[%s13647_s12 + $0x1e8] sm:$0xff]  }
0x2864   :  { %v7433_v57 = vsel %vm13984_vm5, %v10255_v40, %v10260_v29  ;;  %v7434_v31 = vsel %vm13985_vm9, %v10256_v63, %v10261_v61  ;;  %v7437_v43 = vsel %vm13986_vm6, %v10260_v29, %v10255_v40  ;;  %v7438_v30 = vsel %vm13987_vm8, %v10261_v61, %v10256_v63  ;;  %v10456_v61 = vld [vmem:[%s13647_s12 + $0x200] sm:$0xff]  }
0x2865   :  { %v9324_v35 = vpack.c.bf16 %v7434_v31, %v7433_v57  ;;  %v9327_v17 = vpack.c.bf16 %v7438_v30, %v7437_v43  ;;  %vm13993_vm5 = vcmp.lt.s32.totalorder %v10739_v52, 124 }
0x2866   :  { %vm13994_vm9 = vmmov %vm13993_vm5 }
0x2867   :  { %9325 = vmatprep.subr.msk.bf16.mxu0 %vm13891_vm15, %v9324_v35  ;;  %vm13995_vm6 = vmmov %vm13993_vm5 }
0x2868   :  { %v10264_v13 = vpop.permute.xlu1 %10263  ;;  %9328 = vmatpush1.bf16.msk.msra.mxu0 %vm13988_vm2, %v9327_v17  ;;  %vm13996_vm8 = vmmov %vm13993_vm5 }
0x2869   :  { %v10266_v3 = vunpack.i.h.bf16 %v10264_v13  ;;  %v10265_v15 = vunpack.i.l.bf16 %v10264_v13  ;;  %v10269_v18 = vpop.permute.xlu0 %10268 }
0x286a   :  { %v10271_v53 = vunpack.i.h.bf16 %v10269_v18  ;;  %v10270_v39 = vunpack.i.l.bf16 %v10269_v18 }
0x286c   :  { %v7435_v54 = vsel %vm13989_vm10, %v10265_v15, %v10270_v39  ;;  %v7436_v11 = vsel %vm13990_vm13, %v10266_v3, %v10271_v53  ;;  %v7439_v36 = vsel %vm13991_vm3, %v10270_v39, %v10265_v15  ;;  %v7440_v24 = vsel %vm13992_vm14, %v10271_v53, %v10266_v3  ;;  %v10274_v2 = vpop.permute.xlu1 %10273  ;;  %vm13998_vm10 = vmmov %vm13993_vm5 }
0x286d   :  { %v9330_v16 = vpack.c.bf16 %v7436_v11, %v7435_v54  ;;  %v9333_v1 = vpack.c.bf16 %v7440_v24, %v7439_v36  ;;  %v10276_v8 = vunpack.i.h.bf16 %v10274_v2  ;;  %v10275_v20 = vunpack.i.l.bf16 %v10274_v2  ;;  %v10279_v58 = vpop.permute.xlu0 %10278  ;;  %vm13999_vm13 = vmmov %vm13993_vm5 }
0x286e   :  { %v10281_v14 = vunpack.i.h.bf16 %v10279_v58  ;;  %v10280_v26 = vunpack.i.l.bf16 %v10279_v58 }
0x286f   :  { %9331 = vmatprep.subr.msk.bf16.mxu0 %vm13891_vm15, %v9330_v16  ;;  %vm13997_vm15 = vcmask 261120  }
0x2870   :  { %v7611_v28 = vsel %vm13993_vm5, %v10275_v20, %v10280_v26  ;;  %v7612_v55 = vsel %vm13994_vm9, %v10276_v8, %v10281_v14  ;;  %v7615_v4 = vsel %vm13995_vm6, %v10280_v26, %v10275_v20  ;;  %v7616_v27 = vsel %vm13996_vm8, %v10281_v14, %v10276_v8  ;;  %v10284_v50 = vpop.permute.xlu1 %10283  ;;  %9334 = vmatpush1.bf16.msk.msra.mxu0 %vm13988_vm2, %v9333_v1  ;;  %vm14000_vm2 = vmmov %vm13993_vm5 }
0x2871   :  { %v9340_v9 = vpack.c.bf16 %v7616_v27, %v7615_v4  ;;  %v9343_v60 = vpack.c.bf16 %v7612_v55, %v7611_v28  ;;  %v10286_v47 = vunpack.i.h.bf16 %v10284_v50  ;;  %v10285_v22 = vunpack.i.l.bf16 %v10284_v50  ;;  %v10289_v37 = vpop.permute.xlu0 %10288  ;;  %vm14001_vm3 = vmmov %vm14000_vm2 }
0x2872   :  { %v10291_v38 = vunpack.i.h.bf16 %v10289_v37  ;;  %v10290_v44 = vunpack.i.l.bf16 %v10289_v37  ;;  %vm14002_vm14 = vmmov %vm13997_vm15 }
0x2873   :  { %9335 = vmatmul.mubr.msk.bf16.vlgmr.msra.gmra.mrb[132].mxu0 %vm13997_vm15, %v10454_v21  ;;  %9341 = vmatprep.subr.msk.bf16.mxu0 %vm13804_vm7, %v9340_v9  ;;  %vm14003_vm5 = vmmov %vm14002_vm14  ;;  %v10458_v9 = vld [vmem:[%s13649_s14 + $0xa0] sm:$0xff]   ;;  %vm14009_vm15 = vcmp.lt.s32.totalorder %v10739_v52, 8 }
0x2874   :  { %v7613_v46 = vsel %vm13998_vm10, %v10285_v22, %v10290_v44  ;;  %v7614_v10 = vsel %vm13999_vm13, %v10286_v47, %v10291_v38  ;;  %v7617_v12 = vsel %vm14000_vm2, %v10290_v44, %v10285_v22  ;;  %v7618_v32 = vsel %vm14001_vm3, %v10291_v38, %v10286_v47  ;;  %9344 = vmatpush1.bf16.msk.msra.mxu0 %vm13808_vm4, %v9343_v60  ;;  %v10459_v60 = vld [vmem:[%s13649_s14 + $0xa8] sm:$0xff]   ;;  %vm14010_vm10 = vmmov %vm14009_vm15 }
0x2875   :  { %v9346_v63 = vpack.c.bf16 %v7618_v32, %v7617_v12  ;;  %v9349_v40 = vpack.c.bf16 %v7614_v10, %v7613_v46  ;;  %7584 = vmatprep.mubr.bf16.mxu0 %v10516_v5  ;;  %vm14011_vm13 = vmmov %vm14010_vm10 }
0x2876   :  { %vm14012_vm2 = vmmov %vm14010_vm10 }
0x2877   :  { %9347 = vmatprep.subr.msk.bf16.mxu0 %vm13804_vm7, %v9346_v63  ;;  %vm14004_vm7 = vmmov %vm14003_vm5 }
0x2878   :  { %9350 = vmatpush1.bf16.msk.msra.mxu0 %vm13808_vm4, %v9349_v40  ;;  %vm14005_vm4 = vmmov %vm14003_vm5 }
0x2879   :  { %vm14006_vm9 = vmmov %vm14005_vm4 }
0x287a   :  { %vm14007_vm6 = vmmov %vm14005_vm4 }
0x287b   :  { %9336 = vmatmul.mubr.msk.bf16.gmra.mrb[136].mxu0 %vm14002_vm14, %v10455_v19  ;;  %vm14008_vm8 = vmmov %vm14005_vm4 }
0x287c   :  { %7679 = vmatprep.mubr.bf16.mxu0 %v10516_v5  ;;  %vm14013_vm3 = vmmov %vm14012_vm2 }
0x287d   :  { %vm14014_vm14 = vmmov %vm14012_vm2 }
0x2881   :  { %v7711_v51 = vpop.permute.xlu1 %7710 }
0x2882   :  { %v7716_v43 = vpop.permute.xlu0 %7715 }
0x2883   :  { %9351 = vmatmul.mubr.msk.bf16.vlgmr.msra.gmra.mrb[132].mxu0 %vm14003_vm5, %v10456_v61  ;;  %vm14015_vm5 = vmmov %vm14012_vm2 }
0x2884   :  { %7689 = vmatprep.mubr.bf16.mxu0 %v10516_v5 }
0x2885   :  { %v7721_v11 = vpop.permute.xlu1 %7720 }
0x2886   :  { %v7726_v1 = vpop.permute.xlu0 %7725 }
0x2889   :  { %v7751_v47 = vpop.permute.xlu1 %7750 }
0x288a   :  { %v7756_v44 = vpop.permute.xlu0 %7755 }
0x288b   :  { %9352 = vmatmul.mubr.msk.bf16.gmra.mrb[136].mxu0 %vm14004_vm7, %v10457_v48  ;;  %vm14016_vm7 = vmmov %vm14012_vm2 }
0x288c   :  { %8280 = vmatprep.mubr.bf16.mxu0 %v10516_v5 }
0x2956   :  { %v7681_v29 = vpop.f32.mrb[132].mxu0 }
0x2957   :  { %v7728_v57 = vadd.f32 %v7711_v51, %v7681_v29  ;;  %v7683_v31 = vpop.f32.mrb[133].mxu0 }
0x2958   :  { %v7729_v30 = vadd.f32 %v7711_v51, %v7683_v31  ;;  %v7685_v35 = vpop.f32.mrb[134].mxu0 }
0x2959   :  { %v7730_v17 = vadd.f32 %v7716_v43, %v7685_v35  ;;  %v7687_v13 = vpop.f32.mrb[135].mxu0  ;;  %v7736_v15 = vmax.f32 %v7728_v57, 0.0  ;;  %v7761_v57 = vpop.permute.xlu1 %7760 }
0x295a   :  { %v7731_v3 = vadd.f32 %v7716_v43, %v7687_v13  ;;  %v7737_v53 = vmax.f32 %v7729_v30, 0.0 }
0x295b   :  { %v7738_v18 = vmax.f32 %v7730_v17, 0.0 }
0x295c   :  { %v7739_v39 = vmax.f32 %v7731_v3, 0.0 }
0x295d   :  { %v7744_v54 = vpack.c.bf16 %v7738_v18, %v7736_v15 }
0x295e   :  { %v7745_v36 = vpack.c.bf16 %v7739_v39, %v7737_v53  ;;  %v7691_v24 = vpop.f32.mrb[136].mxu0 }
0x295f   :  { %v7732_v2 = vadd.f32 %v7721_v11, %v7691_v24  ;;  %v7693_v16 = vpop.f32.mrb[137].mxu0 }
0x2960   :  { %v7733_v8 = vadd.f32 %v7721_v11, %v7693_v16  ;;  %v7695_v20 = vpop.f32.mrb[138].mxu0  ;;  %7784 = vmatprep.subr.bf16.mxu1 %v7745_v36 }
0x2961   :  { %v7734_v58 = vadd.f32 %v7726_v1, %v7695_v20  ;;  %v7697_v14 = vpop.f32.mrb[139].mxu0  ;;  %7785 = vmatpush1.bf16.msra.mxu1 %v7744_v54  ;;  %v7740_v21 = vmax.f32 %v7732_v2, 0.0  ;;  %v10460_v20 = vld [vmem:[%s13647_s12 + $0x220] sm:$0xff]  }
0x2962   :  { %v7735_v26 = vadd.f32 %v7726_v1, %v7697_v14  ;;  %v7741_v55 = vmax.f32 %v7733_v8, 0.0  ;;  %v10461_v14 = vld [vmem:[%s13647_s12 + $0x228] sm:$0xff]  }
0x2963   :  { %v7742_v28 = vmax.f32 %v7734_v58, 0.0  ;;  %v9369_v58 = vld [vmem:[%s13648_s13 + $0x160] sm:$0xff] }
0x2964   :  { %v7743_v4 = vmax.f32 %v7735_v26, 0.0  ;;  %v9370_v26 = vld [vmem:[%s13648_s13 + $0x168] sm:$0xff] }
0x2965   :  { %v7746_v27 = vpack.c.bf16 %v7742_v28, %v7740_v21  ;;  %v9371_v21 = vld [vmem:[%s13648_s13 + $0x170] sm:$0xff]  ;;  %v9372_v28 = vld [vmem:[%s13648_s13 + $0x178] sm:$0xff] }
0x2966   :  { %v7747_v50 = vpack.c.bf16 %v7743_v4, %v7741_v55  ;;  %v9377_v55 = vld [vmem:[%s13650_s15 + $0x160] sm:$0xff]  ;;  %v9378_v4 = vld [vmem:[%s13650_s15 + $0x168] sm:$0xff] }
0x2968   :  { %7786 = vmatprep.subr.bf16.mxu1 %v7747_v50  ;;  %v9380_v50 = vld [vmem:[%s13650_s15 + $0x178] sm:$0xff] }
0x2969   :  { %7787 = vmatpush1.bf16.msra.mxu1 %v7746_v27  ;;  %v9379_v27 = vld [vmem:[%s13650_s15 + $0x170] sm:$0xff] }
0x296c   :  { %9355 = vmatmul.mubr.msk.bf16.vlgmr.msra.gmra.mrb[136].mxu1 %vm14005_vm4, %v10458_v9  ;;  %v9159_v9 = vld [vmem:[%s13652_s17 + $0x10] sm:$0xff]  ;;  %vm14017_vm4 = vcmp.lt.s32.totalorder %v10739_v52, 120 }
0x296d   :  { %7826 = vmatprep.mubr.bf16.mxu1 %v10516_v5  ;;  %v10464_v52 = vld [vmem:[%s13647_s12 + $0x230] sm:$0xff]  }
0x2974   :  { %9356 = vmatmul.mubr.msk.bf16.gmra.mrb[140].mxu1 %vm14006_vm9, %v10459_v60  ;;  %vm14018_vm9 = vmmov %vm14017_vm4 }
0x2975   :  { %7969 = vmatprep.mubr.bf16.mxu1 %v10516_v5 }
0x2a3f   :  { %v7818_v22 = vpop.f32.mrb[136].mxu1 }
0x2a40   :  { %v7819_v37 = vadd.f32 %v7818_v22, %v7751_v47  ;;  %v7820_v38 = vpop.f32.mrb[137].mxu1 }
0x2a41   :  { %v7821_v46 = vadd.f32 %v7820_v38, %v7751_v47  ;;  %v7822_v10 = vpop.f32.mrb[138].mxu1 }
0x2a42   :  { %v7837_v12 = vadd.f32 %v7819_v37, %v13244_v6  ;;  %v7823_v32 = vadd.f32 %v7822_v10, %v7756_v44  ;;  %v7824_v63 = vpop.f32.mrb[139].mxu1 }
0x2a43   :  { %v7838_v40 = vadd.f32 %v7821_v46, %v13250_v23  ;;  %v7825_v19 = vadd.f32 %v7824_v63, %v7756_v44 }
0x2a44   :  { %v7839_v61 = vadd.f32 %v7823_v32, %v13247_v25  ;;  %v13412_v51 = vmul.f32 %v7837_v12, %v10856_v56 }
0x2a45   :  { %v7840_v48 = vadd.f32 %v7825_v19, %v13253_v62  ;;  %v13418_v31 = vmul.f32 %v7838_v40, %v10859_v59  ;;  %v7766_v62 = vpop.permute.xlu0 %7765 }
0x2a46   :  { %v13415_v29 = vmul.f32 %v7839_v61, %v10856_v56 }
0x2a47   :  { %v13421_v6 = vmul.f32 %v7840_v48, %v10859_v59  ;;  %v7828_v43 = vpop.f32.mrb[140].mxu1 }
0x2a48   :  { %v7829_v23 = vadd.f32 %v7828_v43, %v7761_v57  ;;  %v7830_v30 = vpop.f32.mrb[141].mxu1  ;;  %v10292_v25 = vpack.i.bf16 %v13415_v29, %v13412_v51  ;;  %v7917_v39 = vpack.c.bf16 %v13415_v29, %v13412_v51 }
0x2a49   :  { %v7831_v35 = vadd.f32 %v7830_v30, %v7761_v57  ;;  %v7832_v17 = vpop.f32.mrb[142].mxu1  ;;  %v10297_v13 = vpack.i.bf16 %v13421_v6, %v13418_v31  ;;  %v7918_v3 = vpack.c.bf16 %v13421_v6, %v13418_v31 }
0x2a4a   :  { %v7841_v15 = vadd.f32 %v7829_v23, %v13270_v41  ;;  %v7833_v18 = vadd.f32 %v7832_v17, %v7766_v62  ;;  %v7834_v53 = vpop.f32.mrb[143].mxu1  ;;  %10293 = vrot.lane.b32.xlu1 %v10292_v25, %s13814_s28 }
0x2a4b   :  { %v7842_v54 = vadd.f32 %v7831_v35, %v13276_v7  ;;  %v7835_v11 = vadd.f32 %v7834_v53, %v7766_v62  ;;  %10298 = vrot.lane.b32.xlu0 %v10297_v13, %s13814_s28  ;;  %7937 = vmatprep.subr.bf16.mxu1 %v7918_v3 }
0x2a4c   :  { %v7843_v36 = vadd.f32 %v7833_v18, %v13273_v42  ;;  %7938 = vmatpush1.bf16.msra.mxu1 %v7917_v39  ;;  %v13438_v41 = vmul.f32 %v7841_v15, %v10856_v56 }
0x2a4d   :  { %v7844_v24 = vadd.f32 %v7835_v11, %v13279_v34  ;;  %v13444_v16 = vmul.f32 %v7842_v54, %v10859_v59  ;;  %v10462_v11 = vld [vmem:[%s13647_s12 + $0x210] sm:$0xff]  }
0x2a4e   :  { %v13441_v2 = vmul.f32 %v7843_v36, %v10856_v56 }
0x2a4f   :  { %v13447_v7 = vmul.f32 %v7844_v24, %v10859_v59 }
0x2a50   :  { %v10302_v1 = vpack.i.bf16 %v13441_v2, %v13438_v41  ;;  %v7919_v8 = vpack.c.bf16 %v13441_v2, %v13438_v41 }
0x2a51   :  { %v10307_v42 = vpack.i.bf16 %v13447_v7, %v13444_v16  ;;  %v7920_v34 = vpack.c.bf16 %v13447_v7, %v13444_v16 }
0x2a52   :  { %10303 = vrot.lane.b32.xlu1 %v10302_v1, %s13814_s28 }
0x2a53   :  { %10308 = vrot.lane.b32.xlu0 %v10307_v42, %s13814_s28  ;;  %7939 = vmatprep.subr.bf16.mxu1 %v7920_v34 }
0x2a54   :  { %7940 = vmatpush1.bf16.msra.mxu1 %v7919_v8 }
0x2a56   :  { %10313 = vrot.lane.b32.xlu1 %v10292_v25, %s13815_s4 }
0x2a57   :  { %10318 = vrot.lane.b32.xlu0 %v10297_v13, %s13815_s4  ;;  %9383 = vmatmul.mubr.msk.bf16.vlgmr.msra.gmra.mrb[144].mxu1 %vm14007_vm6, %v10460_v20  ;;  %vm14019_vm6 = vmmov %vm14017_vm4 }
0x2a58   :  { %7979 = vmatprep.mubr.bf16.mxu1 %v10516_v5 }
0x2a5a   :  { %10323 = vrot.lane.b32.xlu1 %v10302_v1, %s13815_s4 }
0x2a5b   :  { %10328 = vrot.lane.b32.xlu0 %v10307_v42, %s13815_s4 }
0x2a5e   :  { %8174 = vperm.xlu1 %9691, %v9369_v58  }
0x2a5f   :  { %8179 = vperm.xlu0 %9690, %v9370_v26   ;;  %9384 = vmatmul.mubr.msk.bf16.gmra.mrb[148].mxu1 %vm14008_vm8, %v10461_v14  ;;  %vm14020_vm8 = vmmov %vm14017_vm4 }
0x2a60   :  { %8038 = vmatprep.mubr.bf16.mxu1 %v10516_v5 }
0x2a62   :  { %8184 = vperm.xlu1 %9691, %v9371_v21  }
0x2a63   :  { %8189 = vperm.xlu0 %9690, %v9372_v28  }
0x2a66   :  { %8214 = vperm.xlu1 %9691, %v9377_v55  }
0x2a67   :  { %8219 = vperm.xlu0 %9690, %v9378_v4  }
0x2a6a   :  { %8224 = vperm.xlu1 %9691, %v9379_v27  }
0x2a6b   :  { %8229 = vperm.xlu0 %9690, %v9380_v50  }
0x2a6e   :  { %8323 = vperm.xlu1 %9691, %v9159_v9   ;;  %v10463_v9 = vld [vmem:[%s13647_s12 + $0x218] sm:$0xff]  }
0x2abc   :  { %v10294_v60 = vpop.permute.xlu1 %10293 }
0x2abd   :  { %v10296_v47 = vunpack.i.h.bf16 %v10294_v60  ;;  %v10295_v22 = vunpack.i.l.bf16 %v10294_v60  ;;  %v10299_v37 = vpop.permute.xlu0 %10298 }
0x2abe   :  { %v10301_v38 = vunpack.i.h.bf16 %v10299_v37  ;;  %v10300_v44 = vunpack.i.l.bf16 %v10299_v37 }
0x2ac0   :  { %v7897_v46 = vsel %vm14009_vm15, %v10295_v22, %v10300_v44  ;;  %v7898_v10 = vsel %vm14010_vm10, %v10296_v47, %v10301_v38  ;;  %v7901_v12 = vsel %vm14011_vm13, %v10300_v44, %v10295_v22  ;;  %v7902_v32 = vsel %vm14012_vm2, %v10301_v38, %v10296_v47  ;;  %vm14022_vm15 = vmmov %vm14017_vm4 }
0x2ac1   :  { %v9388_v63 = vpack.c.bf16 %v7898_v10, %v7897_v46  ;;  %v9391_v40 = vpack.c.bf16 %v7902_v32, %v7901_v12  ;;  %vm14023_vm10 = vmmov %vm14017_vm4 }
0x2ac2   :  { %vm14025_vm13 = vmmov %vm14017_vm4 }
0x2ac3   :  { %9389 = vmatprep.subr.msk.bf16.mxu1 %vm11366_vm1, %v9388_v63 }
0x2ac4   :  { %v10304_v19 = vpop.permute.xlu1 %10303  ;;  %9392 = vmatpush1.bf16.msk.msra.mxu1 %vm11370_vm12, %v9391_v40 }
0x2ac5   :  { %v10306_v61 = vunpack.i.h.bf16 %v10304_v19  ;;  %v10305_v48 = vunpack.i.l.bf16 %v10304_v19  ;;  %v10309_v57 = vpop.permute.xlu0 %10308 }
0x2ac6   :  { %v10311_v43 = vunpack.i.h.bf16 %v10309_v57  ;;  %v10310_v23 = vunpack.i.l.bf16 %v10309_v57 }
0x2ac8   :  { %v7899_v30 = vsel %vm14013_vm3, %v10305_v48, %v10310_v23  ;;  %v7900_v25 = vsel %vm14014_vm14, %v10306_v61, %v10311_v43  ;;  %v7903_v62 = vsel %vm14015_vm5, %v10310_v23, %v10305_v48  ;;  %v7904_v35 = vsel %vm14016_vm7, %v10311_v43, %v10306_v61  ;;  %v10314_v17 = vpop.permute.xlu1 %10313 }
0x2ac9   :  { %v9394_v13 = vpack.c.bf16 %v7900_v25, %v7899_v30  ;;  %v9397_v3 = vpack.c.bf16 %v7904_v35, %v7903_v62  ;;  %v10316_v15 = vunpack.i.h.bf16 %v10314_v17  ;;  %v10315_v18 = vunpack.i.l.bf16 %v10314_v17  ;;  %v10319_v53 = vpop.permute.xlu0 %10318 }
0x2aca   :  { %v10321_v39 = vunpack.i.h.bf16 %v10319_v53  ;;  %v10320_v54 = vunpack.i.l.bf16 %v10319_v53 }
0x2acb   :  { %9395 = vmatprep.subr.msk.bf16.mxu1 %vm11366_vm1, %v9394_v13  ;;  %vm14021_vm1 = vcmask 261120  }
0x2acc   :  { %v8075_v36 = vsel %vm14017_vm4, %v10315_v18, %v10320_v54  ;;  %v8076_v24 = vsel %vm14018_vm9, %v10316_v15, %v10321_v39  ;;  %v8079_v1 = vsel %vm14019_vm6, %v10320_v54, %v10315_v18  ;;  %v8080_v42 = vsel %vm14020_vm8, %v10321_v39, %v10316_v15  ;;  %v10324_v34 = vpop.permute.xlu1 %10323  ;;  %9398 = vmatpush1.bf16.msk.msra.mxu1 %vm11370_vm12, %v9397_v3  ;;  %vm14024_vm12 = vmmov %vm14017_vm4 }
0x2acd   :  { %v9404_v45 = vpack.c.bf16 %v8080_v42, %v8079_v1  ;;  %v9407_v8 = vpack.c.bf16 %v8076_v24, %v8075_v36  ;;  %v10326_v20 = vunpack.i.h.bf16 %v10324_v34  ;;  %v10325_v58 = vunpack.i.l.bf16 %v10324_v34  ;;  %v10329_v14 = vpop.permute.xlu0 %10328  ;;  %vm14026_vm2 = vmmov %vm14021_vm1  ;;  %v10466_v36 = vld [vmem:[%s13649_s14 + $0xb0] sm:$0xff]   ;;  %v10467_v24 = vld [vmem:[%s13649_s14 + $0xb8] sm:$0xff]  }
0x2ace   :  { %v10331_v26 = vunpack.i.h.bf16 %v10329_v14  ;;  %v10330_v21 = vunpack.i.l.bf16 %v10329_v14  ;;  %vm14027_vm3 = vmmov %vm14021_vm1 }
0x2acf   :  { %9399 = vmatmul.mubr.msk.bf16.vlgmr.msra.gmra.mrb[144].mxu1 %vm14021_vm1, %v10462_v11  ;;  %9405 = vmatprep.subr.msk.bf16.mxu1 %vm11406_vm11, %v9404_v45 }
0x2ad0   :  { %v8077_v28 = vsel %vm14022_vm15, %v10325_v58, %v10330_v21  ;;  %v8078_v55 = vsel %vm14023_vm10, %v10326_v20, %v10331_v26  ;;  %v8081_v49 = vsel %vm14024_vm12, %v10330_v21, %v10325_v58  ;;  %v8082_v4 = vsel %vm14025_vm13, %v10331_v26, %v10326_v20  ;;  %9408 = vmatpush1.bf16.msk.msra.mxu1 %vm11413_vm0, %v9407_v8 }
0x2ad1   :  { %v9410_v27 = vpack.c.bf16 %v8082_v4, %v8081_v49  ;;  %v9413_v50 = vpack.c.bf16 %v8078_v55, %v8077_v28  ;;  %8048 = vmatprep.mubr.bf16.mxu1 %v10516_v5 }
0x2ad3   :  { %9411 = vmatprep.subr.msk.bf16.mxu1 %vm11406_vm11, %v9410_v27  ;;  %vm14028_vm11 = vmmov %vm14021_vm1 }
0x2ad4   :  { %9414 = vmatpush1.bf16.msk.msra.mxu1 %vm11413_vm0, %v9413_v50  ;;  %vm14029_vm0 = vmmov %vm14021_vm1 }
0x2ad5   :  { %vm14030_vm14 = vmmov %vm14029_vm0 }
0x2ad6   :  { %vm14031_vm5 = vmmov %vm14029_vm0 }
0x2ad7   :  { %9400 = vmatmul.mubr.msk.bf16.gmra.mrb[148].mxu1 %vm14026_vm2, %v10463_v9 }
0x2ad8   :  { %8143 = vmatprep.mubr.bf16.mxu1 %v10516_v5 }
0x2add   :  { %v8175_v0 = vpop.permute.xlu1 %8174 }
0x2ade   :  { %v8180_v37 = vpop.permute.xlu0 %8179 }
0x2adf   :  { %9415 = vmatmul.mubr.msk.bf16.vlgmr.msra.gmra.mrb[144].mxu1 %vm14027_vm3, %v10464_v52 }
0x2ae0   :  { %8153 = vmatprep.mubr.bf16.mxu1 %v10516_v5 }
0x2ae1   :  { %v8185_v48 = vpop.permute.xlu1 %8184 }
0x2ae2   :  { %v8190_v25 = vpop.permute.xlu0 %8189 }
0x2ae5   :  { %v8215_v1 = vpop.permute.xlu1 %8214 }
0x2ae6   :  { %v8220_v8 = vpop.permute.xlu0 %8219 }
0x2ae7   :  { %9416 = vmatmul.mubr.msk.bf16.gmra.mrb[148].mxu1 %vm14028_vm11, %v10465_v33 }
0x2aea   :  { %v8230_v33 = vpop.permute.xlu0 %8229 }
0x2bb2   :  { %v8145_v60 = vpop.f32.mrb[144].mxu1 }
0x2bb3   :  { %v8192_v47 = vadd.f32 %v8175_v0, %v8145_v60  ;;  %v8147_v22 = vpop.f32.mrb[145].mxu1 }
0x2bb4   :  { %v8193_v38 = vadd.f32 %v8175_v0, %v8147_v22  ;;  %v8149_v44 = vpop.f32.mrb[146].mxu1 }
0x2bb5   :  { %v8194_v46 = vadd.f32 %v8180_v37, %v8149_v44  ;;  %v8151_v10 = vpop.f32.mrb[147].mxu1  ;;  %v8200_v32 = vmax.f32 %v8192_v47, 0.0 }
0x2bb6   :  { %v8195_v12 = vadd.f32 %v8180_v37, %v8151_v10  ;;  %v8201_v40 = vmax.f32 %v8193_v38, 0.0 }
0x2bb7   :  { %v8202_v63 = vmax.f32 %v8194_v46, 0.0 }
0x2bb8   :  { %v8203_v19 = vmax.f32 %v8195_v12, 0.0 }
0x2bb9   :  { %v8208_v61 = vpack.c.bf16 %v8202_v63, %v8200_v32 }
0x2bba   :  { %v8209_v57 = vpack.c.bf16 %v8203_v19, %v8201_v40  ;;  %v8155_v43 = vpop.f32.mrb[148].mxu1 }
0x2bbb   :  { %v8196_v23 = vadd.f32 %v8185_v48, %v8155_v43  ;;  %v8157_v30 = vpop.f32.mrb[149].mxu1 }
0x2bbc   :  { %v8197_v62 = vadd.f32 %v8185_v48, %v8157_v30  ;;  %v8159_v35 = vpop.f32.mrb[150].mxu1  ;;  %8248 = vmatprep.subr.bf16.mxu0 %v8209_v57 }
0x2bbd   :  { %v8198_v17 = vadd.f32 %v8190_v25, %v8159_v35  ;;  %v8161_v13 = vpop.f32.mrb[151].mxu1  ;;  %8249 = vmatpush1.bf16.msra.mxu0 %v8208_v61  ;;  %v8204_v15 = vmax.f32 %v8196_v23, 0.0 }
0x2bbe   :  { %v8199_v3 = vadd.f32 %v8190_v25, %v8161_v13  ;;  %v8205_v53 = vmax.f32 %v8197_v62, 0.0 }
0x2bbf   :  { %v8206_v18 = vmax.f32 %v8198_v17, 0.0 }
0x2bc0   :  { %v8207_v39 = vmax.f32 %v8199_v3, 0.0 }
0x2bc1   :  { %v8210_v54 = vpack.c.bf16 %v8206_v18, %v8204_v15 }
0x2bc2   :  { %v8211_v11 = vpack.c.bf16 %v8207_v39, %v8205_v53 }
0x2bc4   :  { %8250 = vmatprep.subr.bf16.mxu0 %v8211_v11 }
0x2bc5   :  { %8251 = vmatpush1.bf16.msra.mxu0 %v8210_v54 }
0x2bc8   :  { %9419 = vmatmul.mubr.msk.bf16.vlgmr.msra.gmra.mrb[140].mxu0 %vm14029_vm0, %v10466_v36 }
0x2bc9   :  { %8290 = vmatprep.mubr.bf16.mxu0 %v10516_v5 }
0x2bd0   :  { %9420 = vmatmul.mubr.msk.bf16.gmra.mrb[144].mxu0 %vm14030_vm14, %v10467_v24 }
0x2bd1   :  { %8361 = vmatprep.mubr.bf16.mxu0 %v10516_v5 }
0x2c9b   :  { %v8282_v42 = vpop.f32.mrb[140].mxu0 }
0x2c9c   :  { %v8283_v34 = vadd.f32 %v8282_v42, %v8215_v1  ;;  %v8284_v45 = vpop.f32.mrb[141].mxu0 }
0x2c9d   :  { %v8285_v20 = vadd.f32 %v8284_v45, %v8215_v1  ;;  %v8286_v58 = vpop.f32.mrb[142].mxu0 }
0x2c9e   :  { %v8301_v14 = vadd.f32 %v8283_v34, %v13412_v51  ;;  %v8287_v26 = vadd.f32 %v8286_v58, %v8220_v8  ;;  %v8288_v21 = vpop.f32.mrb[143].mxu0  ;;  %v8225_v51 = vpop.permute.xlu1 %8224 }
0x2c9f   :  { %v8302_v28 = vadd.f32 %v8285_v20, %v13418_v31  ;;  %v8289_v55 = vadd.f32 %v8288_v21, %v8220_v8 }
0x2ca0   :  { %v8309_v49 = vmul.f32 %v8301_v14, %v10856_v56  ;;  %v8303_v4 = vadd.f32 %v8287_v26, %v13415_v29 }
0x2ca1   :  { %v8310_v5 = vmul.f32 %v8302_v28, %v10859_v59  ;;  %v8304_v27 = vadd.f32 %v8289_v55, %v13421_v6 }
0x2ca2   :  { %8375 = vst [vmem:[%s13654_s19] sm:$0xff] %v8309_v49  ;;  %v8311_v50 = vmul.f32 %v8303_v4, %v10856_v56  ;;  %v8324_v19 = vpop.permute.xlu1 %8323 }
0x2ca3   :  { %8376 = vst [vmem:[%s13654_s19 + $0x8] sm:$0xff] %v8310_v5  ;;  %v8312_v31 = vmul.f32 %v8304_v27, %v10859_v59  ;;  %v8292_v9 = vpop.f32.mrb[144].mxu0 }
0x2ca4   :  { %v8317_v52 = vpack.c.bf16 %v8311_v50, %v8309_v49  ;;  %8377 = vst [vmem:[%s13654_s19 + $0x10] sm:$0xff] %v8311_v50  ;;  %v8293_v29 = vadd.f32 %v8292_v9, %v8225_v51  ;;  %v8294_v6 = vpop.f32.mrb[145].mxu0 }
0x2ca5   :  { %8378 = vst [vmem:[%s13654_s19 + $0x18] sm:$0xff] %v8312_v31  ;;  %v8295_v0 = vadd.f32 %v8294_v6, %v8225_v51  ;;  %v8296_v60 = vpop.f32.mrb[146].mxu0  ;;  %v8318_v47 = vpack.c.bf16 %v8312_v31, %v8310_v5 }
0x2ca6   :  { %v8305_v22 = vadd.f32 %v8293_v29, %v13438_v41  ;;  %v8297_v37 = vadd.f32 %v8296_v60, %v8230_v33  ;;  %v8298_v38 = vpop.f32.mrb[147].mxu0 }
0x2ca7   :  { %v8306_v44 = vadd.f32 %v8295_v0, %v13444_v16  ;;  %v8299_v46 = vadd.f32 %v8298_v38, %v8230_v33  ;;  %8329 = vmatprep.subr.bf16.mxu0 %v8318_v47 }
0x2ca8   :  { %v8313_v10 = vmul.f32 %v8305_v22, %v10856_v56  ;;  %v8307_v12 = vadd.f32 %v8297_v37, %v13441_v2  ;;  %8330 = vmatpush1.bf16.msra.mxu0 %v8317_v52 }
0x2ca9   :  { %v8314_v32 = vmul.f32 %v8306_v44, %v10859_v59  ;;  %v8308_v63 = vadd.f32 %v8299_v46, %v13447_v7  ;;  %v9158_v7 = vld [vmem:[%s13651_s16 + $0x8] sm:$0xf] }
0x2caa   :  { %8379 = vst [vmem:[%s13654_s19 + $0x20] sm:$0xff] %v8313_v10  ;;  %v8315_v41 = vmul.f32 %v8307_v12, %v10856_v56 }
0x2cab   :  { %8380 = vst [vmem:[%s13654_s19 + $0x28] sm:$0xff] %v8314_v32  ;;  %v8316_v16 = vmul.f32 %v8308_v63, %v10859_v59 }
0x2cac   :  { %v8319_v40 = vpack.c.bf16 %v8315_v41, %v8313_v10  ;;  %8381 = vst [vmem:[%s13654_s19 + $0x30] sm:$0xff] %v8315_v41 }
0x2cad   :  { %8382 = vst [vmem:[%s13654_s19 + $0x38] sm:$0xff] %v8316_v16  ;;  %v8320_v2 = vpack.c.bf16 %v8316_v16, %v8314_v32  ;;  %s10492_s19 = scalar_lea.vmem %s8389_s27, 1024 }
0x2cae   :  { %p10493_p0 = scmp.ne.s32.totalorder %s8389_s27, %s10492_s19  ;;  %p10498_p2 = scmp.lt.s32.totalorder %s10492_s19, %s10492_s19 }
0x2caf   :  { %8331 = vmatprep.subr.bf16.mxu0 %v8320_v2 }
0x2cb0   :  { %8332 = vmatpush1.bf16.msra.mxu0 %v8319_v40  ;;  %p10499_p3 = por %p10498_p2, %p10497_p1 }
0x2cb2   :  { %p10500_p4 = pnand %p10499_p3, %p10493_p0 }
0x2cb3   :  { %9421 = vmatmul.mubr.msk.bf16.vlgmr.msra.gmra.mrb[148].mxu0 %vm14031_vm5, %v9158_v7 }
0x2d86   :  { %v8363_v61 = vpop.f32.mrb[148].mxu0 }
0x2d87   :  { %v8364_v48 = vadd.f32 %v8363_v61, %v8324_v19  ;;  %v8365_v57 = vpop.f32.mrb[149].mxu0 }
0x2d88   :  { %v8366_v43 = vadd.f32 %v8365_v57, %v8324_v19  ;;  %v8367_v23 = vpop.f32.mrb[150].mxu0 }
0x2d89   :  { %v8370_v30 = vmul.f32 %v8364_v48, %v10856_v56  ;;  %v8368_v25 = vpop.f32.mrb[151].mxu0 }
0x2d8a   :  { %v8371_v62 = vmul.f32 %v8366_v43, %v10859_v59 }
0x2d8b   :  { %8373 = vst [vmem:[#allocation2 + $0x30] sm:$0xff] %v8370_v30 }
0x2d8c   :  { %8374 = vst [vmem:[#allocation2 + $0x38] sm:$0xff] %v8371_v62 }
0x2d8d   :  { %10503 = shalt.err (!%p10500_p4)
}
0x2d8e   :  { %s10504_s2 = scalar_lea.hbm %s13653_s18, 1024 }
0x2d8f   :  { %p10505_p5 = scmp.ne.s32.totalorder %s13653_s18, %s10504_s2  ;;  %p10508_p6 = scmp.lt.u32.totalorder %s10504_s2, %s13653_s18 }
0x2d91   :  { %p10510_p7 = pnand %p10508_p6, %p10505_p5 }
0x2d93   :  { %10513 = shalt.err (!%p10510_p7)
}
0x2d94   :  { %s10526_s3 = smov 256   ;;  %s10527_s5 = smov 16  }
0x2d95   :  { %8394 = dma.vmem_to_hbm [thread:$0]  %s8389_s27, 1024, %s13653_s18, [#allocation3], %s10526_s3, %s10526_s3, %s10527_s5  }
0x2d96   :  { %10514 = dma.done.wait [#allocation3], 1024  }
0x2d97   :  { %10515 = vsyncadd [#allocation3], 4294966272 }
0x2d98   :  { %8402 = vsyncpa [#allocation3], 1 }

</bundles_post_ra>
